<compile_context>
chip_gen: v7x
topology: tpu7x:2x2x1
jax: 0.10.0
libtpu: 0.0.40
codegen_flags: <defaults>
</compile_context>

<pallas_src>
import jax
import jax.numpy as jnp
from jax import lax
from jax.experimental import pallas as pl
from jax.experimental.pallas import tpu as pltpu


# ----------------------------------------------------------------------------- kernel
def _repnet_fused_kernel(x_ref, w_ref, b_ref, o_ref, xp_ref, res_ref):
    """Whole-network forward for one batch element, fully resident in VMEM.

    x_ref   : (1, H, W, C)     input activation (obs channels zero-padded to C), f32
    w_ref   : (L, 9, C, C)     per-layer, per-tap conv weights, BN scale folded, bf16
    b_ref   : (L, 1, C)        per-layer folded BN bias, f32
    o_ref   : (1, H, W, C)     output hidden state, f32
    xp_ref  : (H+2, W+2, C)    VMEM scratch: zero-padded activation (SAME padding), f32
    res_ref : (H, W, C)        VMEM scratch: residual skip connection, f32
    """
    _, H, W, C = o_ref.shape
    L = w_ref.shape[0]
    num_blocks = (L - 1) // 2

    # Zero the padded scratch once per grid step: only the 1-px border must stay zero,
    # the interior is rewritten before every read.
    xp_ref[...] = jnp.zeros_like(xp_ref)

    def conv_bn_relu(act, layer, add_residual=False):
        """Fused 3x3 conv (stride 1, SAME) + folded BatchNorm + optional residual + ReLU."""
        # In-kernel SAME padding: write the activation into the interior of the scratch.
        xp_ref[1:H + 1, 1:W + 1, :] = act
        # 9 shifted-window matmuls, accumulated in f32 (bf16 operands on the MXU).
        acc = jnp.zeros((H * W, C), jnp.float32)
        for ky in range(3):
            for kx in range(3):
                tap = ky * 3 + kx
                win = xp_ref[ky:ky + H, kx:kx + W, :].reshape(H * W, C)
                acc = acc + jnp.dot(win.astype(jnp.bfloat16), w_ref[layer, tap],
                                    preferred_element_type=jnp.float32)
        y = (acc + b_ref[layer]).reshape(H, W, C)                  # folded BN bias
        if add_residual:                                           # trace-time specialization:
            y = y + res_ref[...]                                   # zero residual never built
        return jnp.maximum(y, 0.0)

    # Stem: conv -> BN -> ReLU
    act = conv_bn_relu(x_ref[0], 0)
    # Residual blocks: conv -> BN -> ReLU -> conv -> BN -> (+skip) -> ReLU
    for blk in range(num_blocks):
        res_ref[...] = act
        act = conv_bn_relu(act, 1 + 2 * blk)
        act = conv_bn_relu(act, 2 + 2 * blk, add_residual=True)

    o_ref[0] = act.astype(o_ref.dtype)


# --------------------------------------------------------------------------- params
def _fold_bn(gamma, beta, running_mean, running_var, eps=1e-5):
    scale = gamma / jnp.sqrt(running_var + eps)
    bias = beta - running_mean * scale
    return scale, bias


def init_params(key, obs_channels, num_channels, num_blocks):
    """Deterministic synthetic parameters matching the PyTorch module's shapes."""
    def conv_w(k, cin, cout):
        fan_in = 9 * cin                                  # HWIO layout, kaiming-ish scale
        return jax.random.normal(k, (3, 3, cin, cout), jnp.float32) * (2.0 / fan_in) ** 0.5

    def bn_params(k, c):
        k1, k2, k3, k4 = jax.random.split(k, 4)
        gamma = 1.0 + 0.1 * jax.random.normal(k1, (c,), jnp.float32)
        beta = 0.1 * jax.random.normal(k2, (c,), jnp.float32)
        rmean = 0.1 * jax.random.normal(k3, (c,), jnp.float32)
        rvar = 1.0 + 0.1 * jax.random.uniform(k4, (c,), jnp.float32)
        return _fold_bn(gamma, beta, rmean, rvar)         # inference-mode (running stats)

    keys = jax.random.split(key, 2 + 4 * num_blocks)
    params = {
        "stem_w": conv_w(keys[0], obs_channels, num_channels),
        "stem_scale_bias": bn_params(keys[1], num_channels),
        "blocks": [],
    }
    for b in range(num_blocks):
        kw1, kb1, kw2, kb2 = keys[2 + 4 * b: 6 + 4 * b]
        params["blocks"].append({
            "w1": conv_w(kw1, num_channels, num_channels),
            "sb1": bn_params(kb1, num_channels),
            "w2": conv_w(kw2, num_channels, num_channels),
            "sb2": bn_params(kb2, num_channels),
        })
    return params


def _prepare_folded_params(params):
    """Fold BN scale into conv weights, pad the stem's Cin up to C, stack all layers.

    Returns:
      w_stacked : (L, 9, C, C) bf16  per-tap weights (BN scale folded in)
      b_stacked : (L, 1, C)    f32   folded BN biases
      ws_hwio   : list of L (3,3,C,C) bf16 HWIO weights (for the lax.conv reference)
    """
    C = params["stem_w"].shape[-1]
    cin = params["stem_w"].shape[2]

    ws_hwio, biases = [], []

    def add_layer(w_hwio, scale, bias):
        ws_hwio.append((w_hwio * scale[None, None, None, :]).astype(jnp.bfloat16))
        biases.append(bias.astype(jnp.float32))

    stem_w = jnp.pad(params["stem_w"], ((0, 0), (0, 0), (0, C - cin), (0, 0)))
    s, b = params["stem_scale_bias"]
    add_layer(stem_w, s, b)
    for blk in params["blocks"]:
        s1, b1 = blk["sb1"]
        s2, b2 = blk["sb2"]
        add_layer(blk["w1"], s1, b1)
        add_layer(blk["w2"], s2, b2)

    w_stacked = jnp.stack([w.reshape(9, C, C) for w in ws_hwio])    # (L, 9, C, C) bf16
    b_stacked = jnp.stack([b.reshape(1, C) for b in biases])        # (L, 1, C) f32
    return w_stacked, b_stacked, ws_hwio


# -------------------------------------------------------------------------- forward
def representation_network_forward(x_nchw, params):
    """Pallas-backed forward (downsample=False path). Input/output NCHW like PyTorch."""
    # TODO(synk): downsample=True path (DownSample sub-net) is not implemented here.
    C = params["stem_w"].shape[-1]
    cin = params["stem_w"].shape[2]

    x = jnp.transpose(x_nchw, (0, 2, 3, 1)).astype(jnp.float32)     # NCHW -> NHWC
    x = jnp.pad(x, ((0, 0), (0, 0), (0, 0), (0, C - cin)))          # Cin -> C (zero chans)
    N, H, W, _ = x.shape

    w_stacked, b_stacked, _ = _prepare_folded_params(params)
    L = w_stacked.shape[0]

    grid_spec = pltpu.PrefetchScalarGridSpec(
        num_scalar_prefetch=0,
        grid=(N,),                                                  # one step per batch elem
        in_specs=[
            pl.BlockSpec((1, H, W, C), lambda n: (n, 0, 0, 0)),     # per-sample activation
            pl.BlockSpec((L, 9, C, C), lambda n: (0, 0, 0, 0)),     # all weights, fetched once
            pl.BlockSpec((L, 1, C), lambda n: (0, 0, 0)),           # all biases, fetched once
        ],
        out_specs=pl.BlockSpec((1, H, W, C), lambda n: (n, 0, 0, 0)),
        scratch_shapes=[
            pltpu.VMEM((H + 2, W + 2, C), jnp.float32),             # padded activation
            pltpu.VMEM((H, W, C), jnp.float32),                     # residual skip
        ],
    )

    out = pl.pallas_call(
        _repnet_fused_kernel,
        out_shape=jax.ShapeDtypeStruct((N, H, W, C), jnp.float32),
        grid_spec=grid_spec,
        compiler_params=pltpu.CompilerParams(
            dimension_semantics=("parallel",),                      # shards batch over 2 TCs on v7x
        ),
    )(x, w_stacked, b_stacked)

    return jnp.transpose(out, (0, 3, 1, 2))                         # NHWC -> NCHW


# ------------------------------------------------------------------------ reference
def reference_forward(x_nchw, params):
    """Pure-JAX reference with matching numerics (bf16 conv operands, f32 accumulation,
    folded inference-mode BatchNorm)."""
    w_stacked, b_stacked, ws_hwio = _prepare_folded_params(params)
    C = params["stem_w"].shape[-1]
    cin = params["stem_w"].shape[2]

    x = jnp.transpose(x_nchw, (0, 2, 3, 1)).astype(jnp.float32)
    x = jnp.pad(x, ((0, 0), (0, 0), (0, 0), (0, C - cin)))

    L = len(ws_hwio)
    num_blocks = (L - 1) // 2

    def layer(a, l, res=None):
        y = lax.conv_general_dilated(
            a.astype(jnp.bfloat16), ws_hwio[l], (1, 1), "SAME",
            dimension_numbers=("NHWC", "HWIO", "NHWC"),
            preferred_element_type=jnp.float32)
        y = y + b_stacked[l].reshape(-1)
        if res is not None:
            y = y + res
        return jnp.maximum(y, 0.0)

    act = layer(x, 0)
    for blk in range(num_blocks):
        res = act
        act = layer(act, 1 + 2 * blk)
        act = layer(act, 2 + 2 * blk, res)
    return jnp.transpose(act, (0, 3, 1, 2))


# ------------------------------------------------------------------------------ main
if __name__ == "__main__":
    # Shapes consistent with the module: observation_shape=[C=4, 16, 16],
    # num_channels=32, num_blocks=2, downsample=False, batch=2.
    key = jax.random.PRNGKey(0)
    k_x, k_p = jax.random.split(key)

    N, C_IN, H, W = 2, 4, 16, 16
    NUM_CHANNELS, NUM_BLOCKS = 32, 2

    x = jax.random.normal(k_x, (N, C_IN, H, W), jnp.float32)
    params = init_params(k_p, C_IN, NUM_CHANNELS, NUM_BLOCKS)

    fwd = jax.jit(representation_network_forward)
    out = jax.block_until_ready(fwd(x, params))
    ref = jax.block_until_ready(reference_forward(x, params))

    assert out.shape == (N, NUM_CHANNELS, H, W)
    assert jnp.allclose(out, ref, rtol=5e-3, atol=5e-3), "mismatch vs reference"

    print("KERNEL_OK")
</pallas_src>

<mosaic_0001>
module attributes {stable_mosaic.version = 11 : i64} {
  func.func @_repnet_fused_kernel(%arg0: i32, %arg1: memref<1x16x16x32xf32, #tpu.memory_space<vmem>>, %arg2: memref<5x9x32x32xbf16, #tpu.memory_space<vmem>>, %arg3: memref<5x1x32xf32, #tpu.memory_space<vmem>>, %arg4: memref<1x16x16x32xf32, #tpu.memory_space<vmem>>, %arg5: memref<18x18x32xf32, #tpu.memory_space<vmem>>, %arg6: memref<16x16x32xf32, #tpu.memory_space<vmem>>) attributes {dimension_semantics = [#tpu.dimension_semantics<parallel>], iteration_bounds = array<i64: 2>, scalar_prefetch = 0 : i64, scratch_operands = 2 : i64, tpu.core_type = #tpu.core_type<tc>, window_params = [{transform_indices = @transform_0, window_bounds = array<i64: 1, 16, 16, 32>}, {pipeline_mode = #tpu.pipeline_mode<synchronous>, transform_indices = @transform_1, window_bounds = array<i64: 5, 9, 32, 32>}, {pipeline_mode = #tpu.pipeline_mode<synchronous>, transform_indices = @transform_2, window_bounds = array<i64: 5, 1, 32>}, {transform_indices = @transform_3, window_bounds = array<i64: 1, 16, 16, 32>}]} {
    %cst = arith.constant 0.000000e+00 : f32
    %0 = vector.broadcast %cst : f32 to vector<18x18x32xf32>
    %c0 = arith.constant 0 : index
    %c0_0 = arith.constant 0 : index
    %c0_1 = arith.constant 0 : index
    %1 = vector.load %arg5[%c0, %c0_0, %c0_1] : memref<18x18x32xf32, #tpu.memory_space<vmem>>, vector<18x18x32xf32>
    tpu.vector_store %arg5[%c0, %c0_0, %c0_1], %0 {strides = array<i32>} : memref<18x18x32xf32, #tpu.memory_space<vmem>>, vector<18x18x32xf32>,
    %c0_2 = arith.constant 0 : index
    %c0_3 = arith.constant 0 : index
    %c0_4 = arith.constant 0 : index
    %c0_5 = arith.constant 0 : index
    %2 = vector.load %arg1[%c0_2, %c0_3, %c0_4, %c0_5] : memref<1x16x16x32xf32, #tpu.memory_space<vmem>>, vector<1x16x16x32xf32>
    %3 = vector.shape_cast %2 : vector<1x16x16x32xf32> to vector<16x16x32xf32>
    %c1 = arith.constant 1 : index
    %c1_6 = arith.constant 1 : index
    %c0_7 = arith.constant 0 : index
    %4 = vector.load %arg5[%c1, %c1_6, %c0_7] : memref<18x18x32xf32, #tpu.memory_space<vmem>>, vector<16x16x32xf32>
    tpu.vector_store %arg5[%c1, %c1_6, %c0_7], %3 {strides = array<i32>} : memref<18x18x32xf32, #tpu.memory_space<vmem>>, vector<16x16x32xf32>,
    %cst_8 = arith.constant 0.000000e+00 : f32
    %5 = vector.broadcast %cst_8 : f32 to vector<256x32xf32>
    %c0_9 = arith.constant 0 : index
    %c0_10 = arith.constant 0 : index
    %c0_11 = arith.constant 0 : index
    %6 = vector.load %arg5[%c0_9, %c0_10, %c0_11] : memref<18x18x32xf32, #tpu.memory_space<vmem>>, vector<16x16x32xf32>
    %7 = vector.shape_cast %6 : vector<16x16x32xf32> to vector<256x32xf32>
    %8 = arith.truncf %7 : vector<256x32xf32> to vector<256x32xbf16>
    %c0_12 = arith.constant 0 : index
    %c0_13 = arith.constant 0 : index
    %c0_14 = arith.constant 0 : index
    %c0_15 = arith.constant 0 : index
    %9 = vector.load %arg2[%c0_12, %c0_13, %c0_14, %c0_15] : memref<5x9x32x32xbf16, #tpu.memory_space<vmem>>, vector<1x1x32x32xbf16>
    %10 = vector.shape_cast %9 : vector<1x1x32x32xbf16> to vector<32x32xbf16>
    %cst_16 = arith.constant dense<0.000000e+00> : vector<256x32xf32>
    %11 = tpu.matmul %8, %10, %cst_16 {dimension_numbers = #tpu.dot_dimension_numbers<[1], [0], [0], [1], [0, 0, 1, 1], [], []>} : vector<256x32xbf16>, vector<32x32xbf16>, vector<256x32xf32> -> vector<256x32xf32>
    %12 = arith.addf %5, %11 : vector<256x32xf32>
    %c0_17 = arith.constant 0 : index
    %c1_18 = arith.constant 1 : index
    %c0_19 = arith.constant 0 : index
    %13 = vector.load %arg5[%c0_17, %c1_18, %c0_19] : memref<18x18x32xf32, #tpu.memory_space<vmem>>, vector<16x16x32xf32>
    %14 = vector.shape_cast %13 : vector<16x16x32xf32> to vector<256x32xf32>
    %15 = arith.truncf %14 : vector<256x32xf32> to vector<256x32xbf16>
    %c0_20 = arith.constant 0 : index
    %c1_21 = arith.constant 1 : index
    %c0_22 = arith.constant 0 : index
    %c0_23 = arith.constant 0 : index
    %16 = vector.load %arg2[%c0_20, %c1_21, %c0_22, %c0_23] : memref<5x9x32x32xbf16, #tpu.memory_space<vmem>>, vector<1x1x32x32xbf16>
    %17 = vector.shape_cast %16 : vector<1x1x32x32xbf16> to vector<32x32xbf16>
    %cst_24 = arith.constant dense<0.000000e+00> : vector<256x32xf32>
    %18 = tpu.matmul %15, %17, %cst_24 {dimension_numbers = #tpu.dot_dimension_numbers<[1], [0], [0], [1], [0, 0, 1, 1], [], []>} : vector<256x32xbf16>, vector<32x32xbf16>, vector<256x32xf32> -> vector<256x32xf32>
    %19 = arith.addf %12, %18 : vector<256x32xf32>
    %c0_25 = arith.constant 0 : index
    %c2 = arith.constant 2 : index
    %c0_26 = arith.constant 0 : index
    %20 = vector.load %arg5[%c0_25, %c2, %c0_26] : memref<18x18x32xf32, #tpu.memory_space<vmem>>, vector<16x16x32xf32>
    %21 = vector.shape_cast %20 : vector<16x16x32xf32> to vector<256x32xf32>
    %22 = arith.truncf %21 : vector<256x32xf32> to vector<256x32xbf16>
    %c0_27 = arith.constant 0 : index
    %c2_28 = arith.constant 2 : index
    %c0_29 = arith.constant 0 : index
    %c0_30 = arith.constant 0 : index
    %23 = vector.load %arg2[%c0_27, %c2_28, %c0_29, %c0_30] : memref<5x9x32x32xbf16, #tpu.memory_space<vmem>>, vector<1x1x32x32xbf16>
    %24 = vector.shape_cast %23 : vector<1x1x32x32xbf16> to vector<32x32xbf16>
    %cst_31 = arith.constant dense<0.000000e+00> : vector<256x32xf32>
    %25 = tpu.matmul %22, %24, %cst_31 {dimension_numbers = #tpu.dot_dimension_numbers<[1], [0], [0], [1], [0, 0, 1, 1], [], []>} : vector<256x32xbf16>, vector<32x32xbf16>, vector<256x32xf32> -> vector<256x32xf32>
    %26 = arith.addf %19, %25 : vector<256x32xf32>
    %c1_32 = arith.constant 1 : index
    %c0_33 = arith.constant 0 : index
    %c0_34 = arith.constant 0 : index
    %27 = vector.load %arg5[%c1_32, %c0_33, %c0_34] : memref<18x18x32xf32, #tpu.memory_space<vmem>>, vector<16x16x32xf32>
    %28 = vector.shape_cast %27 : vector<16x16x32xf32> to vector<256x32xf32>
    %29 = arith.truncf %28 : vector<256x32xf32> to vector<256x32xbf16>
    %c0_35 = arith.constant 0 : index
    %c3 = arith.constant 3 : index
    %c0_36 = arith.constant 0 : index
    %c0_37 = arith.constant 0 : index
    %30 = vector.load %arg2[%c0_35, %c3, %c0_36, %c0_37] : memref<5x9x32x32xbf16, #tpu.memory_space<vmem>>, vector<1x1x32x32xbf16>
    %31 = vector.shape_cast %30 : vector<1x1x32x32xbf16> to vector<32x32xbf16>
    %cst_38 = arith.constant dense<0.000000e+00> : vector<256x32xf32>
    %32 = tpu.matmul %29, %31, %cst_38 {dimension_numbers = #tpu.dot_dimension_numbers<[1], [0], [0], [1], [0, 0, 1, 1], [], []>} : vector<256x32xbf16>, vector<32x32xbf16>, vector<256x32xf32> -> vector<256x32xf32>
    %33 = arith.addf %26, %32 : vector<256x32xf32>
    %c1_39 = arith.constant 1 : index
    %c1_40 = arith.constant 1 : index
    %c0_41 = arith.constant 0 : index
    %34 = vector.load %arg5[%c1_39, %c1_40, %c0_41] : memref<18x18x32xf32, #tpu.memory_space<vmem>>, vector<16x16x32xf32>
    %35 = vector.shape_cast %34 : vector<16x16x32xf32> to vector<256x32xf32>
    %36 = arith.truncf %35 : vector<256x32xf32> to vector<256x32xbf16>
    %c0_42 = arith.constant 0 : index
    %c4 = arith.constant 4 : index
    %c0_43 = arith.constant 0 : index
    %c0_44 = arith.constant 0 : index
    %37 = vector.load %arg2[%c0_42, %c4, %c0_43, %c0_44] : memref<5x9x32x32xbf16, #tpu.memory_space<vmem>>, vector<1x1x32x32xbf16>
    %38 = vector.shape_cast %37 : vector<1x1x32x32xbf16> to vector<32x32xbf16>
    %cst_45 = arith.constant dense<0.000000e+00> : vector<256x32xf32>
    %39 = tpu.matmul %36, %38, %cst_45 {dimension_numbers = #tpu.dot_dimension_numbers<[1], [0], [0], [1], [0, 0, 1, 1], [], []>} : vector<256x32xbf16>, vector<32x32xbf16>, vector<256x32xf32> -> vector<256x32xf32>
    %40 = arith.addf %33, %39 : vector<256x32xf32>
    %c1_46 = arith.constant 1 : index
    %c2_47 = arith.constant 2 : index
    %c0_48 = arith.constant 0 : index
    %41 = vector.load %arg5[%c1_46, %c2_47, %c0_48] : memref<18x18x32xf32, #tpu.memory_space<vmem>>, vector<16x16x32xf32>
    %42 = vector.shape_cast %41 : vector<16x16x32xf32> to vector<256x32xf32>
    %43 = arith.truncf %42 : vector<256x32xf32> to vector<256x32xbf16>
    %c0_49 = arith.constant 0 : index
    %c5 = arith.constant 5 : index
    %c0_50 = arith.constant 0 : index
    %c0_51 = arith.constant 0 : index
    %44 = vector.load %arg2[%c0_49, %c5, %c0_50, %c0_51] : memref<5x9x32x32xbf16, #tpu.memory_space<vmem>>, vector<1x1x32x32xbf16>
    %45 = vector.shape_cast %44 : vector<1x1x32x32xbf16> to vector<32x32xbf16>
    %cst_52 = arith.constant dense<0.000000e+00> : vector<256x32xf32>
    %46 = tpu.matmul %43, %45, %cst_52 {dimension_numbers = #tpu.dot_dimension_numbers<[1], [0], [0], [1], [0, 0, 1, 1], [], []>} : vector<256x32xbf16>, vector<32x32xbf16>, vector<256x32xf32> -> vector<256x32xf32>
    %47 = arith.addf %40, %46 : vector<256x32xf32>
    %c2_53 = arith.constant 2 : index
    %c0_54 = arith.constant 0 : index
    %c0_55 = arith.constant 0 : index
    %48 = vector.load %arg5[%c2_53, %c0_54, %c0_55] : memref<18x18x32xf32, #tpu.memory_space<vmem>>, vector<16x16x32xf32>
    %49 = vector.shape_cast %48 : vector<16x16x32xf32> to vector<256x32xf32>
    %50 = arith.truncf %49 : vector<256x32xf32> to vector<256x32xbf16>
    %c0_56 = arith.constant 0 : index
    %c6 = arith.constant 6 : index
    %c0_57 = arith.constant 0 : index
    %c0_58 = arith.constant 0 : index
    %51 = vector.load %arg2[%c0_56, %c6, %c0_57, %c0_58] : memref<5x9x32x32xbf16, #tpu.memory_space<vmem>>, vector<1x1x32x32xbf16>
    %52 = vector.shape_cast %51 : vector<1x1x32x32xbf16> to vector<32x32xbf16>
    %cst_59 = arith.constant dense<0.000000e+00> : vector<256x32xf32>
    %53 = tpu.matmul %50, %52, %cst_59 {dimension_numbers = #tpu.dot_dimension_numbers<[1], [0], [0], [1], [0, 0, 1, 1], [], []>} : vector<256x32xbf16>, vector<32x32xbf16>, vector<256x32xf32> -> vector<256x32xf32>
    %54 = arith.addf %47, %53 : vector<256x32xf32>
    %c2_60 = arith.constant 2 : index
    %c1_61 = arith.constant 1 : index
    %c0_62 = arith.constant 0 : index
    %55 = vector.load %arg5[%c2_60, %c1_61, %c0_62] : memref<18x18x32xf32, #tpu.memory_space<vmem>>, vector<16x16x32xf32>
    %56 = vector.shape_cast %55 : vector<16x16x32xf32> to vector<256x32xf32>
    %57 = arith.truncf %56 : vector<256x32xf32> to vector<256x32xbf16>
    %c0_63 = arith.constant 0 : index
    %c7 = arith.constant 7 : index
    %c0_64 = arith.constant 0 : index
    %c0_65 = arith.constant 0 : index
    %58 = vector.load %arg2[%c0_63, %c7, %c0_64, %c0_65] : memref<5x9x32x32xbf16, #tpu.memory_space<vmem>>, vector<1x1x32x32xbf16>
    %59 = vector.shape_cast %58 : vector<1x1x32x32xbf16> to vector<32x32xbf16>
    %cst_66 = arith.constant dense<0.000000e+00> : vector<256x32xf32>
    %60 = tpu.matmul %57, %59, %cst_66 {dimension_numbers = #tpu.dot_dimension_numbers<[1], [0], [0], [1], [0, 0, 1, 1], [], []>} : vector<256x32xbf16>, vector<32x32xbf16>, vector<256x32xf32> -> vector<256x32xf32>
    %61 = arith.addf %54, %60 : vector<256x32xf32>
    %c2_67 = arith.constant 2 : index
    %c2_68 = arith.constant 2 : index
    %c0_69 = arith.constant 0 : index
    %62 = vector.load %arg5[%c2_67, %c2_68, %c0_69] : memref<18x18x32xf32, #tpu.memory_space<vmem>>, vector<16x16x32xf32>
    %63 = vector.shape_cast %62 : vector<16x16x32xf32> to vector<256x32xf32>
    %64 = arith.truncf %63 : vector<256x32xf32> to vector<256x32xbf16>
    %c0_70 = arith.constant 0 : index
    %c8 = arith.constant 8 : index
    %c0_71 = arith.constant 0 : index
    %c0_72 = arith.constant 0 : index
    %65 = vector.load %arg2[%c0_70, %c8, %c0_71, %c0_72] : memref<5x9x32x32xbf16, #tpu.memory_space<vmem>>, vector<1x1x32x32xbf16>
    %66 = vector.shape_cast %65 : vector<1x1x32x32xbf16> to vector<32x32xbf16>
    %cst_73 = arith.constant dense<0.000000e+00> : vector<256x32xf32>
    %67 = tpu.matmul %64, %66, %cst_73 {dimension_numbers = #tpu.dot_dimension_numbers<[1], [0], [0], [1], [0, 0, 1, 1], [], []>} : vector<256x32xbf16>, vector<32x32xbf16>, vector<256x32xf32> -> vector<256x32xf32>
    %68 = arith.addf %61, %67 : vector<256x32xf32>
    %c0_74 = arith.constant 0 : index
    %c0_75 = arith.constant 0 : index
    %c0_76 = arith.constant 0 : index
    %69 = vector.load %arg3[%c0_74, %c0_75, %c0_76] : memref<5x1x32xf32, #tpu.memory_space<vmem>>, vector<1x1x32xf32>
    %70 = vector.shape_cast %69 : vector<1x1x32xf32> to vector<1x32xf32>
    %71 = vector.broadcast %70 : vector<1x32xf32> to vector<256x32xf32>
    %72 = arith.addf %68, %71 : vector<256x32xf32>
    %73 = vector.shape_cast %72 : vector<256x32xf32> to vector<16x16x32xf32>
    %cst_77 = arith.constant 0.000000e+00 : f32
    %74 = vector.broadcast %cst_77 : f32 to vector<16x16x32xf32>
    %75 = arith.maximumf %73, %74 : vector<16x16x32xf32>
    %c0_78 = arith.constant 0 : index
    %c0_79 = arith.constant 0 : index
    %c0_80 = arith.constant 0 : index
    %76 = vector.load %arg6[%c0_78, %c0_79, %c0_80] : memref<16x16x32xf32, #tpu.memory_space<vmem>>, vector<16x16x32xf32>
    tpu.vector_store %arg6[%c0_78, %c0_79, %c0_80], %75 {strides = array<i32>} : memref<16x16x32xf32, #tpu.memory_space<vmem>>, vector<16x16x32xf32>,
    %c1_81 = arith.constant 1 : index
    %c1_82 = arith.constant 1 : index
    %c0_83 = arith.constant 0 : index
    %77 = vector.load %arg5[%c1_81, %c1_82, %c0_83] : memref<18x18x32xf32, #tpu.memory_space<vmem>>, vector<16x16x32xf32>
    tpu.vector_store %arg5[%c1_81, %c1_82, %c0_83], %75 {strides = array<i32>} : memref<18x18x32xf32, #tpu.memory_space<vmem>>, vector<16x16x32xf32>,
    %cst_84 = arith.constant 0.000000e+00 : f32
    %78 = vector.broadcast %cst_84 : f32 to vector<256x32xf32>
    %c0_85 = arith.constant 0 : index
    %c0_86 = arith.constant 0 : index
    %c0_87 = arith.constant 0 : index
    %79 = vector.load %arg5[%c0_85, %c0_86, %c0_87] : memref<18x18x32xf32, #tpu.memory_space<vmem>>, vector<16x16x32xf32>
    %80 = vector.shape_cast %79 : vector<16x16x32xf32> to vector<256x32xf32>
    %81 = arith.truncf %80 : vector<256x32xf32> to vector<256x32xbf16>
    %c1_88 = arith.constant 1 : index
    %c0_89 = arith.constant 0 : index
    %c0_90 = arith.constant 0 : index
    %c0_91 = arith.constant 0 : index
    %82 = vector.load %arg2[%c1_88, %c0_89, %c0_90, %c0_91] : memref<5x9x32x32xbf16, #tpu.memory_space<vmem>>, vector<1x1x32x32xbf16>
    %83 = vector.shape_cast %82 : vector<1x1x32x32xbf16> to vector<32x32xbf16>
    %cst_92 = arith.constant dense<0.000000e+00> : vector<256x32xf32>
    %84 = tpu.matmul %81, %83, %cst_92 {dimension_numbers = #tpu.dot_dimension_numbers<[1], [0], [0], [1], [0, 0, 1, 1], [], []>} : vector<256x32xbf16>, vector<32x32xbf16>, vector<256x32xf32> -> vector<256x32xf32>
    %85 = arith.addf %78, %84 : vector<256x32xf32>
    %c0_93 = arith.constant 0 : index
    %c1_94 = arith.constant 1 : index
    %c0_95 = arith.constant 0 : index
    %86 = vector.load %arg5[%c0_93, %c1_94, %c0_95] : memref<18x18x32xf32, #tpu.memory_space<vmem>>, vector<16x16x32xf32>
    %87 = vector.shape_cast %86 : vector<16x16x32xf32> to vector<256x32xf32>
    %88 = arith.truncf %87 : vector<256x32xf32> to vector<256x32xbf16>
    %c1_96 = arith.constant 1 : index
    %c1_97 = arith.constant 1 : index
    %c0_98 = arith.constant 0 : index
    %c0_99 = arith.constant 0 : index
    %89 = vector.load %arg2[%c1_96, %c1_97, %c0_98, %c0_99] : memref<5x9x32x32xbf16, #tpu.memory_space<vmem>>, vector<1x1x32x32xbf16>
    %90 = vector.shape_cast %89 : vector<1x1x32x32xbf16> to vector<32x32xbf16>
    %cst_100 = arith.constant dense<0.000000e+00> : vector<256x32xf32>
    %91 = tpu.matmul %88, %90, %cst_100 {dimension_numbers = #tpu.dot_dimension_numbers<[1], [0], [0], [1], [0, 0, 1, 1], [], []>} : vector<256x32xbf16>, vector<32x32xbf16>, vector<256x32xf32> -> vector<256x32xf32>
    %92 = arith.addf %85, %91 : vector<256x32xf32>
    %c0_101 = arith.constant 0 : index
    %c2_102 = arith.constant 2 : index
    %c0_103 = arith.constant 0 : index
    %93 = vector.load %arg5[%c0_101, %c2_102, %c0_103] : memref<18x18x32xf32, #tpu.memory_space<vmem>>, vector<16x16x32xf32>
    %94 = vector.shape_cast %93 : vector<16x16x32xf32> to vector<256x32xf32>
    %95 = arith.truncf %94 : vector<256x32xf32> to vector<256x32xbf16>
    %c1_104 = arith.constant 1 : index
    %c2_105 = arith.constant 2 : index
    %c0_106 = arith.constant 0 : index
    %c0_107 = arith.constant 0 : index
    %96 = vector.load %arg2[%c1_104, %c2_105, %c0_106, %c0_107] : memref<5x9x32x32xbf16, #tpu.memory_space<vmem>>, vector<1x1x32x32xbf16>
    %97 = vector.shape_cast %96 : vector<1x1x32x32xbf16> to vector<32x32xbf16>
    %cst_108 = arith.constant dense<0.000000e+00> : vector<256x32xf32>
    %98 = tpu.matmul %95, %97, %cst_108 {dimension_numbers = #tpu.dot_dimension_numbers<[1], [0], [0], [1], [0, 0, 1, 1], [], []>} : vector<256x32xbf16>, vector<32x32xbf16>, vector<256x32xf32> -> vector<256x32xf32>
    %99 = arith.addf %92, %98 : vector<256x32xf32>
    %c1_109 = arith.constant 1 : index
    %c0_110 = arith.constant 0 : index
    %c0_111 = arith.constant 0 : index
    %100 = vector.load %arg5[%c1_109, %c0_110, %c0_111] : memref<18x18x32xf32, #tpu.memory_space<vmem>>, vector<16x16x32xf32>
    %101 = vector.shape_cast %100 : vector<16x16x32xf32> to vector<256x32xf32>
    %102 = arith.truncf %101 : vector<256x32xf32> to vector<256x32xbf16>
    %c1_112 = arith.constant 1 : index
    %c3_113 = arith.constant 3 : index
    %c0_114 = arith.constant 0 : index
    %c0_115 = arith.constant 0 : index
    %103 = vector.load %arg2[%c1_112, %c3_113, %c0_114, %c0_115] : memref<5x9x32x32xbf16, #tpu.memory_space<vmem>>, vector<1x1x32x32xbf16>
    %104 = vector.shape_cast %103 : vector<1x1x32x32xbf16> to vector<32x32xbf16>
    %cst_116 = arith.constant dense<0.000000e+00> : vector<256x32xf32>
    %105 = tpu.matmul %102, %104, %cst_116 {dimension_numbers = #tpu.dot_dimension_numbers<[1], [0], [0], [1], [0, 0, 1, 1], [], []>} : vector<256x32xbf16>, vector<32x32xbf16>, vector<256x32xf32> -> vector<256x32xf32>
    %106 = arith.addf %99, %105 : vector<256x32xf32>
    %c1_117 = arith.constant 1 : index
    %c1_118 = arith.constant 1 : index
    %c0_119 = arith.constant 0 : index
    %107 = vector.load %arg5[%c1_117, %c1_118, %c0_119] : memref<18x18x32xf32, #tpu.memory_space<vmem>>, vector<16x16x32xf32>
    %108 = vector.shape_cast %107 : vector<16x16x32xf32> to vector<256x32xf32>
    %109 = arith.truncf %108 : vector<256x32xf32> to vector<256x32xbf16>
    %c1_120 = arith.constant 1 : index
    %c4_121 = arith.constant 4 : index
    %c0_122 = arith.constant 0 : index
    %c0_123 = arith.constant 0 : index
    %110 = vector.load %arg2[%c1_120, %c4_121, %c0_122, %c0_123] : memref<5x9x32x32xbf16, #tpu.memory_space<vmem>>, vector<1x1x32x32xbf16>
    %111 = vector.shape_cast %110 : vector<1x1x32x32xbf16> to vector<32x32xbf16>
    %cst_124 = arith.constant dense<0.000000e+00> : vector<256x32xf32>
    %112 = tpu.matmul %109, %111, %cst_124 {dimension_numbers = #tpu.dot_dimension_numbers<[1], [0], [0], [1], [0, 0, 1, 1], [], []>} : vector<256x32xbf16>, vector<32x32xbf16>, vector<256x32xf32> -> vector<256x32xf32>
    %113 = arith.addf %106, %112 : vector<256x32xf32>
    %c1_125 = arith.constant 1 : index
    %c2_126 = arith.constant 2 : index
    %c0_127 = arith.constant 0 : index
    %114 = vector.load %arg5[%c1_125, %c2_126, %c0_127] : memref<18x18x32xf32, #tpu.memory_space<vmem>>, vector<16x16x32xf32>
    %115 = vector.shape_cast %114 : vector<16x16x32xf32> to vector<256x32xf32>
    %116 = arith.truncf %115 : vector<256x32xf32> to vector<256x32xbf16>
    %c1_128 = arith.constant 1 : index
    %c5_129 = arith.constant 5 : index
    %c0_130 = arith.constant 0 : index
    %c0_131 = arith.constant 0 : index
    %117 = vector.load %arg2[%c1_128, %c5_129, %c0_130, %c0_131] : memref<5x9x32x32xbf16, #tpu.memory_space<vmem>>, vector<1x1x32x32xbf16>
    %118 = vector.shape_cast %117 : vector<1x1x32x32xbf16> to vector<32x32xbf16>
    %cst_132 = arith.constant dense<0.000000e+00> : vector<256x32xf32>
    %119 = tpu.matmul %116, %118, %cst_132 {dimension_numbers = #tpu.dot_dimension_numbers<[1], [0], [0], [1], [0, 0, 1, 1], [], []>} : vector<256x32xbf16>, vector<32x32xbf16>, vector<256x32xf32> -> vector<256x32xf32>
    %120 = arith.addf %113, %119 : vector<256x32xf32>
    %c2_133 = arith.constant 2 : index
    %c0_134 = arith.constant 0 : index
    %c0_135 = arith.constant 0 : index
    %121 = vector.load %arg5[%c2_133, %c0_134, %c0_135] : memref<18x18x32xf32, #tpu.memory_space<vmem>>, vector<16x16x32xf32>
    %122 = vector.shape_cast %121 : vector<16x16x32xf32> to vector<256x32xf32>
    %123 = arith.truncf %122 : vector<256x32xf32> to vector<256x32xbf16>
    %c1_136 = arith.constant 1 : index
    %c6_137 = arith.constant 6 : index
    %c0_138 = arith.constant 0 : index
    %c0_139 = arith.constant 0 : index
    %124 = vector.load %arg2[%c1_136, %c6_137, %c0_138, %c0_139] : memref<5x9x32x32xbf16, #tpu.memory_space<vmem>>, vector<1x1x32x32xbf16>
    %125 = vector.shape_cast %124 : vector<1x1x32x32xbf16> to vector<32x32xbf16>
    %cst_140 = arith.constant dense<0.000000e+00> : vector<256x32xf32>
    %126 = tpu.matmul %123, %125, %cst_140 {dimension_numbers = #tpu.dot_dimension_numbers<[1], [0], [0], [1], [0, 0, 1, 1], [], []>} : vector<256x32xbf16>, vector<32x32xbf16>, vector<256x32xf32> -> vector<256x32xf32>
    %127 = arith.addf %120, %126 : vector<256x32xf32>
    %c2_141 = arith.constant 2 : index
    %c1_142 = arith.constant 1 : index
    %c0_143 = arith.constant 0 : index
    %128 = vector.load %arg5[%c2_141, %c1_142, %c0_143] : memref<18x18x32xf32, #tpu.memory_space<vmem>>, vector<16x16x32xf32>
    %129 = vector.shape_cast %128 : vector<16x16x32xf32> to vector<256x32xf32>
    %130 = arith.truncf %129 : vector<256x32xf32> to vector<256x32xbf16>
    %c1_144 = arith.constant 1 : index
    %c7_145 = arith.constant 7 : index
    %c0_146 = arith.constant 0 : index
    %c0_147 = arith.constant 0 : index
    %131 = vector.load %arg2[%c1_144, %c7_145, %c0_146, %c0_147] : memref<5x9x32x32xbf16, #tpu.memory_space<vmem>>, vector<1x1x32x32xbf16>
    %132 = vector.shape_cast %131 : vector<1x1x32x32xbf16> to vector<32x32xbf16>
    %cst_148 = arith.constant dense<0.000000e+00> : vector<256x32xf32>
    %133 = tpu.matmul %130, %132, %cst_148 {dimension_numbers = #tpu.dot_dimension_numbers<[1], [0], [0], [1], [0, 0, 1, 1], [], []>} : vector<256x32xbf16>, vector<32x32xbf16>, vector<256x32xf32> -> vector<256x32xf32>
    %134 = arith.addf %127, %133 : vector<256x32xf32>
    %c2_149 = arith.constant 2 : index
    %c2_150 = arith.constant 2 : index
    %c0_151 = arith.constant 0 : index
    %135 = vector.load %arg5[%c2_149, %c2_150, %c0_151] : memref<18x18x32xf32, #tpu.memory_space<vmem>>, vector<16x16x32xf32>
    %136 = vector.shape_cast %135 : vector<16x16x32xf32> to vector<256x32xf32>
    %137 = arith.truncf %136 : vector<256x32xf32> to vector<256x32xbf16>
    %c1_152 = arith.constant 1 : index
    %c8_153 = arith.constant 8 : index
    %c0_154 = arith.constant 0 : index
    %c0_155 = arith.constant 0 : index
    %138 = vector.load %arg2[%c1_152, %c8_153, %c0_154, %c0_155] : memref<5x9x32x32xbf16, #tpu.memory_space<vmem>>, vector<1x1x32x32xbf16>
    %139 = vector.shape_cast %138 : vector<1x1x32x32xbf16> to vector<32x32xbf16>
    %cst_156 = arith.constant dense<0.000000e+00> : vector<256x32xf32>
    %140 = tpu.matmul %137, %139, %cst_156 {dimension_numbers = #tpu.dot_dimension_numbers<[1], [0], [0], [1], [0, 0, 1, 1], [], []>} : vector<256x32xbf16>, vector<32x32xbf16>, vector<256x32xf32> -> vector<256x32xf32>
    %141 = arith.addf %134, %140 : vector<256x32xf32>
    %c1_157 = arith.constant 1 : index
    %c0_158 = arith.constant 0 : index
    %c0_159 = arith.constant 0 : index
    %142 = vector.load %arg3[%c1_157, %c0_158, %c0_159] : memref<5x1x32xf32, #tpu.memory_space<vmem>>, vector<1x1x32xf32>
    %143 = vector.shape_cast %142 : vector<1x1x32xf32> to vector<1x32xf32>
    %144 = vector.broadcast %143 : vector<1x32xf32> to vector<256x32xf32>
    %145 = arith.addf %141, %144 : vector<256x32xf32>
    %146 = vector.shape_cast %145 : vector<256x32xf32> to vector<16x16x32xf32>
    %cst_160 = arith.constant 0.000000e+00 : f32
    %147 = vector.broadcast %cst_160 : f32 to vector<16x16x32xf32>
    %148 = arith.maximumf %146, %147 : vector<16x16x32xf32>
    %c1_161 = arith.constant 1 : index
    %c1_162 = arith.constant 1 : index
    %c0_163 = arith.constant 0 : index
    %149 = vector.load %arg5[%c1_161, %c1_162, %c0_163] : memref<18x18x32xf32, #tpu.memory_space<vmem>>, vector<16x16x32xf32>
    tpu.vector_store %arg5[%c1_161, %c1_162, %c0_163], %148 {strides = array<i32>} : memref<18x18x32xf32, #tpu.memory_space<vmem>>, vector<16x16x32xf32>,
    %cst_164 = arith.constant 0.000000e+00 : f32
    %150 = vector.broadcast %cst_164 : f32 to vector<256x32xf32>
    %c0_165 = arith.constant 0 : index
    %c0_166 = arith.constant 0 : index
    %c0_167 = arith.constant 0 : index
    %151 = vector.load %arg5[%c0_165, %c0_166, %c0_167] : memref<18x18x32xf32, #tpu.memory_space<vmem>>, vector<16x16x32xf32>
    %152 = vector.shape_cast %151 : vector<16x16x32xf32> to vector<256x32xf32>
    %153 = arith.truncf %152 : vector<256x32xf32> to vector<256x32xbf16>
    %c2_168 = arith.constant 2 : index
    %c0_169 = arith.constant 0 : index
    %c0_170 = arith.constant 0 : index
    %c0_171 = arith.constant 0 : index
    %154 = vector.load %arg2[%c2_168, %c0_169, %c0_170, %c0_171] : memref<5x9x32x32xbf16, #tpu.memory_space<vmem>>, vector<1x1x32x32xbf16>
    %155 = vector.shape_cast %154 : vector<1x1x32x32xbf16> to vector<32x32xbf16>
    %cst_172 = arith.constant dense<0.000000e+00> : vector<256x32xf32>
    %156 = tpu.matmul %153, %155, %cst_172 {dimension_numbers = #tpu.dot_dimension_numbers<[1], [0], [0], [1], [0, 0, 1, 1], [], []>} : vector<256x32xbf16>, vector<32x32xbf16>, vector<256x32xf32> -> vector<256x32xf32>
    %157 = arith.addf %150, %156 : vector<256x32xf32>
    %c0_173 = arith.constant 0 : index
    %c1_174 = arith.constant 1 : index
    %c0_175 = arith.constant 0 : index
    %158 = vector.load %arg5[%c0_173, %c1_174, %c0_175] : memref<18x18x32xf32, #tpu.memory_space<vmem>>, vector<16x16x32xf32>
    %159 = vector.shape_cast %158 : vector<16x16x32xf32> to vector<256x32xf32>
    %160 = arith.truncf %159 : vector<256x32xf32> to vector<256x32xbf16>
    %c2_176 = arith.constant 2 : index
    %c1_177 = arith.constant 1 : index
    %c0_178 = arith.constant 0 : index
    %c0_179 = arith.constant 0 : index
    %161 = vector.load %arg2[%c2_176, %c1_177, %c0_178, %c0_179] : memref<5x9x32x32xbf16, #tpu.memory_space<vmem>>, vector<1x1x32x32xbf16>
    %162 = vector.shape_cast %161 : vector<1x1x32x32xbf16> to vector<32x32xbf16>
    %cst_180 = arith.constant dense<0.000000e+00> : vector<256x32xf32>
    %163 = tpu.matmul %160, %162, %cst_180 {dimension_numbers = #tpu.dot_dimension_numbers<[1], [0], [0], [1], [0, 0, 1, 1], [], []>} : vector<256x32xbf16>, vector<32x32xbf16>, vector<256x32xf32> -> vector<256x32xf32>
    %164 = arith.addf %157, %163 : vector<256x32xf32>
    %c0_181 = arith.constant 0 : index
    %c2_182 = arith.constant 2 : index
    %c0_183 = arith.constant 0 : index
    %165 = vector.load %arg5[%c0_181, %c2_182, %c0_183] : memref<18x18x32xf32, #tpu.memory_space<vmem>>, vector<16x16x32xf32>
    %166 = vector.shape_cast %165 : vector<16x16x32xf32> to vector<256x32xf32>
    %167 = arith.truncf %166 : vector<256x32xf32> to vector<256x32xbf16>
    %c2_184 = arith.constant 2 : index
    %c2_185 = arith.constant 2 : index
    %c0_186 = arith.constant 0 : index
    %c0_187 = arith.constant 0 : index
    %168 = vector.load %arg2[%c2_184, %c2_185, %c0_186, %c0_187] : memref<5x9x32x32xbf16, #tpu.memory_space<vmem>>, vector<1x1x32x32xbf16>
    %169 = vector.shape_cast %168 : vector<1x1x32x32xbf16> to vector<32x32xbf16>
    %cst_188 = arith.constant dense<0.000000e+00> : vector<256x32xf32>
    %170 = tpu.matmul %167, %169, %cst_188 {dimension_numbers = #tpu.dot_dimension_numbers<[1], [0], [0], [1], [0, 0, 1, 1], [], []>} : vector<256x32xbf16>, vector<32x32xbf16>, vector<256x32xf32> -> vector<256x32xf32>
    %171 = arith.addf %164, %170 : vector<256x32xf32>
    %c1_189 = arith.constant 1 : index
    %c0_190 = arith.constant 0 : index
    %c0_191 = arith.constant 0 : index
    %172 = vector.load %arg5[%c1_189, %c0_190, %c0_191] : memref<18x18x32xf32, #tpu.memory_space<vmem>>, vector<16x16x32xf32>
    %173 = vector.shape_cast %172 : vector<16x16x32xf32> to vector<256x32xf32>
    %174 = arith.truncf %173 : vector<256x32xf32> to vector<256x32xbf16>
    %c2_192 = arith.constant 2 : index
    %c3_193 = arith.constant 3 : index
    %c0_194 = arith.constant 0 : index
    %c0_195 = arith.constant 0 : index
    %175 = vector.load %arg2[%c2_192, %c3_193, %c0_194, %c0_195] : memref<5x9x32x32xbf16, #tpu.memory_space<vmem>>, vector<1x1x32x32xbf16>
    %176 = vector.shape_cast %175 : vector<1x1x32x32xbf16> to vector<32x32xbf16>
    %cst_196 = arith.constant dense<0.000000e+00> : vector<256x32xf32>
    %177 = tpu.matmul %174, %176, %cst_196 {dimension_numbers = #tpu.dot_dimension_numbers<[1], [0], [0], [1], [0, 0, 1, 1], [], []>} : vector<256x32xbf16>, vector<32x32xbf16>, vector<256x32xf32> -> vector<256x32xf32>
    %178 = arith.addf %171, %177 : vector<256x32xf32>
    %c1_197 = arith.constant 1 : index
    %c1_198 = arith.constant 1 : index
    %c0_199 = arith.constant 0 : index
    %179 = vector.load %arg5[%c1_197, %c1_198, %c0_199] : memref<18x18x32xf32, #tpu.memory_space<vmem>>, vector<16x16x32xf32>
    %180 = vector.shape_cast %179 : vector<16x16x32xf32> to vector<256x32xf32>
    %181 = arith.truncf %180 : vector<256x32xf32> to vector<256x32xbf16>
    %c2_200 = arith.constant 2 : index
    %c4_201 = arith.constant 4 : index
    %c0_202 = arith.constant 0 : index
    %c0_203 = arith.constant 0 : index
    %182 = vector.load %arg2[%c2_200, %c4_201, %c0_202, %c0_203] : memref<5x9x32x32xbf16, #tpu.memory_space<vmem>>, vector<1x1x32x32xbf16>
    %183 = vector.shape_cast %182 : vector<1x1x32x32xbf16> to vector<32x32xbf16>
    %cst_204 = arith.constant dense<0.000000e+00> : vector<256x32xf32>
    %184 = tpu.matmul %181, %183, %cst_204 {dimension_numbers = #tpu.dot_dimension_numbers<[1], [0], [0], [1], [0, 0, 1, 1], [], []>} : vector<256x32xbf16>, vector<32x32xbf16>, vector<256x32xf32> -> vector<256x32xf32>
    %185 = arith.addf %178, %184 : vector<256x32xf32>
    %c1_205 = arith.constant 1 : index
    %c2_206 = arith.constant 2 : index
    %c0_207 = arith.constant 0 : index
    %186 = vector.load %arg5[%c1_205, %c2_206, %c0_207] : memref<18x18x32xf32, #tpu.memory_space<vmem>>, vector<16x16x32xf32>
    %187 = vector.shape_cast %186 : vector<16x16x32xf32> to vector<256x32xf32>
    %188 = arith.truncf %187 : vector<256x32xf32> to vector<256x32xbf16>
    %c2_208 = arith.constant 2 : index
    %c5_209 = arith.constant 5 : index
    %c0_210 = arith.constant 0 : index
    %c0_211 = arith.constant 0 : index
    %189 = vector.load %arg2[%c2_208, %c5_209, %c0_210, %c0_211] : memref<5x9x32x32xbf16, #tpu.memory_space<vmem>>, vector<1x1x32x32xbf16>
    %190 = vector.shape_cast %189 : vector<1x1x32x32xbf16> to vector<32x32xbf16>
    %cst_212 = arith.constant dense<0.000000e+00> : vector<256x32xf32>
    %191 = tpu.matmul %188, %190, %cst_212 {dimension_numbers = #tpu.dot_dimension_numbers<[1], [0], [0], [1], [0, 0, 1, 1], [], []>} : vector<256x32xbf16>, vector<32x32xbf16>, vector<256x32xf32> -> vector<256x32xf32>
    %192 = arith.addf %185, %191 : vector<256x32xf32>
    %c2_213 = arith.constant 2 : index
    %c0_214 = arith.constant 0 : index
    %c0_215 = arith.constant 0 : index
    %193 = vector.load %arg5[%c2_213, %c0_214, %c0_215] : memref<18x18x32xf32, #tpu.memory_space<vmem>>, vector<16x16x32xf32>
    %194 = vector.shape_cast %193 : vector<16x16x32xf32> to vector<256x32xf32>
    %195 = arith.truncf %194 : vector<256x32xf32> to vector<256x32xbf16>
    %c2_216 = arith.constant 2 : index
    %c6_217 = arith.constant 6 : index
    %c0_218 = arith.constant 0 : index
    %c0_219 = arith.constant 0 : index
    %196 = vector.load %arg2[%c2_216, %c6_217, %c0_218, %c0_219] : memref<5x9x32x32xbf16, #tpu.memory_space<vmem>>, vector<1x1x32x32xbf16>
    %197 = vector.shape_cast %196 : vector<1x1x32x32xbf16> to vector<32x32xbf16>
    %cst_220 = arith.constant dense<0.000000e+00> : vector<256x32xf32>
    %198 = tpu.matmul %195, %197, %cst_220 {dimension_numbers = #tpu.dot_dimension_numbers<[1], [0], [0], [1], [0, 0, 1, 1], [], []>} : vector<256x32xbf16>, vector<32x32xbf16>, vector<256x32xf32> -> vector<256x32xf32>
    %199 = arith.addf %192, %198 : vector<256x32xf32>
    %c2_221 = arith.constant 2 : index
    %c1_222 = arith.constant 1 : index
    %c0_223 = arith.constant 0 : index
    %200 = vector.load %arg5[%c2_221, %c1_222, %c0_223] : memref<18x18x32xf32, #tpu.memory_space<vmem>>, vector<16x16x32xf32>
    %201 = vector.shape_cast %200 : vector<16x16x32xf32> to vector<256x32xf32>
    %202 = arith.truncf %201 : vector<256x32xf32> to vector<256x32xbf16>
    %c2_224 = arith.constant 2 : index
    %c7_225 = arith.constant 7 : index
    %c0_226 = arith.constant 0 : index
    %c0_227 = arith.constant 0 : index
    %203 = vector.load %arg2[%c2_224, %c7_225, %c0_226, %c0_227] : memref<5x9x32x32xbf16, #tpu.memory_space<vmem>>, vector<1x1x32x32xbf16>
    %204 = vector.shape_cast %203 : vector<1x1x32x32xbf16> to vector<32x32xbf16>
    %cst_228 = arith.constant dense<0.000000e+00> : vector<256x32xf32>
    %205 = tpu.matmul %202, %204, %cst_228 {dimension_numbers = #tpu.dot_dimension_numbers<[1], [0], [0], [1], [0, 0, 1, 1], [], []>} : vector<256x32xbf16>, vector<32x32xbf16>, vector<256x32xf32> -> vector<256x32xf32>
    %206 = arith.addf %199, %205 : vector<256x32xf32>
    %c2_229 = arith.constant 2 : index
    %c2_230 = arith.constant 2 : index
    %c0_231 = arith.constant 0 : index
    %207 = vector.load %arg5[%c2_229, %c2_230, %c0_231] : memref<18x18x32xf32, #tpu.memory_space<vmem>>, vector<16x16x32xf32>
    %208 = vector.shape_cast %207 : vector<16x16x32xf32> to vector<256x32xf32>
    %209 = arith.truncf %208 : vector<256x32xf32> to vector<256x32xbf16>
    %c2_232 = arith.constant 2 : index
    %c8_233 = arith.constant 8 : index
    %c0_234 = arith.constant 0 : index
    %c0_235 = arith.constant 0 : index
    %210 = vector.load %arg2[%c2_232, %c8_233, %c0_234, %c0_235] : memref<5x9x32x32xbf16, #tpu.memory_space<vmem>>, vector<1x1x32x32xbf16>
    %211 = vector.shape_cast %210 : vector<1x1x32x32xbf16> to vector<32x32xbf16>
    %cst_236 = arith.constant dense<0.000000e+00> : vector<256x32xf32>
    %212 = tpu.matmul %209, %211, %cst_236 {dimension_numbers = #tpu.dot_dimension_numbers<[1], [0], [0], [1], [0, 0, 1, 1], [], []>} : vector<256x32xbf16>, vector<32x32xbf16>, vector<256x32xf32> -> vector<256x32xf32>
    %213 = arith.addf %206, %212 : vector<256x32xf32>
    %c2_237 = arith.constant 2 : index
    %c0_238 = arith.constant 0 : index
    %c0_239 = arith.constant 0 : index
    %214 = vector.load %arg3[%c2_237, %c0_238, %c0_239] : memref<5x1x32xf32, #tpu.memory_space<vmem>>, vector<1x1x32xf32>
    %215 = vector.shape_cast %214 : vector<1x1x32xf32> to vector<1x32xf32>
    %216 = vector.broadcast %215 : vector<1x32xf32> to vector<256x32xf32>
    %217 = arith.addf %213, %216 : vector<256x32xf32>
    %218 = vector.shape_cast %217 : vector<256x32xf32> to vector<16x16x32xf32>
    %c0_240 = arith.constant 0 : index
    %c0_241 = arith.constant 0 : index
    %c0_242 = arith.constant 0 : index
    %219 = vector.load %arg6[%c0_240, %c0_241, %c0_242] : memref<16x16x32xf32, #tpu.memory_space<vmem>>, vector<16x16x32xf32>
    %220 = arith.addf %218, %219 : vector<16x16x32xf32>
    %cst_243 = arith.constant 0.000000e+00 : f32
    %221 = vector.broadcast %cst_243 : f32 to vector<16x16x32xf32>
    %222 = arith.maximumf %220, %221 : vector<16x16x32xf32>
    %c0_244 = arith.constant 0 : index
    %c0_245 = arith.constant 0 : index
    %c0_246 = arith.constant 0 : index
    %223 = vector.load %arg6[%c0_244, %c0_245, %c0_246] : memref<16x16x32xf32, #tpu.memory_space<vmem>>, vector<16x16x32xf32>
    tpu.vector_store %arg6[%c0_244, %c0_245, %c0_246], %222 {strides = array<i32>} : memref<16x16x32xf32, #tpu.memory_space<vmem>>, vector<16x16x32xf32>,
    %c1_247 = arith.constant 1 : index
    %c1_248 = arith.constant 1 : index
    %c0_249 = arith.constant 0 : index
    %224 = vector.load %arg5[%c1_247, %c1_248, %c0_249] : memref<18x18x32xf32, #tpu.memory_space<vmem>>, vector<16x16x32xf32>
    tpu.vector_store %arg5[%c1_247, %c1_248, %c0_249], %222 {strides = array<i32>} : memref<18x18x32xf32, #tpu.memory_space<vmem>>, vector<16x16x32xf32>,
    %cst_250 = arith.constant 0.000000e+00 : f32
    %225 = vector.broadcast %cst_250 : f32 to vector<256x32xf32>
    %c0_251 = arith.constant 0 : index
    %c0_252 = arith.constant 0 : index
    %c0_253 = arith.constant 0 : index
    %226 = vector.load %arg5[%c0_251, %c0_252, %c0_253] : memref<18x18x32xf32, #tpu.memory_space<vmem>>, vector<16x16x32xf32>
    %227 = vector.shape_cast %226 : vector<16x16x32xf32> to vector<256x32xf32>
    %228 = arith.truncf %227 : vector<256x32xf32> to vector<256x32xbf16>
    %c3_254 = arith.constant 3 : index
    %c0_255 = arith.constant 0 : index
    %c0_256 = arith.constant 0 : index
    %c0_257 = arith.constant 0 : index
    %229 = vector.load %arg2[%c3_254, %c0_255, %c0_256, %c0_257] : memref<5x9x32x32xbf16, #tpu.memory_space<vmem>>, vector<1x1x32x32xbf16>
    %230 = vector.shape_cast %229 : vector<1x1x32x32xbf16> to vector<32x32xbf16>
    %cst_258 = arith.constant dense<0.000000e+00> : vector<256x32xf32>
    %231 = tpu.matmul %228, %230, %cst_258 {dimension_numbers = #tpu.dot_dimension_numbers<[1], [0], [0], [1], [0, 0, 1, 1], [], []>} : vector<256x32xbf16>, vector<32x32xbf16>, vector<256x32xf32> -> vector<256x32xf32>
    %232 = arith.addf %225, %231 : vector<256x32xf32>
    %c0_259 = arith.constant 0 : index
    %c1_260 = arith.constant 1 : index
    %c0_261 = arith.constant 0 : index
    %233 = vector.load %arg5[%c0_259, %c1_260, %c0_261] : memref<18x18x32xf32, #tpu.memory_space<vmem>>, vector<16x16x32xf32>
    %234 = vector.shape_cast %233 : vector<16x16x32xf32> to vector<256x32xf32>
    %235 = arith.truncf %234 : vector<256x32xf32> to vector<256x32xbf16>
    %c3_262 = arith.constant 3 : index
    %c1_263 = arith.constant 1 : index
    %c0_264 = arith.constant 0 : index
    %c0_265 = arith.constant 0 : index
    %236 = vector.load %arg2[%c3_262, %c1_263, %c0_264, %c0_265] : memref<5x9x32x32xbf16, #tpu.memory_space<vmem>>, vector<1x1x32x32xbf16>
    %237 = vector.shape_cast %236 : vector<1x1x32x32xbf16> to vector<32x32xbf16>
    %cst_266 = arith.constant dense<0.000000e+00> : vector<256x32xf32>
    %238 = tpu.matmul %235, %237, %cst_266 {dimension_numbers = #tpu.dot_dimension_numbers<[1], [0], [0], [1], [0, 0, 1, 1], [], []>} : vector<256x32xbf16>, vector<32x32xbf16>, vector<256x32xf32> -> vector<256x32xf32>
    %239 = arith.addf %232, %238 : vector<256x32xf32>
    %c0_267 = arith.constant 0 : index
    %c2_268 = arith.constant 2 : index
    %c0_269 = arith.constant 0 : index
    %240 = vector.load %arg5[%c0_267, %c2_268, %c0_269] : memref<18x18x32xf32, #tpu.memory_space<vmem>>, vector<16x16x32xf32>
    %241 = vector.shape_cast %240 : vector<16x16x32xf32> to vector<256x32xf32>
    %242 = arith.truncf %241 : vector<256x32xf32> to vector<256x32xbf16>
    %c3_270 = arith.constant 3 : index
    %c2_271 = arith.constant 2 : index
    %c0_272 = arith.constant 0 : index
    %c0_273 = arith.constant 0 : index
    %243 = vector.load %arg2[%c3_270, %c2_271, %c0_272, %c0_273] : memref<5x9x32x32xbf16, #tpu.memory_space<vmem>>, vector<1x1x32x32xbf16>
    %244 = vector.shape_cast %243 : vector<1x1x32x32xbf16> to vector<32x32xbf16>
    %cst_274 = arith.constant dense<0.000000e+00> : vector<256x32xf32>
    %245 = tpu.matmul %242, %244, %cst_274 {dimension_numbers = #tpu.dot_dimension_numbers<[1], [0], [0], [1], [0, 0, 1, 1], [], []>} : vector<256x32xbf16>, vector<32x32xbf16>, vector<256x32xf32> -> vector<256x32xf32>
    %246 = arith.addf %239, %245 : vector<256x32xf32>
    %c1_275 = arith.constant 1 : index
    %c0_276 = arith.constant 0 : index
    %c0_277 = arith.constant 0 : index
    %247 = vector.load %arg5[%c1_275, %c0_276, %c0_277] : memref<18x18x32xf32, #tpu.memory_space<vmem>>, vector<16x16x32xf32>
    %248 = vector.shape_cast %247 : vector<16x16x32xf32> to vector<256x32xf32>
    %249 = arith.truncf %248 : vector<256x32xf32> to vector<256x32xbf16>
    %c3_278 = arith.constant 3 : index
    %c3_279 = arith.constant 3 : index
    %c0_280 = arith.constant 0 : index
    %c0_281 = arith.constant 0 : index
    %250 = vector.load %arg2[%c3_278, %c3_279, %c0_280, %c0_281] : memref<5x9x32x32xbf16, #tpu.memory_space<vmem>>, vector<1x1x32x32xbf16>
    %251 = vector.shape_cast %250 : vector<1x1x32x32xbf16> to vector<32x32xbf16>
    %cst_282 = arith.constant dense<0.000000e+00> : vector<256x32xf32>
    %252 = tpu.matmul %249, %251, %cst_282 {dimension_numbers = #tpu.dot_dimension_numbers<[1], [0], [0], [1], [0, 0, 1, 1], [], []>} : vector<256x32xbf16>, vector<32x32xbf16>, vector<256x32xf32> -> vector<256x32xf32>
    %253 = arith.addf %246, %252 : vector<256x32xf32>
    %c1_283 = arith.constant 1 : index
    %c1_284 = arith.constant 1 : index
    %c0_285 = arith.constant 0 : index
    %254 = vector.load %arg5[%c1_283, %c1_284, %c0_285] : memref<18x18x32xf32, #tpu.memory_space<vmem>>, vector<16x16x32xf32>
    %255 = vector.shape_cast %254 : vector<16x16x32xf32> to vector<256x32xf32>
    %256 = arith.truncf %255 : vector<256x32xf32> to vector<256x32xbf16>
    %c3_286 = arith.constant 3 : index
    %c4_287 = arith.constant 4 : index
    %c0_288 = arith.constant 0 : index
    %c0_289 = arith.constant 0 : index
    %257 = vector.load %arg2[%c3_286, %c4_287, %c0_288, %c0_289] : memref<5x9x32x32xbf16, #tpu.memory_space<vmem>>, vector<1x1x32x32xbf16>
    %258 = vector.shape_cast %257 : vector<1x1x32x32xbf16> to vector<32x32xbf16>
    %cst_290 = arith.constant dense<0.000000e+00> : vector<256x32xf32>
    %259 = tpu.matmul %256, %258, %cst_290 {dimension_numbers = #tpu.dot_dimension_numbers<[1], [0], [0], [1], [0, 0, 1, 1], [], []>} : vector<256x32xbf16>, vector<32x32xbf16>, vector<256x32xf32> -> vector<256x32xf32>
    %260 = arith.addf %253, %259 : vector<256x32xf32>
    %c1_291 = arith.constant 1 : index
    %c2_292 = arith.constant 2 : index
    %c0_293 = arith.constant 0 : index
    %261 = vector.load %arg5[%c1_291, %c2_292, %c0_293] : memref<18x18x32xf32, #tpu.memory_space<vmem>>, vector<16x16x32xf32>
    %262 = vector.shape_cast %261 : vector<16x16x32xf32> to vector<256x32xf32>
    %263 = arith.truncf %262 : vector<256x32xf32> to vector<256x32xbf16>
    %c3_294 = arith.constant 3 : index
    %c5_295 = arith.constant 5 : index
    %c0_296 = arith.constant 0 : index
    %c0_297 = arith.constant 0 : index
    %264 = vector.load %arg2[%c3_294, %c5_295, %c0_296, %c0_297] : memref<5x9x32x32xbf16, #tpu.memory_space<vmem>>, vector<1x1x32x32xbf16>
    %265 = vector.shape_cast %264 : vector<1x1x32x32xbf16> to vector<32x32xbf16>
    %cst_298 = arith.constant dense<0.000000e+00> : vector<256x32xf32>
    %266 = tpu.matmul %263, %265, %cst_298 {dimension_numbers = #tpu.dot_dimension_numbers<[1], [0], [0], [1], [0, 0, 1, 1], [], []>} : vector<256x32xbf16>, vector<32x32xbf16>, vector<256x32xf32> -> vector<256x32xf32>
    %267 = arith.addf %260, %266 : vector<256x32xf32>
    %c2_299 = arith.constant 2 : index
    %c0_300 = arith.constant 0 : index
    %c0_301 = arith.constant 0 : index
    %268 = vector.load %arg5[%c2_299, %c0_300, %c0_301] : memref<18x18x32xf32, #tpu.memory_space<vmem>>, vector<16x16x32xf32>
    %269 = vector.shape_cast %268 : vector<16x16x32xf32> to vector<256x32xf32>
    %270 = arith.truncf %269 : vector<256x32xf32> to vector<256x32xbf16>
    %c3_302 = arith.constant 3 : index
    %c6_303 = arith.constant 6 : index
    %c0_304 = arith.constant 0 : index
    %c0_305 = arith.constant 0 : index
    %271 = vector.load %arg2[%c3_302, %c6_303, %c0_304, %c0_305] : memref<5x9x32x32xbf16, #tpu.memory_space<vmem>>, vector<1x1x32x32xbf16>
    %272 = vector.shape_cast %271 : vector<1x1x32x32xbf16> to vector<32x32xbf16>
    %cst_306 = arith.constant dense<0.000000e+00> : vector<256x32xf32>
    %273 = tpu.matmul %270, %272, %cst_306 {dimension_numbers = #tpu.dot_dimension_numbers<[1], [0], [0], [1], [0, 0, 1, 1], [], []>} : vector<256x32xbf16>, vector<32x32xbf16>, vector<256x32xf32> -> vector<256x32xf32>
    %274 = arith.addf %267, %273 : vector<256x32xf32>
    %c2_307 = arith.constant 2 : index
    %c1_308 = arith.constant 1 : index
    %c0_309 = arith.constant 0 : index
    %275 = vector.load %arg5[%c2_307, %c1_308, %c0_309] : memref<18x18x32xf32, #tpu.memory_space<vmem>>, vector<16x16x32xf32>
    %276 = vector.shape_cast %275 : vector<16x16x32xf32> to vector<256x32xf32>
    %277 = arith.truncf %276 : vector<256x32xf32> to vector<256x32xbf16>
    %c3_310 = arith.constant 3 : index
    %c7_311 = arith.constant 7 : index
    %c0_312 = arith.constant 0 : index
    %c0_313 = arith.constant 0 : index
    %278 = vector.load %arg2[%c3_310, %c7_311, %c0_312, %c0_313] : memref<5x9x32x32xbf16, #tpu.memory_space<vmem>>, vector<1x1x32x32xbf16>
    %279 = vector.shape_cast %278 : vector<1x1x32x32xbf16> to vector<32x32xbf16>
    %cst_314 = arith.constant dense<0.000000e+00> : vector<256x32xf32>
    %280 = tpu.matmul %277, %279, %cst_314 {dimension_numbers = #tpu.dot_dimension_numbers<[1], [0], [0], [1], [0, 0, 1, 1], [], []>} : vector<256x32xbf16>, vector<32x32xbf16>, vector<256x32xf32> -> vector<256x32xf32>
    %281 = arith.addf %274, %280 : vector<256x32xf32>
    %c2_315 = arith.constant 2 : index
    %c2_316 = arith.constant 2 : index
    %c0_317 = arith.constant 0 : index
    %282 = vector.load %arg5[%c2_315, %c2_316, %c0_317] : memref<18x18x32xf32, #tpu.memory_space<vmem>>, vector<16x16x32xf32>
    %283 = vector.shape_cast %282 : vector<16x16x32xf32> to vector<256x32xf32>
    %284 = arith.truncf %283 : vector<256x32xf32> to vector<256x32xbf16>
    %c3_318 = arith.constant 3 : index
    %c8_319 = arith.constant 8 : index
    %c0_320 = arith.constant 0 : index
    %c0_321 = arith.constant 0 : index
    %285 = vector.load %arg2[%c3_318, %c8_319, %c0_320, %c0_321] : memref<5x9x32x32xbf16, #tpu.memory_space<vmem>>, vector<1x1x32x32xbf16>
    %286 = vector.shape_cast %285 : vector<1x1x32x32xbf16> to vector<32x32xbf16>
    %cst_322 = arith.constant dense<0.000000e+00> : vector<256x32xf32>
    %287 = tpu.matmul %284, %286, %cst_322 {dimension_numbers = #tpu.dot_dimension_numbers<[1], [0], [0], [1], [0, 0, 1, 1], [], []>} : vector<256x32xbf16>, vector<32x32xbf16>, vector<256x32xf32> -> vector<256x32xf32>
    %288 = arith.addf %281, %287 : vector<256x32xf32>
    %c3_323 = arith.constant 3 : index
    %c0_324 = arith.constant 0 : index
    %c0_325 = arith.constant 0 : index
    %289 = vector.load %arg3[%c3_323, %c0_324, %c0_325] : memref<5x1x32xf32, #tpu.memory_space<vmem>>, vector<1x1x32xf32>
    %290 = vector.shape_cast %289 : vector<1x1x32xf32> to vector<1x32xf32>
    %291 = vector.broadcast %290 : vector<1x32xf32> to vector<256x32xf32>
    %292 = arith.addf %288, %291 : vector<256x32xf32>
    %293 = vector.shape_cast %292 : vector<256x32xf32> to vector<16x16x32xf32>
    %cst_326 = arith.constant 0.000000e+00 : f32
    %294 = vector.broadcast %cst_326 : f32 to vector<16x16x32xf32>
    %295 = arith.maximumf %293, %294 : vector<16x16x32xf32>
    %c1_327 = arith.constant 1 : index
    %c1_328 = arith.constant 1 : index
    %c0_329 = arith.constant 0 : index
    %296 = vector.load %arg5[%c1_327, %c1_328, %c0_329] : memref<18x18x32xf32, #tpu.memory_space<vmem>>, vector<16x16x32xf32>
    tpu.vector_store %arg5[%c1_327, %c1_328, %c0_329], %295 {strides = array<i32>} : memref<18x18x32xf32, #tpu.memory_space<vmem>>, vector<16x16x32xf32>,
    %cst_330 = arith.constant 0.000000e+00 : f32
    %297 = vector.broadcast %cst_330 : f32 to vector<256x32xf32>
    %c0_331 = arith.constant 0 : index
    %c0_332 = arith.constant 0 : index
    %c0_333 = arith.constant 0 : index
    %298 = vector.load %arg5[%c0_331, %c0_332, %c0_333] : memref<18x18x32xf32, #tpu.memory_space<vmem>>, vector<16x16x32xf32>
    %299 = vector.shape_cast %298 : vector<16x16x32xf32> to vector<256x32xf32>
    %300 = arith.truncf %299 : vector<256x32xf32> to vector<256x32xbf16>
    %c4_334 = arith.constant 4 : index
    %c0_335 = arith.constant 0 : index
    %c0_336 = arith.constant 0 : index
    %c0_337 = arith.constant 0 : index
    %301 = vector.load %arg2[%c4_334, %c0_335, %c0_336, %c0_337] : memref<5x9x32x32xbf16, #tpu.memory_space<vmem>>, vector<1x1x32x32xbf16>
    %302 = vector.shape_cast %301 : vector<1x1x32x32xbf16> to vector<32x32xbf16>
    %cst_338 = arith.constant dense<0.000000e+00> : vector<256x32xf32>
    %303 = tpu.matmul %300, %302, %cst_338 {dimension_numbers = #tpu.dot_dimension_numbers<[1], [0], [0], [1], [0, 0, 1, 1], [], []>} : vector<256x32xbf16>, vector<32x32xbf16>, vector<256x32xf32> -> vector<256x32xf32>
    %304 = arith.addf %297, %303 : vector<256x32xf32>
    %c0_339 = arith.constant 0 : index
    %c1_340 = arith.constant 1 : index
    %c0_341 = arith.constant 0 : index
    %305 = vector.load %arg5[%c0_339, %c1_340, %c0_341] : memref<18x18x32xf32, #tpu.memory_space<vmem>>, vector<16x16x32xf32>
    %306 = vector.shape_cast %305 : vector<16x16x32xf32> to vector<256x32xf32>
    %307 = arith.truncf %306 : vector<256x32xf32> to vector<256x32xbf16>
    %c4_342 = arith.constant 4 : index
    %c1_343 = arith.constant 1 : index
    %c0_344 = arith.constant 0 : index
    %c0_345 = arith.constant 0 : index
    %308 = vector.load %arg2[%c4_342, %c1_343, %c0_344, %c0_345] : memref<5x9x32x32xbf16, #tpu.memory_space<vmem>>, vector<1x1x32x32xbf16>
    %309 = vector.shape_cast %308 : vector<1x1x32x32xbf16> to vector<32x32xbf16>
    %cst_346 = arith.constant dense<0.000000e+00> : vector<256x32xf32>
    %310 = tpu.matmul %307, %309, %cst_346 {dimension_numbers = #tpu.dot_dimension_numbers<[1], [0], [0], [1], [0, 0, 1, 1], [], []>} : vector<256x32xbf16>, vector<32x32xbf16>, vector<256x32xf32> -> vector<256x32xf32>
    %311 = arith.addf %304, %310 : vector<256x32xf32>
    %c0_347 = arith.constant 0 : index
    %c2_348 = arith.constant 2 : index
    %c0_349 = arith.constant 0 : index
    %312 = vector.load %arg5[%c0_347, %c2_348, %c0_349] : memref<18x18x32xf32, #tpu.memory_space<vmem>>, vector<16x16x32xf32>
    %313 = vector.shape_cast %312 : vector<16x16x32xf32> to vector<256x32xf32>
    %314 = arith.truncf %313 : vector<256x32xf32> to vector<256x32xbf16>
    %c4_350 = arith.constant 4 : index
    %c2_351 = arith.constant 2 : index
    %c0_352 = arith.constant 0 : index
    %c0_353 = arith.constant 0 : index
    %315 = vector.load %arg2[%c4_350, %c2_351, %c0_352, %c0_353] : memref<5x9x32x32xbf16, #tpu.memory_space<vmem>>, vector<1x1x32x32xbf16>
    %316 = vector.shape_cast %315 : vector<1x1x32x32xbf16> to vector<32x32xbf16>
    %cst_354 = arith.constant dense<0.000000e+00> : vector<256x32xf32>
    %317 = tpu.matmul %314, %316, %cst_354 {dimension_numbers = #tpu.dot_dimension_numbers<[1], [0], [0], [1], [0, 0, 1, 1], [], []>} : vector<256x32xbf16>, vector<32x32xbf16>, vector<256x32xf32> -> vector<256x32xf32>
    %318 = arith.addf %311, %317 : vector<256x32xf32>
    %c1_355 = arith.constant 1 : index
    %c0_356 = arith.constant 0 : index
    %c0_357 = arith.constant 0 : index
    %319 = vector.load %arg5[%c1_355, %c0_356, %c0_357] : memref<18x18x32xf32, #tpu.memory_space<vmem>>, vector<16x16x32xf32>
    %320 = vector.shape_cast %319 : vector<16x16x32xf32> to vector<256x32xf32>
    %321 = arith.truncf %320 : vector<256x32xf32> to vector<256x32xbf16>
    %c4_358 = arith.constant 4 : index
    %c3_359 = arith.constant 3 : index
    %c0_360 = arith.constant 0 : index
    %c0_361 = arith.constant 0 : index
    %322 = vector.load %arg2[%c4_358, %c3_359, %c0_360, %c0_361] : memref<5x9x32x32xbf16, #tpu.memory_space<vmem>>, vector<1x1x32x32xbf16>
    %323 = vector.shape_cast %322 : vector<1x1x32x32xbf16> to vector<32x32xbf16>
    %cst_362 = arith.constant dense<0.000000e+00> : vector<256x32xf32>
    %324 = tpu.matmul %321, %323, %cst_362 {dimension_numbers = #tpu.dot_dimension_numbers<[1], [0], [0], [1], [0, 0, 1, 1], [], []>} : vector<256x32xbf16>, vector<32x32xbf16>, vector<256x32xf32> -> vector<256x32xf32>
    %325 = arith.addf %318, %324 : vector<256x32xf32>
    %c1_363 = arith.constant 1 : index
    %c1_364 = arith.constant 1 : index
    %c0_365 = arith.constant 0 : index
    %326 = vector.load %arg5[%c1_363, %c1_364, %c0_365] : memref<18x18x32xf32, #tpu.memory_space<vmem>>, vector<16x16x32xf32>
    %327 = vector.shape_cast %326 : vector<16x16x32xf32> to vector<256x32xf32>
    %328 = arith.truncf %327 : vector<256x32xf32> to vector<256x32xbf16>
    %c4_366 = arith.constant 4 : index
    %c4_367 = arith.constant 4 : index
    %c0_368 = arith.constant 0 : index
    %c0_369 = arith.constant 0 : index
    %329 = vector.load %arg2[%c4_366, %c4_367, %c0_368, %c0_369] : memref<5x9x32x32xbf16, #tpu.memory_space<vmem>>, vector<1x1x32x32xbf16>
    %330 = vector.shape_cast %329 : vector<1x1x32x32xbf16> to vector<32x32xbf16>
    %cst_370 = arith.constant dense<0.000000e+00> : vector<256x32xf32>
    %331 = tpu.matmul %328, %330, %cst_370 {dimension_numbers = #tpu.dot_dimension_numbers<[1], [0], [0], [1], [0, 0, 1, 1], [], []>} : vector<256x32xbf16>, vector<32x32xbf16>, vector<256x32xf32> -> vector<256x32xf32>
    %332 = arith.addf %325, %331 : vector<256x32xf32>
    %c1_371 = arith.constant 1 : index
    %c2_372 = arith.constant 2 : index
    %c0_373 = arith.constant 0 : index
    %333 = vector.load %arg5[%c1_371, %c2_372, %c0_373] : memref<18x18x32xf32, #tpu.memory_space<vmem>>, vector<16x16x32xf32>
    %334 = vector.shape_cast %333 : vector<16x16x32xf32> to vector<256x32xf32>
    %335 = arith.truncf %334 : vector<256x32xf32> to vector<256x32xbf16>
    %c4_374 = arith.constant 4 : index
    %c5_375 = arith.constant 5 : index
    %c0_376 = arith.constant 0 : index
    %c0_377 = arith.constant 0 : index
    %336 = vector.load %arg2[%c4_374, %c5_375, %c0_376, %c0_377] : memref<5x9x32x32xbf16, #tpu.memory_space<vmem>>, vector<1x1x32x32xbf16>
    %337 = vector.shape_cast %336 : vector<1x1x32x32xbf16> to vector<32x32xbf16>
    %cst_378 = arith.constant dense<0.000000e+00> : vector<256x32xf32>
    %338 = tpu.matmul %335, %337, %cst_378 {dimension_numbers = #tpu.dot_dimension_numbers<[1], [0], [0], [1], [0, 0, 1, 1], [], []>} : vector<256x32xbf16>, vector<32x32xbf16>, vector<256x32xf32> -> vector<256x32xf32>
    %339 = arith.addf %332, %338 : vector<256x32xf32>
    %c2_379 = arith.constant 2 : index
    %c0_380 = arith.constant 0 : index
    %c0_381 = arith.constant 0 : index
    %340 = vector.load %arg5[%c2_379, %c0_380, %c0_381] : memref<18x18x32xf32, #tpu.memory_space<vmem>>, vector<16x16x32xf32>
    %341 = vector.shape_cast %340 : vector<16x16x32xf32> to vector<256x32xf32>
    %342 = arith.truncf %341 : vector<256x32xf32> to vector<256x32xbf16>
    %c4_382 = arith.constant 4 : index
    %c6_383 = arith.constant 6 : index
    %c0_384 = arith.constant 0 : index
    %c0_385 = arith.constant 0 : index
    %343 = vector.load %arg2[%c4_382, %c6_383, %c0_384, %c0_385] : memref<5x9x32x32xbf16, #tpu.memory_space<vmem>>, vector<1x1x32x32xbf16>
    %344 = vector.shape_cast %343 : vector<1x1x32x32xbf16> to vector<32x32xbf16>
    %cst_386 = arith.constant dense<0.000000e+00> : vector<256x32xf32>
    %345 = tpu.matmul %342, %344, %cst_386 {dimension_numbers = #tpu.dot_dimension_numbers<[1], [0], [0], [1], [0, 0, 1, 1], [], []>} : vector<256x32xbf16>, vector<32x32xbf16>, vector<256x32xf32> -> vector<256x32xf32>
    %346 = arith.addf %339, %345 : vector<256x32xf32>
    %c2_387 = arith.constant 2 : index
    %c1_388 = arith.constant 1 : index
    %c0_389 = arith.constant 0 : index
    %347 = vector.load %arg5[%c2_387, %c1_388, %c0_389] : memref<18x18x32xf32, #tpu.memory_space<vmem>>, vector<16x16x32xf32>
    %348 = vector.shape_cast %347 : vector<16x16x32xf32> to vector<256x32xf32>
    %349 = arith.truncf %348 : vector<256x32xf32> to vector<256x32xbf16>
    %c4_390 = arith.constant 4 : index
    %c7_391 = arith.constant 7 : index
    %c0_392 = arith.constant 0 : index
    %c0_393 = arith.constant 0 : index
    %350 = vector.load %arg2[%c4_390, %c7_391, %c0_392, %c0_393] : memref<5x9x32x32xbf16, #tpu.memory_space<vmem>>, vector<1x1x32x32xbf16>
    %351 = vector.shape_cast %350 : vector<1x1x32x32xbf16> to vector<32x32xbf16>
    %cst_394 = arith.constant dense<0.000000e+00> : vector<256x32xf32>
    %352 = tpu.matmul %349, %351, %cst_394 {dimension_numbers = #tpu.dot_dimension_numbers<[1], [0], [0], [1], [0, 0, 1, 1], [], []>} : vector<256x32xbf16>, vector<32x32xbf16>, vector<256x32xf32> -> vector<256x32xf32>
    %353 = arith.addf %346, %352 : vector<256x32xf32>
    %c2_395 = arith.constant 2 : index
    %c2_396 = arith.constant 2 : index
    %c0_397 = arith.constant 0 : index
    %354 = vector.load %arg5[%c2_395, %c2_396, %c0_397] : memref<18x18x32xf32, #tpu.memory_space<vmem>>, vector<16x16x32xf32>
    %355 = vector.shape_cast %354 : vector<16x16x32xf32> to vector<256x32xf32>
    %356 = arith.truncf %355 : vector<256x32xf32> to vector<256x32xbf16>
    %c4_398 = arith.constant 4 : index
    %c8_399 = arith.constant 8 : index
    %c0_400 = arith.constant 0 : index
    %c0_401 = arith.constant 0 : index
    %357 = vector.load %arg2[%c4_398, %c8_399, %c0_400, %c0_401] : memref<5x9x32x32xbf16, #tpu.memory_space<vmem>>, vector<1x1x32x32xbf16>
    %358 = vector.shape_cast %357 : vector<1x1x32x32xbf16> to vector<32x32xbf16>
    %cst_402 = arith.constant dense<0.000000e+00> : vector<256x32xf32>
    %359 = tpu.matmul %356, %358, %cst_402 {dimension_numbers = #tpu.dot_dimension_numbers<[1], [0], [0], [1], [0, 0, 1, 1], [], []>} : vector<256x32xbf16>, vector<32x32xbf16>, vector<256x32xf32> -> vector<256x32xf32>
    %360 = arith.addf %353, %359 : vector<256x32xf32>
    %c4_403 = arith.constant 4 : index
    %c0_404 = arith.constant 0 : index
    %c0_405 = arith.constant 0 : index
    %361 = vector.load %arg3[%c4_403, %c0_404, %c0_405] : memref<5x1x32xf32, #tpu.memory_space<vmem>>, vector<1x1x32xf32>
    %362 = vector.shape_cast %361 : vector<1x1x32xf32> to vector<1x32xf32>
    %363 = vector.broadcast %362 : vector<1x32xf32> to vector<256x32xf32>
    %364 = arith.addf %360, %363 : vector<256x32xf32>
    %365 = vector.shape_cast %364 : vector<256x32xf32> to vector<16x16x32xf32>
    %c0_406 = arith.constant 0 : index
    %c0_407 = arith.constant 0 : index
    %c0_408 = arith.constant 0 : index
    %366 = vector.load %arg6[%c0_406, %c0_407, %c0_408] : memref<16x16x32xf32, #tpu.memory_space<vmem>>, vector<16x16x32xf32>
    %367 = arith.addf %365, %366 : vector<16x16x32xf32>
    %cst_409 = arith.constant 0.000000e+00 : f32
    %368 = vector.broadcast %cst_409 : f32 to vector<16x16x32xf32>
    %369 = arith.maximumf %367, %368 : vector<16x16x32xf32>
    %c0_410 = arith.constant 0 : index
    %c0_411 = arith.constant 0 : index
    %c0_412 = arith.constant 0 : index
    %c0_413 = arith.constant 0 : index
    %370 = vector.load %arg4[%c0_410, %c0_411, %c0_412, %c0_413] : memref<1x16x16x32xf32, #tpu.memory_space<vmem>>, vector<1x16x16x32xf32>
    %371 = vector.shape_cast %370 : vector<1x16x16x32xf32> to vector<16x16x32xf32>
    %372 = vector.shape_cast %369 : vector<16x16x32xf32> to vector<1x16x16x32xf32>
    tpu.vector_store %arg4[%c0_410, %c0_411, %c0_412, %c0_413], %372 {strides = array<i32>} : memref<1x16x16x32xf32, #tpu.memory_space<vmem>>, vector<1x16x16x32xf32>,
    return
  }
  func.func @transform_0(%arg0: i32) -> (i32, i32, i32, i32) {
    %c0_i32 = arith.constant 0 : i32
    %c0_i32_0 = arith.constant 0 : i32
    %c0_i32_1 = arith.constant 0 : i32
    %c0_i32_2 = arith.constant 0 : i32
    return %arg0, %c0_i32, %c0_i32_0, %c0_i32_1 : i32, i32, i32, i32
  }
  func.func @transform_1(%arg0: i32) -> (i32, i32, i32, i32) {
    %c0_i32 = arith.constant 0 : i32
    %c0_i32_0 = arith.constant 0 : i32
    %c0_i32_1 = arith.constant 0 : i32
    %c0_i32_2 = arith.constant 0 : i32
    %c0_i32_3 = arith.constant 0 : i32
    return %c0_i32, %c0_i32_0, %c0_i32_1, %c0_i32_2 : i32, i32, i32, i32
  }
  func.func @transform_2(%arg0: i32) -> (i32, i32, i32) {
    %c0_i32 = arith.constant 0 : i32
    %c0_i32_0 = arith.constant 0 : i32
    %c0_i32_1 = arith.constant 0 : i32
    %c0_i32_2 = arith.constant 0 : i32
    return %c0_i32, %c0_i32_0, %c0_i32_1 : i32, i32, i32
  }
  func.func @transform_3(%arg0: i32) -> (i32, i32, i32, i32) {
    %c0_i32 = arith.constant 0 : i32
    %c0_i32_0 = arith.constant 0 : i32
    %c0_i32_1 = arith.constant 0 : i32
    %c0_i32_2 = arith.constant 0 : i32
    return %arg0, %c0_i32, %c0_i32_0, %c0_i32_1 : i32, i32, i32, i32
  }
}

</mosaic_0001>

<bundles_post_ra>
// kernel: representation_network_forward.1
= control target key start
LH: loop header
LB: loop body
LE: loop exit
PB: predicated region body
PF: predicated region fallthrough
CT: control target
= control target key end

     0   :  { %8 = vsyncpa [#allocation5], 0  ;;  %s22348_s0 = inlined_call_operand.vmem [shape: f32[2,16,16,32], index: 0, kind: input, shape index: {}]   ;;  %s22349_s1 = inlined_call_operand.vmem [shape: bf16[5,9,32,32], index: 1, kind: input, shape index: {}]   ;;  %s22350_s2 = inlined_call_operand.vmem [shape: f32[5,1,32], index: 2, kind: input, shape index: {}]   ;;  %s22351_s3 = inlined_call_operand.hbm [shape: f32[2,16,16,32], index: 3, kind: output, shape index: {}]  }
   0x1   :  { %10 = vsyncpa [#allocation5 + $0x1], 0  ;;  %s19473_s12 = smov 0   ;;  %s19475_s13 = smov 0  }
   0x2   :  { %s19477_s14 = smov 0   ;;  %s19479_s15 = smov 0  }
   0x3 LB: > { %s19494_s16 = sadd.s32 4294967295, %s19447_s15   ;;  %s14528_s17 = sadd.s32 4294967294, %s19447_s15   ;;  %s19447_s15 = sphi %s19479_s15, %s22357_s15   ;;  %s19443_s14 = sphi %s19477_s14, %s22356_s14   ;;  %s19439_s13 = sphi %s19475_s13, %s22355_s13   ;;  %s19435_s12 = sphi %s19473_s12, %s22354_s12  }
   0x4   : > { %s19498_s18 = sadd.s32 1, %s19447_s15   ;;  %s91_s19 = sadd.s32 1, %s19443_s14 }
   0x5   : > { %s88_s20 = ssub.s32 %s19447_s15, %s19498_s18  ;;  %p101_p0 = scmp.ne.s32.totalorder %s19443_s14, %s19439_s13 }
   0x6   : > { %p89_p1 = scmp.eq.s32.totalorder %s88_s20, 0  ;;  %p102_p2 = scmp.eq.s32.totalorder %s19494_s16, 1 }
   0x7   : > { %p107_p3 = scmp.ne.s32.totalorder %s19439_s13, %s19435_s12  ;;  %p108_p4 = scmp.eq.s32.totalorder %s14528_s17, 1 }
   0x8   : > { %s19509_s21 = scalar_select %p89_p1, %s19443_s14, %s91_s19  }
   0x9   : > { %p19511_p5 = por %p102_p2, %p101_p0  ;;  %p19515_p6 = por %p108_p4, %p107_p3 }
   0xa   : > { %p14531_p7 = scmp.ge.s32.totalorder %s19447_s15, 1  ;;  %p140_p8 = scmp.lt.s32.totalorder %s19447_s15, 3 }
   0xc   : > { %p141_p9 = pnand %p14531_p7, %p140_p8 }
   0xd   : > { %v19293_v0 = vld [vmem:[%s22349_s1 + $0x10] sm:$0xff] (!%p141_p9)   ;;  %vm170_vm0 = vcmask (!%p141_p9), 261120   ;;  %v19294_v1 = vld [vmem:[%s22349_s1 + $0x40] sm:$0xff] (!%p141_p9)   ;;  %v19530_v2 = vld [vmem:[%s22349_s1 + $0x18] sm:$0xff] (!%p141_p9)   ;;  %v19449_v3 = vmov (!%p141_p9), 0.0   ;;  %vm173_vm1 = vcmask (!%p141_p9), 254976  }
   0xe   : > { %144 = sbr.rel (%p141_p9) target bundleno = 3536 (0xdd0), region = 32  ;;  %16347 = vmatprep.subr.bf16.mxu1 (!%p141_p9), %v19293_v0  ;;  %171 = vst.msk [vmem:[#allocation2] sm:$0xff] (!%p141_p9), %vm170_vm0, %v19449_v3  ;;  %172 = vst.msk [vmem:[#allocation2 + $0x8] sm:$0xff] (!%p141_p9), %vm170_vm0, %v19449_v3  ;;  %16491 = vmatprep.subr.bf16.mxu0 (!%p141_p9), %v19294_v1  ;;  %v19296_v4 = vld [vmem:[%s22349_s1 + $0x48] sm:$0xff] (!%p141_p9)   ;;  %p164_p10 = scmp.lt.s32.totalorder (!%p141_p9), %s19494_s16, 1  ;;  %v19594_v5 = vld [vmem:[%s22349_s1] sm:$0xff] (!%p141_p9)  }
   0xf   : > { %175 = vst.msk [vmem:[#allocation2 + $0x18] sm:$0xff] (!%p141_p9), %vm170_vm0, %v19449_v3  ;;  %176 = vst.msk [vmem:[#allocation2 + $0x20] sm:$0xff] (!%p141_p9), %vm170_vm0, %v19449_v3  ;;  %16348 = vmatpush3.bf16.msra.mxu1 (!%p141_p9), %v19293_v0  ;;  %16492 = vmatpush3.bf16.msra.mxu0 (!%p141_p9), %v19294_v1  ;;  %v19600_v6 = vld [vmem:[%s22349_s1 + $0x50] sm:$0xff] (!%p141_p9)   ;;  %v19299_v40 = vld [vmem:[%s22349_s1 + $0x58] sm:$0xff] (!%p141_p9)   ;;  %s161_s20 = sand.u32 (!%p141_p9), 1, %s19439_s13   ;;  %s15536_s28 = sshll.u32 (!%p141_p9), %s19494_s16, 12 }
  0x10   : > { %178 = vst.msk [vmem:[#allocation2 + $0x30] sm:$0xff] (!%p141_p9), %vm170_vm0, %v19449_v3  ;;  %179 = vst.msk [vmem:[#allocation2 + $0x38] sm:$0xff] (!%p141_p9), %vm170_vm0, %v19449_v3  ;;  %16349 = vmatprep.subr.bf16.mxu1 (!%p141_p9), %v19530_v2  ;;  %16493 = vmatprep.subr.bf16.mxu0 (!%p141_p9), %v19296_v4  ;;  %v19300_v42 = vld [vmem:[%s22349_s1 + $0x8] sm:$0xff] (!%p141_p9)   ;;  %v19678_v47 = vld [vmem:[%s22349_s1 + $0x60] sm:$0xff] (!%p141_p9)   ;;  %s14532_s26 = sshll.u32 (!%p141_p9), %s161_s20, 8  ;;  %s22295_s5 = scalar_lea.hbm (!%p141_p9), %s22351_s3, %s15536_s28 }
  0x11   : > { %181 = vst.msk [vmem:[#allocation2 + $0x48] sm:$0xff] (!%p141_p9), %vm170_vm0, %v19449_v3  ;;  %182 = vst.msk [vmem:[#allocation2 + $0x50] sm:$0xff] (!%p141_p9), %vm170_vm0, %v19449_v3  ;;  %v19716_v0 = vld [vmem:[%s22349_s1 + $0x20] sm:$0xff] (!%p141_p9)   ;;  %s22202_s27 = scalar_lea.vmem (!%p141_p9), [#allocation4], %s14532_s26 }
  0x12   : > { %184 = vst.msk [vmem:[#allocation2 + $0x60] sm:$0xff] (!%p141_p9), %vm170_vm0, %v19449_v3  ;;  %185 = vst.msk [vmem:[#allocation2 + $0x68] sm:$0xff] (!%p141_p9), %vm170_vm0, %v19449_v3  ;;  %s14466_s29 = sshll.u32 (!%p141_p9), %s22202_s27, 4  ;;  %s22297_s29 = int_to_ptr.vmem [resolvable:$true] %s14466_s29 }
  0x13   : > { %187 = vst.msk [vmem:[#allocation2 + $0x78] sm:$0xff] (!%p141_p9), %vm170_vm0, %v19449_v3  ;;  %188 = vst.msk [vmem:[#allocation2 + $0x80] sm:$0xff] (!%p141_p9), %vm170_vm0, %v19449_v3  ;;  %16350 = vmatpush3.bf16.msra.mxu1 (!%p141_p9), %v19530_v2  ;;  %16494 = vmatpush3.bf16.msra.mxu0 (!%p141_p9), %v19296_v4  ;;  %s19385_s6 = scalar_lea.vmem (!%p141_p9), %s22297_s29, 4096 }
  0x14   : > { %190 = vst.msk [vmem:[#allocation2 + $0x90] sm:$0xff] (!%p141_p9), %vm170_vm0, %v19449_v3  ;;  %191 = vst.msk [vmem:[#allocation2 + $0x98] sm:$0xff] (!%p141_p9), %vm170_vm0, %v19449_v3  ;;  %16383 = vmatprep.subr.bf16.mxu1 (!%p141_p9), %v19594_v5  ;;  %16527 = vmatprep.subr.bf16.mxu0 (!%p141_p9), %v19600_v6  ;;  %p19386_p11 = scmp.ne.s32.totalorder (!%p141_p9), %s22297_s29, %s19385_s6 }
  0x15   : > { %193 = vst.msk [vmem:[#allocation2 + $0xa8] sm:$0xff] %vm170_vm0, %v19449_v3  ;;  %194 = vst.msk [vmem:[#allocation2 + $0xb0] sm:$0xff] %vm170_vm0, %v19449_v3  ;;  %s165_s7 = scalar_select %p164_p10, %s19494_s16, 1  ;;  %v343_v7 = vld [vmem:[#allocation2 + $0x1] sm:$0xff] }
  0x16   : > { %196 = vst.msk [vmem:[#allocation2 + $0xc0] sm:$0xff] %vm170_vm0, %v19449_v3  ;;  %197 = vst.msk [vmem:[#allocation2 + $0xc8] sm:$0xff] %vm170_vm0, %v19449_v3  ;;  %s22307_s16 = scalar_lea.sflag [#allocation5], %s161_s20  ;;  %p19387_p12 = pnand %p19386_p11, %p19511_p5 }
  0x17   : > { %199 = vst.msk [vmem:[#allocation2 + $0xd8] sm:$0xff] %vm170_vm0, %v19449_v3  ;;  %200 = vst.msk [vmem:[#allocation2 + $0xe0] sm:$0xff] %vm170_vm0, %v19449_v3  ;;  %s15535_s10 = sshll.u32 %s165_s7, 8  ;;  %s19450_s7 = smov [#allocation4]  }
  0x18   : > { %202 = vst.msk [vmem:[#allocation2 + $0xf0] sm:$0xff] %vm170_vm0, %v19449_v3  ;;  %203 = vst.msk [vmem:[#allocation2 + $0xf8] sm:$0xff] %vm170_vm0, %v19449_v3  ;;  %s19606_s19 = scalar_lea.vmem %s22348_s0, %s15535_s10  ;;  %p19388_p13 = pneg %p19387_p12 }
  0x19   : > { %205 = vst.msk [vmem:[#allocation2 + $0x108] sm:$0xff] %vm170_vm0, %v19449_v3  ;;  %206 = vst.msk [vmem:[#allocation2 + $0x110] sm:$0xff] %vm170_vm0, %v19449_v3  ;;  %v226_v8 = vld [vmem:[%s19606_s19] sm:$0xff]  ;;  %v227_v9 = vld [vmem:[%s19606_s19 + $0x8] sm:$0xff]  ;;  %s19389_s8 = sshll.u32 %s19450_s7, 4  ;;  %s19390_s8 = int_to_ptr.vmem [resolvable:$false] %s19389_s8 }
  0x1a   : > { %208 = vst.msk [vmem:[#allocation2 + $0x120] sm:$0xff] %vm170_vm0, %v19449_v3  ;;  %209 = vst.msk [vmem:[#allocation2 + $0x128] sm:$0xff] %vm170_vm0, %v19449_v3  ;;  %v228_v11 = vld [vmem:[%s19606_s19 + $0x10] sm:$0xff]  ;;  %v229_v12 = vld [vmem:[%s19606_s19 + $0x18] sm:$0xff]  ;;  %s19391_s9 = scalar_lea.vmem %s19390_s8, 8192  ;;  %p19392_p0 = scmp.lt.s32.totalorder %s22297_s29, %s19390_s8 }
  0x1b   : > { %211 = vst.msk [vmem:[#allocation2 + $0x138] sm:$0xff] %vm170_vm0, %v19449_v3  ;;  %212 = vst.msk [vmem:[#allocation2 + $0x140] sm:$0xff] %vm170_vm0, %v19449_v3  ;;  %v230_v14 = vld [vmem:[%s19606_s19 + $0x20] sm:$0xff]  ;;  %v231_v15 = vld [vmem:[%s19606_s19 + $0x28] sm:$0xff]  ;;  %p19393_p1 = scmp.lt.s32.totalorder %s19391_s9, %s19385_s6 }
  0x1c   : > { %214 = vst.msk [vmem:[#allocation2 + $0x150] sm:$0xff] %vm170_vm0, %v19449_v3  ;;  %215 = vst.msk [vmem:[#allocation2 + $0x158] sm:$0xff] %vm170_vm0, %v19449_v3  ;;  %v232_v16 = vld [vmem:[%s19606_s19 + $0x30] sm:$0xff]  ;;  %v233_v17 = vld [vmem:[%s19606_s19 + $0x38] sm:$0xff] }
  0x1d   : > { %217 = vst.msk [vmem:[#allocation2 + $0x168] sm:$0xff] %vm170_vm0, %v19449_v3  ;;  %218 = vst.msk [vmem:[#allocation2 + $0x170] sm:$0xff] %vm170_vm0, %v19449_v3  ;;  %v234_v18 = vld [vmem:[%s19606_s19 + $0x40] sm:$0xff]  ;;  %v235_v19 = vld [vmem:[%s19606_s19 + $0x48] sm:$0xff]  ;;  %p19394_p2 = por %p19393_p1, %p19392_p0 }
  0x1e   : > { %220 = vst.msk [vmem:[#allocation2 + $0x180] sm:$0xff] %vm170_vm0, %v19449_v3  ;;  %221 = vst.msk [vmem:[#allocation2 + $0x188] sm:$0xff] %vm170_vm0, %v19449_v3  ;;  %v236_v20 = vld [vmem:[%s19606_s19 + $0x50] sm:$0xff]  ;;  %v237_v21 = vld [vmem:[%s19606_s19 + $0x58] sm:$0xff] }
  0x1f   : > { %223 = vst.msk [vmem:[#allocation2 + $0x198] sm:$0xff] %vm170_vm0, %v19449_v3  ;;  %224 = vst.msk [vmem:[#allocation2 + $0x1a0] sm:$0xff] %vm170_vm0, %v19449_v3  ;;  %v238_v22 = vld [vmem:[%s19606_s19 + $0x60] sm:$0xff]  ;;  %v239_v23 = vld [vmem:[%s19606_s19 + $0x68] sm:$0xff]  ;;  %p19395_p3 = pnand %p19394_p2, %p19388_p13 }
  0x20   : > { %174 = vst.msk [vmem:[#allocation2 + $0x10] sm:$0x3] %vm173_vm1, %v19449_v3  ;;  %177 = vst.msk [vmem:[#allocation2 + $0x28] sm:$0x3] %vm173_vm1, %v19449_v3  ;;  %v240_v24 = vld [vmem:[%s19606_s19 + $0x70] sm:$0xff]  ;;  %v241_v25 = vld [vmem:[%s19606_s19 + $0x78] sm:$0xff] }
  0x21   : > { %180 = vst.msk [vmem:[#allocation2 + $0x40] sm:$0x3] %vm173_vm1, %v19449_v3  ;;  %183 = vst.msk [vmem:[#allocation2 + $0x58] sm:$0x3] %vm173_vm1, %v19449_v3  ;;  %v242_v26 = vld [vmem:[%s19606_s19 + $0x80] sm:$0xff]  ;;  %v243_v27 = vld [vmem:[%s19606_s19 + $0x88] sm:$0xff] }
  0x22   : > { %186 = vst.msk [vmem:[#allocation2 + $0x70] sm:$0x3] %vm173_vm1, %v19449_v3  ;;  %189 = vst.msk [vmem:[#allocation2 + $0x88] sm:$0x3] %vm173_vm1, %v19449_v3  ;;  %v244_v28 = vld [vmem:[%s19606_s19 + $0x90] sm:$0xff]  ;;  %v245_v29 = vld [vmem:[%s19606_s19 + $0x98] sm:$0xff] }
  0x23   : > { %192 = vst.msk [vmem:[#allocation2 + $0xa0] sm:$0x3] %vm173_vm1, %v19449_v3  ;;  %195 = vst.msk [vmem:[#allocation2 + $0xb8] sm:$0x3] %vm173_vm1, %v19449_v3  ;;  %v246_v30 = vld [vmem:[%s19606_s19 + $0xa0] sm:$0xff]  ;;  %v247_v31 = vld [vmem:[%s19606_s19 + $0xa8] sm:$0xff] }
  0x24   : > { %198 = vst.msk [vmem:[#allocation2 + $0xd0] sm:$0x3] %vm173_vm1, %v19449_v3  ;;  %201 = vst.msk [vmem:[#allocation2 + $0xe8] sm:$0x3] %vm173_vm1, %v19449_v3  ;;  %v248_v50 = vld [vmem:[%s19606_s19 + $0xb0] sm:$0xff]  ;;  %v249_v51 = vld [vmem:[%s19606_s19 + $0xb8] sm:$0xff] }
  0x25   : > { %204 = vst.msk [vmem:[#allocation2 + $0x100] sm:$0x3] %vm173_vm1, %v19449_v3  ;;  %207 = vst.msk [vmem:[#allocation2 + $0x118] sm:$0x3] %vm173_vm1, %v19449_v3  ;;  %v250_v52 = vld [vmem:[%s19606_s19 + $0xc0] sm:$0xff]  ;;  %v251_v53 = vld [vmem:[%s19606_s19 + $0xc8] sm:$0xff] }
  0x26   : > { %210 = vst.msk [vmem:[#allocation2 + $0x130] sm:$0x3] %vm173_vm1, %v19449_v3  ;;  %213 = vst.msk [vmem:[#allocation2 + $0x148] sm:$0x3] %vm173_vm1, %v19449_v3  ;;  %v252_v56 = vld [vmem:[%s19606_s19 + $0xd0] sm:$0xff]  ;;  %v253_v57 = vld [vmem:[%s19606_s19 + $0xd8] sm:$0xff] }
  0x27   : > { %216 = vst.msk [vmem:[#allocation2 + $0x160] sm:$0x3] %vm173_vm1, %v19449_v3  ;;  %219 = vst.msk [vmem:[#allocation2 + $0x178] sm:$0x3] %vm173_vm1, %v19449_v3  ;;  %v344_v10 = vld [vmem:[#allocation2 + $0x9] sm:$0xff]  ;;  %v254_v58 = vld [vmem:[%s19606_s19 + $0xe0] sm:$0xff] }
  0x28   : > { %222 = vst.msk [vmem:[#allocation2 + $0x190] sm:$0x3] %vm173_vm1, %v19449_v3  ;;  %225 = vst.msk [vmem:[#allocation2 + $0x1a8] sm:$0x3] %vm173_vm1, %v19449_v3  ;;  %v375_v13 = vpack.c.bf16 %v344_v10, %v343_v7  ;;  %v255_v59 = vld [vmem:[%s19606_s19 + $0xe8] sm:$0xff] }
  0x29   : > { %259 = vst.msk [vmem:[#allocation2 + $0x19] sm:$0xff] %vm170_vm0, %v226_v8  ;;  %260 = vst.msk [vmem:[#allocation2 + $0x21] sm:$0xff] %vm170_vm0, %v227_v9 }
  0x2a   : > { %261 = vst.msk [vmem:[#allocation2 + $0x31] sm:$0xff] %vm170_vm0, %v228_v11  ;;  %262 = vst.msk [vmem:[#allocation2 + $0x39] sm:$0xff] %vm170_vm0, %v229_v12  ;;  %16351 = vmatprep.mubr.msk.bf16.mxu1 %vm170_vm0, %v375_v13 }
  0x2b   : > { %263 = vst.msk [vmem:[#allocation2 + $0x49] sm:$0xff] %vm170_vm0, %v230_v14  ;;  %264 = vst.msk [vmem:[#allocation2 + $0x51] sm:$0xff] %vm170_vm0, %v231_v15  ;;  %v256_v15 = vld [vmem:[%s19606_s19 + $0xf0] sm:$0xff] }
  0x2c   : > { %265 = vst.msk [vmem:[#allocation2 + $0x61] sm:$0xff] %vm170_vm0, %v232_v16  ;;  %266 = vst.msk [vmem:[#allocation2 + $0x69] sm:$0xff] %vm170_vm0, %v233_v17  ;;  %v257_v16 = vld [vmem:[%s19606_s19 + $0xf8] sm:$0xff] }
  0x2d   : > { %267 = vst.msk [vmem:[#allocation2 + $0x79] sm:$0xff] %vm170_vm0, %v234_v18  ;;  %268 = vst.msk [vmem:[#allocation2 + $0x81] sm:$0xff] %vm170_vm0, %v235_v19 }
  0x2e   : > { %269 = vst.msk [vmem:[#allocation2 + $0x91] sm:$0xff] %vm170_vm0, %v236_v20  ;;  %270 = vst.msk [vmem:[#allocation2 + $0x99] sm:$0xff] %vm170_vm0, %v237_v21  ;;  %v19303_v21 = vld [vmem:[%s22349_s1 + $0x68] sm:$0xff]  }
  0x2f   : > { %271 = vst.msk [vmem:[#allocation2 + $0xa9] sm:$0xff] %vm170_vm0, %v238_v22  ;;  %272 = vst.msk [vmem:[#allocation2 + $0xb1] sm:$0xff] %vm170_vm0, %v239_v23 }
  0x30   : > { %273 = vst.msk [vmem:[#allocation2 + $0xc1] sm:$0xff] %vm170_vm0, %v240_v24  ;;  %274 = vst.msk [vmem:[#allocation2 + $0xc9] sm:$0xff] %vm170_vm0, %v241_v25  ;;  %v345_v32 = vld [vmem:[#allocation2 + $0x19] sm:$0xff]  ;;  %v346_v33 = vld [vmem:[#allocation2 + $0x21] sm:$0xff] }
  0x31   : > { %275 = vst.msk [vmem:[#allocation2 + $0xd9] sm:$0xff] %vm170_vm0, %v242_v26  ;;  %276 = vst.msk [vmem:[#allocation2 + $0xe1] sm:$0xff] %vm170_vm0, %v243_v27  ;;  %v376_v34 = vpack.c.bf16 %v346_v33, %v345_v32  ;;  %v1452_v35 = vld [vmem:[#allocation2 + $0x31] sm:$0xff]  ;;  %v1453_v36 = vld [vmem:[#allocation2 + $0x39] sm:$0xff] }
  0x32   : > { %277 = vst.msk [vmem:[#allocation2 + $0xf1] sm:$0xff] %vm170_vm0, %v244_v28  ;;  %278 = vst.msk [vmem:[#allocation2 + $0xf9] sm:$0xff] %vm170_vm0, %v245_v29  ;;  %v19655_v37 = vpack.c.bf16 %v1453_v36, %v1452_v35  ;;  %v349_v38 = vld [vmem:[#allocation2 + $0x49] sm:$0xff]  ;;  %v350_v39 = vld [vmem:[#allocation2 + $0x51] sm:$0xff] }
  0x33   : > { %279 = vst.msk [vmem:[#allocation2 + $0x109] sm:$0xff] %vm170_vm0, %v246_v30  ;;  %280 = vst.msk [vmem:[#allocation2 + $0x111] sm:$0xff] %vm170_vm0, %v247_v31  ;;  %16352 = vmatmul.mubr.msk.bf16.vlgmr.msra.gmra.mrb[0].mxu1 %vm170_vm0, %v376_v34  ;;  %16495 = vmatprep.mubr.msk.bf16.mxu0 %vm170_vm0, %v376_v34  ;;  %v19662_v41 = vpack.c.bf16 %v350_v39, %v349_v38  ;;  %v1456_v43 = vld [vmem:[#allocation2 + $0x61] sm:$0xff]  ;;  %v1457_v44 = vld [vmem:[#allocation2 + $0x69] sm:$0xff] }
  0x34   : > { %16384 = vmatpush3.bf16.msra.mxu1 %v19594_v5  ;;  %16496 = vmatmul.mubr.msk.bf16.vlgmr.msra.gmra.mrb[0].mxu0 %vm170_vm0, %v19655_v37  ;;  %v353_v45 = vld [vmem:[#allocation2 + $0x79] sm:$0xff]  ;;  %v354_v46 = vld [vmem:[#allocation2 + $0x81] sm:$0xff]  ;;  %v19680_v48 = vpack.c.bf16 %v1457_v44, %v1456_v43  ;;  %281 = vst.msk [vmem:[#allocation2 + $0x121] sm:$0xff] %vm170_vm0, %v248_v50  ;;  %282 = vst.msk [vmem:[#allocation2 + $0x129] sm:$0xff] %vm170_vm0, %v249_v51 }
  0x35   : > { %16528 = vmatpush3.bf16.msra.mxu0 %v19600_v6  ;;  %16355 = vmatprep.mubr.msk.bf16.mxu1 %vm170_vm0, %v19655_v37  ;;  %v19682_v49 = vpack.c.bf16 %v354_v46, %v353_v45  ;;  %283 = vst.msk [vmem:[#allocation2 + $0x139] sm:$0xff] %vm170_vm0, %v250_v52  ;;  %v1460_v54 = vld [vmem:[#allocation2 + $0x91] sm:$0xff]  ;;  %v1461_v55 = vld [vmem:[#allocation2 + $0x99] sm:$0xff]  ;;  %284 = vst.msk [vmem:[#allocation2 + $0x141] sm:$0xff] %vm170_vm0, %v251_v53 }
  0x36   : > { %16499 = vmatprep.mubr.msk.bf16.mxu0 %vm170_vm0, %v19662_v41  ;;  %16529 = vmatprep.subr.bf16.mxu0 %v19299_v40  ;;  %285 = vst.msk [vmem:[#allocation2 + $0x151] sm:$0xff] %vm170_vm0, %v252_v56  ;;  %v357_v60 = vld [vmem:[#allocation2 + $0xa9] sm:$0xff]  ;;  %v358_v61 = vld [vmem:[#allocation2 + $0xb1] sm:$0xff]  ;;  %286 = vst.msk [vmem:[#allocation2 + $0x159] sm:$0xff] %vm170_vm0, %v253_v57  ;;  %v19709_v62 = vpack.c.bf16 %v1461_v55, %v1460_v54 }
  0x37   : > { %16385 = vmatprep.subr.bf16.mxu1 %v19300_v42  ;;  %287 = vst.msk [vmem:[#allocation2 + $0x169] sm:$0xff] %vm170_vm0, %v254_v58  ;;  %288 = vst.msk [vmem:[#allocation2 + $0x171] sm:$0xff] %vm170_vm0, %v255_v59  ;;  %v19711_v63 = vpack.c.bf16 %v358_v61, %v357_v60  ;;  %v1464_v1 = vld [vmem:[#allocation2 + $0xc1] sm:$0xff]  ;;  %v1465_v2 = vld [vmem:[#allocation2 + $0xc9] sm:$0xff] }
  0x38   : > { %16386 = vmatpush3.bf16.msra.mxu1 %v19300_v42  ;;  %v1756_v3 = vld [vmem:[#allocation2 + $0x1a] sm:$0xff]  ;;  %v1757_v4 = vld [vmem:[#allocation2 + $0x22] sm:$0xff]  ;;  %v19727_v5 = vpack.c.bf16 %v1465_v2, %v1464_v1  ;;  %v1758_v9 = vld [vmem:[#allocation2 + $0x32] sm:$0xff]  ;;  %289 = vst.msk [vmem:[#allocation2 + $0x181] sm:$0xff] %vm170_vm0, %v256_v15 }
  0x39   : > { %16530 = vmatpush3.bf16.msra.mxu0 %v19299_v40  ;;  %16419 = vmatprep.subr.bf16.mxu1 %v19716_v0  ;;  %v19729_v6 = vpack.c.bf16 %v1757_v4, %v1756_v3  ;;  %v361_v7 = vld [vmem:[#allocation2 + $0xd9] sm:$0xff]  ;;  %v362_v8 = vld [vmem:[#allocation2 + $0xe1] sm:$0xff]  ;;  %v363_v11 = vld [vmem:[#allocation2 + $0xf1] sm:$0xff]  ;;  %290 = vst.msk [vmem:[#allocation2 + $0x189] sm:$0xff] %vm170_vm0, %v257_v16 }
  0x3a   : > { %16563 = vmatprep.subr.bf16.mxu0 %v19678_v47  ;;  %v1759_v10 = vld [vmem:[#allocation2 + $0x3a] sm:$0xff]  ;;  %v1760_v13 = vld [vmem:[#allocation2 + $0x4a] sm:$0xff]  ;;  %v1761_v14 = vld [vmem:[#allocation2 + $0x52] sm:$0xff]  ;;  %v19741_v17 = vpack.c.bf16 %v362_v8, %v361_v7 }
  0x3b   : > { %16356 = vmatmul.mubr.msk.bf16.gmra.mrb[4].mxu1 %vm170_vm0, %v19662_v41  ;;  %v364_v12 = vld [vmem:[#allocation2 + $0xf9] sm:$0xff]  ;;  %v19745_v18 = vpack.c.bf16 %v1759_v10, %v1758_v9  ;;  %v19749_v20 = vpack.c.bf16 %v1761_v14, %v1760_v13  ;;  %v365_v22 = vld [vmem:[#allocation2 + $0x109] sm:$0xff]  ;;  %v366_v23 = vld [vmem:[#allocation2 + $0x111] sm:$0xff] }
  0x3c   : > { %16500 = vmatmul.mubr.msk.bf16.gmra.mrb[4].mxu0 %vm170_vm0, %v19680_v48  ;;  %16359 = vmatprep.mubr.msk.bf16.mxu1 %vm170_vm0, %v19680_v48  ;;  %v19747_v19 = vpack.c.bf16 %v364_v12, %v363_v11  ;;  %v1762_v24 = vld [vmem:[#allocation2 + $0x62] sm:$0xff]  ;;  %v1763_v25 = vld [vmem:[#allocation2 + $0x6a] sm:$0xff]  ;;  %v1764_v28 = vld [vmem:[#allocation2 + $0x7a] sm:$0xff]  ;;  %v19768_v31 = vpack.c.bf16 %v366_v23, %v365_v22 }
  0x3d   : > { %16503 = vmatprep.mubr.msk.bf16.mxu0 %vm170_vm0, %v19682_v49  ;;  %v367_v26 = vld [vmem:[#allocation2 + $0x121] sm:$0xff]  ;;  %v368_v27 = vld [vmem:[#allocation2 + $0x129] sm:$0xff]  ;;  %v19770_v32 = vpack.c.bf16 %v1763_v25, %v1762_v24  ;;  %v369_v35 = vld [vmem:[#allocation2 + $0x139] sm:$0xff] }
  0x3e   : > { %v1765_v29 = vld [vmem:[#allocation2 + $0x82] sm:$0xff]  ;;  %v19766_v30 = vld [vmem:[%s22349_s1 + $0x70] sm:$0xff]   ;;  %v19772_v33 = vpack.c.bf16 %v368_v27, %v367_v26  ;;  %v1767_v39 = vld [vmem:[#allocation2 + $0x9a] sm:$0xff] }
  0x3f   : > { %v19774_v34 = vpack.c.bf16 %v1765_v29, %v1764_v28  ;;  %v370_v36 = vld [vmem:[#allocation2 + $0x141] sm:$0xff]  ;;  %v1766_v38 = vld [vmem:[#allocation2 + $0x92] sm:$0xff]  ;;  %v1768_v43 = vld [vmem:[#allocation2 + $0xaa] sm:$0xff] }
  0x40   : > { %v371_v40 = vld [vmem:[#allocation2 + $0x151] sm:$0xff]  ;;  %v372_v42 = vld [vmem:[#allocation2 + $0x159] sm:$0xff]  ;;  %v19785_v45 = vpack.c.bf16 %v370_v36, %v369_v35  ;;  %v19787_v46 = vpack.c.bf16 %v1767_v39, %v1766_v38  ;;  %v373_v51 = vld [vmem:[#allocation2 + $0x169] sm:$0xff] }
  0x41   : > { %v1769_v44 = vld [vmem:[#allocation2 + $0xb2] sm:$0xff]  ;;  %v1770_v53 = vld [vmem:[#allocation2 + $0xc2] sm:$0xff]  ;;  %v1771_v54 = vld [vmem:[#allocation2 + $0xca] sm:$0xff] }
  0x42   : > { %v19791_v50 = vpack.c.bf16 %v1769_v44, %v1768_v43  ;;  %v374_v52 = vld [vmem:[#allocation2 + $0x171] sm:$0xff]  ;;  %v291_v55 = vld [vmem:[#allocation2] sm:$0xff]  ;;  %v292_v56 = vld [vmem:[#allocation2 + $0x8] sm:$0xff]  ;;  %v19803_v60 = vpack.c.bf16 %v1771_v54, %v1770_v53 }
  0x43   : > { %16360 = vmatmul.mubr.msk.bf16.gmra.mrb[8].mxu1 %vm170_vm0, %v19682_v49  ;;  %v1772_v57 = vld [vmem:[#allocation2 + $0xda] sm:$0xff]  ;;  %v1773_v58 = vld [vmem:[#allocation2 + $0xe2] sm:$0xff]  ;;  %v19801_v59 = vpack.c.bf16 %v374_v52, %v373_v51  ;;  %v323_v61 = vpack.c.bf16 %v292_v56, %v291_v55  ;;  %v1774_v4 = vld [vmem:[#allocation2 + $0xf2] sm:$0xff] }
  0x44   : > { %16504 = vmatmul.mubr.msk.bf16.gmra.mrb[8].mxu0 %vm170_vm0, %v19709_v62  ;;  %16363 = vmatprep.mubr.msk.bf16.mxu1 %vm170_vm0, %v19709_v62  ;;  %v19805_v1 = vpack.c.bf16 %v1773_v58, %v1772_v57  ;;  %v293_v2 = vld [vmem:[#allocation2 + $0x18] sm:$0xff]  ;;  %v294_v3 = vld [vmem:[#allocation2 + $0x20] sm:$0xff]  ;;  %v295_v8 = vld [vmem:[#allocation2 + $0x30] sm:$0xff] }
  0x45   : > { %16507 = vmatprep.mubr.msk.bf16.mxu0 %vm170_vm0, %v19711_v63  ;;  %v1775_v7 = vld [vmem:[#allocation2 + $0xfa] sm:$0xff]  ;;  %v1776_v10 = vld [vmem:[#allocation2 + $0x10a] sm:$0xff]  ;;  %v1777_v11 = vld [vmem:[#allocation2 + $0x112] sm:$0xff]  ;;  %v19814_v12 = vpack.c.bf16 %v294_v3, %v293_v2 }
  0x46   : > { %v296_v9 = vld [vmem:[#allocation2 + $0x38] sm:$0xff]  ;;  %v19816_v13 = vpack.c.bf16 %v1775_v7, %v1774_v4  ;;  %v19304_v14 = vld [vmem:[%s22349_s1 + $0x28] sm:$0xff]   ;;  %v19823_v16 = vpack.c.bf16 %v1777_v11, %v1776_v10  ;;  %v298_v22 = vld [vmem:[#allocation2 + $0x50] sm:$0xff] }
  0x47   : > { %v19821_v15 = vpack.c.bf16 %v296_v9, %v295_v8  ;;  %v1778_v23 = vld [vmem:[#allocation2 + $0x122] sm:$0xff]  ;;  %v1779_v24 = vld [vmem:[#allocation2 + $0x12a] sm:$0xff]  ;;  %v1780_v28 = vld [vmem:[#allocation2 + $0x13a] sm:$0xff] }
  0x48   : > { %v299_v25 = vld [vmem:[#allocation2 + $0x60] sm:$0xff]  ;;  %v300_v26 = vld [vmem:[#allocation2 + $0x68] sm:$0xff]  ;;  %v19830_v27 = vld [vmem:[%s22349_s1 + $0x30] sm:$0xff]   ;;  %v19841_v36 = vpack.c.bf16 %v1779_v24, %v1778_v23 }
  0x49   : > { %v1781_v29 = vld [vmem:[#allocation2 + $0x142] sm:$0xff]  ;;  %v19843_v38 = vpack.c.bf16 %v300_v26, %v299_v25  ;;  %v301_v39 = vld [vmem:[#allocation2 + $0x78] sm:$0xff]  ;;  %v303_v44 = vld [vmem:[#allocation2 + $0x90] sm:$0xff] }
  0x4a   : > { %v1783_v43 = vld [vmem:[#allocation2 + $0x15a] sm:$0xff]  ;;  %v1784_v52 = vld [vmem:[#allocation2 + $0x16a] sm:$0xff]  ;;  %v1785_v53 = vld [vmem:[#allocation2 + $0x172] sm:$0xff] }
  0x4b   : > { %16364 = vmatmul.mubr.msk.bf16.gmra.mrb[12].mxu1 %vm170_vm0, %v19711_v63  ;;  %v304_v51 = vld [vmem:[#allocation2 + $0x98] sm:$0xff]  ;;  %v19862_v57 = vpack.c.bf16 %v1785_v53, %v1784_v52  ;;  %v305_v58 = vld [vmem:[#allocation2 + $0xa8] sm:$0xff]  ;;  %v307_v4 = vld [vmem:[#allocation2 + $0xc0] sm:$0xff] }
  0x4c   : > { %16508 = vmatmul.mubr.msk.bf16.gmra.mrb[12].mxu0 %vm170_vm0, %v19727_v5  ;;  %16367 = vmatprep.mubr.msk.bf16.mxu1 %vm170_vm0, %v19727_v5  ;;  %v19860_v56 = vpack.c.bf16 %v304_v51, %v303_v44  ;;  %v1786_v2 = vld [vmem:[#allocation2 + $0x182] sm:$0xff]  ;;  %v1787_v3 = vld [vmem:[#allocation2 + $0x18a] sm:$0xff]  ;;  %v309_v11 = vld [vmem:[#allocation2 + $0xd8] sm:$0xff] }
  0x4d   : > { %16531 = vmatprep.mubr.msk.bf16.mxu0 %vm170_vm0, %v19729_v6  ;;  %v308_v7 = vld [vmem:[#allocation2 + $0xc8] sm:$0xff]  ;;  %v19874_v9 = vpack.c.bf16 %v1787_v3, %v1786_v2  ;;  %v19307_v25 = vld [vmem:[%s22349_s1 + $0x78] sm:$0xff]   ;;  %v318_v44 = vld [vmem:[#allocation2 + $0x140] sm:$0xff] }
  0x4e   : > { %v19876_v10 = vpack.c.bf16 %v308_v7, %v307_v4  ;;  %v313_v26 = vld [vmem:[#allocation2 + $0x108] sm:$0xff]  ;;  %v319_v51 = vld [vmem:[#allocation2 + $0x150] sm:$0xff]  ;;  %v320_v52 = vld [vmem:[#allocation2 + $0x158] sm:$0xff] }
  0x4f   : > { %v322_v2 = vld [vmem:[#allocation2 + $0x170] sm:$0xff]  ;;  %v838_v3 = vld [vmem:[#allocation2 + $0x2] sm:$0xff] }
  0x50   : > { %v839_v4 = vld [vmem:[#allocation2 + $0xa] sm:$0xff] }
  0x53   : > { %16368 = vmatmul.mubr.msk.bf16.gmra.mrb[16].mxu1 %vm170_vm0, %v19741_v17 }
  0x54   : > { %16532 = vmatmul.mubr.msk.bf16.vlgmr.msra.gmra.mrb[0].mxu0 %vm170_vm0, %v19745_v18  ;;  %16371 = vmatprep.mubr.msk.bf16.mxu1 %vm170_vm0, %v19747_v19 }
  0x55   : > { %16564 = vmatpush3.bf16.msra.mxu0 %v19678_v47  ;;  %16535 = vmatprep.mubr.msk.bf16.mxu0 %vm170_vm0, %v19749_v20  ;;  %v19789_v47 = vpack.c.bf16 %v372_v42, %v371_v40  ;;  %v302_v40 = vld [vmem:[#allocation2 + $0x80] sm:$0xff]  ;;  %v1782_v42 = vld [vmem:[#allocation2 + $0x152] sm:$0xff] }
  0x56   : > { %16565 = vmatprep.subr.bf16.mxu0 %v19303_v21  ;;  %v19856_v54 = vpack.c.bf16 %v302_v40, %v301_v39  ;;  %v19858_v55 = vpack.c.bf16 %v1783_v43, %v1782_v42  ;;  %v316_v39 = vld [vmem:[#allocation2 + $0x128] sm:$0xff]  ;;  %v19309_v40 = vld [vmem:[%s22349_s1 + $0x80] sm:$0xff]  }
  0x59   : > { %16566 = vmatpush3.bf16.msra.mxu0 %v19303_v21  ;;  %v297_v21 = vld [vmem:[#allocation2 + $0x48] sm:$0xff] }
  0x5a   : > { %16599 = vmatprep.subr.bf16.mxu0 %v19766_v30  ;;  %v19839_v35 = vpack.c.bf16 %v298_v22, %v297_v21  ;;  %v311_v21 = vld [vmem:[#allocation2 + $0xf0] sm:$0xff]  ;;  %v312_v22 = vld [vmem:[#allocation2 + $0xf8] sm:$0xff] }
  0x5b   : > { %16372 = vmatmul.mubr.msk.bf16.gmra.mrb[20].mxu1 %vm170_vm0, %v19768_v31  ;;  %v19888_v24 = vpack.c.bf16 %v312_v22, %v311_v21  ;;  %v19383_v21 = vld [vmem:[%s22349_s1 + $0x40] sm:$0xff]  }
  0x5c   : > { %16536 = vmatmul.mubr.msk.bf16.gmra.mrb[4].mxu0 %vm170_vm0, %v19770_v32  ;;  %16375 = vmatprep.mubr.msk.bf16.mxu1 %vm170_vm0, %v19772_v33 }
  0x5d   : > { %16539 = vmatprep.mubr.msk.bf16.mxu0 %vm170_vm0, %v19774_v34 }
  0x63   : > { %16376 = vmatmul.mubr.msk.bf16.gmra.mrb[24].mxu1 %vm170_vm0, %v19785_v45 }
  0x64   : > { %16540 = vmatmul.mubr.msk.bf16.gmra.mrb[8].mxu0 %vm170_vm0, %v19787_v46  ;;  %16379 = vmatprep.mubr.msk.bf16.mxu1 %vm170_vm0, %v19789_v47 }
  0x65   : > { %16543 = vmatprep.mubr.msk.bf16.mxu0 %vm170_vm0, %v19791_v50 }
  0x6b   : > { %16380 = vmatmul.mubr.msk.bf16.gmra.mrb[28].mxu1 %vm170_vm0, %v19801_v59 }
  0x6c   : > { %16544 = vmatmul.mubr.msk.bf16.gmra.mrb[12].mxu0 %vm170_vm0, %v19803_v60  ;;  %16387 = vmatprep.mubr.msk.bf16.mxu1 %vm170_vm0, %v323_v61  ;;  %v306_v61 = vld [vmem:[#allocation2 + $0xb0] sm:$0xff] }
  0x6d   : > { %16547 = vmatprep.mubr.msk.bf16.mxu0 %vm170_vm0, %v19805_v1  ;;  %v19872_v8 = vpack.c.bf16 %v306_v61, %v305_v58  ;;  %v19919_v58 = vpack.c.bf16 %v320_v52, %v319_v51  ;;  %v321_v61 = vld [vmem:[#allocation2 + $0x168] sm:$0xff] }
  0x6e   : > { %v19929_v7 = vpack.c.bf16 %v322_v2, %v321_v61 }
  0x73   : > { %16388 = vmatmul.mubr.msk.bf16.vlgmr.msra.gmra.mrb[0].mxu1 %vm170_vm0, %v19814_v12 }
  0x74   : > { %16420 = vmatpush3.bf16.msra.mxu1 %v19716_v0  ;;  %16548 = vmatmul.mubr.msk.bf16.gmra.mrb[16].mxu0 %vm170_vm0, %v19816_v13  ;;  %v19845_v0 = vpack.c.bf16 %v1781_v29, %v1780_v28  ;;  %v314_v28 = vld [vmem:[#allocation2 + $0x110] sm:$0xff]  ;;  %v315_v29 = vld [vmem:[#allocation2 + $0x120] sm:$0xff] }
  0x75   : > { %16391 = vmatprep.mubr.msk.bf16.mxu1 %vm170_vm0, %v19821_v15  ;;  %16551 = vmatprep.mubr.msk.bf16.mxu0 %vm170_vm0, %v19823_v16  ;;  %v19905_v42 = vpack.c.bf16 %v314_v28, %v313_v26  ;;  %v19907_v43 = vpack.c.bf16 %v316_v39, %v315_v29  ;;  %v2094_v26 = vld [vmem:[#allocation2 + $0x1a0] sm:$0xff]  ;;  %v19310_v29 = vld [vmem:[%s22349_s1 + $0x88] sm:$0xff]  }
  0x76   : > { %16421 = vmatprep.subr.bf16.mxu1 %v19304_v14  ;;  %v20130_v39 = vld [vmem:[%s22350_s2] ss:$0 sm:$0xff] }
  0x78   : > { %16422 = vmatpush3.bf16.msra.mxu1 %v19304_v14  ;;  %v310_v14 = vld [vmem:[#allocation2 + $0xe0] sm:$0xff] }
  0x79   : > { %16455 = vmatprep.subr.bf16.mxu1 %v19830_v27  ;;  %v19886_v23 = vpack.c.bf16 %v310_v14, %v309_v11  ;;  %v870_v11 = vpack.c.bf16 %v839_v4, %v838_v3  ;;  %v19308_v14 = vld [vmem:[%s22349_s1 + $0x38] sm:$0xff]  }
  0x7b   : > { %16392 = vmatmul.mubr.msk.bf16.gmra.mrb[4].mxu1 %vm170_vm0, %v19839_v35 }
  0x7c   : > { %16552 = vmatmul.mubr.msk.bf16.gmra.mrb[20].mxu0 %vm170_vm0, %v19841_v36  ;;  %16395 = vmatprep.mubr.msk.bf16.mxu1 %vm170_vm0, %v19843_v38 }
  0x7d   : > { %16555 = vmatprep.mubr.msk.bf16.mxu0 %vm170_vm0, %v19845_v0 }
  0x83   : > { %16396 = vmatmul.mubr.msk.bf16.gmra.mrb[8].mxu1 %vm170_vm0, %v19856_v54 }
  0x84   : > { %16556 = vmatmul.mubr.msk.bf16.gmra.mrb[24].mxu0 %vm170_vm0, %v19858_v55  ;;  %16399 = vmatprep.mubr.msk.bf16.mxu1 %vm170_vm0, %v19860_v56 }
  0x85   : > { %16559 = vmatprep.mubr.msk.bf16.mxu0 %vm170_vm0, %v19862_v57 }
  0x8b   : > { %16400 = vmatmul.mubr.msk.bf16.gmra.mrb[12].mxu1 %vm170_vm0, %v19872_v8 }
  0x8c   : > { %16560 = vmatmul.mubr.msk.bf16.gmra.mrb[28].mxu0 %vm170_vm0, %v19874_v9  ;;  %16403 = vmatprep.mubr.msk.bf16.mxu1 %vm170_vm0, %v19876_v10 }
  0x8d   : > { %16567 = vmatprep.mubr.msk.bf16.mxu0 %vm170_vm0, %v19821_v15 }
  0x93   : > { %16404 = vmatmul.mubr.msk.bf16.gmra.mrb[16].mxu1 %vm170_vm0, %v19886_v23 }
  0x94   : > { %16568 = vmatmul.mubr.msk.bf16.vlgmr.msra.gmra.mrb[0].mxu0 %vm170_vm0, %v19839_v35  ;;  %16407 = vmatprep.mubr.msk.bf16.mxu1 %vm170_vm0, %v19888_v24 }
  0x95   : > { %16600 = vmatpush3.bf16.msra.mxu0 %v19766_v30  ;;  %16571 = vmatprep.mubr.msk.bf16.mxu0 %vm170_vm0, %v19843_v38  ;;  %v317_v30 = vld [vmem:[#allocation2 + $0x138] sm:$0xff] }
  0x96   : > { %16601 = vmatprep.subr.bf16.mxu0 %v19307_v25  ;;  %v19917_v53 = vpack.c.bf16 %v318_v44, %v317_v30 }
  0x99   : > { %16602 = vmatpush3.bf16.msra.mxu0 %v19307_v25  ;;  %v2093_v25 = vld [vmem:[#allocation2 + $0x198] sm:$0xff] }
  0x9a   : > { %16635 = vmatprep.subr.bf16.mxu0 %v19309_v40  ;;  %v2110_v28 = vpack.c.bf16 %v2094_v26, %v2093_v25 }
  0x9b   : > { %16408 = vmatmul.mubr.msk.bf16.gmra.mrb[20].mxu1 %vm170_vm0, %v19905_v42 }
  0x9c   : > { %16572 = vmatmul.mubr.msk.bf16.gmra.mrb[4].mxu0 %vm170_vm0, %v19856_v54  ;;  %16411 = vmatprep.mubr.msk.bf16.mxu1 %vm170_vm0, %v19907_v43 }
  0x9d   : > { %16575 = vmatprep.mubr.msk.bf16.mxu0 %vm170_vm0, %v19860_v56 }
  0xa3   : > { %16412 = vmatmul.mubr.msk.bf16.gmra.mrb[24].mxu1 %vm170_vm0, %v19917_v53 }
  0xa4   : > { %16576 = vmatmul.mubr.msk.bf16.gmra.mrb[8].mxu0 %vm170_vm0, %v19872_v8  ;;  %16415 = vmatprep.mubr.msk.bf16.mxu1 %vm170_vm0, %v19919_v58 }
  0xa5   : > { %16579 = vmatprep.mubr.msk.bf16.mxu0 %vm170_vm0, %v19876_v10 }
  0xab   : > { %16416 = vmatmul.mubr.msk.bf16.gmra.mrb[28].mxu1 %vm170_vm0, %v19929_v7 }
  0xac   : > { %16580 = vmatmul.mubr.msk.bf16.gmra.mrb[12].mxu0 %vm170_vm0, %v19886_v23  ;;  %16423 = vmatprep.mubr.msk.bf16.mxu1 %vm170_vm0, %v870_v11 }
  0xad   : > { %16583 = vmatprep.mubr.msk.bf16.mxu0 %vm170_vm0, %v19888_v24 }
  0xb3   : > { %16424 = vmatmul.mubr.msk.bf16.vlgmr.msra.gmra.mrb[0].mxu1 %vm170_vm0, %v19729_v6  ;;  %v2091_v6 = vld [vmem:[#allocation2 + $0x180] sm:$0xff] }
  0xb4   : > { %16456 = vmatpush3.bf16.msra.mxu1 %v19830_v27  ;;  %16584 = vmatmul.mubr.msk.bf16.gmra.mrb[16].mxu0 %vm170_vm0, %v19905_v42  ;;  %v2092_v27 = vld [vmem:[#allocation2 + $0x188] sm:$0xff] }
  0xb5   : > { %16427 = vmatprep.mubr.msk.bf16.mxu1 %vm170_vm0, %v19745_v18  ;;  %16587 = vmatprep.mubr.msk.bf16.mxu0 %vm170_vm0, %v19907_v43  ;;  %v19961_v22 = vpack.c.bf16 %v2092_v27, %v2091_v6 }
  0xb6   : > { %16457 = vmatprep.subr.bf16.mxu1 %v19308_v14 }
  0xb8   : > { %16458 = vmatpush3.bf16.msra.mxu1 %v19308_v14 }
  0xb9   : > { %17967 = vmatprep.subr.bf16.mxu1 %v19383_v21 }
  0xbb   : > { %16428 = vmatmul.mubr.msk.bf16.gmra.mrb[4].mxu1 %vm170_vm0, %v19749_v20 }
  0xbc   : > { %16588 = vmatmul.mubr.msk.bf16.gmra.mrb[20].mxu0 %vm170_vm0, %v19917_v53  ;;  %16431 = vmatprep.mubr.msk.bf16.mxu1 %vm170_vm0, %v19770_v32 }
  0xbd   : > { %16591 = vmatprep.mubr.msk.bf16.mxu0 %vm170_vm0, %v19919_v58 }
  0xc3   : > { %16432 = vmatmul.mubr.msk.bf16.gmra.mrb[8].mxu1 %vm170_vm0, %v19774_v34 }
  0xc4   : > { %16592 = vmatmul.mubr.msk.bf16.gmra.mrb[24].mxu0 %vm170_vm0, %v19929_v7  ;;  %16435 = vmatprep.mubr.msk.bf16.mxu1 %vm170_vm0, %v19787_v46 }
  0xc5   : > { %16595 = vmatprep.mubr.msk.bf16.mxu0 %vm170_vm0, %v19961_v22 }
  0xcb   : > { %16436 = vmatmul.mubr.msk.bf16.gmra.mrb[12].mxu1 %vm170_vm0, %v19791_v50 }
  0xcc   : > { %16596 = vmatmul.mubr.msk.bf16.gmra.mrb[28].mxu0 %vm170_vm0, %v2110_v28  ;;  %16439 = vmatprep.mubr.msk.bf16.mxu1 %vm170_vm0, %v19803_v60 }
  0xcd   : > { %16603 = vmatprep.mubr.msk.bf16.mxu0 %vm170_vm0, %v19655_v37  ;;  %v19384_v37 = vld [vmem:[%s22349_s1 + $0x48] sm:$0xff]  }
  0xd3   : > { %16440 = vmatmul.mubr.msk.bf16.gmra.mrb[16].mxu1 %vm170_vm0, %v19805_v1 }
  0xd4   : > { %16604 = vmatmul.mubr.msk.bf16.vlgmr.msra.gmra.mrb[0].mxu0 %vm170_vm0, %v19662_v41  ;;  %16443 = vmatprep.mubr.msk.bf16.mxu1 %vm170_vm0, %v19816_v13  ;;  %v2397_v41 = vld [vmem:[#allocation2 + $0x181] sm:$0xff] }
  0xd5   : > { %16636 = vmatpush3.bf16.msra.mxu0 %v19309_v40  ;;  %16607 = vmatprep.mubr.msk.bf16.mxu0 %vm170_vm0, %v19680_v48  ;;  %v2398_v48 = vld [vmem:[#allocation2 + $0x189] sm:$0xff] }
  0xd6   : > { %16637 = vmatprep.subr.bf16.mxu0 %v19310_v29 }
  0xd9   : > { %16638 = vmatpush3.bf16.msra.mxu0 %v19310_v29 }
  0xdb   : > { %16444 = vmatmul.mubr.msk.bf16.gmra.mrb[20].mxu1 %vm170_vm0, %v19823_v16 }
  0xdc   : > { %16608 = vmatmul.mubr.msk.bf16.gmra.mrb[4].mxu0 %vm170_vm0, %v19682_v49  ;;  %16447 = vmatprep.mubr.msk.bf16.mxu1 %vm170_vm0, %v19841_v36  ;;  %v2415_v49 = vpack.c.bf16 %v2398_v48, %v2397_v41 }
  0xdd   : > { %16611 = vmatprep.mubr.msk.bf16.mxu0 %vm170_vm0, %v19709_v62  ;;  %v2399_v62 = vld [vmem:[#allocation2 + $0x199] sm:$0xff] }
  0xe3   : > { %16448 = vmatmul.mubr.msk.bf16.gmra.mrb[24].mxu1 %vm170_vm0, %v19845_v0 }
  0xe4   : > { %16612 = vmatmul.mubr.msk.bf16.gmra.mrb[8].mxu0 %vm170_vm0, %v19711_v63  ;;  %16451 = vmatprep.mubr.msk.bf16.mxu1 %vm170_vm0, %v19858_v55  ;;  %v2400_v63 = vld [vmem:[#allocation2 + $0x1a1] sm:$0xff] }
  0xe5   : > { %16615 = vmatprep.mubr.msk.bf16.mxu0 %vm170_vm0, %v19727_v5  ;;  %v2416_v5 = vpack.c.bf16 %v2400_v63, %v2399_v62 }
  0xeb   : > { %16452 = vmatmul.mubr.msk.bf16.gmra.mrb[28].mxu1 %vm170_vm0, %v19862_v57 }
  0xec   : > { %16616 = vmatmul.mubr.msk.bf16.gmra.mrb[12].mxu0 %vm170_vm0, %v19741_v17  ;;  %16459 = vmatprep.mubr.msk.bf16.mxu1 %vm170_vm0, %v19814_v12  ;;  %v1466_v17 = vld [vmem:[#allocation2 + $0xd9] sm:$0xff] }
  0xed   : > { %16619 = vmatprep.mubr.msk.bf16.mxu0 %vm170_vm0, %v19747_v19 }
  0xf3   : > { %16460 = vmatmul.mubr.msk.bf16.vlgmr.msra.gmra.mrb[0].mxu1 %vm170_vm0, %v19821_v15 }
  0xf4   : > { %17969 = vmatpush3.bf16.msra.mxu1 %v19383_v21  ;;  %16620 = vmatmul.mubr.msk.bf16.gmra.mrb[16].mxu0 %vm170_vm0, %v19768_v31  ;;  %v1470_v31 = vld [vmem:[#allocation2 + $0x109] sm:$0xff] }
  0xf5   : > { %16463 = vmatprep.mubr.msk.bf16.mxu1 %vm170_vm0, %v19839_v35  ;;  %16623 = vmatprep.mubr.msk.bf16.mxu0 %vm170_vm0, %v19772_v33 }
  0xf6   : > { %17968 = vmatprep.subr.bf16.mxu1 %v19384_v37 }
  0xf8   : > { %17970 = vmatpush3.bf16.msra.mxu1 %v19384_v37 }
  0xfb   : > { %16464 = vmatmul.mubr.msk.bf16.gmra.mrb[4].mxu1 %vm170_vm0, %v19843_v38 }
  0xfc   : > { %16624 = vmatmul.mubr.msk.bf16.gmra.mrb[20].mxu0 %vm170_vm0, %v19785_v45  ;;  %16467 = vmatprep.mubr.msk.bf16.mxu1 %vm170_vm0, %v19856_v54 }
  0xfd   : > { %16627 = vmatprep.mubr.msk.bf16.mxu0 %vm170_vm0, %v19789_v47 }
 0x103   : > { %16468 = vmatmul.mubr.msk.bf16.gmra.mrb[8].mxu1 %vm170_vm0, %v19860_v56 }
 0x104   : > { %16628 = vmatmul.mubr.msk.bf16.gmra.mrb[24].mxu0 %vm170_vm0, %v19801_v59  ;;  %16471 = vmatprep.mubr.msk.bf16.mxu1 %vm170_vm0, %v19872_v8 }
 0x105   : > { %16631 = vmatprep.mubr.msk.bf16.mxu0 %vm170_vm0, %v2415_v49 }
 0x10b   : > { %16472 = vmatmul.mubr.msk.bf16.gmra.mrb[12].mxu1 %vm170_vm0, %v19876_v10 }
 0x10c   : > { %16632 = vmatmul.mubr.msk.bf16.gmra.mrb[28].mxu0 %vm170_vm0, %v2416_v5  ;;  %16475 = vmatprep.mubr.msk.bf16.mxu1 %vm170_vm0, %v19886_v23 }
 0x10d   : > { %16639 = vmatprep.mubr.msk.bf16.mxu0 %vm170_vm0, %v19745_v18  ;;  %v1467_v18 = vld [vmem:[#allocation2 + $0xe1] sm:$0xff] }
 0x113   : > { %16476 = vmatmul.mubr.msk.bf16.gmra.mrb[16].mxu1 %vm170_vm0, %v19888_v24 }
 0x114   : > { %16640 = vmatmul.mubr.msk.bf16.vlgmr.msra.gmra.mrb[0].mxu0 %vm170_vm0, %v19749_v20  ;;  %16479 = vmatprep.mubr.msk.bf16.mxu1 %vm170_vm0, %v19905_v42  ;;  %v1490_v20 = vpack.c.bf16 %v1467_v18, %v1466_v17 }
 0x115   : > { %16643 = vmatprep.mubr.msk.bf16.mxu0 %vm170_vm0, %v19770_v32  ;;  %v1471_v32 = vld [vmem:[#allocation2 + $0x111] sm:$0xff] }
 0x11b   : > { %16480 = vmatmul.mubr.msk.bf16.gmra.mrb[20].mxu1 %vm170_vm0, %v19907_v43 }
 0x11c   : > { %16644 = vmatmul.mubr.msk.bf16.gmra.mrb[4].mxu0 %vm170_vm0, %v19774_v34  ;;  %16483 = vmatprep.mubr.msk.bf16.mxu1 %vm170_vm0, %v19917_v53  ;;  %v1492_v34 = vpack.c.bf16 %v1471_v32, %v1470_v31 }
 0x11d   : > { %16647 = vmatprep.mubr.msk.bf16.mxu0 %vm170_vm0, %v19787_v46 }
 0x123   : > { %16484 = vmatmul.mubr.msk.bf16.gmra.mrb[24].mxu1 %vm170_vm0, %v19919_v58 }
 0x124   : > { %16648 = vmatmul.mubr.msk.bf16.gmra.mrb[8].mxu0 %vm170_vm0, %v19791_v50  ;;  %16487 = vmatprep.mubr.msk.bf16.mxu1 %vm170_vm0, %v19929_v7  ;;  %v3169_v50 = vld [vmem:[#allocation2 + $0x1] sm:$0xff] }
 0x125   : > { %16651 = vmatprep.mubr.msk.bf16.mxu0 %vm170_vm0, %v19803_v60 }
 0x12b   : > { %16488 = vmatmul.mubr.msk.bf16.gmra.mrb[28].mxu1 %vm170_vm0, %v19961_v22 }
 0x12c   : > { %16652 = vmatmul.mubr.msk.bf16.gmra.mrb[12].mxu0 %vm170_vm0, %v19805_v1  ;;  %16511 = vmatprep.mubr.msk.bf16.mxu1 %vm170_vm0, %v1490_v20  ;;  %v20112_v1 = vld [vmem:[%s22349_s1 + $0x90] sm:$0xff]  }
 0x12d   : > { %16655 = vmatprep.mubr.msk.bf16.mxu0 %vm170_vm0, %v19816_v13 }
 0x133   : > { %16512 = vmatmul.mubr.msk.bf16.vlgmr.msra.gmra.mrb[16].mxu1 %vm170_vm0, %v19747_v19  ;;  %v2705_v19 = vld [vmem:[#allocation2 + $0x19a] sm:$0xff] }
 0x134   : > { %16656 = vmatmul.mubr.msk.bf16.gmra.mrb[16].mxu0 %vm170_vm0, %v19823_v16  ;;  %16515 = vmatprep.mubr.msk.bf16.mxu1 %vm170_vm0, %v1492_v34 }
 0x135   : > { %16659 = vmatprep.mubr.msk.bf16.mxu0 %vm170_vm0, %v19841_v36 }
 0x13b   : > { %16516 = vmatmul.mubr.msk.bf16.gmra.mrb[20].mxu1 %vm170_vm0, %v19772_v33  ;;  %v2706_v33 = vld [vmem:[#allocation2 + $0x1a2] sm:$0xff] }
 0x13c   : > { %16660 = vmatmul.mubr.msk.bf16.gmra.mrb[20].mxu0 %vm170_vm0, %v19845_v0  ;;  %16519 = vmatprep.mubr.msk.bf16.mxu1 %vm170_vm0, %v19785_v45  ;;  %v2722_v46 = vpack.c.bf16 %v2706_v33, %v2705_v19  ;;  %v19311_v45 = vld [vmem:[%s22349_s1 + $0xa0] sm:$0xff]  }
 0x13d   : > { %16663 = vmatprep.mubr.msk.bf16.mxu0 %vm170_vm0, %v19858_v55  ;;  %16671 = vmatprep.subr.bf16.mxu1 %v19311_v45 }
 0x13e   : > { %16672 = vmatpush3.bf16.msra.mxu1 %v19311_v45 }
 0x143   : > { %16520 = vmatmul.mubr.msk.bf16.gmra.mrb[24].mxu1 %vm170_vm0, %v19789_v47  ;;  %v19312_v47 = vld [vmem:[%s22349_s1 + $0xa8] sm:$0xff]  }
 0x144   : > { %16664 = vmatmul.mubr.msk.bf16.gmra.mrb[24].mxu0 %vm170_vm0, %v19862_v57  ;;  %16523 = vmatprep.mubr.msk.bf16.mxu1 %vm170_vm0, %v19801_v59  ;;  %v3170_v59 = vld [vmem:[#allocation2 + $0x9] sm:$0xff] }
 0x145   : > { %16667 = vmatprep.mubr.msk.bf16.mxu0 %vm170_vm0, %v19874_v9  ;;  %16673 = vmatprep.subr.bf16.mxu1 %v19312_v47  ;;  %v3201_v60 = vpack.c.bf16 %v3170_v59, %v3169_v50 }
 0x146   : > { %16674 = vmatpush3.bf16.msra.mxu1 %v19312_v47  ;;  %v19314_v47 = vld [vmem:[%s22349_s1 + $0x98] sm:$0xff]  }
 0x147   : > { %16707 = vmatprep.subr.bf16.mxu1 %v20112_v1 }
 0x14b   : > { %16524 = vmatmul.mubr.msk.bf16.gmra.mrb[28].mxu1 %vm170_vm0, %v2415_v49 }
 0x14c   : > { %16668 = vmatmul.mubr.msk.bf16.gmra.mrb[28].mxu0 %vm170_vm0, %v2722_v46  ;;  %16675 = vmatprep.mubr.msk.bf16.mxu1 %vm170_vm0, %v3201_v60 }
 0x1c6   : > { %v16461_v12 = vpop.f32.mrb[0].mxu1 }
 0x1c7   : > { %v1291_v13 = vpop.f32.mrb[1].mxu1 }
 0x1c8   : > { %v16462_v15 = vpop.f32.mrb[2].mxu1 }
 0x1c9   : > { %v1294_v16 = vpop.f32.mrb[3].mxu1 }
 0x1ce   : > { %v16465_v35 = vpop.f32.mrb[4].mxu1 }
 0x1cf   : > { %v1307_v36 = vpop.f32.mrb[5].mxu1 }
 0x1d0   : > { %v16466_v38 = vpop.f32.mrb[6].mxu1 }
 0x1d1   : > { %v1310_v0 = vpop.f32.mrb[7].mxu1 }
 0x1d6   : > { %v16469_v54 = vpop.f32.mrb[8].mxu1 }
 0x1d7   : > { %v1323_v55 = vpop.f32.mrb[9].mxu1 }
 0x1d8   : > { %v20115_v56 = vpop.f32.mrb[10].mxu1 }
 0x1d9   : > { %v20117_v57 = vpop.f32.mrb[11].mxu1 }
 0x1de   : > { %v20119_v8 = vpop.f32.mrb[12].mxu1 }
 0x1df   : > { %v20121_v9 = vpop.f32.mrb[13].mxu1 }
 0x1e0   : > { %v20123_v10 = vpop.f32.mrb[14].mxu1 }
 0x1e1   : > { %v20125_v23 = vpop.f32.mrb[15].mxu1 }
 0x1e7   : > { %v16641_v24 = vpop.f32.mrb[0].mxu0 }
 0x1e8   : > { %v17971_v40 = vadd.f32 %v16641_v24, %v16461_v12  ;;  %v2822_v42 = vpop.f32.mrb[1].mxu0 }
 0x1e9   : > { %v17972_v43 = vadd.f32 %v2822_v42, %v1291_v13  ;;  %v16642_v30 = vpop.f32.mrb[2].mxu0 }
 0x1ea   : > { %v2990_v44 = vadd.f32 %v17971_v40, %v20130_v39  ;;  %v17973_v51 = vadd.f32 %v16642_v30, %v16462_v15  ;;  %v2825_v52 = vpop.f32.mrb[3].mxu0 }
 0x1eb   : > { %v2988_v53 = vadd.f32 %v17972_v43, %v20130_v39  ;;  %v17974_v58 = vadd.f32 %v2825_v52, %v1294_v16 }
 0x1ec   : > { %v3022_v61 = vmax.f32 %v2990_v44, 0.0  ;;  %v2991_v2 = vadd.f32 %v17973_v51, %v20130_v39 }
 0x1ed   : > { %v3020_v3 = vmax.f32 %v2988_v53, 0.0  ;;  %v2989_v4 = vadd.f32 %v17974_v58, %v20130_v39 }
 0x1ee   : > { %3054 = vst.msk [vmem:[#allocation3 + $0x10] sm:$0xff] %vm170_vm0, %v3022_v61  ;;  %3086 = vst.msk [vmem:[#allocation2 + $0x31] sm:$0xff] %vm170_vm0, %v3022_v61  ;;  %v3023_v7 = vmax.f32 %v2991_v2, 0.0 }
 0x1ef   : > { %3052 = vst.msk [vmem:[#allocation3] sm:$0xff] %vm170_vm0, %v3020_v3  ;;  %3084 = vst.msk [vmem:[#allocation2 + $0x19] sm:$0xff] %vm170_vm0, %v3020_v3  ;;  %v3021_v11 = vmax.f32 %v2989_v4, 0.0  ;;  %v16645_v14 = vpop.f32.mrb[4].mxu0 }
 0x1f0   : > { %3055 = vst.msk [vmem:[#allocation3 + $0x18] sm:$0xff] %vm170_vm0, %v3023_v7  ;;  %3087 = vst.msk [vmem:[#allocation2 + $0x39] sm:$0xff] %vm170_vm0, %v3023_v7  ;;  %v17975_v21 = vadd.f32 %v16645_v14, %v16465_v35  ;;  %v2838_v6 = vpop.f32.mrb[5].mxu0 }
 0x1f1   : > { %3053 = vst.msk [vmem:[#allocation3 + $0x8] sm:$0xff] %vm170_vm0, %v3021_v11  ;;  %3085 = vst.msk [vmem:[#allocation2 + $0x21] sm:$0xff] %vm170_vm0, %v3021_v11  ;;  %v17976_v27 = vadd.f32 %v2838_v6, %v1307_v36  ;;  %v16646_v22 = vpop.f32.mrb[6].mxu0 }
 0x1f2   : > { %v2994_v25 = vadd.f32 %v17975_v21, %v20130_v39  ;;  %v17977_v26 = vadd.f32 %v16646_v22, %v16466_v38  ;;  %v2841_v28 = vpop.f32.mrb[7].mxu0 }
 0x1f3   : > { %v2992_v29 = vadd.f32 %v17976_v27, %v20130_v39  ;;  %v17978_v37 = vadd.f32 %v2841_v28, %v1310_v0  ;;  %v20177_v0 = vld [vmem:[%s22349_s1 + $0xb0] sm:$0xff]  }
 0x1f4   : > { %v3026_v41 = vmax.f32 %v2994_v25, 0.0  ;;  %v2995_v48 = vadd.f32 %v17977_v26, %v20130_v39 }
 0x1f5   : > { %v3024_v49 = vmax.f32 %v2992_v29, 0.0  ;;  %v2993_v62 = vadd.f32 %v17978_v37, %v20130_v39  ;;  %v3173_v45 = vld [vmem:[#allocation2 + $0x31] sm:$0xff] }
 0x1f6   : > { %3058 = vst.msk [vmem:[#allocation3 + $0x30] sm:$0xff] %vm170_vm0, %v3026_v41  ;;  %3090 = vst.msk [vmem:[#allocation2 + $0x61] sm:$0xff] %vm170_vm0, %v3026_v41  ;;  %v3027_v63 = vmax.f32 %v2995_v48, 0.0  ;;  %v3171_v32 = vld [vmem:[#allocation2 + $0x19] sm:$0xff] }
 0x1f7   : > { %3056 = vst.msk [vmem:[#allocation3 + $0x20] sm:$0xff] %vm170_vm0, %v3024_v49  ;;  %3088 = vst.msk [vmem:[#allocation2 + $0x49] sm:$0xff] %vm170_vm0, %v3024_v49  ;;  %v3025_v5 = vmax.f32 %v2993_v62, 0.0  ;;  %v16649_v17 = vpop.f32.mrb[8].mxu0  ;;  %v3174_v18 = vld [vmem:[#allocation2 + $0x39] sm:$0xff] }
 0x1f8   : > { %3059 = vst.msk [vmem:[#allocation3 + $0x38] sm:$0xff] %vm170_vm0, %v3027_v63  ;;  %3091 = vst.msk [vmem:[#allocation2 + $0x69] sm:$0xff] %vm170_vm0, %v3027_v63  ;;  %v17979_v20 = vadd.f32 %v16649_v17, %v16469_v54  ;;  %v2854_v31 = vpop.f32.mrb[9].mxu0  ;;  %v3172_v34 = vld [vmem:[#allocation2 + $0x21] sm:$0xff]  ;;  %v20163_v12 = vpack.c.bf16 %v3174_v18, %v3173_v45 }
 0x1f9   : > { %3057 = vst.msk [vmem:[#allocation3 + $0x28] sm:$0xff] %vm170_vm0, %v3025_v5  ;;  %3089 = vst.msk [vmem:[#allocation2 + $0x51] sm:$0xff] %vm170_vm0, %v3025_v5  ;;  %v17980_v19 = vadd.f32 %v2854_v31, %v1323_v55  ;;  %v16650_v33 = vpop.f32.mrb[10].mxu0  ;;  %v20156_v46 = vpack.c.bf16 %v3172_v34, %v3171_v32 }
 0x1fa   : > { %v2998_v50 = vadd.f32 %v17979_v20, %v20130_v39  ;;  %v17981_v59 = vadd.f32 %v16650_v33, %v20115_v56  ;;  %v2857_v60 = vpop.f32.mrb[11].mxu0 }
 0x1fb   : > { %v2996_v13 = vadd.f32 %v17980_v19, %v20130_v39  ;;  %v17982_v15 = vadd.f32 %v2857_v60, %v20117_v57  ;;  %16676 = vmatmul.mubr.msk.bf16.vlgmr.msra.gmra.mrb[32].mxu1 %vm170_vm0, %v20156_v46 }
 0x1fc   : > { %v3030_v16 = vmax.f32 %v2998_v50, 0.0  ;;  %v2999_v35 = vadd.f32 %v17981_v59, %v20130_v39  ;;  %16708 = vmatpush3.bf16.msra.mxu1 %v20112_v1  ;;  %16679 = vmatprep.mubr.msk.bf16.mxu1 %vm170_vm0, %v20163_v12 }
 0x1fd   : > { %v3028_v36 = vmax.f32 %v2996_v13, 0.0  ;;  %v2997_v38 = vadd.f32 %v17982_v15, %v20130_v39  ;;  %16709 = vmatprep.subr.bf16.mxu1 %v19314_v47  ;;  %v3177_v51 = vld [vmem:[#allocation2 + $0x61] sm:$0xff] }
 0x1fe   : > { %3062 = vst.msk [vmem:[#allocation3 + $0x50] sm:$0xff] %vm170_vm0, %v3030_v16  ;;  %3094 = vst.msk [vmem:[#allocation2 + $0x91] sm:$0xff] %vm170_vm0, %v3030_v16  ;;  %v3031_v54 = vmax.f32 %v2999_v35, 0.0  ;;  %v3175_v40 = vld [vmem:[#allocation2 + $0x49] sm:$0xff] }
 0x1ff   : > { %3060 = vst.msk [vmem:[#allocation3 + $0x40] sm:$0xff] %vm170_vm0, %v3028_v36  ;;  %3092 = vst.msk [vmem:[#allocation2 + $0x79] sm:$0xff] %vm170_vm0, %v3028_v36  ;;  %v3029_v1 = vmax.f32 %v2997_v38, 0.0  ;;  %v16653_v55 = vpop.f32.mrb[12].mxu0  ;;  %v3178_v56 = vld [vmem:[#allocation2 + $0x69] sm:$0xff] }
 0x200   : > { %3063 = vst.msk [vmem:[#allocation3 + $0x58] sm:$0xff] %vm170_vm0, %v3031_v54  ;;  %3095 = vst.msk [vmem:[#allocation2 + $0x99] sm:$0xff] %vm170_vm0, %v3031_v54  ;;  %v17983_v57 = vadd.f32 %v16653_v55, %v20119_v8  ;;  %v2870_v24 = vpop.f32.mrb[13].mxu0  ;;  %v3176_v42 = vld [vmem:[#allocation2 + $0x51] sm:$0xff]  ;;  %16710 = vmatpush3.bf16.msra.mxu1 %v19314_v47  ;;  %v20194_v58 = vpack.c.bf16 %v3178_v56, %v3177_v51 }
 0x201   : > { %3061 = vst.msk [vmem:[#allocation3 + $0x48] sm:$0xff] %vm170_vm0, %v3029_v1  ;;  %3093 = vst.msk [vmem:[#allocation2 + $0x81] sm:$0xff] %vm170_vm0, %v3029_v1  ;;  %v17984_v43 = vadd.f32 %v2870_v24, %v20121_v9  ;;  %v16654_v30 = vpop.f32.mrb[14].mxu0  ;;  %v20189_v44 = vpack.c.bf16 %v3176_v42, %v3175_v40  ;;  %16743 = vmatprep.subr.bf16.mxu1 %v20177_v0 }
 0x202   : > { %v3002_v52 = vadd.f32 %v17983_v57, %v20130_v39  ;;  %v17985_v8 = vadd.f32 %v16654_v30, %v20123_v10  ;;  %v2873_v53 = vpop.f32.mrb[15].mxu0 }
 0x203   : > { %v3000_v61 = vadd.f32 %v17984_v43, %v20130_v39  ;;  %v17986_v2 = vadd.f32 %v2873_v53, %v20125_v23  ;;  %16680 = vmatmul.mubr.msk.bf16.gmra.mrb[36].mxu1 %vm170_vm0, %v20189_v44 }
 0x204   : > { %v3034_v9 = vmax.f32 %v3002_v52, 0.0  ;;  %v3003_v3 = vadd.f32 %v17985_v8, %v20130_v39  ;;  %16683 = vmatprep.mubr.msk.bf16.mxu1 %vm170_vm0, %v20194_v58 }
 0x205   : > { %v3032_v4 = vmax.f32 %v3000_v61, 0.0  ;;  %v3001_v7 = vadd.f32 %v17986_v2, %v20130_v39  ;;  %v3181_v49 = vld [vmem:[#allocation2 + $0x91] sm:$0xff] }
 0x206   : > { %3066 = vst.msk [vmem:[#allocation3 + $0x70] sm:$0xff] %vm170_vm0, %v3034_v9  ;;  %3098 = vst.msk [vmem:[#allocation2 + $0xc1] sm:$0xff] %vm170_vm0, %v3034_v9  ;;  %v3035_v10 = vmax.f32 %v3003_v3, 0.0  ;;  %v16513_v11 = vpop.f32.mrb[16].mxu1  ;;  %v3179_v26 = vld [vmem:[#allocation2 + $0x79] sm:$0xff] }
 0x207   : > { %3064 = vst.msk [vmem:[#allocation3 + $0x60] sm:$0xff] %vm170_vm0, %v3032_v4  ;;  %3096 = vst.msk [vmem:[#allocation2 + $0xa9] sm:$0xff] %vm170_vm0, %v3032_v4  ;;  %v3033_v23 = vmax.f32 %v3001_v7, 0.0  ;;  %v1661_v14 = vpop.f32.mrb[17].mxu1  ;;  %v16657_v21 = vpop.f32.mrb[16].mxu0  ;;  %v3182_v6 = vld [vmem:[#allocation2 + $0x99] sm:$0xff] }
 0x208   : > { %3067 = vst.msk [vmem:[#allocation3 + $0x78] sm:$0xff] %vm170_vm0, %v3035_v10  ;;  %3099 = vst.msk [vmem:[#allocation2 + $0xc9] sm:$0xff] %vm170_vm0, %v3035_v10  ;;  %v17987_v27 = vadd.f32 %v16657_v21, %v16513_v11  ;;  %v16514_v22 = vpop.f32.mrb[18].mxu1  ;;  %v2886_v25 = vpop.f32.mrb[17].mxu0  ;;  %v3180_v28 = vld [vmem:[#allocation2 + $0x81] sm:$0xff]  ;;  %v20215_v17 = vpack.c.bf16 %v3182_v6, %v3181_v49 }
 0x209   : > { %3065 = vst.msk [vmem:[#allocation3 + $0x68] sm:$0xff] %vm170_vm0, %v3033_v23  ;;  %3097 = vst.msk [vmem:[#allocation2 + $0xb1] sm:$0xff] %vm170_vm0, %v3033_v23  ;;  %v17988_v29 = vadd.f32 %v2886_v25, %v1661_v14  ;;  %v1664_v37 = vpop.f32.mrb[19].mxu1  ;;  %v16658_v41 = vpop.f32.mrb[18].mxu0  ;;  %v20212_v48 = vpack.c.bf16 %v3180_v28, %v3179_v26 }
 0x20a   : > { %v3006_v62 = vadd.f32 %v17987_v27, %v20130_v39  ;;  %v17989_v63 = vadd.f32 %v16658_v41, %v16514_v22  ;;  %v2889_v5 = vpop.f32.mrb[19].mxu0 }
 0x20b   : > { %v3004_v18 = vadd.f32 %v17988_v29, %v20130_v39  ;;  %v17990_v20 = vadd.f32 %v2889_v5, %v1664_v37  ;;  %16684 = vmatmul.mubr.msk.bf16.gmra.mrb[40].mxu1 %vm170_vm0, %v20212_v48 }
 0x20c   : > { %v3038_v31 = vmax.f32 %v3006_v62, 0.0  ;;  %v3007_v32 = vadd.f32 %v17989_v63, %v20130_v39  ;;  %16687 = vmatprep.mubr.msk.bf16.mxu1 %vm170_vm0, %v20215_v17 }
 0x20d   : > { %v3036_v34 = vmax.f32 %v3004_v18, 0.0  ;;  %v3005_v19 = vadd.f32 %v17990_v20, %v20130_v39  ;;  %v3185_v56 = vld [vmem:[#allocation2 + $0xc1] sm:$0xff] }
 0x20e   : > { %3070 = vst.msk [vmem:[#allocation3 + $0x90] sm:$0xff] %vm170_vm0, %v3038_v31  ;;  %3102 = vst.msk [vmem:[#allocation2 + $0xf1] sm:$0xff] %vm170_vm0, %v3038_v31  ;;  %v3039_v33 = vmax.f32 %v3007_v32, 0.0  ;;  %v16517_v45 = vpop.f32.mrb[20].mxu1  ;;  %v3183_v35 = vld [vmem:[#allocation2 + $0xa9] sm:$0xff] }
 0x20f   : > { %3068 = vst.msk [vmem:[#allocation3 + $0x80] sm:$0xff] %vm170_vm0, %v3036_v34  ;;  %3100 = vst.msk [vmem:[#allocation2 + $0xd9] sm:$0xff] %vm170_vm0, %v3036_v34  ;;  %v3037_v47 = vmax.f32 %v3005_v19, 0.0  ;;  %v1677_v50 = vpop.f32.mrb[21].mxu1  ;;  %v16661_v59 = vpop.f32.mrb[20].mxu0  ;;  %v3186_v60 = vld [vmem:[#allocation2 + $0xc9] sm:$0xff] }
 0x210   : > { %3071 = vst.msk [vmem:[#allocation3 + $0x98] sm:$0xff] %vm170_vm0, %v3039_v33  ;;  %3103 = vst.msk [vmem:[#allocation2 + $0xf9] sm:$0xff] %vm170_vm0, %v3039_v33  ;;  %v17991_v13 = vadd.f32 %v16661_v59, %v16517_v45  ;;  %v16518_v15 = vpop.f32.mrb[22].mxu1  ;;  %v2902_v16 = vpop.f32.mrb[21].mxu0  ;;  %v3184_v36 = vld [vmem:[#allocation2 + $0xb1] sm:$0xff]  ;;  %v20235_v42 = vpack.c.bf16 %v3186_v60, %v3185_v56 }
 0x211   : > { %3069 = vst.msk [vmem:[#allocation3 + $0x88] sm:$0xff] %vm170_vm0, %v3037_v47  ;;  %3101 = vst.msk [vmem:[#allocation2 + $0xe1] sm:$0xff] %vm170_vm0, %v3037_v47  ;;  %v17992_v38 = vadd.f32 %v2902_v16, %v1677_v50  ;;  %v1680_v54 = vpop.f32.mrb[23].mxu1  ;;  %v16662_v1 = vpop.f32.mrb[22].mxu0  ;;  %v20232_v55 = vpack.c.bf16 %v3184_v36, %v3183_v35 }
 0x212   : > { %v3010_v57 = vadd.f32 %v17991_v13, %v20130_v39  ;;  %v17993_v24 = vadd.f32 %v16662_v1, %v16518_v15  ;;  %v2905_v40 = vpop.f32.mrb[23].mxu0 }
 0x213   : > { %v3008_v43 = vadd.f32 %v17992_v38, %v20130_v39  ;;  %v17994_v30 = vadd.f32 %v2905_v40, %v1680_v54  ;;  %16688 = vmatmul.mubr.msk.bf16.gmra.mrb[44].mxu1 %vm170_vm0, %v20232_v55 }
 0x214   : > { %v3042_v51 = vmax.f32 %v3010_v57, 0.0  ;;  %v3011_v52 = vadd.f32 %v17993_v24, %v20130_v39  ;;  %16691 = vmatprep.mubr.msk.bf16.mxu1 %vm170_vm0, %v20235_v42 }
 0x215   : > { %v3040_v8 = vmax.f32 %v3008_v43, 0.0  ;;  %v3009_v53 = vadd.f32 %v17994_v30, %v20130_v39  ;;  %v3189_v26 = vld [vmem:[#allocation2 + $0xf1] sm:$0xff] }
 0x216   : > { %3074 = vst.msk [vmem:[#allocation3 + $0xb0] sm:$0xff] %vm170_vm0, %v3042_v51  ;;  %3106 = vst.msk [vmem:[#allocation2 + $0x121] sm:$0xff] %vm170_vm0, %v3042_v51  ;;  %v3043_v61 = vmax.f32 %v3011_v52, 0.0  ;;  %v16521_v2 = vpop.f32.mrb[24].mxu1  ;;  %v3187_v14 = vld [vmem:[#allocation2 + $0xd9] sm:$0xff] }
 0x217   : > { %3072 = vst.msk [vmem:[#allocation3 + $0xa0] sm:$0xff] %vm170_vm0, %v3040_v8  ;;  %3104 = vst.msk [vmem:[#allocation2 + $0x109] sm:$0xff] %vm170_vm0, %v3040_v8  ;;  %v3041_v9 = vmax.f32 %v3009_v53, 0.0  ;;  %v1693_v3 = vpop.f32.mrb[25].mxu1  ;;  %v16665_v4 = vpop.f32.mrb[24].mxu0  ;;  %v3190_v7 = vld [vmem:[#allocation2 + $0xf9] sm:$0xff] }
 0x218   : > { %3075 = vst.msk [vmem:[#allocation3 + $0xb8] sm:$0xff] %vm170_vm0, %v3043_v61  ;;  %3107 = vst.msk [vmem:[#allocation2 + $0x129] sm:$0xff] %vm170_vm0, %v3043_v61  ;;  %v17995_v10 = vadd.f32 %v16665_v4, %v16521_v2  ;;  %v16522_v11 = vpop.f32.mrb[26].mxu1  ;;  %v2918_v23 = vpop.f32.mrb[25].mxu0  ;;  %v3188_v21 = vld [vmem:[#allocation2 + $0xe1] sm:$0xff]  ;;  %v20255_v41 = vpack.c.bf16 %v3190_v7, %v3189_v26 }
 0x219   : > { %3073 = vst.msk [vmem:[#allocation3 + $0xa8] sm:$0xff] %vm170_vm0, %v3041_v9  ;;  %3105 = vst.msk [vmem:[#allocation2 + $0x111] sm:$0xff] %vm170_vm0, %v3041_v9  ;;  %v17996_v6 = vadd.f32 %v2918_v23, %v1693_v3  ;;  %v1696_v27 = vpop.f32.mrb[27].mxu1  ;;  %v16666_v22 = vpop.f32.mrb[26].mxu0  ;;  %v20252_v25 = vpack.c.bf16 %v3188_v21, %v3187_v14  ;;  %v3116_v7 = vld [vmem:[#allocation2] sm:$0xff] }
 0x21a   : > { %v3014_v28 = vadd.f32 %v17995_v10, %v20130_v39  ;;  %v17997_v29 = vadd.f32 %v16666_v22, %v16522_v11  ;;  %v2921_v37 = vpop.f32.mrb[27].mxu0  ;;  %v3117_v10 = vld [vmem:[#allocation2 + $0x8] sm:$0xff]  ;;  %v3118_v22 = vld [vmem:[#allocation2 + $0x18] sm:$0xff] }
 0x21b   : > { %v3012_v49 = vadd.f32 %v17996_v6, %v20130_v39  ;;  %v17998_v62 = vadd.f32 %v2921_v37, %v1696_v27  ;;  %16692 = vmatmul.mubr.msk.bf16.gmra.mrb[48].mxu1 %vm170_vm0, %v20252_v25  ;;  %v3148_v14 = vpack.c.bf16 %v3117_v10, %v3116_v7  ;;  %v3119_v6 = vld [vmem:[#allocation2 + $0x20] sm:$0xff]  ;;  %v3121_v27 = vld [vmem:[#allocation2 + $0x38] sm:$0xff]  ;;  %v3665_v10 = vld [vmem:[#allocation2 + $0xa] sm:$0xff] }
 0x21c   : > { %v3046_v63 = vmax.f32 %v3014_v28, 0.0  ;;  %v3015_v5 = vadd.f32 %v17997_v29, %v20130_v39  ;;  %16695 = vmatprep.mubr.msk.bf16.mxu1 %vm170_vm0, %v20255_v41  ;;  %v20305_v26 = vpack.c.bf16 %v3119_v6, %v3118_v22  ;;  %v3120_v28 = vld [vmem:[#allocation2 + $0x30] sm:$0xff]  ;;  %v19316_v29 = vld [vmem:[%s22349_s1 + $0xb8] sm:$0xff]   ;;  %v3664_v7 = vld [vmem:[#allocation2 + $0x2] sm:$0xff] }
 0x21d   : > { %v3044_v18 = vmax.f32 %v3012_v49, 0.0  ;;  %v3013_v20 = vadd.f32 %v17998_v62, %v20130_v39  ;;  %v3193_v38 = vld [vmem:[#allocation2 + $0x121] sm:$0xff]  ;;  %v20310_v37 = vpack.c.bf16 %v3121_v27, %v3120_v28  ;;  %v3123_v62 = vld [vmem:[#allocation2 + $0x50] sm:$0xff] }
 0x21e   : > { %3078 = vst.msk [vmem:[#allocation3 + $0xd0] sm:$0xff] %vm170_vm0, %v3046_v63  ;;  %3110 = vst.msk [vmem:[#allocation2 + $0x151] sm:$0xff] %vm170_vm0, %v3046_v63  ;;  %v3047_v31 = vmax.f32 %v3015_v5, 0.0  ;;  %v16525_v32 = vpop.f32.mrb[28].mxu1  ;;  %v3191_v60 = vld [vmem:[#allocation2 + $0x109] sm:$0xff]  ;;  %v20320_v49 = vld [vmem:[%s22349_s1 + $0xc0] sm:$0xff]  }
 0x21f   : > { %3076 = vst.msk [vmem:[#allocation3 + $0xc0] sm:$0xff] %vm170_vm0, %v3044_v18  ;;  %3108 = vst.msk [vmem:[#allocation2 + $0x139] sm:$0xff] %vm170_vm0, %v3044_v18  ;;  %v3045_v34 = vmax.f32 %v3013_v20, 0.0  ;;  %v1709_v19 = vpop.f32.mrb[29].mxu1  ;;  %v16669_v33 = vpop.f32.mrb[28].mxu0  ;;  %v3194_v45 = vld [vmem:[#allocation2 + $0x129] sm:$0xff] }
 0x220   : > { %3079 = vst.msk [vmem:[#allocation3 + $0xd8] sm:$0xff] %vm170_vm0, %v3047_v31  ;;  %3111 = vst.msk [vmem:[#allocation2 + $0x159] sm:$0xff] %vm170_vm0, %v3047_v31  ;;  %v17999_v47 = vadd.f32 %v16669_v33, %v16525_v32  ;;  %v16526_v50 = vpop.f32.mrb[30].mxu1  ;;  %v2934_v59 = vpop.f32.mrb[29].mxu0  ;;  %v3192_v13 = vld [vmem:[#allocation2 + $0x111] sm:$0xff]  ;;  %v20275_v57 = vpack.c.bf16 %v3194_v45, %v3193_v38  ;;  %v3125_v63 = vld [vmem:[#allocation2 + $0x68] sm:$0xff] }
 0x221   : > { %3077 = vst.msk [vmem:[#allocation3 + $0xc8] sm:$0xff] %vm170_vm0, %v3045_v34  ;;  %3109 = vst.msk [vmem:[#allocation2 + $0x141] sm:$0xff] %vm170_vm0, %v3045_v34  ;;  %v18000_v15 = vadd.f32 %v2934_v59, %v1709_v19  ;;  %v1712_v16 = vpop.f32.mrb[31].mxu1  ;;  %v16670_v35 = vpop.f32.mrb[30].mxu0  ;;  %v20272_v36 = vpack.c.bf16 %v3192_v13, %v3191_v60  ;;  %v3122_v5 = vld [vmem:[#allocation2 + $0x48] sm:$0xff]  ;;  %v3124_v20 = vld [vmem:[#allocation2 + $0x60] sm:$0xff] }
 0x222   : > { %v3018_v54 = vadd.f32 %v17999_v47, %v20130_v39  ;;  %v18001_v1 = vadd.f32 %v16670_v35, %v16526_v50  ;;  %v2937_v56 = vpop.f32.mrb[31].mxu0  ;;  %v20322_v18 = vpack.c.bf16 %v3123_v62, %v3122_v5  ;;  %v20325_v31 = vpack.c.bf16 %v3125_v63, %v3124_v20  ;;  %v3129_v32 = vld [vmem:[#allocation2 + $0x98] sm:$0xff]  ;;  %v3128_v33 = vld [vmem:[#allocation2 + $0x90] sm:$0xff]  ;;  %v3133_v50 = vld [vmem:[#allocation2 + $0xc8] sm:$0xff] }
 0x223   : > { %v3016_v24 = vadd.f32 %v18000_v15, %v20130_v39  ;;  %v18002_v40 = vadd.f32 %v2937_v56, %v1712_v16  ;;  %16696 = vmatmul.mubr.msk.bf16.gmra.mrb[52].mxu1 %vm170_vm0, %v20272_v36  ;;  %v3126_v34 = vld [vmem:[#allocation2 + $0x78] sm:$0xff]  ;;  %v20333_v45 = vpack.c.bf16 %v3129_v32, %v3128_v33  ;;  %v3131_v47 = vld [vmem:[#allocation2 + $0xb0] sm:$0xff]  ;;  %v3130_v59 = vld [vmem:[#allocation2 + $0xa8] sm:$0xff] }
 0x224   : > { %v3050_v43 = vmax.f32 %v3018_v54, 0.0  ;;  %v3019_v30 = vadd.f32 %v18001_v1, %v20130_v39  ;;  %16699 = vmatprep.mubr.msk.bf16.mxu1 %vm170_vm0, %v20275_v57  ;;  %v20339_v60 = vpack.c.bf16 %v3131_v47, %v3130_v59  ;;  %v3132_v13 = vld [vmem:[#allocation2 + $0xc0] sm:$0xff]  ;;  %v3137_v35 = vld [vmem:[#allocation2 + $0xf8] sm:$0xff]  ;;  %v3136_v1 = vld [vmem:[#allocation2 + $0xf0] sm:$0xff] }
 0x225   : > { %v3048_v51 = vmax.f32 %v3016_v24, 0.0  ;;  %v3017_v52 = vadd.f32 %v18002_v40, %v20130_v39  ;;  %v3197_v3 = vld [vmem:[#allocation2 + $0x151] sm:$0xff]  ;;  %v20341_v15 = vpack.c.bf16 %v3133_v50, %v3132_v13  ;;  %v3135_v16 = vld [vmem:[#allocation2 + $0xe0] sm:$0xff]  ;;  %v20349_v56 = vpack.c.bf16 %v3137_v35, %v3136_v1  ;;  %v3141_v40 = vld [vmem:[#allocation2 + $0x128] sm:$0xff] }
 0x226   : > { %3082 = vst.msk [vmem:[#allocation3 + $0xf0] sm:$0xff] %vm170_vm0, %v3050_v43  ;;  %3114 = vst.msk [vmem:[#allocation2 + $0x181] sm:$0xff] %vm170_vm0, %v3050_v43  ;;  %v3051_v8 = vmax.f32 %v3019_v30, 0.0  ;;  %v3195_v2 = vld [vmem:[#allocation2 + $0x139] sm:$0xff]  ;;  %v3139_v24 = vld [vmem:[#allocation2 + $0x110] sm:$0xff] }
 0x227   : > { %3080 = vst.msk [vmem:[#allocation3 + $0xe0] sm:$0xff] %vm170_vm0, %v3048_v51  ;;  %3112 = vst.msk [vmem:[#allocation2 + $0x169] sm:$0xff] %vm170_vm0, %v3048_v51  ;;  %v3049_v53 = vmax.f32 %v3017_v52, 0.0  ;;  %v3198_v61 = vld [vmem:[#allocation2 + $0x159] sm:$0xff]  ;;  %v3138_v43 = vld [vmem:[#allocation2 + $0x108] sm:$0xff] }
 0x228   : > { %3083 = vst.msk [vmem:[#allocation3 + $0xf8] sm:$0xff] %vm170_vm0, %v3051_v8  ;;  %3115 = vst.msk [vmem:[#allocation2 + $0x189] sm:$0xff] %vm170_vm0, %v3051_v8  ;;  %v3196_v9 = vld [vmem:[#allocation2 + $0x141] sm:$0xff]  ;;  %v20294_v4 = vpack.c.bf16 %v3198_v61, %v3197_v3  ;;  %v3134_v38 = vld [vmem:[#allocation2 + $0xd8] sm:$0xff]  ;;  %v20355_v30 = vpack.c.bf16 %v3139_v24, %v3138_v43 }
 0x229   : > { %3081 = vst.msk [vmem:[#allocation3 + $0xe8] sm:$0xff] %vm170_vm0, %v3049_v53  ;;  %3113 = vst.msk [vmem:[#allocation2 + $0x171] sm:$0xff] %vm170_vm0, %v3049_v53  ;;  %v20292_v39 = vpack.c.bf16 %v3196_v9, %v3195_v2  ;;  %v20347_v54 = vpack.c.bf16 %v3135_v16, %v3134_v38  ;;  %v3140_v51 = vld [vmem:[#allocation2 + $0x120] sm:$0xff]  ;;  %v3145_v53 = vld [vmem:[#allocation2 + $0x158] sm:$0xff] }
 0x22a   : > { %v20357_v52 = vpack.c.bf16 %v3141_v40, %v3140_v51  ;;  %v3143_v8 = vld [vmem:[#allocation2 + $0x140] sm:$0xff]  ;;  %v3142_v61 = vld [vmem:[#allocation2 + $0x138] sm:$0xff]  ;;  %v3144_v9 = vld [vmem:[#allocation2 + $0x150] sm:$0xff] }
 0x22b   : > { %16700 = vmatmul.mubr.msk.bf16.gmra.mrb[56].mxu1 %vm170_vm0, %v20292_v39  ;;  %v20363_v2 = vpack.c.bf16 %v3143_v8, %v3142_v61  ;;  %v20365_v3 = vpack.c.bf16 %v3145_v53, %v3144_v9  ;;  %v3666_v27 = vld [vmem:[#allocation2 + $0x1a] sm:$0xff]  ;;  %v3667_v22 = vld [vmem:[#allocation2 + $0x22] sm:$0xff]  ;;  %v3668_v28 = vld [vmem:[#allocation2 + $0x32] sm:$0xff] }
 0x22c   : > { %16703 = vmatprep.mubr.msk.bf16.mxu1 %vm170_vm0, %v20294_v4  ;;  %v20376_v62 = vpack.c.bf16 %v3667_v22, %v3666_v27  ;;  %v19318_v63 = vld [vmem:[%s22349_s1 + $0xc8] sm:$0xff]   ;;  %v19319_v20 = vld [vmem:[%s22349_s1 + $0xd0] sm:$0xff]   ;;  %v3677_v16 = vld [vmem:[#allocation2 + $0x9a] sm:$0xff] }
 0x22d   : > { %v3671_v32 = vld [vmem:[#allocation2 + $0x52] sm:$0xff]  ;;  %v3673_v33 = vld [vmem:[#allocation2 + $0x6a] sm:$0xff]  ;;  %v3675_v59 = vld [vmem:[#allocation2 + $0x82] sm:$0xff] }
 0x22e   : > { %v3199_v11 = vld [vmem:[#allocation2 + $0x169] sm:$0xff]  ;;  %v3676_v13 = vld [vmem:[#allocation2 + $0x92] sm:$0xff]  ;;  %v3682_v53 = vld [vmem:[#allocation2 + $0xda] sm:$0xff] }
 0x22f   : > { %v20401_v38 = vpack.c.bf16 %v3677_v16, %v3676_v13  ;;  %v3678_v1 = vld [vmem:[#allocation2 + $0xaa] sm:$0xff]  ;;  %v3679_v24 = vld [vmem:[#allocation2 + $0xb2] sm:$0xff]  ;;  %v3680_v40 = vld [vmem:[#allocation2 + $0xc2] sm:$0xff] }
 0x230   : > { %v3200_v23 = vld [vmem:[#allocation2 + $0x171] sm:$0xff]  ;;  %v20407_v51 = vpack.c.bf16 %v3679_v24, %v3678_v1  ;;  %v3683_v61 = vld [vmem:[#allocation2 + $0xe2] sm:$0xff] }
 0x231   : > { %v20300_v21 = vpack.c.bf16 %v3200_v23, %v3199_v11  ;;  %v3147_v11 = vld [vmem:[#allocation2 + $0x170] sm:$0xff]  ;;  %v3146_v23 = vld [vmem:[#allocation2 + $0x168] sm:$0xff]  ;;  %v19320_v1 = vld [vmem:[%s22349_s1 + $0xd8] sm:$0xff]  }
 0x232   : > { %v20371_v6 = vpack.c.bf16 %v3147_v11, %v3146_v23  ;;  %v3681_v43 = vld [vmem:[#allocation2 + $0xca] sm:$0xff]  ;;  %v3684_v9 = vld [vmem:[#allocation2 + $0xf2] sm:$0xff]  ;;  %v3688_v27 = vld [vmem:[#allocation2 + $0x122] sm:$0xff] }
 0x233   : > { %16704 = vmatmul.mubr.msk.bf16.gmra.mrb[60].mxu1 %vm170_vm0, %v20300_v21  ;;  %v20409_v8 = vpack.c.bf16 %v3681_v43, %v3680_v40  ;;  %v3686_v23 = vld [vmem:[#allocation2 + $0x10a] sm:$0xff]  ;;  %v3695_v13 = vld [vmem:[#allocation2 + $0x172] sm:$0xff]  ;;  %v19321_v24 = vld [vmem:[%s22349_s1 + $0xe0] sm:$0xff]  }
 0x234   : > { %16711 = vmatprep.mubr.msk.bf16.mxu1 %vm170_vm0, %v3148_v14  ;;  %v3696_v14 = vpack.c.bf16 %v3665_v10, %v3664_v7  ;;  %v3685_v7 = vld [vmem:[#allocation2 + $0xfa] sm:$0xff]  ;;  %v20415_v10 = vpack.c.bf16 %v3683_v61, %v3682_v53  ;;  %v3689_v22 = vld [vmem:[#allocation2 + $0x12a] sm:$0xff] }
 0x235   : > { %v20417_v11 = vpack.c.bf16 %v3685_v7, %v3684_v9  ;;  %v19322_v43 = vld [vmem:[%s22349_s1 + $0xe8] sm:$0xff]   ;;  %v19323_v53 = vld [vmem:[%s22349_s1 + $0xf0] sm:$0xff]   ;;  %v5203_v9 = vld [vmem:[#allocation2 + $0x99] sm:$0xff] }
 0x236   : > { %v5201_v61 = vld [vmem:[#allocation2 + $0x81] sm:$0xff]  ;;  %v5200_v7 = vld [vmem:[#allocation2 + $0x79] sm:$0xff] }
 0x23b   : > { %16712 = vmatmul.mubr.msk.bf16.vlgmr.msra.gmra.mrb[32].mxu1 %vm170_vm0, %v20305_v26 }
 0x23c   : > { %16744 = vmatpush3.bf16.msra.mxu1 %v20177_v0  ;;  %16715 = vmatprep.mubr.msk.bf16.mxu1 %vm170_vm0, %v20310_v37  ;;  %v3127_v0 = vld [vmem:[#allocation2 + $0x80] sm:$0xff] }
 0x23d   : > { %16745 = vmatprep.subr.bf16.mxu1 %v19316_v29  ;;  %v20331_v19 = vpack.c.bf16 %v3127_v0, %v3126_v34  ;;  %v3670_v0 = vld [vmem:[#allocation2 + $0x4a] sm:$0xff]  ;;  %v3672_v34 = vld [vmem:[#allocation2 + $0x62] sm:$0xff] }
 0x23e   : > { %v20391_v47 = vpack.c.bf16 %v3671_v32, %v3670_v0  ;;  %v20393_v50 = vpack.c.bf16 %v3673_v33, %v3672_v34  ;;  %v3691_v0 = vld [vmem:[#allocation2 + $0x142] sm:$0xff]  ;;  %v3692_v32 = vld [vmem:[#allocation2 + $0x152] sm:$0xff]  ;;  %v3693_v34 = vld [vmem:[#allocation2 + $0x15a] sm:$0xff] }
 0x240   : > { %16746 = vmatpush3.bf16.msra.mxu1 %v19316_v29  ;;  %v3669_v29 = vld [vmem:[#allocation2 + $0x3a] sm:$0xff] }
 0x241   : > { %16779 = vmatprep.subr.bf16.mxu1 %v20320_v49  ;;  %v20381_v5 = vpack.c.bf16 %v3669_v29, %v3668_v28  ;;  %v20425_v29 = vpack.c.bf16 %v3689_v22, %v3688_v27  ;;  %v5205_v22 = vld [vmem:[#allocation2 + $0xb1] sm:$0xff] }
 0x243   : > { %16716 = vmatmul.mubr.msk.bf16.gmra.mrb[36].mxu1 %vm170_vm0, %v20322_v18 }
 0x244   : > { %16719 = vmatprep.mubr.msk.bf16.mxu1 %vm170_vm0, %v20325_v31 }
 0x24b   : > { %16720 = vmatmul.mubr.msk.bf16.gmra.mrb[40].mxu1 %vm170_vm0, %v20331_v19 }
 0x24c   : > { %16723 = vmatprep.mubr.msk.bf16.mxu1 %vm170_vm0, %v20333_v45 }
 0x253   : > { %16724 = vmatmul.mubr.msk.bf16.gmra.mrb[44].mxu1 %vm170_vm0, %v20339_v60 }
 0x254   : > { %16727 = vmatprep.mubr.msk.bf16.mxu1 %vm170_vm0, %v20341_v15 }
 0x25b   : > { %16728 = vmatmul.mubr.msk.bf16.gmra.mrb[48].mxu1 %vm170_vm0, %v20347_v54 }
 0x25c   : > { %16731 = vmatprep.mubr.msk.bf16.mxu1 %vm170_vm0, %v20349_v56 }
 0x263   : > { %16732 = vmatmul.mubr.msk.bf16.gmra.mrb[52].mxu1 %vm170_vm0, %v20355_v30 }
 0x264   : > { %16735 = vmatprep.mubr.msk.bf16.mxu1 %vm170_vm0, %v20357_v52 }
 0x26b   : > { %16736 = vmatmul.mubr.msk.bf16.gmra.mrb[56].mxu1 %vm170_vm0, %v20363_v2 }
 0x26c   : > { %16739 = vmatprep.mubr.msk.bf16.mxu1 %vm170_vm0, %v20365_v3 }
 0x273   : > { %16740 = vmatmul.mubr.msk.bf16.gmra.mrb[60].mxu1 %vm170_vm0, %v20371_v6 }
 0x274   : > { %16747 = vmatprep.mubr.msk.bf16.mxu1 %vm170_vm0, %v3696_v14  ;;  %v3687_v14 = vld [vmem:[#allocation2 + $0x112] sm:$0xff] }
 0x275   : > { %v20423_v28 = vpack.c.bf16 %v3687_v14, %v3686_v23  ;;  %v5229_v23 = vpack.c.bf16 %v5201_v61, %v5200_v7  ;;  %v5202_v14 = vld [vmem:[#allocation2 + $0x91] sm:$0xff] }
 0x276   : > { %v5230_v27 = vpack.c.bf16 %v5203_v9, %v5202_v14 }
 0x27b   : > { %16748 = vmatmul.mubr.msk.bf16.vlgmr.msra.gmra.mrb[32].mxu1 %vm170_vm0, %v20376_v62 }
 0x27c   : > { %16780 = vmatpush3.bf16.msra.mxu1 %v20320_v49  ;;  %16751 = vmatprep.mubr.msk.bf16.mxu1 %vm170_vm0, %v20381_v5  ;;  %v3674_v49 = vld [vmem:[#allocation2 + $0x7a] sm:$0xff] }
 0x27d   : > { %16781 = vmatprep.subr.bf16.mxu1 %v19318_v63  ;;  %v20399_v35 = vpack.c.bf16 %v3675_v59, %v3674_v49  ;;  %v20433_v49 = vpack.c.bf16 %v3693_v34, %v3692_v32  ;;  %v3694_v59 = vld [vmem:[#allocation2 + $0x16a] sm:$0xff]  ;;  %v5206_v34 = vld [vmem:[#allocation2 + $0xc1] sm:$0xff] }
 0x27e   : > { %v20439_v16 = vpack.c.bf16 %v3695_v13, %v3694_v59  ;;  %v5209_v13 = vld [vmem:[#allocation2 + $0xe1] sm:$0xff] }
 0x280   : > { %16782 = vmatpush3.bf16.msra.mxu1 %v19318_v63  ;;  %v3690_v63 = vld [vmem:[#allocation2 + $0x13a] sm:$0xff] }
 0x281   : > { %16815 = vmatprep.subr.bf16.mxu1 %v19319_v20  ;;  %v20431_v33 = vpack.c.bf16 %v3691_v0, %v3690_v63  ;;  %v5207_v63 = vld [vmem:[#allocation2 + $0xc9] sm:$0xff] }
 0x282   : > { %v5204_v0 = vld [vmem:[#allocation2 + $0xa9] sm:$0xff]  ;;  %v5232_v59 = vpack.c.bf16 %v5207_v63, %v5206_v34 }
 0x283   : > { %16752 = vmatmul.mubr.msk.bf16.gmra.mrb[36].mxu1 %vm170_vm0, %v20391_v47  ;;  %v5231_v32 = vpack.c.bf16 %v5205_v22, %v5204_v0  ;;  %v20705_v22 = vld [vmem:[%s22349_s1 + $0x140] sm:$0xff]  }
 0x284   : > { %16755 = vmatprep.mubr.msk.bf16.mxu1 %vm170_vm0, %v20393_v50 }
 0x28b   : > { %16756 = vmatmul.mubr.msk.bf16.gmra.mrb[40].mxu1 %vm170_vm0, %v20399_v35 }
 0x28c   : > { %16759 = vmatprep.mubr.msk.bf16.mxu1 %vm170_vm0, %v20401_v38 }
 0x293   : > { %16760 = vmatmul.mubr.msk.bf16.gmra.mrb[44].mxu1 %vm170_vm0, %v20407_v51 }
 0x294   : > { %16763 = vmatprep.mubr.msk.bf16.mxu1 %vm170_vm0, %v20409_v8 }
 0x29b   : > { %16764 = vmatmul.mubr.msk.bf16.gmra.mrb[48].mxu1 %vm170_vm0, %v20415_v10 }
 0x29c   : > { %16767 = vmatprep.mubr.msk.bf16.mxu1 %vm170_vm0, %v20417_v11 }
 0x2a3   : > { %16768 = vmatmul.mubr.msk.bf16.gmra.mrb[52].mxu1 %vm170_vm0, %v20423_v28 }
 0x2a4   : > { %16771 = vmatprep.mubr.msk.bf16.mxu1 %vm170_vm0, %v20425_v29 }
 0x2ab   : > { %16772 = vmatmul.mubr.msk.bf16.gmra.mrb[56].mxu1 %vm170_vm0, %v20431_v33 }
 0x2ac   : > { %16775 = vmatprep.mubr.msk.bf16.mxu1 %vm170_vm0, %v20433_v49 }
 0x2b3   : > { %16776 = vmatmul.mubr.msk.bf16.gmra.mrb[60].mxu1 %vm170_vm0, %v20439_v16 }
 0x2b4   : > { %16783 = vmatprep.mubr.msk.bf16.mxu1 %vm170_vm0, %v20305_v26  ;;  %v4001_v26 = vld [vmem:[#allocation2 + $0x188] sm:$0xff] }
 0x2bb   : > { %16784 = vmatmul.mubr.msk.bf16.vlgmr.msra.gmra.mrb[32].mxu1 %vm170_vm0, %v20310_v37 }
 0x2bc   : > { %16816 = vmatpush3.bf16.msra.mxu1 %v19319_v20  ;;  %16787 = vmatprep.mubr.msk.bf16.mxu1 %vm170_vm0, %v20322_v18  ;;  %v4000_v20 = vld [vmem:[#allocation2 + $0x180] sm:$0xff] }
 0x2bd   : > { %16817 = vmatprep.subr.bf16.mxu1 %v19320_v1  ;;  %v20479_v40 = vpack.c.bf16 %v4001_v26, %v4000_v20  ;;  %v5210_v20 = vld [vmem:[#allocation2 + $0xf1] sm:$0xff] }
 0x2c0   : > { %16818 = vmatpush3.bf16.msra.mxu1 %v19320_v1  ;;  %v5211_v1 = vld [vmem:[#allocation2 + $0xf9] sm:$0xff] }
 0x2c1   : > { %16851 = vmatprep.subr.bf16.mxu1 %v19321_v24 }
 0x2c3   : > { %16788 = vmatmul.mubr.msk.bf16.gmra.mrb[36].mxu1 %vm170_vm0, %v20325_v31 }
 0x2c4   : > { %16791 = vmatprep.mubr.msk.bf16.mxu1 %vm170_vm0, %v20331_v19 }
 0x2cb   : > { %16792 = vmatmul.mubr.msk.bf16.gmra.mrb[40].mxu1 %vm170_vm0, %v20333_v45 }
 0x2cc   : > { %16795 = vmatprep.mubr.msk.bf16.mxu1 %vm170_vm0, %v20339_v60 }
 0x2d3   : > { %16796 = vmatmul.mubr.msk.bf16.gmra.mrb[44].mxu1 %vm170_vm0, %v20341_v15 }
 0x2d4   : > { %16799 = vmatprep.mubr.msk.bf16.mxu1 %vm170_vm0, %v20347_v54 }
 0x2db   : > { %16800 = vmatmul.mubr.msk.bf16.gmra.mrb[48].mxu1 %vm170_vm0, %v20349_v56 }
 0x2dc   : > { %16803 = vmatprep.mubr.msk.bf16.mxu1 %vm170_vm0, %v20355_v30 }
 0x2e3   : > { %16804 = vmatmul.mubr.msk.bf16.gmra.mrb[52].mxu1 %vm170_vm0, %v20357_v52 }
 0x2e4   : > { %16807 = vmatprep.mubr.msk.bf16.mxu1 %vm170_vm0, %v20363_v2 }
 0x2eb   : > { %16808 = vmatmul.mubr.msk.bf16.gmra.mrb[56].mxu1 %vm170_vm0, %v20365_v3 }
 0x2ec   : > { %16811 = vmatprep.mubr.msk.bf16.mxu1 %vm170_vm0, %v20371_v6 }
 0x2f3   : > { %16812 = vmatmul.mubr.msk.bf16.gmra.mrb[60].mxu1 %vm170_vm0, %v20479_v40 }
 0x2f4   : > { %16819 = vmatprep.mubr.msk.bf16.mxu1 %vm170_vm0, %v20156_v46  ;;  %v4307_v46 = vld [vmem:[#allocation2 + $0x189] sm:$0xff] }
 0x2fb   : > { %16820 = vmatmul.mubr.msk.bf16.vlgmr.msra.gmra.mrb[32].mxu1 %vm170_vm0, %v20163_v12  ;;  %v4306_v12 = vld [vmem:[#allocation2 + $0x181] sm:$0xff] }
 0x2fc   : > { %16852 = vmatpush3.bf16.msra.mxu1 %v19321_v24  ;;  %16823 = vmatprep.mubr.msk.bf16.mxu1 %vm170_vm0, %v20189_v44  ;;  %v20519_v44 = vpack.c.bf16 %v4307_v46, %v4306_v12  ;;  %v5208_v24 = vld [vmem:[#allocation2 + $0xd9] sm:$0xff] }
 0x2fd   : > { %16853 = vmatprep.subr.bf16.mxu1 %v19322_v43  ;;  %v5233_v26 = vpack.c.bf16 %v5209_v13, %v5208_v24 }
 0x300   : > { %16854 = vmatpush3.bf16.msra.mxu1 %v19322_v43  ;;  %v5224_v43 = vld [vmem:[#allocation2 + $0x199] sm:$0xff] }
 0x301   : > { %16887 = vmatprep.subr.bf16.mxu1 %v19323_v53 }
 0x303   : > { %16824 = vmatmul.mubr.msk.bf16.gmra.mrb[36].mxu1 %vm170_vm0, %v20194_v58  ;;  %v19324_v58 = vld [vmem:[%s22349_s1 + $0xf8] sm:$0xff]  }
 0x304   : > { %16827 = vmatprep.mubr.msk.bf16.mxu1 %vm170_vm0, %v20212_v48  ;;  %v19325_v48 = vld [vmem:[%s22349_s1 + $0x100] sm:$0xff]  }
 0x30b   : > { %16828 = vmatmul.mubr.msk.bf16.gmra.mrb[40].mxu1 %vm170_vm0, %v20215_v17  ;;  %v4612_v17 = vld [vmem:[#allocation2 + $0x182] sm:$0xff] }
 0x30c   : > { %16831 = vmatprep.mubr.msk.bf16.mxu1 %vm170_vm0, %v20232_v55  ;;  %v4613_v55 = vld [vmem:[#allocation2 + $0x18a] sm:$0xff] }
 0x313   : > { %16832 = vmatmul.mubr.msk.bf16.gmra.mrb[44].mxu1 %vm170_vm0, %v20235_v42  ;;  %v20559_v42 = vpack.c.bf16 %v4613_v55, %v4612_v17 }
 0x314   : > { %16835 = vmatprep.mubr.msk.bf16.mxu1 %vm170_vm0, %v20252_v25  ;;  %v19326_v25 = vld [vmem:[%s22349_s1 + $0x108] sm:$0xff]  }
 0x31b   : > { %16836 = vmatmul.mubr.msk.bf16.gmra.mrb[48].mxu1 %vm170_vm0, %v20255_v41  ;;  %v19327_v41 = vld [vmem:[%s22349_s1 + $0x110] sm:$0xff]  }
 0x31c   : > { %16839 = vmatprep.mubr.msk.bf16.mxu1 %vm170_vm0, %v20272_v36 }
 0x323   : > { %16840 = vmatmul.mubr.msk.bf16.gmra.mrb[52].mxu1 %vm170_vm0, %v20275_v57 }
 0x324   : > { %16843 = vmatprep.mubr.msk.bf16.mxu1 %vm170_vm0, %v20292_v39 }
 0x32b   : > { %16844 = vmatmul.mubr.msk.bf16.gmra.mrb[56].mxu1 %vm170_vm0, %v20294_v4 }
 0x32c   : > { %16847 = vmatprep.mubr.msk.bf16.mxu1 %vm170_vm0, %v20300_v21 }
 0x333   : > { %16848 = vmatmul.mubr.msk.bf16.gmra.mrb[60].mxu1 %vm170_vm0, %v20519_v44 }
 0x334   : > { %16855 = vmatprep.mubr.msk.bf16.mxu1 %vm170_vm0, %v20376_v62 }
 0x33b   : > { %16856 = vmatmul.mubr.msk.bf16.vlgmr.msra.gmra.mrb[32].mxu1 %vm170_vm0, %v20381_v5 }
 0x33c   : > { %16888 = vmatpush3.bf16.msra.mxu1 %v19323_v53  ;;  %16859 = vmatprep.mubr.msk.bf16.mxu1 %vm170_vm0, %v20391_v47  ;;  %v5225_v53 = vld [vmem:[#allocation2 + $0x1a1] sm:$0xff] }
 0x33d   : > { %16889 = vmatprep.subr.bf16.mxu1 %v19324_v58  ;;  %v5241_v46 = vpack.c.bf16 %v5225_v53, %v5224_v43 }
 0x340   : > { %16890 = vmatpush3.bf16.msra.mxu1 %v19324_v58 }
 0x341   : > { %16923 = vmatprep.subr.bf16.mxu1 %v19325_v48 }
 0x343   : > { %16860 = vmatmul.mubr.msk.bf16.gmra.mrb[36].mxu1 %vm170_vm0, %v20393_v50 }
 0x344   : > { %16863 = vmatprep.mubr.msk.bf16.mxu1 %vm170_vm0, %v20399_v35 }
 0x34b   : > { %16864 = vmatmul.mubr.msk.bf16.gmra.mrb[40].mxu1 %vm170_vm0, %v20401_v38 }
 0x34c   : > { %16867 = vmatprep.mubr.msk.bf16.mxu1 %vm170_vm0, %v20407_v51 }
 0x353   : > { %16868 = vmatmul.mubr.msk.bf16.gmra.mrb[44].mxu1 %vm170_vm0, %v20409_v8 }
 0x354   : > { %16871 = vmatprep.mubr.msk.bf16.mxu1 %vm170_vm0, %v20415_v10 }
 0x35b   : > { %16872 = vmatmul.mubr.msk.bf16.gmra.mrb[48].mxu1 %vm170_vm0, %v20417_v11 }
 0x35c   : > { %16875 = vmatprep.mubr.msk.bf16.mxu1 %vm170_vm0, %v20423_v28 }
 0x363   : > { %16876 = vmatmul.mubr.msk.bf16.gmra.mrb[52].mxu1 %vm170_vm0, %v20425_v29 }
 0x364   : > { %16879 = vmatprep.mubr.msk.bf16.mxu1 %vm170_vm0, %v20431_v33 }
 0x36b   : > { %16880 = vmatmul.mubr.msk.bf16.gmra.mrb[56].mxu1 %vm170_vm0, %v20433_v49 }
 0x36c   : > { %16883 = vmatprep.mubr.msk.bf16.mxu1 %vm170_vm0, %v20439_v16 }
 0x373   : > { %16884 = vmatmul.mubr.msk.bf16.gmra.mrb[60].mxu1 %vm170_vm0, %v20559_v42 }
 0x374   : > { %16891 = vmatprep.mubr.msk.bf16.mxu1 %vm170_vm0, %v20310_v37  ;;  %v4918_v37 = vld [vmem:[#allocation2 + $0x198] sm:$0xff] }
 0x37b   : > { %16892 = vmatmul.mubr.msk.bf16.vlgmr.msra.gmra.mrb[32].mxu1 %vm170_vm0, %v20322_v18  ;;  %v4919_v18 = vld [vmem:[#allocation2 + $0x1a0] sm:$0xff] }
 0x37c   : > { %16924 = vmatpush3.bf16.msra.mxu1 %v19325_v48  ;;  %16895 = vmatprep.mubr.msk.bf16.mxu1 %vm170_vm0, %v20325_v31  ;;  %v4935_v31 = vpack.c.bf16 %v4919_v18, %v4918_v37 }
 0x37d   : > { %16925 = vmatprep.subr.bf16.mxu1 %v19326_v25 }
 0x380   : > { %16926 = vmatpush3.bf16.msra.mxu1 %v19326_v25 }
 0x381   : > { %16959 = vmatprep.subr.bf16.mxu1 %v19327_v41 }
 0x383   : > { %16896 = vmatmul.mubr.msk.bf16.gmra.mrb[36].mxu1 %vm170_vm0, %v20331_v19  ;;  %v5195_v19 = vld [vmem:[#allocation2 + $0x39] sm:$0xff] }
 0x384   : > { %16899 = vmatprep.mubr.msk.bf16.mxu1 %vm170_vm0, %v20333_v45  ;;  %v5194_v45 = vld [vmem:[#allocation2 + $0x31] sm:$0xff] }
 0x38b   : > { %16900 = vmatmul.mubr.msk.bf16.gmra.mrb[40].mxu1 %vm170_vm0, %v20339_v60  ;;  %v5226_v60 = vpack.c.bf16 %v5195_v19, %v5194_v45 }
 0x38c   : > { %16903 = vmatprep.mubr.msk.bf16.mxu1 %vm170_vm0, %v20341_v15  ;;  %v19329_v15 = vld [vmem:[%s22349_s1 + $0x130] sm:$0xff]  }
 0x38d   : > { %16995 = vmatprep.subr.bf16.mxu0 %v19329_v15 }
 0x38e   : > { %16996 = vmatpush3.bf16.msra.mxu0 %v19329_v15 }
 0x393   : > { %16904 = vmatmul.mubr.msk.bf16.gmra.mrb[44].mxu1 %vm170_vm0, %v20347_v54  ;;  %v19330_v54 = vld [vmem:[%s22349_s1 + $0x138] sm:$0xff]  }
 0x394   : > { %16907 = vmatprep.mubr.msk.bf16.mxu1 %vm170_vm0, %v20349_v56  ;;  %v5197_v56 = vld [vmem:[#allocation2 + $0x51] sm:$0xff]  ;;  %16997 = vmatprep.subr.bf16.mxu0 %v19330_v54 }
 0x395   : > { %16998 = vmatpush3.bf16.msra.mxu0 %v19330_v54 }
 0x39b   : > { %16908 = vmatmul.mubr.msk.bf16.gmra.mrb[48].mxu1 %vm170_vm0, %v20355_v30  ;;  %v5199_v30 = vld [vmem:[#allocation2 + $0x69] sm:$0xff] }
 0x39c   : > { %16911 = vmatprep.mubr.msk.bf16.mxu1 %vm170_vm0, %v20357_v52  ;;  %v5196_v52 = vld [vmem:[#allocation2 + $0x49] sm:$0xff] }
 0x3a3   : > { %16912 = vmatmul.mubr.msk.bf16.gmra.mrb[52].mxu1 %vm170_vm0, %v20363_v2  ;;  %v5227_v2 = vpack.c.bf16 %v5197_v56, %v5196_v52  ;;  %v19332_v52 = vld [vmem:[%s22349_s1 + $0x128] sm:$0xff]  }
 0x3a4   : > { %16915 = vmatprep.mubr.msk.bf16.mxu1 %vm170_vm0, %v20365_v3  ;;  %v5198_v3 = vld [vmem:[#allocation2 + $0x61] sm:$0xff] }
 0x3a5   : > { %v5228_v62 = vpack.c.bf16 %v5199_v30, %v5198_v3 }
 0x3ab   : > { %16916 = vmatmul.mubr.msk.bf16.gmra.mrb[56].mxu1 %vm170_vm0, %v20371_v6  ;;  %v19328_v6 = vld [vmem:[%s22349_s1 + $0x118] sm:$0xff]  }
 0x3ac   : > { %16919 = vmatprep.mubr.msk.bf16.mxu1 %vm170_vm0, %v20479_v40  ;;  %v5234_v40 = vpack.c.bf16 %v5211_v1, %v5210_v20 }
 0x3b3   : > { %16920 = vmatmul.mubr.msk.bf16.gmra.mrb[60].mxu1 %vm170_vm0, %v4935_v31 }
 0x3b4   : > { %16927 = vmatprep.mubr.msk.bf16.mxu1 %vm170_vm0, %v5226_v60 }
 0x3bb   : > { %16928 = vmatmul.mubr.msk.bf16.vlgmr.msra.gmra.mrb[32].mxu1 %vm170_vm0, %v5227_v2 }
 0x3bc   : > { %16960 = vmatpush3.bf16.msra.mxu1 %v19327_v41  ;;  %16931 = vmatprep.mubr.msk.bf16.mxu1 %vm170_vm0, %v5228_v62 }
 0x3bd   : > { %16961 = vmatprep.subr.bf16.mxu1 %v19328_v6 }
 0x3c0   : > { %16962 = vmatpush3.bf16.msra.mxu1 %v19328_v6 }
 0x3c3   : > { %16932 = vmatmul.mubr.msk.bf16.gmra.mrb[36].mxu1 %vm170_vm0, %v5229_v23 }
 0x3c4   : > { %16935 = vmatprep.mubr.msk.bf16.mxu1 %vm170_vm0, %v5230_v27 }
 0x3cb   : > { %16936 = vmatmul.mubr.msk.bf16.gmra.mrb[40].mxu1 %vm170_vm0, %v5231_v32 }
 0x3cc   : > { %16939 = vmatprep.mubr.msk.bf16.mxu1 %vm170_vm0, %v5232_v59 }
 0x3d3   : > { %16940 = vmatmul.mubr.msk.bf16.gmra.mrb[44].mxu1 %vm170_vm0, %v5233_v26 }
 0x3d4   : > { %16943 = vmatprep.mubr.msk.bf16.mxu1 %vm170_vm0, %v5234_v40 }
 0x3db   : > { %16944 = vmatmul.mubr.msk.bf16.gmra.mrb[48].mxu1 %vm170_vm0, %v20272_v36  ;;  %v5530_v36 = vld [vmem:[#allocation2 + $0x19a] sm:$0xff] }
 0x3dc   : > { %16947 = vmatprep.mubr.msk.bf16.mxu1 %vm170_vm0, %v20275_v57  ;;  %v5531_v57 = vld [vmem:[#allocation2 + $0x1a2] sm:$0xff] }
 0x3e3   : > { %16948 = vmatmul.mubr.msk.bf16.gmra.mrb[52].mxu1 %vm170_vm0, %v20292_v39  ;;  %v5547_v39 = vpack.c.bf16 %v5531_v57, %v5530_v36 }
 0x3e4   : > { %16951 = vmatprep.mubr.msk.bf16.mxu1 %vm170_vm0, %v20294_v4  ;;  %v5963_v4 = vld [vmem:[#allocation2 + $0x1] sm:$0xff] }
 0x3eb   : > { %16952 = vmatmul.mubr.msk.bf16.gmra.mrb[56].mxu1 %vm170_vm0, %v20300_v21  ;;  %v5964_v21 = vld [vmem:[#allocation2 + $0x9] sm:$0xff] }
 0x3ec   : > { %16955 = vmatprep.mubr.msk.bf16.mxu1 %vm170_vm0, %v20519_v44 }
 0x3f3   : > { %16956 = vmatmul.mubr.msk.bf16.gmra.mrb[60].mxu1 %vm170_vm0, %v5241_v46 }
 0x3f4   : > { %16963 = vmatprep.mubr.msk.bf16.mxu1 %vm170_vm0, %v20381_v5  ;;  %v5995_v5 = vpack.c.bf16 %v5964_v21, %v5963_v4 }
 0x3f6   : > { %16999 = vmatprep.mubr.msk.bf16.mxu0 %vm170_vm0, %v5995_v5 }
 0x3fb   : > { %16964 = vmatmul.mubr.msk.bf16.vlgmr.msra.gmra.mrb[32].mxu1 %vm170_vm0, %v20391_v47  ;;  %v19331_v47 = vld [vmem:[%s22349_s1 + $0x120] sm:$0xff]  }
 0x3fc   : > { %16967 = vmatprep.mubr.msk.bf16.mxu1 %vm170_vm0, %v20393_v50  ;;  %17031 = vmatprep.subr.bf16.mxu0 %v19331_v47  ;;  %v20669_v50 = vld [vmem:[%s22350_s2 + $0x1] ss:$0 sm:$0xff] }
 0x403   : > { %16968 = vmatmul.mubr.msk.bf16.gmra.mrb[36].mxu1 %vm170_vm0, %v20399_v35 }
 0x404   : > { %16971 = vmatprep.mubr.msk.bf16.mxu1 %vm170_vm0, %v20401_v38 }
 0x40b   : > { %16972 = vmatmul.mubr.msk.bf16.gmra.mrb[40].mxu1 %vm170_vm0, %v20407_v51 }
 0x40c   : > { %16975 = vmatprep.mubr.msk.bf16.mxu1 %vm170_vm0, %v20409_v8 }
 0x413   : > { %16976 = vmatmul.mubr.msk.bf16.gmra.mrb[44].mxu1 %vm170_vm0, %v20415_v10 }
 0x414   : > { %16979 = vmatprep.mubr.msk.bf16.mxu1 %vm170_vm0, %v20417_v11 }
 0x41b   : > { %16980 = vmatmul.mubr.msk.bf16.gmra.mrb[48].mxu1 %vm170_vm0, %v20423_v28 }
 0x41c   : > { %16983 = vmatprep.mubr.msk.bf16.mxu1 %vm170_vm0, %v20425_v29 }
 0x423   : > { %16984 = vmatmul.mubr.msk.bf16.gmra.mrb[52].mxu1 %vm170_vm0, %v20431_v33 }
 0x424   : > { %16987 = vmatprep.mubr.msk.bf16.mxu1 %vm170_vm0, %v20433_v49 }
 0x42b   : > { %16988 = vmatmul.mubr.msk.bf16.gmra.mrb[56].mxu1 %vm170_vm0, %v20439_v16 }
 0x42c   : > { %16991 = vmatprep.mubr.msk.bf16.mxu1 %vm170_vm0, %v20559_v42 }
 0x433   : > { %16992 = vmatmul.mubr.msk.bf16.gmra.mrb[60].mxu1 %vm170_vm0, %v5547_v39 }
 0x4ce   : > { %v16965_v35 = vpop.f32.mrb[32].mxu1 }
 0x4cf   : > { %v5816_v38 = vadd.f32 %v16965_v35, %v20669_v50  ;;  %v5647_v51 = vpop.f32.mrb[33].mxu1 }
 0x4d0   : > { %v5814_v8 = vadd.f32 %v20669_v50, %v5647_v51  ;;  %v16966_v10 = vpop.f32.mrb[34].mxu1 }
 0x4d1   : > { %v5848_v11 = vmax.f32 %v5816_v38, 0.0  ;;  %v5817_v28 = vadd.f32 %v16966_v10, %v20669_v50  ;;  %v5650_v29 = vpop.f32.mrb[35].mxu1 }
 0x4d2   : > { %v5846_v33 = vmax.f32 %v5814_v8, 0.0  ;;  %v5815_v49 = vadd.f32 %v20669_v50, %v5650_v29 }
 0x4d3   : > { %5880 = vst.msk [vmem:[#allocation2 + $0x31] sm:$0xff] %vm170_vm0, %v5848_v11  ;;  %v5849_v16 = vmax.f32 %v5817_v28, 0.0 }
 0x4d4   : > { %5878 = vst.msk [vmem:[#allocation2 + $0x19] sm:$0xff] %vm170_vm0, %v5846_v33  ;;  %v5847_v12 = vmax.f32 %v5815_v49, 0.0 }
 0x4d5   : > { %5881 = vst.msk [vmem:[#allocation2 + $0x39] sm:$0xff] %vm170_vm0, %v5849_v16 }
 0x4d6   : > { %5879 = vst.msk [vmem:[#allocation2 + $0x21] sm:$0xff] %vm170_vm0, %v5847_v12  ;;  %v16969_v44 = vpop.f32.mrb[36].mxu1 }
 0x4d7   : > { %v5820_v58 = vadd.f32 %v16969_v44, %v20669_v50  ;;  %v5663_v48 = vpop.f32.mrb[37].mxu1 }
 0x4d8   : > { %v5818_v17 = vadd.f32 %v20669_v50, %v5663_v48  ;;  %v16970_v55 = vpop.f32.mrb[38].mxu1 }
 0x4d9   : > { %v5852_v42 = vmax.f32 %v5820_v58, 0.0  ;;  %v5821_v25 = vadd.f32 %v16970_v55, %v20669_v50  ;;  %v5666_v41 = vpop.f32.mrb[39].mxu1 }
 0x4da   : > { %v5850_v37 = vmax.f32 %v5818_v17, 0.0  ;;  %v5819_v18 = vadd.f32 %v20669_v50, %v5666_v41  ;;  %v5967_v30 = vld [vmem:[#allocation2 + $0x31] sm:$0xff] }
 0x4db   : > { %5884 = vst.msk [vmem:[#allocation2 + $0x61] sm:$0xff] %vm170_vm0, %v5852_v42  ;;  %v5853_v31 = vmax.f32 %v5821_v25, 0.0  ;;  %v5965_v60 = vld [vmem:[#allocation2 + $0x19] sm:$0xff] }
 0x4dc   : > { %5882 = vst.msk [vmem:[#allocation2 + $0x49] sm:$0xff] %vm170_vm0, %v5850_v37  ;;  %v5851_v19 = vmax.f32 %v5819_v18, 0.0  ;;  %v5968_v45 = vld [vmem:[#allocation2 + $0x39] sm:$0xff] }
 0x4dd   : > { %5885 = vst.msk [vmem:[#allocation2 + $0x69] sm:$0xff] %vm170_vm0, %v5853_v31  ;;  %v5966_v15 = vld [vmem:[#allocation2 + $0x21] sm:$0xff]  ;;  %v20693_v6 = vpack.c.bf16 %v5968_v45, %v5967_v30 }
 0x4de   : > { %5883 = vst.msk [vmem:[#allocation2 + $0x51] sm:$0xff] %vm170_vm0, %v5851_v19  ;;  %v16973_v54 = vpop.f32.mrb[40].mxu1  ;;  %v20687_v56 = vpack.c.bf16 %v5966_v15, %v5965_v60 }
 0x4df   : > { %v5824_v2 = vadd.f32 %v16973_v54, %v20669_v50  ;;  %v5679_v3 = vpop.f32.mrb[41].mxu1 }
 0x4e0   : > { %v5822_v62 = vadd.f32 %v20669_v50, %v5679_v3  ;;  %v16974_v61 = vpop.f32.mrb[42].mxu1  ;;  %17000 = vmatmul.mubr.msk.bf16.vlgmr.msra.gmra.mrb[32].mxu0 %vm170_vm0, %v20687_v56 }
 0x4e1   : > { %v5856_v9 = vmax.f32 %v5824_v2, 0.0  ;;  %v5825_v7 = vadd.f32 %v16974_v61, %v20669_v50  ;;  %17032 = vmatpush3.bf16.msra.mxu0 %v19331_v47  ;;  %v5682_v23 = vpop.f32.mrb[43].mxu1  ;;  %17003 = vmatprep.mubr.msk.bf16.mxu0 %vm170_vm0, %v20693_v6 }
 0x4e2   : > { %v5854_v14 = vmax.f32 %v5822_v62, 0.0  ;;  %v5823_v27 = vadd.f32 %v20669_v50, %v5682_v23  ;;  %17033 = vmatprep.subr.bf16.mxu0 %v19332_v52  ;;  %v5971_v24 = vld [vmem:[#allocation2 + $0x61] sm:$0xff] }
 0x4e3   : > { %5888 = vst.msk [vmem:[#allocation2 + $0x91] sm:$0xff] %vm170_vm0, %v5856_v9  ;;  %v5857_v63 = vmax.f32 %v5825_v7, 0.0  ;;  %v5969_v34 = vld [vmem:[#allocation2 + $0x49] sm:$0xff] }
 0x4e4   : > { %5886 = vst.msk [vmem:[#allocation2 + $0x79] sm:$0xff] %vm170_vm0, %v5854_v14  ;;  %v5855_v0 = vmax.f32 %v5823_v27, 0.0  ;;  %v5972_v32 = vld [vmem:[#allocation2 + $0x69] sm:$0xff] }
 0x4e5   : > { %5889 = vst.msk [vmem:[#allocation2 + $0x99] sm:$0xff] %vm170_vm0, %v5857_v63  ;;  %v5970_v59 = vld [vmem:[#allocation2 + $0x51] sm:$0xff]  ;;  %17034 = vmatpush3.bf16.msra.mxu0 %v19332_v52  ;;  %v20715_v40 = vpack.c.bf16 %v5972_v32, %v5971_v24 }
 0x4e6   : > { %5887 = vst.msk [vmem:[#allocation2 + $0x81] sm:$0xff] %vm170_vm0, %v5855_v0  ;;  %v16977_v13 = vpop.f32.mrb[44].mxu1  ;;  %v20711_v1 = vpack.c.bf16 %v5970_v59, %v5969_v34  ;;  %17067 = vmatprep.subr.bf16.mxu0 %v20705_v22 }
 0x4e7   : > { %v5828_v26 = vadd.f32 %v16977_v13, %v20669_v50  ;;  %v5695_v20 = vpop.f32.mrb[45].mxu1 }
 0x4e8   : > { %v5826_v43 = vadd.f32 %v20669_v50, %v5695_v20  ;;  %v16978_v53 = vpop.f32.mrb[46].mxu1  ;;  %17004 = vmatmul.mubr.msk.bf16.gmra.mrb[36].mxu0 %vm170_vm0, %v20711_v1 }
 0x4e9   : > { %v5860_v46 = vmax.f32 %v5828_v26, 0.0  ;;  %v5829_v36 = vadd.f32 %v16978_v53, %v20669_v50  ;;  %v5698_v57 = vpop.f32.mrb[47].mxu1  ;;  %17007 = vmatprep.mubr.msk.bf16.mxu0 %vm170_vm0, %v20715_v40 }
 0x4ea   : > { %v5858_v39 = vmax.f32 %v5826_v43, 0.0  ;;  %v5827_v4 = vadd.f32 %v20669_v50, %v5698_v57  ;;  %v5975_v10 = vld [vmem:[#allocation2 + $0x91] sm:$0xff] }
 0x4eb   : > { %5892 = vst.msk [vmem:[#allocation2 + $0xc1] sm:$0xff] %vm170_vm0, %v5860_v46  ;;  %v5861_v21 = vmax.f32 %v5829_v36, 0.0  ;;  %v5973_v35 = vld [vmem:[#allocation2 + $0x79] sm:$0xff] }
 0x4ec   : > { %5890 = vst.msk [vmem:[#allocation2 + $0xa9] sm:$0xff] %vm170_vm0, %v5858_v39  ;;  %v5859_v5 = vmax.f32 %v5827_v4, 0.0  ;;  %v5976_v47 = vld [vmem:[#allocation2 + $0x99] sm:$0xff] }
 0x4ed   : > { %5893 = vst.msk [vmem:[#allocation2 + $0xc9] sm:$0xff] %vm170_vm0, %v5861_v21  ;;  %v5974_v38 = vld [vmem:[#allocation2 + $0x81] sm:$0xff]  ;;  %v20731_v29 = vpack.c.bf16 %v5976_v47, %v5975_v10 }
 0x4ee   : > { %5891 = vst.msk [vmem:[#allocation2 + $0xb1] sm:$0xff] %vm170_vm0, %v5859_v5  ;;  %v16981_v51 = vpop.f32.mrb[48].mxu1  ;;  %v20728_v8 = vpack.c.bf16 %v5974_v38, %v5973_v35 }
 0x4ef   : > { %v5832_v11 = vadd.f32 %v16981_v51, %v20669_v50  ;;  %v5711_v28 = vpop.f32.mrb[49].mxu1 }
 0x4f0   : > { %v5830_v33 = vadd.f32 %v20669_v50, %v5711_v28  ;;  %v16982_v49 = vpop.f32.mrb[50].mxu1  ;;  %17008 = vmatmul.mubr.msk.bf16.gmra.mrb[40].mxu0 %vm170_vm0, %v20728_v8 }
 0x4f1   : > { %v5864_v16 = vmax.f32 %v5832_v11, 0.0  ;;  %v5833_v12 = vadd.f32 %v16982_v49, %v20669_v50  ;;  %v5714_v44 = vpop.f32.mrb[51].mxu1  ;;  %17011 = vmatprep.mubr.msk.bf16.mxu0 %vm170_vm0, %v20731_v29 }
 0x4f2   : > { %v5862_v58 = vmax.f32 %v5830_v33, 0.0  ;;  %v5831_v48 = vadd.f32 %v20669_v50, %v5714_v44  ;;  %v5979_v31 = vld [vmem:[#allocation2 + $0xc1] sm:$0xff] }
 0x4f3   : > { %5896 = vst.msk [vmem:[#allocation2 + $0xf1] sm:$0xff] %vm170_vm0, %v5864_v16  ;;  %v5865_v17 = vmax.f32 %v5833_v12, 0.0  ;;  %v5977_v25 = vld [vmem:[#allocation2 + $0xa9] sm:$0xff] }
 0x4f4   : > { %5894 = vst.msk [vmem:[#allocation2 + $0xd9] sm:$0xff] %vm170_vm0, %v5862_v58  ;;  %v5863_v55 = vmax.f32 %v5831_v48, 0.0  ;;  %v5980_v42 = vld [vmem:[#allocation2 + $0xc9] sm:$0xff] }
 0x4f5   : > { %5897 = vst.msk [vmem:[#allocation2 + $0xf9] sm:$0xff] %vm170_vm0, %v5865_v17  ;;  %v5978_v41 = vld [vmem:[#allocation2 + $0xb1] sm:$0xff]  ;;  %v20747_v60 = vpack.c.bf16 %v5980_v42, %v5979_v31  ;;  %v5911_v31 = vld [vmem:[#allocation2 + $0x8] sm:$0xff] }
 0x4f6   : > { %5895 = vst.msk [vmem:[#allocation2 + $0xe1] sm:$0xff] %vm170_vm0, %v5863_v55  ;;  %v16985_v37 = vpop.f32.mrb[52].mxu1  ;;  %v20744_v18 = vpack.c.bf16 %v5978_v41, %v5977_v25 }
 0x4f7   : > { %v5836_v19 = vadd.f32 %v16985_v37, %v20669_v50  ;;  %v5727_v45 = vpop.f32.mrb[53].mxu1 }
 0x4f8   : > { %v5834_v15 = vadd.f32 %v20669_v50, %v5727_v45  ;;  %v16986_v54 = vpop.f32.mrb[54].mxu1  ;;  %17012 = vmatmul.mubr.msk.bf16.gmra.mrb[44].mxu0 %vm170_vm0, %v20744_v18 }
 0x4f9   : > { %v5868_v30 = vmax.f32 %v5836_v19, 0.0  ;;  %v5837_v52 = vadd.f32 %v16986_v54, %v20669_v50  ;;  %v5730_v2 = vpop.f32.mrb[55].mxu1  ;;  %17015 = vmatprep.mubr.msk.bf16.mxu0 %vm170_vm0, %v20747_v60 }
 0x4fa   : > { %v5866_v3 = vmax.f32 %v5834_v15, 0.0  ;;  %v5835_v62 = vadd.f32 %v20669_v50, %v5730_v2  ;;  %v5983_v0 = vld [vmem:[#allocation2 + $0xf1] sm:$0xff] }
 0x4fb   : > { %5900 = vst.msk [vmem:[#allocation2 + $0x121] sm:$0xff] %vm170_vm0, %v5868_v30  ;;  %v5869_v61 = vmax.f32 %v5837_v52, 0.0  ;;  %v5981_v23 = vld [vmem:[#allocation2 + $0xd9] sm:$0xff] }
 0x4fc   : > { %5898 = vst.msk [vmem:[#allocation2 + $0x109] sm:$0xff] %vm170_vm0, %v5866_v3  ;;  %v5867_v9 = vmax.f32 %v5835_v62, 0.0  ;;  %v5984_v7 = vld [vmem:[#allocation2 + $0xf9] sm:$0xff]  ;;  %v5914_v62 = vld [vmem:[#allocation2 + $0x30] sm:$0xff] }
 0x4fd   : > { %5901 = vst.msk [vmem:[#allocation2 + $0x129] sm:$0xff] %vm170_vm0, %v5869_v61  ;;  %v5982_v14 = vld [vmem:[#allocation2 + $0xe1] sm:$0xff]  ;;  %v20763_v59 = vpack.c.bf16 %v5984_v7, %v5983_v0  ;;  %v5915_v52 = vld [vmem:[#allocation2 + $0x38] sm:$0xff]  ;;  %v20820_v7 = vld [vmem:[%s22349_s1 + $0x150] sm:$0xff]  }
 0x4fe   : > { %5899 = vst.msk [vmem:[#allocation2 + $0x111] sm:$0xff] %vm170_vm0, %v5867_v9  ;;  %v16989_v27 = vpop.f32.mrb[56].mxu1  ;;  %v20760_v63 = vpack.c.bf16 %v5982_v14, %v5981_v23  ;;  %v5913_v30 = vld [vmem:[#allocation2 + $0x20] sm:$0xff]  ;;  %v5912_v2 = vld [vmem:[#allocation2 + $0x18] sm:$0xff]  ;;  %v19334_v61 = vld [vmem:[%s22349_s1 + $0x148] sm:$0xff]   ;;  %v20810_v9 = vpack.c.bf16 %v5915_v52, %v5914_v62 }
 0x4ff   : > { %v5840_v32 = vadd.f32 %v16989_v27, %v20669_v50  ;;  %v5743_v34 = vpop.f32.mrb[57].mxu1  ;;  %v20805_v3 = vpack.c.bf16 %v5913_v30, %v5912_v2  ;;  %v5917_v23 = vld [vmem:[#allocation2 + $0x50] sm:$0xff]  ;;  %v5919_v14 = vld [vmem:[#allocation2 + $0x68] sm:$0xff]  ;;  %v6460_v52 = vld [vmem:[#allocation2 + $0x1a] sm:$0xff] }
 0x500   : > { %v5838_v13 = vadd.f32 %v20669_v50, %v5743_v34  ;;  %v16990_v24 = vpop.f32.mrb[58].mxu1  ;;  %17016 = vmatmul.mubr.msk.bf16.gmra.mrb[48].mxu0 %vm170_vm0, %v20760_v63  ;;  %v5916_v27 = vld [vmem:[#allocation2 + $0x48] sm:$0xff]  ;;  %v6462_v62 = vld [vmem:[#allocation2 + $0x32] sm:$0xff] }
 0x501   : > { %v5872_v26 = vmax.f32 %v5840_v32, 0.0  ;;  %v5841_v20 = vadd.f32 %v16990_v24, %v20669_v50  ;;  %v5746_v43 = vpop.f32.mrb[59].mxu1  ;;  %17019 = vmatprep.mubr.msk.bf16.mxu0 %vm170_vm0, %v20763_v59  ;;  %v20822_v0 = vpack.c.bf16 %v5917_v23, %v5916_v27  ;;  %v5918_v32 = vld [vmem:[#allocation2 + $0x60] sm:$0xff]  ;;  %v5920_v24 = vld [vmem:[#allocation2 + $0x78] sm:$0xff] }
 0x502   : > { %v5870_v53 = vmax.f32 %v5838_v13, 0.0  ;;  %v5839_v46 = vadd.f32 %v20669_v50, %v5746_v43  ;;  %v5987_v35 = vld [vmem:[#allocation2 + $0x121] sm:$0xff]  ;;  %v20825_v34 = vpack.c.bf16 %v5919_v14, %v5918_v32  ;;  %v5923_v13 = vld [vmem:[#allocation2 + $0x98] sm:$0xff] }
 0x503   : > { %5904 = vst.msk [vmem:[#allocation2 + $0x151] sm:$0xff] %vm170_vm0, %v5872_v26  ;;  %v5873_v36 = vmax.f32 %v5841_v20, 0.0  ;;  %v5985_v4 = vld [vmem:[#allocation2 + $0x109] sm:$0xff]  ;;  %v19336_v14 = vld [vmem:[%s22349_s1 + $0x158] sm:$0xff]   ;;  %v19337_v32 = vld [vmem:[%s22349_s1 + $0x160] sm:$0xff]  }
 0x504   : > { %5902 = vst.msk [vmem:[#allocation2 + $0x139] sm:$0xff] %vm170_vm0, %v5870_v53  ;;  %v5871_v57 = vmax.f32 %v5839_v46, 0.0  ;;  %v5988_v39 = vld [vmem:[#allocation2 + $0x129] sm:$0xff] }
 0x505   : > { %5905 = vst.msk [vmem:[#allocation2 + $0x159] sm:$0xff] %vm170_vm0, %v5873_v36  ;;  %v5986_v21 = vld [vmem:[#allocation2 + $0x111] sm:$0xff]  ;;  %v20779_v10 = vpack.c.bf16 %v5988_v39, %v5987_v35  ;;  %v5927_v46 = vld [vmem:[#allocation2 + $0xc8] sm:$0xff]  ;;  %v5926_v39 = vld [vmem:[#allocation2 + $0xc0] sm:$0xff] }
 0x506   : > { %5903 = vst.msk [vmem:[#allocation2 + $0x141] sm:$0xff] %vm170_vm0, %v5871_v57  ;;  %v16993_v5 = vpop.f32.mrb[60].mxu1  ;;  %v20776_v47 = vpack.c.bf16 %v5986_v21, %v5985_v4  ;;  %v5922_v20 = vld [vmem:[#allocation2 + $0x90] sm:$0xff]  ;;  %v5924_v36 = vld [vmem:[#allocation2 + $0xa8] sm:$0xff]  ;;  %v20841_v4 = vpack.c.bf16 %v5927_v46, %v5926_v39  ;;  %v5929_v21 = vld [vmem:[#allocation2 + $0xe0] sm:$0xff] }
 0x507   : > { %v5844_v38 = vadd.f32 %v16993_v5, %v20669_v50  ;;  %v5759_v51 = vpop.f32.mrb[61].mxu1  ;;  %v20833_v43 = vpack.c.bf16 %v5923_v13, %v5922_v20  ;;  %v5925_v53 = vld [vmem:[#allocation2 + $0xb0] sm:$0xff]  ;;  %v5931_v5 = vld [vmem:[#allocation2 + $0xf8] sm:$0xff]  ;;  %v6461_v2 = vld [vmem:[#allocation2 + $0x22] sm:$0xff] }
 0x508   : > { %v5842_v11 = vadd.f32 %v20669_v50, %v5759_v51  ;;  %v16994_v28 = vpop.f32.mrb[62].mxu1  ;;  %17020 = vmatmul.mubr.msk.bf16.gmra.mrb[52].mxu0 %vm170_vm0, %v20776_v47  ;;  %v20839_v57 = vpack.c.bf16 %v5925_v53, %v5924_v36  ;;  %v5928_v35 = vld [vmem:[#allocation2 + $0xd8] sm:$0xff]  ;;  %v5930_v51 = vld [vmem:[#allocation2 + $0xf0] sm:$0xff]  ;;  %v20876_v23 = vpack.c.bf16 %v6461_v2, %v6460_v52  ;;  %v6469_v36 = vld [vmem:[#allocation2 + $0x82] sm:$0xff] }
 0x509   : > { %v5876_v33 = vmax.f32 %v5844_v38, 0.0  ;;  %v5845_v49 = vadd.f32 %v16994_v28, %v20669_v50  ;;  %v5762_v16 = vpop.f32.mrb[63].mxu1  ;;  %17023 = vmatprep.mubr.msk.bf16.mxu0 %vm170_vm0, %v20779_v10  ;;  %v20847_v38 = vpack.c.bf16 %v5929_v21, %v5928_v35  ;;  %v5933_v28 = vld [vmem:[#allocation2 + $0x110] sm:$0xff]  ;;  %v6471_v21 = vld [vmem:[#allocation2 + $0x9a] sm:$0xff]  ;;  %v6482_v52 = vld [vmem:[#allocation2 + $0x122] sm:$0xff] }
 0x50a   : > { %v5874_v12 = vmax.f32 %v5842_v11, 0.0  ;;  %v5843_v44 = vadd.f32 %v20669_v50, %v5762_v16  ;;  %v5991_v41 = vld [vmem:[#allocation2 + $0x151] sm:$0xff]  ;;  %v5910_v50 = vld [vmem:[#allocation2] sm:$0xff]  ;;  %v20849_v11 = vpack.c.bf16 %v5931_v5, %v5930_v51 }
 0x50b   : > { %5908 = vst.msk [vmem:[#allocation2 + $0x181] sm:$0xff] %vm170_vm0, %v5876_v33  ;;  %v5877_v58 = vmax.f32 %v5845_v49, 0.0  ;;  %v5989_v55 = vld [vmem:[#allocation2 + $0x139] sm:$0xff]  ;;  %v5942_v15 = vpack.c.bf16 %v5911_v31, %v5910_v50  ;;  %v5935_v33 = vld [vmem:[#allocation2 + $0x128] sm:$0xff] }
 0x50c   : > { %5906 = vst.msk [vmem:[#allocation2 + $0x169] sm:$0xff] %vm170_vm0, %v5874_v12  ;;  %v5875_v48 = vmax.f32 %v5843_v44, 0.0  ;;  %v5992_v17 = vld [vmem:[#allocation2 + $0x159] sm:$0xff]  ;;  %v5932_v49 = vld [vmem:[#allocation2 + $0x108] sm:$0xff] }
 0x50d   : > { %5909 = vst.msk [vmem:[#allocation2 + $0x189] sm:$0xff] %vm170_vm0, %v5877_v58  ;;  %v5990_v42 = vld [vmem:[#allocation2 + $0x141] sm:$0xff]  ;;  %v20794_v37 = vpack.c.bf16 %v5992_v17, %v5991_v41  ;;  %v20855_v16 = vpack.c.bf16 %v5933_v28, %v5932_v49  ;;  %v5936_v17 = vld [vmem:[#allocation2 + $0x138] sm:$0xff]  ;;  %v6459_v31 = vld [vmem:[#allocation2 + $0xa] sm:$0xff] }
 0x50e   : > { %5907 = vst.msk [vmem:[#allocation2 + $0x171] sm:$0xff] %vm170_vm0, %v5875_v48  ;;  %v20792_v25 = vpack.c.bf16 %v5990_v42, %v5989_v55  ;;  %v5934_v12 = vld [vmem:[#allocation2 + $0x120] sm:$0xff]  ;;  %v5939_v48 = vld [vmem:[#allocation2 + $0x158] sm:$0xff]  ;;  %v5938_v42 = vld [vmem:[#allocation2 + $0x150] sm:$0xff] }
 0x50f   : > { %v20857_v44 = vpack.c.bf16 %v5935_v33, %v5934_v12  ;;  %v5937_v58 = vld [vmem:[#allocation2 + $0x140] sm:$0xff]  ;;  %v20865_v41 = vpack.c.bf16 %v5939_v48, %v5938_v42  ;;  %v6465_v13 = vld [vmem:[#allocation2 + $0x52] sm:$0xff]  ;;  %v6467_v20 = vld [vmem:[#allocation2 + $0x6a] sm:$0xff] }
 0x510   : > { %17024 = vmatmul.mubr.msk.bf16.gmra.mrb[56].mxu0 %vm170_vm0, %v20792_v25  ;;  %v20863_v55 = vpack.c.bf16 %v5937_v58, %v5936_v17  ;;  %v6458_v50 = vld [vmem:[#allocation2 + $0x2] sm:$0xff]  ;;  %v6470_v39 = vld [vmem:[#allocation2 + $0x92] sm:$0xff]  ;;  %v6472_v51 = vld [vmem:[#allocation2 + $0xaa] sm:$0xff] }
 0x511   : > { %17027 = vmatprep.mubr.msk.bf16.mxu0 %vm170_vm0, %v20794_v37  ;;  %v20901_v35 = vpack.c.bf16 %v6471_v21, %v6470_v39  ;;  %v6473_v28 = vld [vmem:[#allocation2 + $0xb2] sm:$0xff]  ;;  %v6474_v33 = vld [vmem:[#allocation2 + $0xc2] sm:$0xff]  ;;  %v6475_v49 = vld [vmem:[#allocation2 + $0xca] sm:$0xff] }
 0x512   : > { %v20907_v12 = vpack.c.bf16 %v6473_v28, %v6472_v51  ;;  %v20909_v58 = vpack.c.bf16 %v6475_v49, %v6474_v33  ;;  %v6476_v48 = vld [vmem:[#allocation2 + $0xda] sm:$0xff]  ;;  %v6477_v17 = vld [vmem:[#allocation2 + $0xe2] sm:$0xff]  ;;  %v6478_v42 = vld [vmem:[#allocation2 + $0xf2] sm:$0xff] }
 0x513   : > { %v5993_v19 = vld [vmem:[#allocation2 + $0x169] sm:$0xff]  ;;  %v19340_v49 = vld [vmem:[%s22349_s1 + $0x178] sm:$0xff]  }
 0x514   : > { %v6483_v2 = vld [vmem:[#allocation2 + $0x12a] sm:$0xff] }
 0x515   : > { %v5994_v45 = vld [vmem:[#allocation2 + $0x171] sm:$0xff]  ;;  %v19338_v51 = vld [vmem:[%s22349_s1 + $0x168] sm:$0xff]  }
 0x516   : > { %v20800_v54 = vpack.c.bf16 %v5994_v45, %v5993_v19  ;;  %v5941_v19 = vld [vmem:[#allocation2 + $0x170] sm:$0xff]  ;;  %v5940_v45 = vld [vmem:[#allocation2 + $0x168] sm:$0xff] }
 0x517   : > { %v20871_v30 = vpack.c.bf16 %v5941_v19, %v5940_v45  ;;  %v6480_v45 = vld [vmem:[#allocation2 + $0x10a] sm:$0xff]  ;;  %v6489_v39 = vld [vmem:[#allocation2 + $0x172] sm:$0xff] }
 0x518   : > { %17028 = vmatmul.mubr.msk.bf16.gmra.mrb[60].mxu0 %vm170_vm0, %v20800_v54  ;;  %v19339_v28 = vld [vmem:[%s22349_s1 + $0x170] sm:$0xff]  }
 0x519   : > { %17035 = vmatprep.mubr.msk.bf16.mxu0 %vm170_vm0, %v5942_v15  ;;  %v6490_v15 = vpack.c.bf16 %v6459_v31, %v6458_v50  ;;  %v6479_v50 = vld [vmem:[#allocation2 + $0xfa] sm:$0xff]  ;;  %v20915_v31 = vpack.c.bf16 %v6477_v17, %v6476_v48 }
 0x51a   : > { %v20917_v19 = vpack.c.bf16 %v6479_v50, %v6478_v42  ;;  %v19341_v48 = vld [vmem:[%s22349_s1 + $0x180] sm:$0xff]  }
 0x51b   : > { %v7997_v17 = vld [vmem:[#allocation2 + $0x99] sm:$0xff] }
 0x51c   : > { %v7994_v42 = vld [vmem:[#allocation2 + $0x79] sm:$0xff] }
 0x520   : > { %17036 = vmatmul.mubr.msk.bf16.vlgmr.msra.gmra.mrb[32].mxu0 %vm170_vm0, %v20805_v3 }
 0x521   : > { %17068 = vmatpush3.bf16.msra.mxu0 %v20705_v22  ;;  %17039 = vmatprep.mubr.msk.bf16.mxu0 %vm170_vm0, %v20810_v9  ;;  %v5921_v22 = vld [vmem:[#allocation2 + $0x80] sm:$0xff] }
 0x522   : > { %17069 = vmatprep.subr.bf16.mxu0 %v19334_v61  ;;  %v20831_v26 = vpack.c.bf16 %v5921_v22, %v5920_v24  ;;  %v6464_v22 = vld [vmem:[#allocation2 + $0x4a] sm:$0xff]  ;;  %v6466_v24 = vld [vmem:[#allocation2 + $0x62] sm:$0xff] }
 0x523   : > { %v20891_v53 = vpack.c.bf16 %v6465_v13, %v6464_v22  ;;  %v20893_v46 = vpack.c.bf16 %v6467_v20, %v6466_v24  ;;  %v6485_v22 = vld [vmem:[#allocation2 + $0x142] sm:$0xff]  ;;  %v6486_v13 = vld [vmem:[#allocation2 + $0x152] sm:$0xff]  ;;  %v6487_v24 = vld [vmem:[#allocation2 + $0x15a] sm:$0xff] }
 0x525   : > { %17070 = vmatpush3.bf16.msra.mxu0 %v19334_v61  ;;  %v6463_v61 = vld [vmem:[#allocation2 + $0x3a] sm:$0xff] }
 0x526   : > { %17103 = vmatprep.subr.bf16.mxu0 %v20820_v7  ;;  %v20881_v27 = vpack.c.bf16 %v6463_v61, %v6462_v62  ;;  %v20925_v61 = vpack.c.bf16 %v6483_v2, %v6482_v52  ;;  %v7999_v52 = vld [vmem:[#allocation2 + $0xb1] sm:$0xff]  ;;  %v8001_v2 = vld [vmem:[#allocation2 + $0xc9] sm:$0xff] }
 0x528   : > { %17040 = vmatmul.mubr.msk.bf16.gmra.mrb[36].mxu0 %vm170_vm0, %v20822_v0 }
 0x529   : > { %17043 = vmatprep.mubr.msk.bf16.mxu0 %vm170_vm0, %v20825_v34 }
 0x530   : > { %17044 = vmatmul.mubr.msk.bf16.gmra.mrb[40].mxu0 %vm170_vm0, %v20831_v26 }
 0x531   : > { %17047 = vmatprep.mubr.msk.bf16.mxu0 %vm170_vm0, %v20833_v43 }
 0x538   : > { %17048 = vmatmul.mubr.msk.bf16.gmra.mrb[44].mxu0 %vm170_vm0, %v20839_v57 }
 0x539   : > { %17051 = vmatprep.mubr.msk.bf16.mxu0 %vm170_vm0, %v20841_v4 }
 0x540   : > { %17052 = vmatmul.mubr.msk.bf16.gmra.mrb[48].mxu0 %vm170_vm0, %v20847_v38 }
 0x541   : > { %17055 = vmatprep.mubr.msk.bf16.mxu0 %vm170_vm0, %v20849_v11 }
 0x548   : > { %17056 = vmatmul.mubr.msk.bf16.gmra.mrb[52].mxu0 %vm170_vm0, %v20855_v16 }
 0x549   : > { %17059 = vmatprep.mubr.msk.bf16.mxu0 %vm170_vm0, %v20857_v44 }
 0x550   : > { %17060 = vmatmul.mubr.msk.bf16.gmra.mrb[56].mxu0 %vm170_vm0, %v20863_v55 }
 0x551   : > { %17063 = vmatprep.mubr.msk.bf16.mxu0 %vm170_vm0, %v20865_v41 }
 0x558   : > { %17064 = vmatmul.mubr.msk.bf16.gmra.mrb[60].mxu0 %vm170_vm0, %v20871_v30 }
 0x559   : > { %17071 = vmatprep.mubr.msk.bf16.mxu0 %vm170_vm0, %v6490_v15  ;;  %v6481_v15 = vld [vmem:[#allocation2 + $0x112] sm:$0xff] }
 0x55a   : > { %v20923_v62 = vpack.c.bf16 %v6481_v15, %v6480_v45  ;;  %v7996_v45 = vld [vmem:[#allocation2 + $0x91] sm:$0xff] }
 0x55b   : > { %v8024_v15 = vpack.c.bf16 %v7997_v17, %v7996_v45 }
 0x560   : > { %17072 = vmatmul.mubr.msk.bf16.vlgmr.msra.gmra.mrb[32].mxu0 %vm170_vm0, %v20876_v23 }
 0x561   : > { %17104 = vmatpush3.bf16.msra.mxu0 %v20820_v7  ;;  %17075 = vmatprep.mubr.msk.bf16.mxu0 %vm170_vm0, %v20881_v27  ;;  %v6468_v7 = vld [vmem:[#allocation2 + $0x7a] sm:$0xff] }
 0x562   : > { %17105 = vmatprep.subr.bf16.mxu0 %v19336_v14  ;;  %v20899_v5 = vpack.c.bf16 %v6469_v36, %v6468_v7  ;;  %v20933_v7 = vpack.c.bf16 %v6487_v24, %v6486_v13  ;;  %v6488_v36 = vld [vmem:[#allocation2 + $0x16a] sm:$0xff]  ;;  %v8000_v13 = vld [vmem:[#allocation2 + $0xc1] sm:$0xff] }
 0x563   : > { %v20939_v21 = vpack.c.bf16 %v6489_v39, %v6488_v36  ;;  %v8026_v24 = vpack.c.bf16 %v8001_v2, %v8000_v13  ;;  %v8003_v36 = vld [vmem:[#allocation2 + $0xe1] sm:$0xff]  ;;  %v8005_v39 = vld [vmem:[#allocation2 + $0xf9] sm:$0xff] }
 0x565   : > { %17106 = vmatpush3.bf16.msra.mxu0 %v19336_v14  ;;  %v6484_v14 = vld [vmem:[#allocation2 + $0x13a] sm:$0xff] }
 0x566   : > { %17139 = vmatprep.subr.bf16.mxu0 %v19337_v32  ;;  %v20931_v20 = vpack.c.bf16 %v6485_v22, %v6484_v14  ;;  %v7998_v14 = vld [vmem:[#allocation2 + $0xa9] sm:$0xff] }
 0x567   : > { %v8025_v22 = vpack.c.bf16 %v7999_v52, %v7998_v14 }
 0x568   : > { %17076 = vmatmul.mubr.msk.bf16.gmra.mrb[36].mxu0 %vm170_vm0, %v20891_v53 }
 0x569   : > { %17079 = vmatprep.mubr.msk.bf16.mxu0 %vm170_vm0, %v20893_v46 }
 0x570   : > { %17080 = vmatmul.mubr.msk.bf16.gmra.mrb[40].mxu0 %vm170_vm0, %v20899_v5 }
 0x571   : > { %17083 = vmatprep.mubr.msk.bf16.mxu0 %vm170_vm0, %v20901_v35 }
 0x578   : > { %17084 = vmatmul.mubr.msk.bf16.gmra.mrb[44].mxu0 %vm170_vm0, %v20907_v12 }
 0x579   : > { %17087 = vmatprep.mubr.msk.bf16.mxu0 %vm170_vm0, %v20909_v58 }
 0x580   : > { %17088 = vmatmul.mubr.msk.bf16.gmra.mrb[48].mxu0 %vm170_vm0, %v20915_v31 }
 0x581   : > { %17091 = vmatprep.mubr.msk.bf16.mxu0 %vm170_vm0, %v20917_v19 }
 0x588   : > { %17092 = vmatmul.mubr.msk.bf16.gmra.mrb[52].mxu0 %vm170_vm0, %v20923_v62 }
 0x589   : > { %17095 = vmatprep.mubr.msk.bf16.mxu0 %vm170_vm0, %v20925_v61 }
 0x590   : > { %17096 = vmatmul.mubr.msk.bf16.gmra.mrb[56].mxu0 %vm170_vm0, %v20931_v20 }
 0x591   : > { %17099 = vmatprep.mubr.msk.bf16.mxu0 %vm170_vm0, %v20933_v7 }
 0x598   : > { %17100 = vmatmul.mubr.msk.bf16.gmra.mrb[60].mxu0 %vm170_vm0, %v20939_v21 }
 0x599   : > { %17107 = vmatprep.mubr.msk.bf16.mxu0 %vm170_vm0, %v20805_v3  ;;  %v6795_v3 = vld [vmem:[#allocation2 + $0x188] sm:$0xff] }
 0x5a0   : > { %17108 = vmatmul.mubr.msk.bf16.vlgmr.msra.gmra.mrb[32].mxu0 %vm170_vm0, %v20810_v9 }
 0x5a1   : > { %17140 = vmatpush3.bf16.msra.mxu0 %v19337_v32  ;;  %17111 = vmatprep.mubr.msk.bf16.mxu0 %vm170_vm0, %v20822_v0  ;;  %v6794_v32 = vld [vmem:[#allocation2 + $0x180] sm:$0xff] }
 0x5a2   : > { %17141 = vmatprep.subr.bf16.mxu0 %v19338_v51  ;;  %v20979_v33 = vpack.c.bf16 %v6795_v3, %v6794_v32  ;;  %v8004_v3 = vld [vmem:[#allocation2 + $0xf1] sm:$0xff] }
 0x5a3   : > { %v8028_v32 = vpack.c.bf16 %v8005_v39, %v8004_v3 }
 0x5a5   : > { %17142 = vmatpush3.bf16.msra.mxu0 %v19338_v51  ;;  %v8002_v51 = vld [vmem:[#allocation2 + $0xd9] sm:$0xff] }
 0x5a6   : > { %17175 = vmatprep.subr.bf16.mxu0 %v19339_v28 }
 0x5a8   : > { %17112 = vmatmul.mubr.msk.bf16.gmra.mrb[36].mxu0 %vm170_vm0, %v20825_v34 }
 0x5a9   : > { %17115 = vmatprep.mubr.msk.bf16.mxu0 %vm170_vm0, %v20831_v26 }
 0x5b0   : > { %17116 = vmatmul.mubr.msk.bf16.gmra.mrb[40].mxu0 %vm170_vm0, %v20833_v43 }
 0x5b1   : > { %17119 = vmatprep.mubr.msk.bf16.mxu0 %vm170_vm0, %v20839_v57 }
 0x5b8   : > { %17120 = vmatmul.mubr.msk.bf16.gmra.mrb[44].mxu0 %vm170_vm0, %v20841_v4 }
 0x5b9   : > { %17123 = vmatprep.mubr.msk.bf16.mxu0 %vm170_vm0, %v20847_v38 }
 0x5c0   : > { %17124 = vmatmul.mubr.msk.bf16.gmra.mrb[48].mxu0 %vm170_vm0, %v20849_v11 }
 0x5c1   : > { %17127 = vmatprep.mubr.msk.bf16.mxu0 %vm170_vm0, %v20855_v16 }
 0x5c8   : > { %17128 = vmatmul.mubr.msk.bf16.gmra.mrb[52].mxu0 %vm170_vm0, %v20857_v44 }
 0x5c9   : > { %17131 = vmatprep.mubr.msk.bf16.mxu0 %vm170_vm0, %v20863_v55 }
 0x5d0   : > { %17132 = vmatmul.mubr.msk.bf16.gmra.mrb[56].mxu0 %vm170_vm0, %v20865_v41 }
 0x5d1   : > { %17135 = vmatprep.mubr.msk.bf16.mxu0 %vm170_vm0, %v20871_v30 }
 0x5d8   : > { %17136 = vmatmul.mubr.msk.bf16.gmra.mrb[60].mxu0 %vm170_vm0, %v20979_v33 }
 0x5d9   : > { %17143 = vmatprep.mubr.msk.bf16.mxu0 %vm170_vm0, %v20687_v56  ;;  %v7101_v56 = vld [vmem:[#allocation2 + $0x189] sm:$0xff] }
 0x5e0   : > { %17144 = vmatmul.mubr.msk.bf16.vlgmr.msra.gmra.mrb[32].mxu0 %vm170_vm0, %v20693_v6  ;;  %v7100_v6 = vld [vmem:[#allocation2 + $0x181] sm:$0xff] }
 0x5e1   : > { %17176 = vmatpush3.bf16.msra.mxu0 %v19339_v28  ;;  %17147 = vmatprep.mubr.msk.bf16.mxu0 %vm170_vm0, %v20711_v1  ;;  %v21019_v1 = vpack.c.bf16 %v7101_v56, %v7100_v6  ;;  %v8027_v28 = vpack.c.bf16 %v8003_v36, %v8002_v51  ;;  %v8018_v56 = vld [vmem:[#allocation2 + $0x199] sm:$0xff]  ;;  %v8019_v6 = vld [vmem:[#allocation2 + $0x1a1] sm:$0xff] }
 0x5e2   : > { %17177 = vmatprep.subr.bf16.mxu0 %v19340_v49  ;;  %v8650_v51 = vld [vmem:[#allocation3 + $0x50] sm:$0xff] }
 0x5e5   : > { %17178 = vmatpush3.bf16.msra.mxu0 %v19340_v49  ;;  %v8006_v49 = vld [vmem:[#allocation2 + $0x109] sm:$0xff] }
 0x5e6   : > { %17211 = vmatprep.subr.bf16.mxu0 %v19341_v48 }
 0x5e8   : > { %17148 = vmatmul.mubr.msk.bf16.gmra.mrb[36].mxu0 %vm170_vm0, %v20715_v40  ;;  %v19342_v40 = vld [vmem:[%s22349_s1 + $0x188] sm:$0xff]  }
 0x5e9   : > { %17151 = vmatprep.mubr.msk.bf16.mxu0 %vm170_vm0, %v20728_v8  ;;  %v19343_v8 = vld [vmem:[%s22349_s1 + $0x190] sm:$0xff]  }
 0x5f0   : > { %17152 = vmatmul.mubr.msk.bf16.gmra.mrb[40].mxu0 %vm170_vm0, %v20731_v29  ;;  %v7406_v29 = vld [vmem:[#allocation2 + $0x182] sm:$0xff] }
 0x5f1   : > { %17155 = vmatprep.mubr.msk.bf16.mxu0 %vm170_vm0, %v20744_v18  ;;  %v7407_v18 = vld [vmem:[#allocation2 + $0x18a] sm:$0xff] }
 0x5f8   : > { %17156 = vmatmul.mubr.msk.bf16.gmra.mrb[44].mxu0 %vm170_vm0, %v20747_v60  ;;  %v21059_v60 = vpack.c.bf16 %v7407_v18, %v7406_v29 }
 0x5f9   : > { %17159 = vmatprep.mubr.msk.bf16.mxu0 %vm170_vm0, %v20760_v63  ;;  %v19344_v63 = vld [vmem:[%s22349_s1 + $0x198] sm:$0xff]  }
 0x600   : > { %17160 = vmatmul.mubr.msk.bf16.gmra.mrb[48].mxu0 %vm170_vm0, %v20763_v59  ;;  %v19345_v59 = vld [vmem:[%s22349_s1 + $0x1a0] sm:$0xff]  }
 0x601   : > { %17163 = vmatprep.mubr.msk.bf16.mxu0 %vm170_vm0, %v20776_v47  ;;  %v7712_v47 = vld [vmem:[#allocation2 + $0x198] sm:$0xff] }
 0x608   : > { %17164 = vmatmul.mubr.msk.bf16.gmra.mrb[52].mxu0 %vm170_vm0, %v20779_v10 }
 0x609   : > { %17167 = vmatprep.mubr.msk.bf16.mxu0 %vm170_vm0, %v20792_v25 }
 0x610   : > { %17168 = vmatmul.mubr.msk.bf16.gmra.mrb[56].mxu0 %vm170_vm0, %v20794_v37 }
 0x611   : > { %17171 = vmatprep.mubr.msk.bf16.mxu0 %vm170_vm0, %v20800_v54 }
 0x618   : > { %17172 = vmatmul.mubr.msk.bf16.gmra.mrb[60].mxu0 %vm170_vm0, %v21019_v1 }
 0x619   : > { %17179 = vmatprep.mubr.msk.bf16.mxu0 %vm170_vm0, %v20876_v23  ;;  %v7995_v23 = vld [vmem:[#allocation2 + $0x81] sm:$0xff] }
 0x61a   : > { %v8023_v50 = vpack.c.bf16 %v7995_v23, %v7994_v42 }
 0x620   : > { %17180 = vmatmul.mubr.msk.bf16.vlgmr.msra.gmra.mrb[32].mxu0 %vm170_vm0, %v20881_v27 }
 0x621   : > { %17212 = vmatpush3.bf16.msra.mxu0 %v19341_v48  ;;  %17183 = vmatprep.mubr.msk.bf16.mxu0 %vm170_vm0, %v20891_v53 }
 0x622   : > { %17213 = vmatprep.subr.bf16.mxu0 %v19342_v40 }
 0x625   : > { %17214 = vmatpush3.bf16.msra.mxu0 %v19342_v40  ;;  %v8035_v40 = vpack.c.bf16 %v8019_v6, %v8018_v56  ;;  %v8648_v56 = vld [vmem:[#allocation3 + $0x40] sm:$0xff] }
 0x626   : > { %17247 = vmatprep.subr.bf16.mxu0 %v19343_v8 }
 0x628   : > { %17184 = vmatmul.mubr.msk.bf16.gmra.mrb[36].mxu0 %vm170_vm0, %v20893_v46 }
 0x629   : > { %17187 = vmatprep.mubr.msk.bf16.mxu0 %vm170_vm0, %v20899_v5 }
 0x630   : > { %17188 = vmatmul.mubr.msk.bf16.gmra.mrb[40].mxu0 %vm170_vm0, %v20901_v35 }
 0x631   : > { %17191 = vmatprep.mubr.msk.bf16.mxu0 %vm170_vm0, %v20907_v12 }
 0x638   : > { %17192 = vmatmul.mubr.msk.bf16.gmra.mrb[44].mxu0 %vm170_vm0, %v20909_v58 }
 0x639   : > { %17195 = vmatprep.mubr.msk.bf16.mxu0 %vm170_vm0, %v20915_v31 }
 0x640   : > { %17196 = vmatmul.mubr.msk.bf16.gmra.mrb[48].mxu0 %vm170_vm0, %v20917_v19 }
 0x641   : > { %17199 = vmatprep.mubr.msk.bf16.mxu0 %vm170_vm0, %v20923_v62 }
 0x648   : > { %17200 = vmatmul.mubr.msk.bf16.gmra.mrb[52].mxu0 %vm170_vm0, %v20925_v61 }
 0x649   : > { %17203 = vmatprep.mubr.msk.bf16.mxu0 %vm170_vm0, %v20931_v20 }
 0x650   : > { %17204 = vmatmul.mubr.msk.bf16.gmra.mrb[56].mxu0 %vm170_vm0, %v20933_v7 }
 0x651   : > { %17207 = vmatprep.mubr.msk.bf16.mxu0 %vm170_vm0, %v20939_v21 }
 0x658   : > { %17208 = vmatmul.mubr.msk.bf16.gmra.mrb[60].mxu0 %vm170_vm0, %v21059_v60 }
 0x659   : > { %17215 = vmatprep.mubr.msk.bf16.mxu0 %vm170_vm0, %v20810_v9  ;;  %v7713_v9 = vld [vmem:[#allocation2 + $0x1a0] sm:$0xff] }
 0x660   : > { %17216 = vmatmul.mubr.msk.bf16.vlgmr.msra.gmra.mrb[32].mxu0 %vm170_vm0, %v20822_v0  ;;  %v7729_v0 = vpack.c.bf16 %v7713_v9, %v7712_v47 }
 0x661   : > { %17248 = vmatpush3.bf16.msra.mxu0 %v19343_v8  ;;  %17219 = vmatprep.mubr.msk.bf16.mxu0 %vm170_vm0, %v20825_v34  ;;  %v7989_v34 = vld [vmem:[#allocation2 + $0x39] sm:$0xff]  ;;  %v8643_v8 = vld [vmem:[#allocation3 + $0x18] sm:$0xff] }
 0x662   : > { %17249 = vmatprep.subr.bf16.mxu0 %v19344_v63 }
 0x665   : > { %17250 = vmatpush3.bf16.msra.mxu0 %v19344_v63  ;;  %v8641_v63 = vld [vmem:[#allocation3 + $0x8] sm:$0xff] }
 0x666   : > { %17283 = vmatprep.subr.bf16.mxu0 %v19345_v59 }
 0x668   : > { %17220 = vmatmul.mubr.msk.bf16.gmra.mrb[36].mxu0 %vm170_vm0, %v20831_v26  ;;  %v7988_v26 = vld [vmem:[#allocation2 + $0x31] sm:$0xff] }
 0x669   : > { %17223 = vmatprep.mubr.msk.bf16.mxu0 %vm170_vm0, %v20833_v43  ;;  %v8020_v43 = vpack.c.bf16 %v7989_v34, %v7988_v26 }
 0x670   : > { %17224 = vmatmul.mubr.msk.bf16.gmra.mrb[40].mxu0 %vm170_vm0, %v20839_v57  ;;  %v19347_v57 = vld [vmem:[%s22349_s1 + $0x1c0] sm:$0xff]  }
 0x671   : > { %17227 = vmatprep.mubr.msk.bf16.mxu0 %vm170_vm0, %v20841_v4  ;;  %v19348_v4 = vld [vmem:[%s22349_s1 + $0x1c8] sm:$0xff]   ;;  %17319 = vmatprep.subr.bf16.mxu1 %v19347_v57 }
 0x672   : > { %17320 = vmatpush3.bf16.msra.mxu1 %v19347_v57  ;;  %v8646_v57 = vld [vmem:[#allocation3 + $0x30] sm:$0xff] }
 0x673   : > { %17321 = vmatprep.subr.bf16.mxu1 %v19348_v4 }
 0x676   : > { %17322 = vmatpush3.bf16.msra.mxu1 %v19348_v4 }
 0x678   : > { %17228 = vmatmul.mubr.msk.bf16.gmra.mrb[44].mxu0 %vm170_vm0, %v20847_v38  ;;  %v7991_v38 = vld [vmem:[#allocation2 + $0x51] sm:$0xff] }
 0x679   : > { %17231 = vmatprep.mubr.msk.bf16.mxu0 %vm170_vm0, %v20849_v11  ;;  %v7993_v11 = vld [vmem:[#allocation2 + $0x69] sm:$0xff] }
 0x680   : > { %17232 = vmatmul.mubr.msk.bf16.gmra.mrb[48].mxu0 %vm170_vm0, %v20855_v16  ;;  %v7990_v16 = vld [vmem:[#allocation2 + $0x49] sm:$0xff] }
 0x681   : > { %17235 = vmatprep.mubr.msk.bf16.mxu0 %vm170_vm0, %v20857_v44  ;;  %v8021_v44 = vpack.c.bf16 %v7991_v38, %v7990_v16  ;;  %v8644_v16 = vld [vmem:[#allocation3 + $0x20] sm:$0xff] }
 0x688   : > { %17236 = vmatmul.mubr.msk.bf16.gmra.mrb[52].mxu0 %vm170_vm0, %v20863_v55  ;;  %v7992_v55 = vld [vmem:[#allocation2 + $0x61] sm:$0xff] }
 0x689   : > { %17239 = vmatprep.mubr.msk.bf16.mxu0 %vm170_vm0, %v20865_v41  ;;  %v19346_v41 = vld [vmem:[%s22349_s1 + $0x1a8] sm:$0xff]  }
 0x690   : > { %17240 = vmatmul.mubr.msk.bf16.gmra.mrb[56].mxu0 %vm170_vm0, %v20871_v30  ;;  %v8022_v30 = vpack.c.bf16 %v7993_v11, %v7992_v55 }
 0x691   : > { %17243 = vmatprep.mubr.msk.bf16.mxu0 %vm170_vm0, %v20979_v33  ;;  %v8007_v33 = vld [vmem:[#allocation2 + $0x111] sm:$0xff] }
 0x692   : > { %v8029_v48 = vpack.c.bf16 %v8007_v33, %v8006_v49  ;;  %v19350_v49 = vld [vmem:[%s22349_s1 + $0x1b8] sm:$0xff]  }
 0x698   : > { %17244 = vmatmul.mubr.msk.bf16.gmra.mrb[60].mxu0 %vm170_vm0, %v7729_v0 }
 0x699   : > { %17251 = vmatprep.mubr.msk.bf16.mxu0 %vm170_vm0, %v8020_v43 }
 0x6a0   : > { %17252 = vmatmul.mubr.msk.bf16.vlgmr.msra.gmra.mrb[32].mxu0 %vm170_vm0, %v8021_v44 }
 0x6a1   : > { %17284 = vmatpush3.bf16.msra.mxu0 %v19345_v59  ;;  %17255 = vmatprep.mubr.msk.bf16.mxu0 %vm170_vm0, %v8022_v30  ;;  %v8647_v30 = vld [vmem:[#allocation3 + $0x38] sm:$0xff] }
 0x6a2   : > { %17285 = vmatprep.subr.bf16.mxu0 %v19346_v41 }
 0x6a5   : > { %17286 = vmatpush3.bf16.msra.mxu0 %v19346_v41 }
 0x6a8   : > { %17256 = vmatmul.mubr.msk.bf16.gmra.mrb[36].mxu0 %vm170_vm0, %v8023_v50  ;;  %v8645_v50 = vld [vmem:[#allocation3 + $0x28] sm:$0xff] }
 0x6a9   : > { %17259 = vmatprep.mubr.msk.bf16.mxu0 %vm170_vm0, %v8024_v15 }
 0x6b0   : > { %17260 = vmatmul.mubr.msk.bf16.gmra.mrb[40].mxu0 %vm170_vm0, %v8025_v22 }
 0x6b1   : > { %17263 = vmatprep.mubr.msk.bf16.mxu0 %vm170_vm0, %v8026_v24 }
 0x6b8   : > { %17264 = vmatmul.mubr.msk.bf16.gmra.mrb[44].mxu0 %vm170_vm0, %v8027_v28 }
 0x6b9   : > { %17267 = vmatprep.mubr.msk.bf16.mxu0 %vm170_vm0, %v8028_v32 }
 0x6c0   : > { %17268 = vmatmul.mubr.msk.bf16.gmra.mrb[48].mxu0 %vm170_vm0, %v8029_v48 }
 0x6c1   : > { %17271 = vmatprep.mubr.msk.bf16.mxu0 %vm170_vm0, %v20779_v10  ;;  %v8324_v10 = vld [vmem:[#allocation2 + $0x19a] sm:$0xff] }
 0x6c8   : > { %17272 = vmatmul.mubr.msk.bf16.gmra.mrb[52].mxu0 %vm170_vm0, %v20792_v25  ;;  %v8325_v25 = vld [vmem:[#allocation2 + $0x1a2] sm:$0xff] }
 0x6c9   : > { %17275 = vmatprep.mubr.msk.bf16.mxu0 %vm170_vm0, %v20794_v37  ;;  %v8341_v37 = vpack.c.bf16 %v8325_v25, %v8324_v10 }
 0x6d0   : > { %17276 = vmatmul.mubr.msk.bf16.gmra.mrb[56].mxu0 %vm170_vm0, %v20800_v54  ;;  %v8853_v54 = vld [vmem:[#allocation2 + $0x1] sm:$0xff] }
 0x6d1   : > { %17279 = vmatprep.mubr.msk.bf16.mxu0 %vm170_vm0, %v21019_v1 }
 0x6d8   : > { %17280 = vmatmul.mubr.msk.bf16.gmra.mrb[60].mxu0 %vm170_vm0, %v8035_v40 }
 0x6d9   : > { %17287 = vmatprep.mubr.msk.bf16.mxu0 %vm170_vm0, %v20881_v27  ;;  %v8854_v27 = vld [vmem:[#allocation2 + $0x9] sm:$0xff] }
 0x6e0   : > { %17288 = vmatmul.mubr.msk.bf16.vlgmr.msra.gmra.mrb[32].mxu0 %vm170_vm0, %v20891_v53  ;;  %v8885_v53 = vpack.c.bf16 %v8854_v27, %v8853_v54 }
 0x6e1   : > { %17291 = vmatprep.mubr.msk.bf16.mxu0 %vm170_vm0, %v20893_v46  ;;  %v21165_v46 = vld [vmem:[%s22349_s1 + $0x1b0] sm:$0xff]  }
 0x6e2   : > { %17323 = vmatprep.mubr.msk.bf16.mxu1 %vm170_vm0, %v8885_v53  ;;  %17355 = vmatprep.subr.bf16.mxu1 %v21165_v46 }
 0x6e8   : > { %17292 = vmatmul.mubr.msk.bf16.gmra.mrb[36].mxu0 %vm170_vm0, %v20899_v5  ;;  %v21171_v5 = vld [vmem:[%s22350_s2 + $0x2] ss:$0 sm:$0xff] }
 0x6e9   : > { %17295 = vmatprep.mubr.msk.bf16.mxu0 %vm170_vm0, %v20901_v35 }
 0x6f0   : > { %17296 = vmatmul.mubr.msk.bf16.gmra.mrb[40].mxu0 %vm170_vm0, %v20907_v12 }
 0x6f1   : > { %17299 = vmatprep.mubr.msk.bf16.mxu0 %vm170_vm0, %v20909_v58 }
 0x6f8   : > { %17300 = vmatmul.mubr.msk.bf16.gmra.mrb[44].mxu0 %vm170_vm0, %v20915_v31  ;;  %v8642_v31 = vld [vmem:[#allocation3 + $0x10] sm:$0xff] }
 0x6f9   : > { %17303 = vmatprep.mubr.msk.bf16.mxu0 %vm170_vm0, %v20917_v19 }
 0x700   : > { %17304 = vmatmul.mubr.msk.bf16.gmra.mrb[48].mxu0 %vm170_vm0, %v20923_v62 }
 0x701   : > { %17307 = vmatprep.mubr.msk.bf16.mxu0 %vm170_vm0, %v20925_v61 }
 0x708   : > { %17308 = vmatmul.mubr.msk.bf16.gmra.mrb[52].mxu0 %vm170_vm0, %v20931_v20  ;;  %v8640_v20 = vld [vmem:[#allocation3] sm:$0xff] }
 0x709   : > { %17311 = vmatprep.mubr.msk.bf16.mxu0 %vm170_vm0, %v20933_v7 }
 0x710   : > { %17312 = vmatmul.mubr.msk.bf16.gmra.mrb[56].mxu0 %vm170_vm0, %v20939_v21 }
 0x711   : > { %17315 = vmatprep.mubr.msk.bf16.mxu0 %vm170_vm0, %v21059_v60 }
 0x718   : > { %17316 = vmatmul.mubr.msk.bf16.gmra.mrb[60].mxu0 %vm170_vm0, %v8341_v37  ;;  %v8651_v37 = vld [vmem:[#allocation3 + $0x58] sm:$0xff] }
 0x7b3   : > { %v17289_v35 = vpop.f32.mrb[32].mxu0 }
 0x7b4   : > { %v8610_v12 = vadd.f32 %v17289_v35, %v21171_v5  ;;  %v8441_v58 = vpop.f32.mrb[33].mxu0  ;;  %v8649_v35 = vld [vmem:[#allocation3 + $0x48] sm:$0xff] }
 0x7b5   : > { %v8608_v19 = vadd.f32 %v21171_v5, %v8441_v58  ;;  %v17290_v62 = vpop.f32.mrb[34].mxu0 }
 0x7b6   : > { %v8674_v61 = vadd.f32 %v8642_v31, %v8610_v12  ;;  %v8611_v7 = vadd.f32 %v17290_v62, %v21171_v5  ;;  %v8444_v21 = vpop.f32.mrb[35].mxu0  ;;  %v21216_v31 = vld [vmem:[%s22349_s1 + $0x1d0] sm:$0xff]  }
 0x7b7   : > { %v8672_v1 = vadd.f32 %v8640_v20, %v8608_v19  ;;  %v8609_v29 = vadd.f32 %v21171_v5, %v8444_v21 }
 0x7b8   : > { %v8706_v18 = vmax.f32 %v8674_v61, 0.0  ;;  %v8675_v60 = vadd.f32 %v8643_v8, %v8611_v7  ;;  %v8654_v8 = vld [vmem:[#allocation3 + $0x70] sm:$0xff] }
 0x7b9   : > { %v8704_v59 = vmax.f32 %v8672_v1, 0.0  ;;  %v8673_v47 = vadd.f32 %v8641_v63, %v8609_v29 }
 0x7ba   : > { %8738 = vst.msk [vmem:[#allocation3 + $0x10] sm:$0xff] %vm170_vm0, %v8706_v18  ;;  %8770 = vst.msk [vmem:[#allocation2 + $0x31] sm:$0xff] %vm170_vm0, %v8706_v18  ;;  %v8707_v9 = vmax.f32 %v8675_v60, 0.0 }
 0x7bb   : > { %8736 = vst.msk [vmem:[#allocation3] sm:$0xff] %vm170_vm0, %v8704_v59  ;;  %8768 = vst.msk [vmem:[#allocation2 + $0x19] sm:$0xff] %vm170_vm0, %v8704_v59  ;;  %v8705_v0 = vmax.f32 %v8673_v47, 0.0  ;;  %v17293_v34 = vpop.f32.mrb[36].mxu0  ;;  %v8652_v47 = vld [vmem:[#allocation3 + $0x60] sm:$0xff] }
 0x7bc   : > { %8739 = vst.msk [vmem:[#allocation3 + $0x18] sm:$0xff] %vm170_vm0, %v8707_v9  ;;  %8771 = vst.msk [vmem:[#allocation2 + $0x39] sm:$0xff] %vm170_vm0, %v8707_v9  ;;  %v8614_v26 = vadd.f32 %v17293_v34, %v21171_v5  ;;  %v8457_v43 = vpop.f32.mrb[37].mxu0 }
 0x7bd   : > { %8737 = vst.msk [vmem:[#allocation3 + $0x8] sm:$0xff] %vm170_vm0, %v8705_v0  ;;  %8769 = vst.msk [vmem:[#allocation2 + $0x21] sm:$0xff] %vm170_vm0, %v8705_v0  ;;  %v8612_v4 = vadd.f32 %v21171_v5, %v8457_v43  ;;  %v17294_v38 = vpop.f32.mrb[38].mxu0  ;;  %v8655_v43 = vld [vmem:[#allocation3 + $0x78] sm:$0xff] }
 0x7be   : > { %v8678_v11 = vadd.f32 %v8646_v57, %v8614_v26  ;;  %v8615_v44 = vadd.f32 %v17294_v38, %v21171_v5  ;;  %v8460_v55 = vpop.f32.mrb[39].mxu0 }
 0x7bf   : > { %v8676_v41 = vadd.f32 %v8644_v16, %v8612_v4  ;;  %v8613_v23 = vadd.f32 %v21171_v5, %v8460_v55 }
 0x7c0   : > { %v8710_v17 = vmax.f32 %v8678_v11, 0.0  ;;  %v8679_v42 = vadd.f32 %v8647_v30, %v8615_v44  ;;  %v8653_v11 = vld [vmem:[#allocation3 + $0x68] sm:$0xff] }
 0x7c1   : > { %v8708_v45 = vmax.f32 %v8676_v41, 0.0  ;;  %v8677_v15 = vadd.f32 %v8645_v50, %v8613_v23  ;;  %v8857_v33 = vld [vmem:[#allocation2 + $0x31] sm:$0xff] }
 0x7c2   : > { %8742 = vst.msk [vmem:[#allocation3 + $0x30] sm:$0xff] %vm170_vm0, %v8710_v17  ;;  %8774 = vst.msk [vmem:[#allocation2 + $0x61] sm:$0xff] %vm170_vm0, %v8710_v17  ;;  %v8711_v52 = vmax.f32 %v8679_v42, 0.0  ;;  %v8855_v36 = vld [vmem:[#allocation2 + $0x19] sm:$0xff] }
 0x7c3   : > { %8740 = vst.msk [vmem:[#allocation3 + $0x20] sm:$0xff] %vm170_vm0, %v8708_v45  ;;  %8772 = vst.msk [vmem:[#allocation2 + $0x49] sm:$0xff] %vm170_vm0, %v8708_v45  ;;  %v8709_v2 = vmax.f32 %v8677_v15, 0.0  ;;  %v17297_v14 = vpop.f32.mrb[40].mxu0  ;;  %v8858_v22 = vld [vmem:[#allocation2 + $0x39] sm:$0xff] }
 0x7c4   : > { %8743 = vst.msk [vmem:[#allocation3 + $0x38] sm:$0xff] %vm170_vm0, %v8711_v52  ;;  %8775 = vst.msk [vmem:[#allocation2 + $0x69] sm:$0xff] %vm170_vm0, %v8711_v52  ;;  %v8618_v13 = vadd.f32 %v17297_v14, %v21171_v5  ;;  %v8473_v24 = vpop.f32.mrb[41].mxu0  ;;  %v8856_v39 = vld [vmem:[#allocation2 + $0x21] sm:$0xff]  ;;  %v21205_v10 = vpack.c.bf16 %v8858_v22, %v8857_v33 }
 0x7c5   : > { %8741 = vst.msk [vmem:[#allocation3 + $0x28] sm:$0xff] %vm170_vm0, %v8709_v2  ;;  %8773 = vst.msk [vmem:[#allocation2 + $0x51] sm:$0xff] %vm170_vm0, %v8709_v2  ;;  %v8616_v28 = vadd.f32 %v21171_v5, %v8473_v24  ;;  %v17298_v3 = vpop.f32.mrb[42].mxu0  ;;  %v21199_v32 = vpack.c.bf16 %v8856_v39, %v8855_v36  ;;  %v8658_v15 = vld [vmem:[#allocation3 + $0x90] sm:$0xff]  ;;  %v8656_v24 = vld [vmem:[#allocation3 + $0x80] sm:$0xff] }
 0x7c6   : > { %v8682_v48 = vadd.f32 %v8650_v51, %v8618_v13  ;;  %v8619_v6 = vadd.f32 %v17298_v3, %v21171_v5  ;;  %v8476_v40 = vpop.f32.mrb[43].mxu0  ;;  %v8659_v3 = vld [vmem:[#allocation3 + $0x98] sm:$0xff] }
 0x7c7   : > { %v8680_v25 = vadd.f32 %v8648_v56, %v8616_v28  ;;  %v8617_v54 = vadd.f32 %v21171_v5, %v8476_v40  ;;  %17324 = vmatmul.mubr.msk.bf16.vlgmr.msra.gmra.mrb[64].mxu1 %vm170_vm0, %v21199_v32  ;;  %v8657_v56 = vld [vmem:[#allocation3 + $0x88] sm:$0xff] }
 0x7c8   : > { %v8714_v27 = vmax.f32 %v8682_v48, 0.0  ;;  %v8683_v53 = vadd.f32 %v8651_v37, %v8619_v6  ;;  %17356 = vmatpush3.bf16.msra.mxu1 %v21165_v46  ;;  %17327 = vmatprep.mubr.msk.bf16.mxu1 %vm170_vm0, %v21205_v10 }
 0x7c9   : > { %v8712_v12 = vmax.f32 %v8680_v25, 0.0  ;;  %v8681_v58 = vadd.f32 %v8649_v35, %v8617_v54  ;;  %17357 = vmatprep.subr.bf16.mxu1 %v19350_v49  ;;  %v8861_v63 = vld [vmem:[#allocation2 + $0x61] sm:$0xff] }
 0x7ca   : > { %8746 = vst.msk [vmem:[#allocation3 + $0x50] sm:$0xff] %vm170_vm0, %v8714_v27  ;;  %8778 = vst.msk [vmem:[#allocation2 + $0x91] sm:$0xff] %vm170_vm0, %v8714_v27  ;;  %v8715_v19 = vmax.f32 %v8683_v53, 0.0  ;;  %v8859_v21 = vld [vmem:[#allocation2 + $0x49] sm:$0xff] }
 0x7cb   : > { %8744 = vst.msk [vmem:[#allocation3 + $0x40] sm:$0xff] %vm170_vm0, %v8712_v12  ;;  %8776 = vst.msk [vmem:[#allocation2 + $0x79] sm:$0xff] %vm170_vm0, %v8712_v12  ;;  %v8713_v46 = vmax.f32 %v8681_v58, 0.0  ;;  %v17301_v62 = vpop.f32.mrb[44].mxu0  ;;  %v8862_v61 = vld [vmem:[#allocation2 + $0x69] sm:$0xff] }
 0x7cc   : > { %8747 = vst.msk [vmem:[#allocation3 + $0x58] sm:$0xff] %vm170_vm0, %v8715_v19  ;;  %8779 = vst.msk [vmem:[#allocation2 + $0x99] sm:$0xff] %vm170_vm0, %v8715_v19  ;;  %v8622_v20 = vadd.f32 %v17301_v62, %v21171_v5  ;;  %v8489_v7 = vpop.f32.mrb[45].mxu0  ;;  %v8860_v1 = vld [vmem:[#allocation2 + $0x51] sm:$0xff]  ;;  %17358 = vmatpush3.bf16.msra.mxu1 %v19350_v49  ;;  %v21232_v34 = vpack.c.bf16 %v8862_v61, %v8861_v63  ;;  %v8662_v19 = vld [vmem:[#allocation3 + $0xb0] sm:$0xff] }
 0x7cd   : > { %8745 = vst.msk [vmem:[#allocation3 + $0x48] sm:$0xff] %vm170_vm0, %v8713_v46  ;;  %8777 = vst.msk [vmem:[#allocation2 + $0x81] sm:$0xff] %vm170_vm0, %v8713_v46  ;;  %v8620_v29 = vadd.f32 %v21171_v5, %v8489_v7  ;;  %v17302_v18 = vpop.f32.mrb[46].mxu0  ;;  %v21228_v60 = vpack.c.bf16 %v8860_v1, %v8859_v21  ;;  %17391 = vmatprep.subr.bf16.mxu1 %v21216_v31  ;;  %v8660_v21 = vld [vmem:[#allocation3 + $0xa0] sm:$0xff]  ;;  %v8663_v63 = vld [vmem:[#allocation3 + $0xb8] sm:$0xff] }
 0x7ce   : > { %v8686_v59 = vadd.f32 %v8654_v8, %v8622_v20  ;;  %v8623_v9 = vadd.f32 %v17302_v18, %v21171_v5  ;;  %v8492_v0 = vpop.f32.mrb[47].mxu0 }
 0x7cf   : > { %v8684_v26 = vadd.f32 %v8652_v47, %v8620_v29  ;;  %v8621_v57 = vadd.f32 %v21171_v5, %v8492_v0  ;;  %17328 = vmatmul.mubr.msk.bf16.gmra.mrb[68].mxu1 %vm170_vm0, %v21228_v60  ;;  %v8661_v0 = vld [vmem:[#allocation3 + $0xa8] sm:$0xff] }
 0x7d0   : > { %v8718_v4 = vmax.f32 %v8686_v59, 0.0  ;;  %v8687_v38 = vadd.f32 %v8655_v43, %v8623_v9  ;;  %17331 = vmatprep.mubr.msk.bf16.mxu1 %vm170_vm0, %v21232_v34 }
 0x7d1   : > { %v8716_v16 = vmax.f32 %v8684_v26, 0.0  ;;  %v8685_v44 = vadd.f32 %v8653_v11, %v8621_v57  ;;  %v8865_v22 = vld [vmem:[#allocation2 + $0x91] sm:$0xff] }
 0x7d2   : > { %8750 = vst.msk [vmem:[#allocation3 + $0x70] sm:$0xff] %vm170_vm0, %v8718_v4  ;;  %8782 = vst.msk [vmem:[#allocation2 + $0xc1] sm:$0xff] %vm170_vm0, %v8718_v4  ;;  %v8719_v55 = vmax.f32 %v8687_v38, 0.0  ;;  %v8863_v50 = vld [vmem:[#allocation2 + $0x79] sm:$0xff] }
 0x7d3   : > { %8748 = vst.msk [vmem:[#allocation3 + $0x60] sm:$0xff] %vm170_vm0, %v8716_v16  ;;  %8780 = vst.msk [vmem:[#allocation2 + $0xa9] sm:$0xff] %vm170_vm0, %v8716_v16  ;;  %v8717_v41 = vmax.f32 %v8685_v44, 0.0  ;;  %v17305_v30 = vpop.f32.mrb[48].mxu0  ;;  %v8866_v23 = vld [vmem:[#allocation2 + $0x99] sm:$0xff] }
 0x7d4   : > { %8751 = vst.msk [vmem:[#allocation3 + $0x78] sm:$0xff] %vm170_vm0, %v8719_v55  ;;  %8783 = vst.msk [vmem:[#allocation2 + $0xc9] sm:$0xff] %vm170_vm0, %v8719_v55  ;;  %v8626_v17 = vadd.f32 %v17305_v30, %v21171_v5  ;;  %v8505_v42 = vpop.f32.mrb[49].mxu0  ;;  %v8864_v45 = vld [vmem:[#allocation2 + $0x81] sm:$0xff]  ;;  %v21252_v51 = vpack.c.bf16 %v8866_v23, %v8865_v22 }
 0x7d5   : > { %8749 = vst.msk [vmem:[#allocation3 + $0x68] sm:$0xff] %vm170_vm0, %v8717_v41  ;;  %8781 = vst.msk [vmem:[#allocation2 + $0xb1] sm:$0xff] %vm170_vm0, %v8717_v41  ;;  %v8624_v52 = vadd.f32 %v21171_v5, %v8505_v42  ;;  %v17306_v2 = vpop.f32.mrb[50].mxu0  ;;  %v21249_v14 = vpack.c.bf16 %v8864_v45, %v8863_v50  ;;  %v8666_v30 = vld [vmem:[#allocation3 + $0xd0] sm:$0xff] }
 0x7d6   : > { %v8690_v13 = vadd.f32 %v8658_v15, %v8626_v17  ;;  %v8627_v36 = vadd.f32 %v17306_v2, %v21171_v5  ;;  %v8508_v39 = vpop.f32.mrb[51].mxu0  ;;  %v8664_v15 = vld [vmem:[#allocation3 + $0xc0] sm:$0xff] }
 0x7d7   : > { %v8688_v28 = vadd.f32 %v8656_v24, %v8624_v52  ;;  %v8625_v33 = vadd.f32 %v21171_v5, %v8508_v39  ;;  %17332 = vmatmul.mubr.msk.bf16.gmra.mrb[72].mxu1 %vm170_vm0, %v21249_v14  ;;  %v8667_v24 = vld [vmem:[#allocation3 + $0xd8] sm:$0xff] }
 0x7d8   : > { %v8722_v49 = vmax.f32 %v8690_v13, 0.0  ;;  %v8691_v48 = vadd.f32 %v8659_v3, %v8627_v36  ;;  %17335 = vmatprep.mubr.msk.bf16.mxu1 %vm170_vm0, %v21252_v51  ;;  %v8665_v3 = vld [vmem:[#allocation3 + $0xc8] sm:$0xff] }
 0x7d9   : > { %v8720_v6 = vmax.f32 %v8688_v28, 0.0  ;;  %v8689_v40 = vadd.f32 %v8657_v56, %v8625_v33  ;;  %v8869_v20 = vld [vmem:[#allocation2 + $0xc1] sm:$0xff] }
 0x7da   : > { %8754 = vst.msk [vmem:[#allocation3 + $0x90] sm:$0xff] %vm170_vm0, %v8722_v49  ;;  %8786 = vst.msk [vmem:[#allocation2 + $0xf1] sm:$0xff] %vm170_vm0, %v8722_v49  ;;  %v8723_v25 = vmax.f32 %v8691_v48, 0.0  ;;  %v8867_v12 = vld [vmem:[#allocation2 + $0xa9] sm:$0xff] }
 0x7db   : > { %8752 = vst.msk [vmem:[#allocation3 + $0x80] sm:$0xff] %vm170_vm0, %v8720_v6  ;;  %8784 = vst.msk [vmem:[#allocation2 + $0xd9] sm:$0xff] %vm170_vm0, %v8720_v6  ;;  %v8721_v37 = vmax.f32 %v8689_v40, 0.0  ;;  %v17309_v54 = vpop.f32.mrb[52].mxu0  ;;  %v8870_v27 = vld [vmem:[#allocation2 + $0xc9] sm:$0xff] }
 0x7dc   : > { %8755 = vst.msk [vmem:[#allocation3 + $0x98] sm:$0xff] %vm170_vm0, %v8723_v25  ;;  %8787 = vst.msk [vmem:[#allocation2 + $0xf9] sm:$0xff] %vm170_vm0, %v8723_v25  ;;  %v8630_v53 = vadd.f32 %v17309_v54, %v21171_v5  ;;  %v8521_v35 = vpop.f32.mrb[53].mxu0  ;;  %v8868_v58 = vld [vmem:[#allocation2 + $0xb1] sm:$0xff]  ;;  %v21272_v29 = vpack.c.bf16 %v8870_v27, %v8869_v20 }
 0x7dd   : > { %8753 = vst.msk [vmem:[#allocation3 + $0x88] sm:$0xff] %vm170_vm0, %v8721_v37  ;;  %8785 = vst.msk [vmem:[#allocation2 + $0xe1] sm:$0xff] %vm170_vm0, %v8721_v37  ;;  %v8628_v46 = vadd.f32 %v21171_v5, %v8521_v35  ;;  %v17310_v62 = vpop.f32.mrb[54].mxu0  ;;  %v21269_v61 = vpack.c.bf16 %v8868_v58, %v8867_v12 }
 0x7de   : > { %v8694_v7 = vadd.f32 %v8662_v19, %v8630_v53  ;;  %v8631_v1 = vadd.f32 %v17310_v62, %v21171_v5  ;;  %v8524_v8 = vpop.f32.mrb[55].mxu0  ;;  %v8670_v53 = vld [vmem:[#allocation3 + $0xf0] sm:$0xff]  ;;  %v8668_v62 = vld [vmem:[#allocation3 + $0xe0] sm:$0xff] }
 0x7df   : > { %v8692_v18 = vadd.f32 %v8660_v21, %v8628_v46  ;;  %v8629_v59 = vadd.f32 %v21171_v5, %v8524_v8  ;;  %17336 = vmatmul.mubr.msk.bf16.gmra.mrb[76].mxu1 %vm170_vm0, %v21269_v61  ;;  %v8671_v8 = vld [vmem:[#allocation3 + $0xf8] sm:$0xff] }
 0x7e0   : > { %v8726_v47 = vmax.f32 %v8694_v7, 0.0  ;;  %v8695_v9 = vadd.f32 %v8663_v63, %v8631_v1  ;;  %17339 = vmatprep.mubr.msk.bf16.mxu1 %vm170_vm0, %v21272_v29 }
 0x7e1   : > { %v8724_v26 = vmax.f32 %v8692_v18, 0.0  ;;  %v8693_v43 = vadd.f32 %v8661_v0, %v8629_v59  ;;  %v8873_v50 = vld [vmem:[#allocation2 + $0xf1] sm:$0xff] }
 0x7e2   : > { %8758 = vst.msk [vmem:[#allocation3 + $0xb0] sm:$0xff] %vm170_vm0, %v8726_v47  ;;  %8790 = vst.msk [vmem:[#allocation2 + $0x121] sm:$0xff] %vm170_vm0, %v8726_v47  ;;  %v8727_v57 = vmax.f32 %v8695_v9, 0.0  ;;  %v8871_v55 = vld [vmem:[#allocation2 + $0xd9] sm:$0xff] }
 0x7e3   : > { %8756 = vst.msk [vmem:[#allocation3 + $0xa0] sm:$0xff] %vm170_vm0, %v8724_v26  ;;  %8788 = vst.msk [vmem:[#allocation2 + $0x109] sm:$0xff] %vm170_vm0, %v8724_v26  ;;  %v8725_v4 = vmax.f32 %v8693_v43, 0.0  ;;  %v17313_v38 = vpop.f32.mrb[56].mxu0  ;;  %v8874_v11 = vld [vmem:[#allocation2 + $0xf9] sm:$0xff] }
 0x7e4   : > { %8759 = vst.msk [vmem:[#allocation3 + $0xb8] sm:$0xff] %vm170_vm0, %v8727_v57  ;;  %8791 = vst.msk [vmem:[#allocation2 + $0x129] sm:$0xff] %vm170_vm0, %v8727_v57  ;;  %v8634_v16 = vadd.f32 %v17313_v38, %v21171_v5  ;;  %v8537_v44 = vpop.f32.mrb[57].mxu0  ;;  %v8872_v41 = vld [vmem:[#allocation2 + $0xe1] sm:$0xff]  ;;  %v21292_v22 = vpack.c.bf16 %v8874_v11, %v8873_v50  ;;  %v8669_v47 = vld [vmem:[#allocation3 + $0xe8] sm:$0xff] }
 0x7e5   : > { %8757 = vst.msk [vmem:[#allocation3 + $0xa8] sm:$0xff] %vm170_vm0, %v8725_v4  ;;  %8789 = vst.msk [vmem:[#allocation2 + $0x111] sm:$0xff] %vm170_vm0, %v8725_v4  ;;  %v8632_v23 = vadd.f32 %v21171_v5, %v8537_v44  ;;  %v17314_v17 = vpop.f32.mrb[58].mxu0  ;;  %v21289_v42 = vpack.c.bf16 %v8872_v41, %v8871_v55  ;;  %v8800_v44 = vld [vmem:[#allocation2] sm:$0xff]  ;;  %v8801_v55 = vld [vmem:[#allocation2 + $0x8] sm:$0xff] }
 0x7e6   : > { %v8698_v45 = vadd.f32 %v8666_v30, %v8634_v16  ;;  %v8635_v52 = vadd.f32 %v17314_v17, %v21171_v5  ;;  %v8540_v2 = vpop.f32.mrb[59].mxu0  ;;  %v8803_v50 = vld [vmem:[#allocation2 + $0x20] sm:$0xff] }
 0x7e7   : > { %v8696_v13 = vadd.f32 %v8664_v15, %v8632_v23  ;;  %v8633_v36 = vadd.f32 %v21171_v5, %v8540_v2  ;;  %17340 = vmatmul.mubr.msk.bf16.gmra.mrb[80].mxu1 %vm170_vm0, %v21289_v42  ;;  %v8832_v23 = vpack.c.bf16 %v8801_v55, %v8800_v44  ;;  %v8802_v15 = vld [vmem:[#allocation2 + $0x18] sm:$0xff]  ;;  %v8804_v2 = vld [vmem:[#allocation2 + $0x30] sm:$0xff]  ;;  %v9348_v44 = vld [vmem:[#allocation2 + $0x2] sm:$0xff] }
 0x7e8   : > { %v8730_v39 = vmax.f32 %v8698_v45, 0.0  ;;  %v8699_v28 = vadd.f32 %v8667_v24, %v8635_v52  ;;  %17343 = vmatprep.mubr.msk.bf16.mxu1 %vm170_vm0, %v21292_v22  ;;  %v8805_v45 = vld [vmem:[#allocation2 + $0x38] sm:$0xff]  ;;  %v21340_v52 = vpack.c.bf16 %v8803_v50, %v8802_v15  ;;  %v9349_v55 = vld [vmem:[#allocation2 + $0xa] sm:$0xff]  ;;  %v9351_v15 = vld [vmem:[#allocation2 + $0x22] sm:$0xff] }
 0x7e9   : > { %v8728_v33 = vmax.f32 %v8696_v13, 0.0  ;;  %v8697_v49 = vadd.f32 %v8665_v3, %v8633_v36  ;;  %v8877_v19 = vld [vmem:[#allocation2 + $0x121] sm:$0xff]  ;;  %v19352_v13 = vld [vmem:[%s22349_s1 + $0x1d8] sm:$0xff]   ;;  %v21345_v24 = vpack.c.bf16 %v8805_v45, %v8804_v2 }
 0x7ea   : > { %8762 = vst.msk [vmem:[#allocation3 + $0xd0] sm:$0xff] %vm170_vm0, %v8730_v39  ;;  %8794 = vst.msk [vmem:[#allocation2 + $0x151] sm:$0xff] %vm170_vm0, %v8730_v39  ;;  %v8731_v48 = vmax.f32 %v8699_v28, 0.0  ;;  %v8875_v54 = vld [vmem:[#allocation2 + $0x109] sm:$0xff]  ;;  %v21355_v36 = vld [vmem:[%s22349_s1 + $0x1e0] sm:$0xff]  }
 0x7eb   : > { %8760 = vst.msk [vmem:[#allocation3 + $0xc0] sm:$0xff] %vm170_vm0, %v8728_v33  ;;  %8792 = vst.msk [vmem:[#allocation2 + $0x139] sm:$0xff] %vm170_vm0, %v8728_v33  ;;  %v8729_v56 = vmax.f32 %v8697_v49, 0.0  ;;  %v17317_v6 = vpop.f32.mrb[60].mxu0  ;;  %v8878_v40 = vld [vmem:[#allocation2 + $0x129] sm:$0xff]  ;;  %v8808_v49 = vld [vmem:[#allocation2 + $0x60] sm:$0xff] }
 0x7ec   : > { %8763 = vst.msk [vmem:[#allocation3 + $0xd8] sm:$0xff] %vm170_vm0, %v8731_v48  ;;  %8795 = vst.msk [vmem:[#allocation2 + $0x159] sm:$0xff] %vm170_vm0, %v8731_v48  ;;  %v8638_v25 = vadd.f32 %v17317_v6, %v21171_v5  ;;  %v8553_v37 = vpop.f32.mrb[61].mxu0  ;;  %v8876_v27 = vld [vmem:[#allocation2 + $0x111] sm:$0xff]  ;;  %v21312_v21 = vpack.c.bf16 %v8878_v40, %v8877_v19  ;;  %v8809_v28 = vld [vmem:[#allocation2 + $0x68] sm:$0xff] }
 0x7ed   : > { %8761 = vst.msk [vmem:[#allocation3 + $0xc8] sm:$0xff] %vm170_vm0, %v8729_v56  ;;  %8793 = vst.msk [vmem:[#allocation2 + $0x141] sm:$0xff] %vm170_vm0, %v8729_v56  ;;  %v8636_v35 = vadd.f32 %v21171_v5, %v8553_v37  ;;  %v17318_v12 = vpop.f32.mrb[62].mxu0  ;;  %v21309_v58 = vpack.c.bf16 %v8876_v27, %v8875_v54  ;;  %v8807_v39 = vld [vmem:[#allocation2 + $0x50] sm:$0xff]  ;;  %v8806_v3 = vld [vmem:[#allocation2 + $0x48] sm:$0xff]  ;;  %v21360_v48 = vpack.c.bf16 %v8809_v28, %v8808_v49 }
 0x7ee   : > { %v8702_v46 = vadd.f32 %v8670_v53, %v8638_v25  ;;  %v8639_v20 = vadd.f32 %v17318_v12, %v21171_v5  ;;  %v8556_v7 = vpop.f32.mrb[63].mxu0  ;;  %v21357_v33 = vpack.c.bf16 %v8807_v39, %v8806_v3  ;;  %v8813_v56 = vld [vmem:[#allocation2 + $0x98] sm:$0xff]  ;;  %v8812_v25 = vld [vmem:[#allocation2 + $0x90] sm:$0xff]  ;;  %v8817_v27 = vld [vmem:[#allocation2 + $0xc8] sm:$0xff] }
 0x7ef   : > { %v8700_v1 = vadd.f32 %v8668_v62, %v8636_v35  ;;  %v8637_v18 = vadd.f32 %v21171_v5, %v8556_v7  ;;  %17344 = vmatmul.mubr.msk.bf16.gmra.mrb[84].mxu1 %vm170_vm0, %v21309_v58  ;;  %v8810_v6 = vld [vmem:[#allocation2 + $0x78] sm:$0xff]  ;;  %v21368_v37 = vpack.c.bf16 %v8813_v56, %v8812_v25  ;;  %v8815_v54 = vld [vmem:[#allocation2 + $0xb0] sm:$0xff]  ;;  %v8814_v53 = vld [vmem:[#allocation2 + $0xa8] sm:$0xff] }
 0x7f0   : > { %v8734_v63 = vmax.f32 %v8702_v46, 0.0  ;;  %v8703_v59 = vadd.f32 %v8671_v8, %v8639_v20  ;;  %17347 = vmatprep.mubr.msk.bf16.mxu1 %vm170_vm0, %v21312_v21  ;;  %v21374_v35 = vpack.c.bf16 %v8815_v54, %v8814_v53  ;;  %v8816_v12 = vld [vmem:[#allocation2 + $0xc0] sm:$0xff]  ;;  %v8821_v62 = vld [vmem:[#allocation2 + $0xf8] sm:$0xff]  ;;  %v19354_v28 = vld [vmem:[%s22349_s1 + $0x1e8] sm:$0xff]  }
 0x7f1   : > { %v8732_v9 = vmax.f32 %v8700_v1, 0.0  ;;  %v8701_v0 = vadd.f32 %v8669_v47, %v8637_v18  ;;  %v8881_v11 = vld [vmem:[#allocation2 + $0x151] sm:$0xff]  ;;  %v21376_v19 = vpack.c.bf16 %v8817_v27, %v8816_v12  ;;  %v8819_v46 = vld [vmem:[#allocation2 + $0xe0] sm:$0xff] }
 0x7f2   : > { %8766 = vst.msk [vmem:[#allocation3 + $0xf0] sm:$0xff] %vm170_vm0, %v8734_v63  ;;  %8798 = vst.msk [vmem:[#allocation2 + $0x181] sm:$0xff] %vm170_vm0, %v8734_v63  ;;  %v8735_v26 = vmax.f32 %v8703_v59, 0.0  ;;  %v8879_v57 = vld [vmem:[#allocation2 + $0x139] sm:$0xff]  ;;  %v8820_v1 = vld [vmem:[#allocation2 + $0xf0] sm:$0xff] }
 0x7f3   : > { %8764 = vst.msk [vmem:[#allocation3 + $0xe0] sm:$0xff] %vm170_vm0, %v8732_v9  ;;  %8796 = vst.msk [vmem:[#allocation2 + $0x169] sm:$0xff] %vm170_vm0, %v8732_v9  ;;  %v8733_v5 = vmax.f32 %v8701_v0, 0.0  ;;  %v8882_v43 = vld [vmem:[#allocation2 + $0x159] sm:$0xff]  ;;  %v21384_v8 = vpack.c.bf16 %v8821_v62, %v8820_v1  ;;  %v8823_v18 = vld [vmem:[#allocation2 + $0x110] sm:$0xff] }
 0x7f4   : > { %8767 = vst.msk [vmem:[#allocation3 + $0xf8] sm:$0xff] %vm170_vm0, %v8735_v26  ;;  %8799 = vst.msk [vmem:[#allocation2 + $0x189] sm:$0xff] %vm170_vm0, %v8735_v26  ;;  %v8880_v4 = vld [vmem:[#allocation2 + $0x141] sm:$0xff]  ;;  %v21329_v16 = vpack.c.bf16 %v8882_v43, %v8881_v11  ;;  %v8818_v20 = vld [vmem:[#allocation2 + $0xd8] sm:$0xff] }
 0x7f5   : > { %8765 = vst.msk [vmem:[#allocation3 + $0xe8] sm:$0xff] %vm170_vm0, %v8733_v5  ;;  %8797 = vst.msk [vmem:[#allocation2 + $0x171] sm:$0xff] %vm170_vm0, %v8733_v5  ;;  %v21327_v38 = vpack.c.bf16 %v8880_v4, %v8879_v57  ;;  %v21382_v7 = vpack.c.bf16 %v8819_v46, %v8818_v20  ;;  %v8825_v63 = vld [vmem:[#allocation2 + $0x128] sm:$0xff]  ;;  %v8824_v9 = vld [vmem:[#allocation2 + $0x120] sm:$0xff] }
 0x7f6   : > { %v8822_v59 = vld [vmem:[#allocation2 + $0x108] sm:$0xff]  ;;  %v21392_v0 = vpack.c.bf16 %v8825_v63, %v8824_v9  ;;  %v8827_v26 = vld [vmem:[#allocation2 + $0x140] sm:$0xff]  ;;  %v8829_v5 = vld [vmem:[#allocation2 + $0x158] sm:$0xff] }
 0x7f7   : > { %17348 = vmatmul.mubr.msk.bf16.gmra.mrb[88].mxu1 %vm170_vm0, %v21327_v38  ;;  %v21390_v47 = vpack.c.bf16 %v8823_v18, %v8822_v59  ;;  %v8826_v43 = vld [vmem:[#allocation2 + $0x138] sm:$0xff]  ;;  %v8828_v4 = vld [vmem:[#allocation2 + $0x150] sm:$0xff]  ;;  %v9359_v53 = vld [vmem:[#allocation2 + $0x82] sm:$0xff] }
 0x7f8   : > { %17351 = vmatprep.mubr.msk.bf16.mxu1 %vm170_vm0, %v21329_v16  ;;  %v21398_v57 = vpack.c.bf16 %v8827_v26, %v8826_v43  ;;  %v21400_v11 = vpack.c.bf16 %v8829_v5, %v8828_v4  ;;  %v9350_v45 = vld [vmem:[#allocation2 + $0x1a] sm:$0xff]  ;;  %v9352_v2 = vld [vmem:[#allocation2 + $0x32] sm:$0xff]  ;;  %v9357_v25 = vld [vmem:[#allocation2 + $0x6a] sm:$0xff] }
 0x7f9   : > { %v21411_v39 = vpack.c.bf16 %v9351_v15, %v9350_v45  ;;  %v19355_v49 = vld [vmem:[%s22349_s1 + $0x1f0] sm:$0xff]   ;;  %v9361_v46 = vld [vmem:[#allocation2 + $0x9a] sm:$0xff]  ;;  %v9364_v63 = vld [vmem:[#allocation2 + $0xc2] sm:$0xff] }
 0x7fa   : > { %v8883_v41 = vld [vmem:[#allocation2 + $0x169] sm:$0xff]  ;;  %v9355_v56 = vld [vmem:[#allocation2 + $0x52] sm:$0xff]  ;;  %v9366_v5 = vld [vmem:[#allocation2 + $0xda] sm:$0xff] }
 0x7fb   : > { %v9360_v12 = vld [vmem:[#allocation2 + $0x92] sm:$0xff]  ;;  %v9362_v1 = vld [vmem:[#allocation2 + $0xaa] sm:$0xff]  ;;  %v9367_v43 = vld [vmem:[#allocation2 + $0xe2] sm:$0xff] }
 0x7fc   : > { %v8884_v30 = vld [vmem:[#allocation2 + $0x171] sm:$0xff]  ;;  %v21436_v20 = vpack.c.bf16 %v9361_v46, %v9360_v12  ;;  %v9372_v45 = vld [vmem:[#allocation2 + $0x122] sm:$0xff] }
 0x7fd   : > { %v21335_v17 = vpack.c.bf16 %v8884_v30, %v8883_v41  ;;  %v8831_v41 = vld [vmem:[#allocation2 + $0x170] sm:$0xff]  ;;  %v8830_v30 = vld [vmem:[#allocation2 + $0x168] sm:$0xff] }
 0x7fe   : > { %v21406_v50 = vpack.c.bf16 %v8831_v41, %v8830_v30  ;;  %v9363_v18 = vld [vmem:[#allocation2 + $0xb2] sm:$0xff]  ;;  %v9365_v59 = vld [vmem:[#allocation2 + $0xca] sm:$0xff] }
 0x7ff   : > { %17352 = vmatmul.mubr.msk.bf16.gmra.mrb[92].mxu1 %vm170_vm0, %v21335_v17  ;;  %v21442_v9 = vpack.c.bf16 %v9363_v18, %v9362_v1  ;;  %v21444_v26 = vpack.c.bf16 %v9365_v59, %v9364_v63  ;;  %v9368_v4 = vld [vmem:[#allocation2 + $0xf2] sm:$0xff]  ;;  %v9370_v30 = vld [vmem:[#allocation2 + $0x10a] sm:$0xff]  ;;  %v19357_v18 = vld [vmem:[%s22349_s1 + $0x200] sm:$0xff]  }
 0x800   : > { %17359 = vmatprep.mubr.msk.bf16.mxu1 %vm170_vm0, %v8832_v23  ;;  %v9380_v23 = vpack.c.bf16 %v9349_v55, %v9348_v44  ;;  %v9369_v44 = vld [vmem:[#allocation2 + $0xfa] sm:$0xff]  ;;  %v21450_v55 = vpack.c.bf16 %v9367_v43, %v9366_v5  ;;  %v9373_v15 = vld [vmem:[#allocation2 + $0x12a] sm:$0xff]  ;;  %v9379_v12 = vld [vmem:[#allocation2 + $0x172] sm:$0xff] }
 0x801   : > { %v21452_v41 = vpack.c.bf16 %v9369_v44, %v9368_v4  ;;  %v19356_v1 = vld [vmem:[%s22349_s1 + $0x1f8] sm:$0xff]   ;;  %v19358_v59 = vld [vmem:[%s22349_s1 + $0x208] sm:$0xff]   ;;  %v19359_v5 = vld [vmem:[%s22349_s1 + $0x210] sm:$0xff]  }
 0x802   : > { %v10885_v43 = vld [vmem:[#allocation2 + $0x81] sm:$0xff]  ;;  %v10887_v4 = vld [vmem:[#allocation2 + $0x99] sm:$0xff] }
 0x803   : > { %v10884_v44 = vld [vmem:[#allocation2 + $0x79] sm:$0xff] }
 0x807   : > { %17360 = vmatmul.mubr.msk.bf16.vlgmr.msra.gmra.mrb[64].mxu1 %vm170_vm0, %v21340_v52 }
 0x808   : > { %17392 = vmatpush3.bf16.msra.mxu1 %v21216_v31  ;;  %17363 = vmatprep.mubr.msk.bf16.mxu1 %vm170_vm0, %v21345_v24  ;;  %v8811_v31 = vld [vmem:[#allocation2 + $0x80] sm:$0xff] }
 0x809   : > { %17393 = vmatprep.subr.bf16.mxu1 %v19352_v13  ;;  %v21366_v40 = vpack.c.bf16 %v8811_v31, %v8810_v6  ;;  %v9354_v31 = vld [vmem:[#allocation2 + $0x4a] sm:$0xff]  ;;  %v9356_v6 = vld [vmem:[#allocation2 + $0x62] sm:$0xff] }
 0x80a   : > { %v21426_v54 = vpack.c.bf16 %v9355_v56, %v9354_v31  ;;  %v21428_v27 = vpack.c.bf16 %v9357_v25, %v9356_v6  ;;  %v9375_v31 = vld [vmem:[#allocation2 + $0x142] sm:$0xff]  ;;  %v9376_v56 = vld [vmem:[#allocation2 + $0x152] sm:$0xff]  ;;  %v9377_v6 = vld [vmem:[#allocation2 + $0x15a] sm:$0xff] }
 0x80c   : > { %17394 = vmatpush3.bf16.msra.mxu1 %v19352_v13  ;;  %v9353_v13 = vld [vmem:[#allocation2 + $0x3a] sm:$0xff] }
 0x80d   : > { %17427 = vmatprep.subr.bf16.mxu1 %v21355_v36  ;;  %v21416_v3 = vpack.c.bf16 %v9353_v13, %v9352_v2  ;;  %v21460_v13 = vpack.c.bf16 %v9373_v15, %v9372_v45  ;;  %v10889_v15 = vld [vmem:[#allocation2 + $0xb1] sm:$0xff] }
 0x80f   : > { %17364 = vmatmul.mubr.msk.bf16.gmra.mrb[68].mxu1 %vm170_vm0, %v21357_v33 }
 0x810   : > { %17367 = vmatprep.mubr.msk.bf16.mxu1 %vm170_vm0, %v21360_v48 }
 0x817   : > { %17368 = vmatmul.mubr.msk.bf16.gmra.mrb[72].mxu1 %vm170_vm0, %v21366_v40 }
 0x818   : > { %17371 = vmatprep.mubr.msk.bf16.mxu1 %vm170_vm0, %v21368_v37 }
 0x81f   : > { %17372 = vmatmul.mubr.msk.bf16.gmra.mrb[76].mxu1 %vm170_vm0, %v21374_v35 }
 0x820   : > { %17375 = vmatprep.mubr.msk.bf16.mxu1 %vm170_vm0, %v21376_v19 }
 0x827   : > { %17376 = vmatmul.mubr.msk.bf16.gmra.mrb[80].mxu1 %vm170_vm0, %v21382_v7 }
 0x828   : > { %17379 = vmatprep.mubr.msk.bf16.mxu1 %vm170_vm0, %v21384_v8 }
 0x82f   : > { %17380 = vmatmul.mubr.msk.bf16.gmra.mrb[84].mxu1 %vm170_vm0, %v21390_v47 }
 0x830   : > { %17383 = vmatprep.mubr.msk.bf16.mxu1 %vm170_vm0, %v21392_v0 }
 0x837   : > { %17384 = vmatmul.mubr.msk.bf16.gmra.mrb[88].mxu1 %vm170_vm0, %v21398_v57 }
 0x838   : > { %17387 = vmatprep.mubr.msk.bf16.mxu1 %vm170_vm0, %v21400_v11 }
 0x83f   : > { %17388 = vmatmul.mubr.msk.bf16.gmra.mrb[92].mxu1 %vm170_vm0, %v21406_v50 }
 0x840   : > { %17395 = vmatprep.mubr.msk.bf16.mxu1 %vm170_vm0, %v9380_v23  ;;  %v9371_v23 = vld [vmem:[#allocation2 + $0x112] sm:$0xff] }
 0x841   : > { %v21458_v2 = vpack.c.bf16 %v9371_v23, %v9370_v30  ;;  %v10913_v30 = vpack.c.bf16 %v10885_v43, %v10884_v44  ;;  %v10886_v23 = vld [vmem:[#allocation2 + $0x91] sm:$0xff] }
 0x842   : > { %v10914_v45 = vpack.c.bf16 %v10887_v4, %v10886_v23 }
 0x847   : > { %17396 = vmatmul.mubr.msk.bf16.vlgmr.msra.gmra.mrb[64].mxu1 %vm170_vm0, %v21411_v39 }
 0x848   : > { %17428 = vmatpush3.bf16.msra.mxu1 %v21355_v36  ;;  %17399 = vmatprep.mubr.msk.bf16.mxu1 %vm170_vm0, %v21416_v3  ;;  %v9358_v36 = vld [vmem:[#allocation2 + $0x7a] sm:$0xff] }
 0x849   : > { %17429 = vmatprep.subr.bf16.mxu1 %v19354_v28  ;;  %v21434_v62 = vpack.c.bf16 %v9359_v53, %v9358_v36  ;;  %v21468_v36 = vpack.c.bf16 %v9377_v6, %v9376_v56  ;;  %v9378_v53 = vld [vmem:[#allocation2 + $0x16a] sm:$0xff]  ;;  %v10890_v6 = vld [vmem:[#allocation2 + $0xc1] sm:$0xff] }
 0x84a   : > { %v21474_v46 = vpack.c.bf16 %v9379_v12, %v9378_v53  ;;  %v10893_v12 = vld [vmem:[#allocation2 + $0xe1] sm:$0xff] }
 0x84c   : > { %17430 = vmatpush3.bf16.msra.mxu1 %v19354_v28  ;;  %v9374_v28 = vld [vmem:[#allocation2 + $0x13a] sm:$0xff] }
 0x84d   : > { %17463 = vmatprep.subr.bf16.mxu1 %v19355_v49  ;;  %v21466_v25 = vpack.c.bf16 %v9375_v31, %v9374_v28  ;;  %v10891_v28 = vld [vmem:[#allocation2 + $0xc9] sm:$0xff] }
 0x84e   : > { %v10888_v31 = vld [vmem:[#allocation2 + $0xa9] sm:$0xff]  ;;  %v10916_v53 = vpack.c.bf16 %v10891_v28, %v10890_v6 }
 0x84f   : > { %17400 = vmatmul.mubr.msk.bf16.gmra.mrb[68].mxu1 %vm170_vm0, %v21426_v54  ;;  %v10915_v56 = vpack.c.bf16 %v10889_v15, %v10888_v31  ;;  %v21740_v15 = vld [vmem:[%s22349_s1 + $0x260] sm:$0xff]  }
 0x850   : > { %17403 = vmatprep.mubr.msk.bf16.mxu1 %vm170_vm0, %v21428_v27 }
 0x857   : > { %17404 = vmatmul.mubr.msk.bf16.gmra.mrb[72].mxu1 %vm170_vm0, %v21434_v62 }
 0x858   : > { %17407 = vmatprep.mubr.msk.bf16.mxu1 %vm170_vm0, %v21436_v20 }
 0x85f   : > { %17408 = vmatmul.mubr.msk.bf16.gmra.mrb[76].mxu1 %vm170_vm0, %v21442_v9 }
 0x860   : > { %17411 = vmatprep.mubr.msk.bf16.mxu1 %vm170_vm0, %v21444_v26 }
 0x867   : > { %17412 = vmatmul.mubr.msk.bf16.gmra.mrb[80].mxu1 %vm170_vm0, %v21450_v55 }
 0x868   : > { %17415 = vmatprep.mubr.msk.bf16.mxu1 %vm170_vm0, %v21452_v41 }
 0x86f   : > { %17416 = vmatmul.mubr.msk.bf16.gmra.mrb[84].mxu1 %vm170_vm0, %v21458_v2 }
 0x870   : > { %17419 = vmatprep.mubr.msk.bf16.mxu1 %vm170_vm0, %v21460_v13 }
 0x877   : > { %17420 = vmatmul.mubr.msk.bf16.gmra.mrb[88].mxu1 %vm170_vm0, %v21466_v25 }
 0x878   : > { %17423 = vmatprep.mubr.msk.bf16.mxu1 %vm170_vm0, %v21468_v36 }
 0x87f   : > { %17424 = vmatmul.mubr.msk.bf16.gmra.mrb[92].mxu1 %vm170_vm0, %v21474_v46 }
 0x880   : > { %17431 = vmatprep.mubr.msk.bf16.mxu1 %vm170_vm0, %v21340_v52  ;;  %v9685_v52 = vld [vmem:[#allocation2 + $0x188] sm:$0xff] }
 0x887   : > { %17432 = vmatmul.mubr.msk.bf16.vlgmr.msra.gmra.mrb[64].mxu1 %vm170_vm0, %v21345_v24 }
 0x888   : > { %17464 = vmatpush3.bf16.msra.mxu1 %v19355_v49  ;;  %17435 = vmatprep.mubr.msk.bf16.mxu1 %vm170_vm0, %v21357_v33  ;;  %v9684_v49 = vld [vmem:[#allocation2 + $0x180] sm:$0xff] }
 0x889   : > { %17465 = vmatprep.subr.bf16.mxu1 %v19356_v1  ;;  %v21514_v63 = vpack.c.bf16 %v9685_v52, %v9684_v49  ;;  %v10894_v49 = vld [vmem:[#allocation2 + $0xf1] sm:$0xff] }
 0x88c   : > { %17466 = vmatpush3.bf16.msra.mxu1 %v19356_v1  ;;  %v10895_v1 = vld [vmem:[#allocation2 + $0xf9] sm:$0xff] }
 0x88d   : > { %17499 = vmatprep.subr.bf16.mxu1 %v19357_v18 }
 0x88f   : > { %17436 = vmatmul.mubr.msk.bf16.gmra.mrb[68].mxu1 %vm170_vm0, %v21360_v48 }
 0x890   : > { %17439 = vmatprep.mubr.msk.bf16.mxu1 %vm170_vm0, %v21366_v40 }
 0x897   : > { %17440 = vmatmul.mubr.msk.bf16.gmra.mrb[72].mxu1 %vm170_vm0, %v21368_v37 }
 0x898   : > { %17443 = vmatprep.mubr.msk.bf16.mxu1 %vm170_vm0, %v21374_v35 }
 0x89f   : > { %17444 = vmatmul.mubr.msk.bf16.gmra.mrb[76].mxu1 %vm170_vm0, %v21376_v19 }
 0x8a0   : > { %17447 = vmatprep.mubr.msk.bf16.mxu1 %vm170_vm0, %v21382_v7 }
 0x8a7   : > { %17448 = vmatmul.mubr.msk.bf16.gmra.mrb[80].mxu1 %vm170_vm0, %v21384_v8 }
 0x8a8   : > { %17451 = vmatprep.mubr.msk.bf16.mxu1 %vm170_vm0, %v21390_v47 }
 0x8af   : > { %17452 = vmatmul.mubr.msk.bf16.gmra.mrb[84].mxu1 %vm170_vm0, %v21392_v0 }
 0x8b0   : > { %17455 = vmatprep.mubr.msk.bf16.mxu1 %vm170_vm0, %v21398_v57 }
 0x8b7   : > { %17456 = vmatmul.mubr.msk.bf16.gmra.mrb[88].mxu1 %vm170_vm0, %v21400_v11 }
 0x8b8   : > { %17459 = vmatprep.mubr.msk.bf16.mxu1 %vm170_vm0, %v21406_v50 }
 0x8bf   : > { %17460 = vmatmul.mubr.msk.bf16.gmra.mrb[92].mxu1 %vm170_vm0, %v21514_v63 }
 0x8c0   : > { %17467 = vmatprep.mubr.msk.bf16.mxu1 %vm170_vm0, %v21199_v32  ;;  %v9991_v32 = vld [vmem:[#allocation2 + $0x189] sm:$0xff] }
 0x8c7   : > { %17468 = vmatmul.mubr.msk.bf16.vlgmr.msra.gmra.mrb[64].mxu1 %vm170_vm0, %v21205_v10  ;;  %v9990_v10 = vld [vmem:[#allocation2 + $0x181] sm:$0xff] }
 0x8c8   : > { %17500 = vmatpush3.bf16.msra.mxu1 %v19357_v18  ;;  %17471 = vmatprep.mubr.msk.bf16.mxu1 %vm170_vm0, %v21228_v60  ;;  %v21554_v60 = vpack.c.bf16 %v9991_v32, %v9990_v10  ;;  %v10892_v18 = vld [vmem:[#allocation2 + $0xd9] sm:$0xff] }
 0x8c9   : > { %17501 = vmatprep.subr.bf16.mxu1 %v19358_v59  ;;  %v10917_v52 = vpack.c.bf16 %v10893_v12, %v10892_v18 }
 0x8cc   : > { %17502 = vmatpush3.bf16.msra.mxu1 %v19358_v59  ;;  %v10908_v59 = vld [vmem:[#allocation2 + $0x199] sm:$0xff] }
 0x8cd   : > { %17535 = vmatprep.subr.bf16.mxu1 %v19359_v5 }
 0x8cf   : > { %17472 = vmatmul.mubr.msk.bf16.gmra.mrb[68].mxu1 %vm170_vm0, %v21232_v34  ;;  %v19360_v34 = vld [vmem:[%s22349_s1 + $0x218] sm:$0xff]  }
 0x8d0   : > { %17475 = vmatprep.mubr.msk.bf16.mxu1 %vm170_vm0, %v21249_v14  ;;  %v19361_v14 = vld [vmem:[%s22349_s1 + $0x220] sm:$0xff]  }
 0x8d7   : > { %17476 = vmatmul.mubr.msk.bf16.gmra.mrb[72].mxu1 %vm170_vm0, %v21252_v51  ;;  %v10296_v51 = vld [vmem:[#allocation2 + $0x182] sm:$0xff] }
 0x8d8   : > { %17479 = vmatprep.mubr.msk.bf16.mxu1 %vm170_vm0, %v21269_v61  ;;  %v10297_v61 = vld [vmem:[#allocation2 + $0x18a] sm:$0xff] }
 0x8df   : > { %17480 = vmatmul.mubr.msk.bf16.gmra.mrb[76].mxu1 %vm170_vm0, %v21272_v29  ;;  %v21594_v29 = vpack.c.bf16 %v10297_v61, %v10296_v51 }
 0x8e0   : > { %17483 = vmatprep.mubr.msk.bf16.mxu1 %vm170_vm0, %v21289_v42  ;;  %v19362_v42 = vld [vmem:[%s22349_s1 + $0x228] sm:$0xff]  }
 0x8e7   : > { %17484 = vmatmul.mubr.msk.bf16.gmra.mrb[80].mxu1 %vm170_vm0, %v21292_v22  ;;  %v19363_v22 = vld [vmem:[%s22349_s1 + $0x230] sm:$0xff]  }
 0x8e8   : > { %17487 = vmatprep.mubr.msk.bf16.mxu1 %vm170_vm0, %v21309_v58 }
 0x8ef   : > { %17488 = vmatmul.mubr.msk.bf16.gmra.mrb[84].mxu1 %vm170_vm0, %v21312_v21 }
 0x8f0   : > { %17491 = vmatprep.mubr.msk.bf16.mxu1 %vm170_vm0, %v21327_v38 }
 0x8f7   : > { %17492 = vmatmul.mubr.msk.bf16.gmra.mrb[88].mxu1 %vm170_vm0, %v21329_v16 }
 0x8f8   : > { %17495 = vmatprep.mubr.msk.bf16.mxu1 %vm170_vm0, %v21335_v17 }
 0x8ff   : > { %17496 = vmatmul.mubr.msk.bf16.gmra.mrb[92].mxu1 %vm170_vm0, %v21554_v60 }
 0x900   : > { %17503 = vmatprep.mubr.msk.bf16.mxu1 %vm170_vm0, %v21411_v39 }
 0x907   : > { %17504 = vmatmul.mubr.msk.bf16.vlgmr.msra.gmra.mrb[64].mxu1 %vm170_vm0, %v21416_v3 }
 0x908   : > { %17536 = vmatpush3.bf16.msra.mxu1 %v19359_v5  ;;  %17507 = vmatprep.mubr.msk.bf16.mxu1 %vm170_vm0, %v21426_v54  ;;  %v10909_v5 = vld [vmem:[#allocation2 + $0x1a1] sm:$0xff] }
 0x909   : > { %17537 = vmatprep.subr.bf16.mxu1 %v19360_v34  ;;  %v10925_v32 = vpack.c.bf16 %v10909_v5, %v10908_v59 }
 0x90c   : > { %17538 = vmatpush3.bf16.msra.mxu1 %v19360_v34 }
 0x90d   : > { %17571 = vmatprep.subr.bf16.mxu1 %v19361_v14 }
 0x90f   : > { %17508 = vmatmul.mubr.msk.bf16.gmra.mrb[68].mxu1 %vm170_vm0, %v21428_v27 }
 0x910   : > { %17511 = vmatprep.mubr.msk.bf16.mxu1 %vm170_vm0, %v21434_v62 }
 0x917   : > { %17512 = vmatmul.mubr.msk.bf16.gmra.mrb[72].mxu1 %vm170_vm0, %v21436_v20 }
 0x918   : > { %17515 = vmatprep.mubr.msk.bf16.mxu1 %vm170_vm0, %v21442_v9 }
 0x91f   : > { %17516 = vmatmul.mubr.msk.bf16.gmra.mrb[76].mxu1 %vm170_vm0, %v21444_v26 }
 0x920   : > { %17519 = vmatprep.mubr.msk.bf16.mxu1 %vm170_vm0, %v21450_v55 }
 0x927   : > { %17520 = vmatmul.mubr.msk.bf16.gmra.mrb[80].mxu1 %vm170_vm0, %v21452_v41 }
 0x928   : > { %17523 = vmatprep.mubr.msk.bf16.mxu1 %vm170_vm0, %v21458_v2 }
 0x92f   : > { %17524 = vmatmul.mubr.msk.bf16.gmra.mrb[84].mxu1 %vm170_vm0, %v21460_v13 }
 0x930   : > { %17527 = vmatprep.mubr.msk.bf16.mxu1 %vm170_vm0, %v21466_v25 }
 0x937   : > { %17528 = vmatmul.mubr.msk.bf16.gmra.mrb[88].mxu1 %vm170_vm0, %v21468_v36 }
 0x938   : > { %17531 = vmatprep.mubr.msk.bf16.mxu1 %vm170_vm0, %v21474_v46 }
 0x93f   : > { %17532 = vmatmul.mubr.msk.bf16.gmra.mrb[92].mxu1 %vm170_vm0, %v21594_v29 }
 0x940   : > { %17539 = vmatprep.mubr.msk.bf16.mxu1 %vm170_vm0, %v21345_v24  ;;  %v10602_v24 = vld [vmem:[#allocation2 + $0x198] sm:$0xff] }
 0x947   : > { %17540 = vmatmul.mubr.msk.bf16.vlgmr.msra.gmra.mrb[64].mxu1 %vm170_vm0, %v21357_v33  ;;  %v10603_v33 = vld [vmem:[#allocation2 + $0x1a0] sm:$0xff] }
 0x948   : > { %17572 = vmatpush3.bf16.msra.mxu1 %v19361_v14  ;;  %17543 = vmatprep.mubr.msk.bf16.mxu1 %vm170_vm0, %v21360_v48  ;;  %v10619_v48 = vpack.c.bf16 %v10603_v33, %v10602_v24 }
 0x949   : > { %17573 = vmatprep.subr.bf16.mxu1 %v19362_v42 }
 0x94c   : > { %17574 = vmatpush3.bf16.msra.mxu1 %v19362_v42 }
 0x94d   : > { %17607 = vmatprep.subr.bf16.mxu1 %v19363_v22 }
 0x94f   : > { %17544 = vmatmul.mubr.msk.bf16.gmra.mrb[68].mxu1 %vm170_vm0, %v21366_v40  ;;  %v10879_v40 = vld [vmem:[#allocation2 + $0x39] sm:$0xff] }
 0x950   : > { %17547 = vmatprep.mubr.msk.bf16.mxu1 %vm170_vm0, %v21368_v37  ;;  %v10878_v37 = vld [vmem:[#allocation2 + $0x31] sm:$0xff] }
 0x957   : > { %17548 = vmatmul.mubr.msk.bf16.gmra.mrb[72].mxu1 %vm170_vm0, %v21374_v35  ;;  %v10910_v35 = vpack.c.bf16 %v10879_v40, %v10878_v37 }
 0x958   : > { %17551 = vmatprep.mubr.msk.bf16.mxu1 %vm170_vm0, %v21376_v19  ;;  %v19365_v19 = vld [vmem:[%s22349_s1 + $0x250] sm:$0xff]  }
 0x959   : > { %17643 = vmatprep.subr.bf16.mxu0 %v19365_v19 }
 0x95a   : > { %17644 = vmatpush3.bf16.msra.mxu0 %v19365_v19 }
 0x95f   : > { %17552 = vmatmul.mubr.msk.bf16.gmra.mrb[76].mxu1 %vm170_vm0, %v21382_v7  ;;  %v19366_v7 = vld [vmem:[%s22349_s1 + $0x258] sm:$0xff]  }
 0x960   : > { %17555 = vmatprep.mubr.msk.bf16.mxu1 %vm170_vm0, %v21384_v8  ;;  %v10881_v8 = vld [vmem:[#allocation2 + $0x51] sm:$0xff]  ;;  %17645 = vmatprep.subr.bf16.mxu0 %v19366_v7 }
 0x961   : > { %17646 = vmatpush3.bf16.msra.mxu0 %v19366_v7 }
 0x967   : > { %17556 = vmatmul.mubr.msk.bf16.gmra.mrb[80].mxu1 %vm170_vm0, %v21390_v47  ;;  %v10883_v47 = vld [vmem:[#allocation2 + $0x69] sm:$0xff] }
 0x968   : > { %17559 = vmatprep.mubr.msk.bf16.mxu1 %vm170_vm0, %v21392_v0  ;;  %v10880_v0 = vld [vmem:[#allocation2 + $0x49] sm:$0xff] }
 0x96f   : > { %17560 = vmatmul.mubr.msk.bf16.gmra.mrb[84].mxu1 %vm170_vm0, %v21398_v57  ;;  %v10911_v57 = vpack.c.bf16 %v10881_v8, %v10880_v0  ;;  %v19368_v0 = vld [vmem:[%s22349_s1 + $0x248] sm:$0xff]  }
 0x970   : > { %17563 = vmatprep.mubr.msk.bf16.mxu1 %vm170_vm0, %v21400_v11  ;;  %v10882_v11 = vld [vmem:[#allocation2 + $0x61] sm:$0xff] }
 0x971   : > { %v10912_v39 = vpack.c.bf16 %v10883_v47, %v10882_v11 }
 0x977   : > { %17564 = vmatmul.mubr.msk.bf16.gmra.mrb[88].mxu1 %vm170_vm0, %v21406_v50  ;;  %v19364_v50 = vld [vmem:[%s22349_s1 + $0x238] sm:$0xff]  }
 0x978   : > { %17567 = vmatprep.mubr.msk.bf16.mxu1 %vm170_vm0, %v21514_v63  ;;  %v10918_v63 = vpack.c.bf16 %v10895_v1, %v10894_v49 }
 0x97f   : > { %17568 = vmatmul.mubr.msk.bf16.gmra.mrb[92].mxu1 %vm170_vm0, %v10619_v48 }
 0x980   : > { %17575 = vmatprep.mubr.msk.bf16.mxu1 %vm170_vm0, %v10910_v35 }
 0x987   : > { %17576 = vmatmul.mubr.msk.bf16.vlgmr.msra.gmra.mrb[64].mxu1 %vm170_vm0, %v10911_v57 }
 0x988   : > { %17608 = vmatpush3.bf16.msra.mxu1 %v19363_v22  ;;  %17579 = vmatprep.mubr.msk.bf16.mxu1 %vm170_vm0, %v10912_v39 }
 0x989   : > { %17609 = vmatprep.subr.bf16.mxu1 %v19364_v50 }
 0x98c   : > { %17610 = vmatpush3.bf16.msra.mxu1 %v19364_v50 }
 0x98f   : > { %17580 = vmatmul.mubr.msk.bf16.gmra.mrb[68].mxu1 %vm170_vm0, %v10913_v30 }
 0x990   : > { %17583 = vmatprep.mubr.msk.bf16.mxu1 %vm170_vm0, %v10914_v45 }
 0x997   : > { %17584 = vmatmul.mubr.msk.bf16.gmra.mrb[72].mxu1 %vm170_vm0, %v10915_v56 }
 0x998   : > { %17587 = vmatprep.mubr.msk.bf16.mxu1 %vm170_vm0, %v10916_v53 }
 0x99f   : > { %17588 = vmatmul.mubr.msk.bf16.gmra.mrb[76].mxu1 %vm170_vm0, %v10917_v52 }
 0x9a0   : > { %17591 = vmatprep.mubr.msk.bf16.mxu1 %vm170_vm0, %v10918_v63 }
 0x9a7   : > { %17592 = vmatmul.mubr.msk.bf16.gmra.mrb[80].mxu1 %vm170_vm0, %v21309_v58  ;;  %v11214_v58 = vld [vmem:[#allocation2 + $0x19a] sm:$0xff] }
 0x9a8   : > { %17595 = vmatprep.mubr.msk.bf16.mxu1 %vm170_vm0, %v21312_v21  ;;  %v11215_v21 = vld [vmem:[#allocation2 + $0x1a2] sm:$0xff] }
 0x9af   : > { %17596 = vmatmul.mubr.msk.bf16.gmra.mrb[84].mxu1 %vm170_vm0, %v21327_v38  ;;  %v11231_v38 = vpack.c.bf16 %v11215_v21, %v11214_v58 }
 0x9b0   : > { %17599 = vmatprep.mubr.msk.bf16.mxu1 %vm170_vm0, %v21329_v16  ;;  %v11647_v16 = vld [vmem:[#allocation2 + $0x1] sm:$0xff] }
 0x9b7   : > { %17600 = vmatmul.mubr.msk.bf16.gmra.mrb[88].mxu1 %vm170_vm0, %v21335_v17  ;;  %v11648_v17 = vld [vmem:[#allocation2 + $0x9] sm:$0xff] }
 0x9b8   : > { %17603 = vmatprep.mubr.msk.bf16.mxu1 %vm170_vm0, %v21554_v60 }
 0x9bf   : > { %17604 = vmatmul.mubr.msk.bf16.gmra.mrb[92].mxu1 %vm170_vm0, %v10925_v32 }
 0x9c0   : > { %17611 = vmatprep.mubr.msk.bf16.mxu1 %vm170_vm0, %v21416_v3  ;;  %v11679_v3 = vpack.c.bf16 %v11648_v17, %v11647_v16 }
 0x9c2   : > { %17647 = vmatprep.mubr.msk.bf16.mxu0 %vm170_vm0, %v11679_v3 }
 0x9c7   : > { %17612 = vmatmul.mubr.msk.bf16.vlgmr.msra.gmra.mrb[64].mxu1 %vm170_vm0, %v21426_v54  ;;  %v19367_v54 = vld [vmem:[%s22349_s1 + $0x240] sm:$0xff]  }
 0x9c8   : > { %17615 = vmatprep.mubr.msk.bf16.mxu1 %vm170_vm0, %v21428_v27  ;;  %17679 = vmatprep.subr.bf16.mxu0 %v19367_v54  ;;  %v21704_v27 = vld [vmem:[%s22350_s2 + $0x3] ss:$0 sm:$0xff] }
 0x9cf   : > { %17616 = vmatmul.mubr.msk.bf16.gmra.mrb[68].mxu1 %vm170_vm0, %v21434_v62 }
 0x9d0   : > { %17619 = vmatprep.mubr.msk.bf16.mxu1 %vm170_vm0, %v21436_v20 }
 0x9d7   : > { %17620 = vmatmul.mubr.msk.bf16.gmra.mrb[72].mxu1 %vm170_vm0, %v21442_v9 }
 0x9d8   : > { %17623 = vmatprep.mubr.msk.bf16.mxu1 %vm170_vm0, %v21444_v26 }
 0x9df   : > { %17624 = vmatmul.mubr.msk.bf16.gmra.mrb[76].mxu1 %vm170_vm0, %v21450_v55 }
 0x9e0   : > { %17627 = vmatprep.mubr.msk.bf16.mxu1 %vm170_vm0, %v21452_v41 }
 0x9e7   : > { %17628 = vmatmul.mubr.msk.bf16.gmra.mrb[80].mxu1 %vm170_vm0, %v21458_v2 }
 0x9e8   : > { %17631 = vmatprep.mubr.msk.bf16.mxu1 %vm170_vm0, %v21460_v13 }
 0x9ef   : > { %17632 = vmatmul.mubr.msk.bf16.gmra.mrb[84].mxu1 %vm170_vm0, %v21466_v25 }
 0x9f0   : > { %17635 = vmatprep.mubr.msk.bf16.mxu1 %vm170_vm0, %v21468_v36 }
 0x9f7   : > { %17636 = vmatmul.mubr.msk.bf16.gmra.mrb[88].mxu1 %vm170_vm0, %v21474_v46 }
 0x9f8   : > { %17639 = vmatprep.mubr.msk.bf16.mxu1 %vm170_vm0, %v21594_v29 }
 0x9ff   : > { %17640 = vmatmul.mubr.msk.bf16.gmra.mrb[92].mxu1 %vm170_vm0, %v11231_v38 }
 0xa9a   : > { %v17613_v62 = vpop.f32.mrb[64].mxu1 }
 0xa9b   : > { %v11500_v20 = vadd.f32 %v17613_v62, %v21704_v27  ;;  %v11331_v9 = vpop.f32.mrb[65].mxu1 }
 0xa9c   : > { %v11498_v26 = vadd.f32 %v21704_v27, %v11331_v9  ;;  %v17614_v55 = vpop.f32.mrb[66].mxu1 }
 0xa9d   : > { %v11532_v41 = vmax.f32 %v11500_v20, 0.0  ;;  %v11501_v2 = vadd.f32 %v17614_v55, %v21704_v27  ;;  %v11334_v13 = vpop.f32.mrb[67].mxu1 }
 0xa9e   : > { %v11530_v25 = vmax.f32 %v11498_v26, 0.0  ;;  %v11499_v36 = vadd.f32 %v21704_v27, %v11334_v13 }
 0xa9f   : > { %11564 = vst.msk [vmem:[#allocation2 + $0x31] sm:$0xff] %vm170_vm0, %v11532_v41  ;;  %v11533_v46 = vmax.f32 %v11501_v2, 0.0 }
 0xaa0   : > { %11562 = vst.msk [vmem:[#allocation2 + $0x19] sm:$0xff] %vm170_vm0, %v11530_v25  ;;  %v11531_v10 = vmax.f32 %v11499_v36, 0.0 }
 0xaa1   : > { %11565 = vst.msk [vmem:[#allocation2 + $0x39] sm:$0xff] %vm170_vm0, %v11533_v46 }
 0xaa2   : > { %11563 = vst.msk [vmem:[#allocation2 + $0x21] sm:$0xff] %vm170_vm0, %v11531_v10  ;;  %v17617_v60 = vpop.f32.mrb[68].mxu1 }
 0xaa3   : > { %v11504_v34 = vadd.f32 %v17617_v60, %v21704_v27  ;;  %v11347_v14 = vpop.f32.mrb[69].mxu1 }
 0xaa4   : > { %v11502_v51 = vadd.f32 %v21704_v27, %v11347_v14  ;;  %v17618_v61 = vpop.f32.mrb[70].mxu1 }
 0xaa5   : > { %v11536_v29 = vmax.f32 %v11504_v34, 0.0  ;;  %v11505_v42 = vadd.f32 %v17618_v61, %v21704_v27  ;;  %v11350_v22 = vpop.f32.mrb[71].mxu1 }
 0xaa6   : > { %v11534_v24 = vmax.f32 %v11502_v51, 0.0  ;;  %v11503_v33 = vadd.f32 %v21704_v27, %v11350_v22  ;;  %v11651_v47 = vld [vmem:[#allocation2 + $0x31] sm:$0xff] }
 0xaa7   : > { %11568 = vst.msk [vmem:[#allocation2 + $0x61] sm:$0xff] %vm170_vm0, %v11536_v29  ;;  %v11537_v48 = vmax.f32 %v11505_v42, 0.0  ;;  %v11649_v35 = vld [vmem:[#allocation2 + $0x19] sm:$0xff] }
 0xaa8   : > { %11566 = vst.msk [vmem:[#allocation2 + $0x49] sm:$0xff] %vm170_vm0, %v11534_v24  ;;  %v11535_v40 = vmax.f32 %v11503_v33, 0.0  ;;  %v11652_v37 = vld [vmem:[#allocation2 + $0x39] sm:$0xff] }
 0xaa9   : > { %11569 = vst.msk [vmem:[#allocation2 + $0x69] sm:$0xff] %vm170_vm0, %v11537_v48  ;;  %v11650_v19 = vld [vmem:[#allocation2 + $0x21] sm:$0xff]  ;;  %v21728_v50 = vpack.c.bf16 %v11652_v37, %v11651_v47 }
 0xaaa   : > { %11567 = vst.msk [vmem:[#allocation2 + $0x51] sm:$0xff] %vm170_vm0, %v11535_v40  ;;  %v17621_v7 = vpop.f32.mrb[72].mxu1  ;;  %v21722_v8 = vpack.c.bf16 %v11650_v19, %v11649_v35 }
 0xaab   : > { %v11508_v57 = vadd.f32 %v17621_v7, %v21704_v27  ;;  %v11363_v11 = vpop.f32.mrb[73].mxu1 }
 0xaac   : > { %v11506_v39 = vadd.f32 %v21704_v27, %v11363_v11  ;;  %v17622_v43 = vpop.f32.mrb[74].mxu1  ;;  %17648 = vmatmul.mubr.msk.bf16.vlgmr.msra.gmra.mrb[64].mxu0 %vm170_vm0, %v21722_v8 }
 0xaad   : > { %v11540_v4 = vmax.f32 %v11508_v57, 0.0  ;;  %v11509_v44 = vadd.f32 %v17622_v43, %v21704_v27  ;;  %17680 = vmatpush3.bf16.msra.mxu0 %v19367_v54  ;;  %v11366_v30 = vpop.f32.mrb[75].mxu1  ;;  %17651 = vmatprep.mubr.msk.bf16.mxu0 %vm170_vm0, %v21728_v50 }
 0xaae   : > { %v11538_v23 = vmax.f32 %v11506_v39, 0.0  ;;  %v11507_v45 = vadd.f32 %v21704_v27, %v11366_v30  ;;  %17681 = vmatprep.subr.bf16.mxu0 %v19368_v0  ;;  %v11655_v18 = vld [vmem:[#allocation2 + $0x61] sm:$0xff] }
 0xaaf   : > { %11572 = vst.msk [vmem:[#allocation2 + $0x91] sm:$0xff] %vm170_vm0, %v11540_v4  ;;  %v11541_v28 = vmax.f32 %v11509_v44, 0.0  ;;  %v11653_v6 = vld [vmem:[#allocation2 + $0x49] sm:$0xff] }
 0xab0   : > { %11570 = vst.msk [vmem:[#allocation2 + $0x79] sm:$0xff] %vm170_vm0, %v11538_v23  ;;  %v11539_v31 = vmax.f32 %v11507_v45, 0.0  ;;  %v11656_v56 = vld [vmem:[#allocation2 + $0x69] sm:$0xff] }
 0xab1   : > { %11573 = vst.msk [vmem:[#allocation2 + $0x99] sm:$0xff] %vm170_vm0, %v11541_v28  ;;  %v11654_v53 = vld [vmem:[#allocation2 + $0x51] sm:$0xff]  ;;  %17682 = vmatpush3.bf16.msra.mxu0 %v19368_v0  ;;  %v21750_v63 = vpack.c.bf16 %v11656_v56, %v11655_v18 }
 0xab2   : > { %11571 = vst.msk [vmem:[#allocation2 + $0x81] sm:$0xff] %vm170_vm0, %v11539_v31  ;;  %v17625_v12 = vpop.f32.mrb[76].mxu1  ;;  %v21746_v1 = vpack.c.bf16 %v11654_v53, %v11653_v6  ;;  %17715 = vmatprep.subr.bf16.mxu0 %v21740_v15 }
 0xab3   : > { %v11512_v52 = vadd.f32 %v17625_v12, %v21704_v27  ;;  %v11379_v49 = vpop.f32.mrb[77].mxu1 }
 0xab4   : > { %v11510_v59 = vadd.f32 %v21704_v27, %v11379_v49  ;;  %v17626_v5 = vpop.f32.mrb[78].mxu1  ;;  %17652 = vmatmul.mubr.msk.bf16.gmra.mrb[68].mxu0 %vm170_vm0, %v21746_v1 }
 0xab5   : > { %v11544_v32 = vmax.f32 %v11512_v52, 0.0  ;;  %v11513_v58 = vadd.f32 %v17626_v5, %v21704_v27  ;;  %v11382_v21 = vpop.f32.mrb[79].mxu1  ;;  %17655 = vmatprep.mubr.msk.bf16.mxu0 %vm170_vm0, %v21750_v63 }
 0xab6   : > { %v11542_v38 = vmax.f32 %v11510_v59, 0.0  ;;  %v11511_v16 = vadd.f32 %v21704_v27, %v11382_v21  ;;  %v11659_v55 = vld [vmem:[#allocation2 + $0x91] sm:$0xff] }
 0xab7   : > { %11576 = vst.msk [vmem:[#allocation2 + $0xc1] sm:$0xff] %vm170_vm0, %v11544_v32  ;;  %v11545_v17 = vmax.f32 %v11513_v58, 0.0  ;;  %v11657_v62 = vld [vmem:[#allocation2 + $0x79] sm:$0xff] }
 0xab8   : > { %11574 = vst.msk [vmem:[#allocation2 + $0xa9] sm:$0xff] %vm170_vm0, %v11542_v38  ;;  %v11543_v3 = vmax.f32 %v11511_v16, 0.0  ;;  %v11660_v54 = vld [vmem:[#allocation2 + $0x99] sm:$0xff] }
 0xab9   : > { %11577 = vst.msk [vmem:[#allocation2 + $0xc9] sm:$0xff] %vm170_vm0, %v11545_v17  ;;  %v11658_v20 = vld [vmem:[#allocation2 + $0x81] sm:$0xff]  ;;  %v21766_v13 = vpack.c.bf16 %v11660_v54, %v11659_v55 }
 0xaba   : > { %11575 = vst.msk [vmem:[#allocation2 + $0xb1] sm:$0xff] %vm170_vm0, %v11543_v3  ;;  %v17629_v9 = vpop.f32.mrb[80].mxu1  ;;  %v21763_v26 = vpack.c.bf16 %v11658_v20, %v11657_v62 }
 0xabb   : > { %v11516_v41 = vadd.f32 %v17629_v9, %v21704_v27  ;;  %v11395_v2 = vpop.f32.mrb[81].mxu1 }
 0xabc   : > { %v11514_v25 = vadd.f32 %v21704_v27, %v11395_v2  ;;  %v17630_v36 = vpop.f32.mrb[82].mxu1  ;;  %17656 = vmatmul.mubr.msk.bf16.gmra.mrb[72].mxu0 %vm170_vm0, %v21763_v26 }
 0xabd   : > { %v11548_v46 = vmax.f32 %v11516_v41, 0.0  ;;  %v11517_v10 = vadd.f32 %v17630_v36, %v21704_v27  ;;  %v11398_v60 = vpop.f32.mrb[83].mxu1  ;;  %17659 = vmatprep.mubr.msk.bf16.mxu0 %vm170_vm0, %v21766_v13 }
 0xabe   : > { %v11546_v34 = vmax.f32 %v11514_v25, 0.0  ;;  %v11515_v14 = vadd.f32 %v21704_v27, %v11398_v60  ;;  %v11663_v48 = vld [vmem:[#allocation2 + $0xc1] sm:$0xff] }
 0xabf   : > { %11580 = vst.msk [vmem:[#allocation2 + $0xf1] sm:$0xff] %vm170_vm0, %v11548_v46  ;;  %v11549_v51 = vmax.f32 %v11517_v10, 0.0  ;;  %v11661_v42 = vld [vmem:[#allocation2 + $0xa9] sm:$0xff] }
 0xac0   : > { %11578 = vst.msk [vmem:[#allocation2 + $0xd9] sm:$0xff] %vm170_vm0, %v11546_v34  ;;  %v11547_v61 = vmax.f32 %v11515_v14, 0.0  ;;  %v11664_v29 = vld [vmem:[#allocation2 + $0xc9] sm:$0xff] }
 0xac1   : > { %11581 = vst.msk [vmem:[#allocation2 + $0xf9] sm:$0xff] %vm170_vm0, %v11549_v51  ;;  %v11662_v22 = vld [vmem:[#allocation2 + $0xb1] sm:$0xff]  ;;  %v21782_v35 = vpack.c.bf16 %v11664_v29, %v11663_v48  ;;  %v11595_v48 = vld [vmem:[#allocation2 + $0x8] sm:$0xff] }
 0xac2   : > { %11579 = vst.msk [vmem:[#allocation2 + $0xe1] sm:$0xff] %vm170_vm0, %v11547_v61  ;;  %v17633_v24 = vpop.f32.mrb[84].mxu1  ;;  %v21779_v33 = vpack.c.bf16 %v11662_v22, %v11661_v42 }
 0xac3   : > { %v11520_v40 = vadd.f32 %v17633_v24, %v21704_v27  ;;  %v11411_v37 = vpop.f32.mrb[85].mxu1 }
 0xac4   : > { %v11518_v19 = vadd.f32 %v21704_v27, %v11411_v37  ;;  %v17634_v7 = vpop.f32.mrb[86].mxu1  ;;  %17660 = vmatmul.mubr.msk.bf16.gmra.mrb[76].mxu0 %vm170_vm0, %v21779_v33 }
 0xac5   : > { %v11552_v47 = vmax.f32 %v11520_v40, 0.0  ;;  %v11521_v0 = vadd.f32 %v17634_v7, %v21704_v27  ;;  %v11414_v57 = vpop.f32.mrb[87].mxu1  ;;  %17663 = vmatprep.mubr.msk.bf16.mxu0 %vm170_vm0, %v21782_v35 }
 0xac6   : > { %v11550_v11 = vmax.f32 %v11518_v19, 0.0  ;;  %v11519_v39 = vadd.f32 %v21704_v27, %v11414_v57  ;;  %v11667_v31 = vld [vmem:[#allocation2 + $0xf1] sm:$0xff] }
 0xac7   : > { %11584 = vst.msk [vmem:[#allocation2 + $0x121] sm:$0xff] %vm170_vm0, %v11552_v47  ;;  %v11553_v43 = vmax.f32 %v11521_v0, 0.0  ;;  %v11665_v30 = vld [vmem:[#allocation2 + $0xd9] sm:$0xff] }
 0xac8   : > { %11582 = vst.msk [vmem:[#allocation2 + $0x109] sm:$0xff] %vm170_vm0, %v11550_v11  ;;  %v11551_v4 = vmax.f32 %v11519_v39, 0.0  ;;  %v11668_v44 = vld [vmem:[#allocation2 + $0xf9] sm:$0xff]  ;;  %v11598_v39 = vld [vmem:[#allocation2 + $0x30] sm:$0xff] }
 0xac9   : > { %11585 = vst.msk [vmem:[#allocation2 + $0x129] sm:$0xff] %vm170_vm0, %v11553_v43  ;;  %v11666_v23 = vld [vmem:[#allocation2 + $0xe1] sm:$0xff]  ;;  %v21798_v53 = vpack.c.bf16 %v11668_v44, %v11667_v31  ;;  %v11599_v0 = vld [vmem:[#allocation2 + $0x38] sm:$0xff]  ;;  %v21855_v44 = vld [vmem:[%s22349_s1 + $0x270] sm:$0xff]  }
 0xaca   : > { %11583 = vst.msk [vmem:[#allocation2 + $0x111] sm:$0xff] %vm170_vm0, %v11551_v4  ;;  %v17637_v45 = vpop.f32.mrb[88].mxu1  ;;  %v21795_v28 = vpack.c.bf16 %v11666_v23, %v11665_v30  ;;  %v11597_v47 = vld [vmem:[#allocation2 + $0x20] sm:$0xff]  ;;  %v11596_v57 = vld [vmem:[#allocation2 + $0x18] sm:$0xff]  ;;  %v19370_v43 = vld [vmem:[%s22349_s1 + $0x268] sm:$0xff]   ;;  %v21845_v4 = vpack.c.bf16 %v11599_v0, %v11598_v39 }
 0xacb   : > { %v11524_v56 = vadd.f32 %v17637_v45, %v21704_v27  ;;  %v11427_v6 = vpop.f32.mrb[89].mxu1  ;;  %v21840_v11 = vpack.c.bf16 %v11597_v47, %v11596_v57  ;;  %v11601_v30 = vld [vmem:[#allocation2 + $0x50] sm:$0xff]  ;;  %v11603_v23 = vld [vmem:[#allocation2 + $0x68] sm:$0xff]  ;;  %v12144_v0 = vld [vmem:[#allocation2 + $0x1a] sm:$0xff] }
 0xacc   : > { %v11522_v12 = vadd.f32 %v21704_v27, %v11427_v6  ;;  %v17638_v18 = vpop.f32.mrb[90].mxu1  ;;  %17664 = vmatmul.mubr.msk.bf16.gmra.mrb[80].mxu0 %vm170_vm0, %v21795_v28  ;;  %v11600_v45 = vld [vmem:[#allocation2 + $0x48] sm:$0xff]  ;;  %v12146_v39 = vld [vmem:[#allocation2 + $0x32] sm:$0xff] }
 0xacd   : > { %v11556_v52 = vmax.f32 %v11524_v56, 0.0  ;;  %v11525_v49 = vadd.f32 %v17638_v18, %v21704_v27  ;;  %v11430_v59 = vpop.f32.mrb[91].mxu1  ;;  %17667 = vmatprep.mubr.msk.bf16.mxu0 %vm170_vm0, %v21798_v53  ;;  %v21857_v31 = vpack.c.bf16 %v11601_v30, %v11600_v45  ;;  %v11602_v56 = vld [vmem:[#allocation2 + $0x60] sm:$0xff]  ;;  %v11604_v18 = vld [vmem:[#allocation2 + $0x78] sm:$0xff] }
 0xace   : > { %v11554_v5 = vmax.f32 %v11522_v12, 0.0  ;;  %v11523_v32 = vadd.f32 %v21704_v27, %v11430_v59  ;;  %v11671_v62 = vld [vmem:[#allocation2 + $0x121] sm:$0xff]  ;;  %v21860_v6 = vpack.c.bf16 %v11603_v23, %v11602_v56  ;;  %v11607_v12 = vld [vmem:[#allocation2 + $0x98] sm:$0xff] }
 0xacf   : > { %11588 = vst.msk [vmem:[#allocation2 + $0x151] sm:$0xff] %vm170_vm0, %v11556_v52  ;;  %v11557_v58 = vmax.f32 %v11525_v49, 0.0  ;;  %v11669_v16 = vld [vmem:[#allocation2 + $0x109] sm:$0xff]  ;;  %v19372_v23 = vld [vmem:[%s22349_s1 + $0x278] sm:$0xff]   ;;  %v19373_v56 = vld [vmem:[%s22349_s1 + $0x280] sm:$0xff]  }
 0xad0   : > { %11586 = vst.msk [vmem:[#allocation2 + $0x139] sm:$0xff] %vm170_vm0, %v11554_v5  ;;  %v11555_v21 = vmax.f32 %v11523_v32, 0.0  ;;  %v11672_v38 = vld [vmem:[#allocation2 + $0x129] sm:$0xff] }
 0xad1   : > { %11589 = vst.msk [vmem:[#allocation2 + $0x159] sm:$0xff] %vm170_vm0, %v11557_v58  ;;  %v11670_v17 = vld [vmem:[#allocation2 + $0x111] sm:$0xff]  ;;  %v21814_v55 = vpack.c.bf16 %v11672_v38, %v11671_v62  ;;  %v11611_v32 = vld [vmem:[#allocation2 + $0xc8] sm:$0xff]  ;;  %v11610_v38 = vld [vmem:[#allocation2 + $0xc0] sm:$0xff] }
 0xad2   : > { %11587 = vst.msk [vmem:[#allocation2 + $0x141] sm:$0xff] %vm170_vm0, %v11555_v21  ;;  %v17641_v3 = vpop.f32.mrb[92].mxu1  ;;  %v21811_v54 = vpack.c.bf16 %v11670_v17, %v11669_v16  ;;  %v11606_v49 = vld [vmem:[#allocation2 + $0x90] sm:$0xff]  ;;  %v11608_v58 = vld [vmem:[#allocation2 + $0xa8] sm:$0xff]  ;;  %v21876_v16 = vpack.c.bf16 %v11611_v32, %v11610_v38  ;;  %v11613_v17 = vld [vmem:[#allocation2 + $0xe0] sm:$0xff] }
 0xad3   : > { %v11528_v20 = vadd.f32 %v17641_v3, %v21704_v27  ;;  %v11443_v9 = vpop.f32.mrb[93].mxu1  ;;  %v21868_v59 = vpack.c.bf16 %v11607_v12, %v11606_v49  ;;  %v11609_v5 = vld [vmem:[#allocation2 + $0xb0] sm:$0xff]  ;;  %v11615_v3 = vld [vmem:[#allocation2 + $0xf8] sm:$0xff]  ;;  %v12145_v57 = vld [vmem:[#allocation2 + $0x22] sm:$0xff] }
 0xad4   : > { %v11526_v41 = vadd.f32 %v21704_v27, %v11443_v9  ;;  %v17642_v2 = vpop.f32.mrb[94].mxu1  ;;  %17668 = vmatmul.mubr.msk.bf16.gmra.mrb[84].mxu0 %vm170_vm0, %v21811_v54  ;;  %v21874_v21 = vpack.c.bf16 %v11609_v5, %v11608_v58  ;;  %v11612_v62 = vld [vmem:[#allocation2 + $0xd8] sm:$0xff]  ;;  %v11614_v9 = vld [vmem:[#allocation2 + $0xf0] sm:$0xff]  ;;  %v21911_v30 = vpack.c.bf16 %v12145_v57, %v12144_v0  ;;  %v12153_v58 = vld [vmem:[#allocation2 + $0x82] sm:$0xff] }
 0xad5   : > { %v11560_v25 = vmax.f32 %v11528_v20, 0.0  ;;  %v11529_v36 = vadd.f32 %v17642_v2, %v21704_v27  ;;  %v11446_v46 = vpop.f32.mrb[95].mxu1  ;;  %17671 = vmatprep.mubr.msk.bf16.mxu0 %vm170_vm0, %v21814_v55  ;;  %v21882_v20 = vpack.c.bf16 %v11613_v17, %v11612_v62  ;;  %v11617_v2 = vld [vmem:[#allocation2 + $0x110] sm:$0xff]  ;;  %v12155_v17 = vld [vmem:[#allocation2 + $0x9a] sm:$0xff]  ;;  %v12166_v0 = vld [vmem:[#allocation2 + $0x122] sm:$0xff] }
 0xad6   : > { %v11558_v10 = vmax.f32 %v11526_v41, 0.0  ;;  %v11527_v60 = vadd.f32 %v21704_v27, %v11446_v46  ;;  %v11675_v22 = vld [vmem:[#allocation2 + $0x151] sm:$0xff]  ;;  %v11594_v27 = vld [vmem:[#allocation2] sm:$0xff]  ;;  %v21884_v41 = vpack.c.bf16 %v11615_v3, %v11614_v9 }
 0xad7   : > { %11592 = vst.msk [vmem:[#allocation2 + $0x181] sm:$0xff] %vm170_vm0, %v11560_v25  ;;  %v11561_v34 = vmax.f32 %v11529_v36, 0.0  ;;  %v11673_v61 = vld [vmem:[#allocation2 + $0x139] sm:$0xff]  ;;  %v11626_v19 = vpack.c.bf16 %v11595_v48, %v11594_v27  ;;  %v11619_v25 = vld [vmem:[#allocation2 + $0x128] sm:$0xff] }
 0xad8   : > { %11590 = vst.msk [vmem:[#allocation2 + $0x169] sm:$0xff] %vm170_vm0, %v11558_v10  ;;  %v11559_v14 = vmax.f32 %v11527_v60, 0.0  ;;  %v11676_v51 = vld [vmem:[#allocation2 + $0x159] sm:$0xff]  ;;  %v11616_v36 = vld [vmem:[#allocation2 + $0x108] sm:$0xff] }
 0xad9   : > { %11593 = vst.msk [vmem:[#allocation2 + $0x189] sm:$0xff] %vm170_vm0, %v11561_v34  ;;  %v11674_v29 = vld [vmem:[#allocation2 + $0x141] sm:$0xff]  ;;  %v21829_v24 = vpack.c.bf16 %v11676_v51, %v11675_v22  ;;  %v21890_v46 = vpack.c.bf16 %v11617_v2, %v11616_v36  ;;  %v11620_v51 = vld [vmem:[#allocation2 + $0x138] sm:$0xff]  ;;  %v12143_v48 = vld [vmem:[#allocation2 + $0xa] sm:$0xff] }
 0xada   : > { %11591 = vst.msk [vmem:[#allocation2 + $0x171] sm:$0xff] %vm170_vm0, %v11559_v14  ;;  %v21827_v42 = vpack.c.bf16 %v11674_v29, %v11673_v61  ;;  %v11618_v10 = vld [vmem:[#allocation2 + $0x120] sm:$0xff]  ;;  %v11623_v14 = vld [vmem:[#allocation2 + $0x158] sm:$0xff]  ;;  %v11622_v29 = vld [vmem:[#allocation2 + $0x150] sm:$0xff] }
 0xadb   : > { %v21892_v60 = vpack.c.bf16 %v11619_v25, %v11618_v10  ;;  %v11621_v34 = vld [vmem:[#allocation2 + $0x140] sm:$0xff]  ;;  %v21900_v22 = vpack.c.bf16 %v11623_v14, %v11622_v29  ;;  %v12149_v12 = vld [vmem:[#allocation2 + $0x52] sm:$0xff]  ;;  %v12151_v49 = vld [vmem:[#allocation2 + $0x6a] sm:$0xff] }
 0xadc   : > { %17672 = vmatmul.mubr.msk.bf16.gmra.mrb[88].mxu0 %vm170_vm0, %v21827_v42  ;;  %v21898_v61 = vpack.c.bf16 %v11621_v34, %v11620_v51  ;;  %v12142_v27 = vld [vmem:[#allocation2 + $0x2] sm:$0xff]  ;;  %v12154_v38 = vld [vmem:[#allocation2 + $0x92] sm:$0xff]  ;;  %v12156_v9 = vld [vmem:[#allocation2 + $0xaa] sm:$0xff] }
 0xadd   : > { %17675 = vmatprep.mubr.msk.bf16.mxu0 %vm170_vm0, %v21829_v24  ;;  %v21936_v62 = vpack.c.bf16 %v12155_v17, %v12154_v38  ;;  %v12157_v2 = vld [vmem:[#allocation2 + $0xb2] sm:$0xff]  ;;  %v12158_v25 = vld [vmem:[#allocation2 + $0xc2] sm:$0xff]  ;;  %v12159_v36 = vld [vmem:[#allocation2 + $0xca] sm:$0xff] }
 0xade   : > { %v21942_v10 = vpack.c.bf16 %v12157_v2, %v12156_v9  ;;  %v21944_v34 = vpack.c.bf16 %v12159_v36, %v12158_v25  ;;  %v12160_v14 = vld [vmem:[#allocation2 + $0xda] sm:$0xff]  ;;  %v12161_v51 = vld [vmem:[#allocation2 + $0xe2] sm:$0xff]  ;;  %v12162_v29 = vld [vmem:[#allocation2 + $0xf2] sm:$0xff] }
 0xadf   : > { %v11677_v40 = vld [vmem:[#allocation2 + $0x169] sm:$0xff]  ;;  %v19376_v36 = vld [vmem:[%s22349_s1 + $0x298] sm:$0xff]  }
 0xae0   : > { %v12167_v57 = vld [vmem:[#allocation2 + $0x12a] sm:$0xff] }
 0xae1   : > { %v11678_v37 = vld [vmem:[#allocation2 + $0x171] sm:$0xff]  ;;  %v19374_v9 = vld [vmem:[%s22349_s1 + $0x288] sm:$0xff]  }
 0xae2   : > { %v21835_v7 = vpack.c.bf16 %v11678_v37, %v11677_v40  ;;  %v11625_v40 = vld [vmem:[#allocation2 + $0x170] sm:$0xff]  ;;  %v11624_v37 = vld [vmem:[#allocation2 + $0x168] sm:$0xff] }
 0xae3   : > { %v21906_v47 = vpack.c.bf16 %v11625_v40, %v11624_v37  ;;  %v12164_v37 = vld [vmem:[#allocation2 + $0x10a] sm:$0xff]  ;;  %v12173_v38 = vld [vmem:[#allocation2 + $0x172] sm:$0xff] }
 0xae4   : > { %17676 = vmatmul.mubr.msk.bf16.gmra.mrb[92].mxu0 %vm170_vm0, %v21835_v7  ;;  %v19375_v2 = vld [vmem:[%s22349_s1 + $0x290] sm:$0xff]  }
 0xae5   : > { %17683 = vmatprep.mubr.msk.bf16.mxu0 %vm170_vm0, %v11626_v19  ;;  %v12174_v19 = vpack.c.bf16 %v12143_v48, %v12142_v27  ;;  %v12163_v27 = vld [vmem:[#allocation2 + $0xfa] sm:$0xff]  ;;  %v21950_v48 = vpack.c.bf16 %v12161_v51, %v12160_v14 }
 0xae6   : > { %v21952_v40 = vpack.c.bf16 %v12163_v27, %v12162_v29  ;;  %v19377_v14 = vld [vmem:[%s22349_s1 + $0x2a0] sm:$0xff]   ;;  %v13680_v29 = vld [vmem:[#allocation2 + $0x91] sm:$0xff] }
 0xaec   : > { %17684 = vmatmul.mubr.msk.bf16.vlgmr.msra.gmra.mrb[64].mxu0 %vm170_vm0, %v21840_v11 }
 0xaed   : > { %17716 = vmatpush3.bf16.msra.mxu0 %v21740_v15  ;;  %17687 = vmatprep.mubr.msk.bf16.mxu0 %vm170_vm0, %v21845_v4  ;;  %v11605_v15 = vld [vmem:[#allocation2 + $0x80] sm:$0xff] }
 0xaee   : > { %17717 = vmatprep.subr.bf16.mxu0 %v19370_v43  ;;  %v21866_v52 = vpack.c.bf16 %v11605_v15, %v11604_v18  ;;  %v12148_v15 = vld [vmem:[#allocation2 + $0x4a] sm:$0xff]  ;;  %v12150_v18 = vld [vmem:[#allocation2 + $0x62] sm:$0xff] }
 0xaef   : > { %v21926_v5 = vpack.c.bf16 %v12149_v12, %v12148_v15  ;;  %v21928_v32 = vpack.c.bf16 %v12151_v49, %v12150_v18  ;;  %v12169_v15 = vld [vmem:[#allocation2 + $0x142] sm:$0xff]  ;;  %v12170_v12 = vld [vmem:[#allocation2 + $0x152] sm:$0xff]  ;;  %v12171_v18 = vld [vmem:[#allocation2 + $0x15a] sm:$0xff] }
 0xaf1   : > { %17718 = vmatpush3.bf16.msra.mxu0 %v19370_v43  ;;  %v12147_v43 = vld [vmem:[#allocation2 + $0x3a] sm:$0xff] }
 0xaf2   : > { %17751 = vmatprep.subr.bf16.mxu0 %v21855_v44  ;;  %v21916_v45 = vpack.c.bf16 %v12147_v43, %v12146_v39  ;;  %v21960_v43 = vpack.c.bf16 %v12167_v57, %v12166_v0  ;;  %v13682_v0 = vld [vmem:[#allocation2 + $0xa9] sm:$0xff] }
 0xaf4   : > { %17688 = vmatmul.mubr.msk.bf16.gmra.mrb[68].mxu0 %vm170_vm0, %v21857_v31 }
 0xaf5   : > { %17691 = vmatprep.mubr.msk.bf16.mxu0 %vm170_vm0, %v21860_v6 }
 0xafc   : > { %17692 = vmatmul.mubr.msk.bf16.gmra.mrb[72].mxu0 %vm170_vm0, %v21866_v52 }
 0xafd   : > { %17695 = vmatprep.mubr.msk.bf16.mxu0 %vm170_vm0, %v21868_v59 }
 0xb04   : > { %17696 = vmatmul.mubr.msk.bf16.gmra.mrb[76].mxu0 %vm170_vm0, %v21874_v21 }
 0xb05   : > { %17699 = vmatprep.mubr.msk.bf16.mxu0 %vm170_vm0, %v21876_v16 }
 0xb0c   : > { %17700 = vmatmul.mubr.msk.bf16.gmra.mrb[80].mxu0 %vm170_vm0, %v21882_v20 }
 0xb0d   : > { %17703 = vmatprep.mubr.msk.bf16.mxu0 %vm170_vm0, %v21884_v41 }
 0xb14   : > { %17704 = vmatmul.mubr.msk.bf16.gmra.mrb[84].mxu0 %vm170_vm0, %v21890_v46 }
 0xb15   : > { %17707 = vmatprep.mubr.msk.bf16.mxu0 %vm170_vm0, %v21892_v60 }
 0xb1c   : > { %17708 = vmatmul.mubr.msk.bf16.gmra.mrb[88].mxu0 %vm170_vm0, %v21898_v61 }
 0xb1d   : > { %17711 = vmatprep.mubr.msk.bf16.mxu0 %vm170_vm0, %v21900_v22 }
 0xb24   : > { %17712 = vmatmul.mubr.msk.bf16.gmra.mrb[92].mxu0 %vm170_vm0, %v21906_v47 }
 0xb25   : > { %17719 = vmatprep.mubr.msk.bf16.mxu0 %vm170_vm0, %v12174_v19  ;;  %v12165_v19 = vld [vmem:[#allocation2 + $0x112] sm:$0xff] }
 0xb26   : > { %v21958_v39 = vpack.c.bf16 %v12165_v19, %v12164_v37  ;;  %v13683_v37 = vld [vmem:[#allocation2 + $0xb1] sm:$0xff]  ;;  %v13685_v19 = vld [vmem:[#allocation2 + $0xc9] sm:$0xff] }
 0xb27   : > { %v13709_v57 = vpack.c.bf16 %v13683_v37, %v13682_v0 }
 0xb2c   : > { %17720 = vmatmul.mubr.msk.bf16.vlgmr.msra.gmra.mrb[64].mxu0 %vm170_vm0, %v21911_v30 }
 0xb2d   : > { %17752 = vmatpush3.bf16.msra.mxu0 %v21855_v44  ;;  %17723 = vmatprep.mubr.msk.bf16.mxu0 %vm170_vm0, %v21916_v45  ;;  %v12152_v44 = vld [vmem:[#allocation2 + $0x7a] sm:$0xff] }
 0xb2e   : > { %17753 = vmatprep.subr.bf16.mxu0 %v19372_v23  ;;  %v21934_v3 = vpack.c.bf16 %v12153_v58, %v12152_v44  ;;  %v21968_v44 = vpack.c.bf16 %v12171_v18, %v12170_v12  ;;  %v12172_v58 = vld [vmem:[#allocation2 + $0x16a] sm:$0xff]  ;;  %v13687_v12 = vld [vmem:[#allocation2 + $0xe1] sm:$0xff]  ;;  %v13689_v18 = vld [vmem:[#allocation2 + $0xf9] sm:$0xff] }
 0xb2f   : > { %v21974_v17 = vpack.c.bf16 %v12173_v38, %v12172_v58  ;;  %v13686_v58 = vld [vmem:[#allocation2 + $0xd9] sm:$0xff] }
 0xb30   : > { %v13711_v38 = vpack.c.bf16 %v13687_v12, %v13686_v58 }
 0xb31   : > { %17754 = vmatpush3.bf16.msra.mxu0 %v19372_v23  ;;  %v12168_v23 = vld [vmem:[#allocation2 + $0x13a] sm:$0xff] }
 0xb32   : > { %17787 = vmatprep.subr.bf16.mxu0 %v19373_v56  ;;  %v21966_v49 = vpack.c.bf16 %v12169_v15, %v12168_v23  ;;  %v13684_v23 = vld [vmem:[#allocation2 + $0xc1] sm:$0xff] }
 0xb33   : > { %v13710_v15 = vpack.c.bf16 %v13685_v19, %v13684_v23  ;;  %v14334_v19 = vld [vmem:[#allocation3 + $0x50] sm:$0xff] }
 0xb34   : > { %17724 = vmatmul.mubr.msk.bf16.gmra.mrb[68].mxu0 %vm170_vm0, %v21926_v5 }
 0xb35   : > { %17727 = vmatprep.mubr.msk.bf16.mxu0 %vm170_vm0, %v21928_v32 }
 0xb3c   : > { %17728 = vmatmul.mubr.msk.bf16.gmra.mrb[72].mxu0 %vm170_vm0, %v21934_v3 }
 0xb3d   : > { %17731 = vmatprep.mubr.msk.bf16.mxu0 %vm170_vm0, %v21936_v62 }
 0xb44   : > { %17732 = vmatmul.mubr.msk.bf16.gmra.mrb[76].mxu0 %vm170_vm0, %v21942_v10 }
 0xb45   : > { %17735 = vmatprep.mubr.msk.bf16.mxu0 %vm170_vm0, %v21944_v34 }
 0xb4c   : > { %17736 = vmatmul.mubr.msk.bf16.gmra.mrb[80].mxu0 %vm170_vm0, %v21950_v48 }
 0xb4d   : > { %17739 = vmatprep.mubr.msk.bf16.mxu0 %vm170_vm0, %v21952_v40 }
 0xb54   : > { %17740 = vmatmul.mubr.msk.bf16.gmra.mrb[84].mxu0 %vm170_vm0, %v21958_v39 }
 0xb55   : > { %17743 = vmatprep.mubr.msk.bf16.mxu0 %vm170_vm0, %v21960_v43 }
 0xb5c   : > { %17744 = vmatmul.mubr.msk.bf16.gmra.mrb[88].mxu0 %vm170_vm0, %v21966_v49 }
 0xb5d   : > { %17747 = vmatprep.mubr.msk.bf16.mxu0 %vm170_vm0, %v21968_v44 }
 0xb64   : > { %17748 = vmatmul.mubr.msk.bf16.gmra.mrb[92].mxu0 %vm170_vm0, %v21974_v17 }
 0xb65   : > { %17755 = vmatprep.mubr.msk.bf16.mxu0 %vm170_vm0, %v21840_v11  ;;  %v12479_v11 = vld [vmem:[#allocation2 + $0x188] sm:$0xff] }
 0xb6c   : > { %17756 = vmatmul.mubr.msk.bf16.vlgmr.msra.gmra.mrb[64].mxu0 %vm170_vm0, %v21845_v4 }
 0xb6d   : > { %17788 = vmatpush3.bf16.msra.mxu0 %v19373_v56  ;;  %17759 = vmatprep.mubr.msk.bf16.mxu0 %vm170_vm0, %v21857_v31  ;;  %v12478_v56 = vld [vmem:[#allocation2 + $0x180] sm:$0xff] }
 0xb6e   : > { %17789 = vmatprep.subr.bf16.mxu0 %v19374_v9  ;;  %v22014_v25 = vpack.c.bf16 %v12479_v11, %v12478_v56  ;;  %v13691_v11 = vld [vmem:[#allocation2 + $0x111] sm:$0xff]  ;;  %v13690_v56 = vld [vmem:[#allocation2 + $0x109] sm:$0xff] }
 0xb71   : > { %17790 = vmatpush3.bf16.msra.mxu0 %v19374_v9  ;;  %v13688_v9 = vld [vmem:[#allocation2 + $0xf1] sm:$0xff] }
 0xb72   : > { %17823 = vmatprep.subr.bf16.mxu0 %v19375_v2 }
 0xb74   : > { %17760 = vmatmul.mubr.msk.bf16.gmra.mrb[68].mxu0 %vm170_vm0, %v21860_v6 }
 0xb75   : > { %17763 = vmatprep.mubr.msk.bf16.mxu0 %vm170_vm0, %v21866_v52 }
 0xb7c   : > { %17764 = vmatmul.mubr.msk.bf16.gmra.mrb[72].mxu0 %vm170_vm0, %v21868_v59 }
 0xb7d   : > { %17767 = vmatprep.mubr.msk.bf16.mxu0 %vm170_vm0, %v21874_v21 }
 0xb84   : > { %17768 = vmatmul.mubr.msk.bf16.gmra.mrb[76].mxu0 %vm170_vm0, %v21876_v16 }
 0xb85   : > { %17771 = vmatprep.mubr.msk.bf16.mxu0 %vm170_vm0, %v21882_v20 }
 0xb8c   : > { %17772 = vmatmul.mubr.msk.bf16.gmra.mrb[80].mxu0 %vm170_vm0, %v21884_v41 }
 0xb8d   : > { %17775 = vmatprep.mubr.msk.bf16.mxu0 %vm170_vm0, %v21890_v46 }
 0xb94   : > { %17776 = vmatmul.mubr.msk.bf16.gmra.mrb[84].mxu0 %vm170_vm0, %v21892_v60 }
 0xb95   : > { %17779 = vmatprep.mubr.msk.bf16.mxu0 %vm170_vm0, %v21898_v61 }
 0xb9c   : > { %17780 = vmatmul.mubr.msk.bf16.gmra.mrb[88].mxu0 %vm170_vm0, %v21900_v22 }
 0xb9d   : > { %17783 = vmatprep.mubr.msk.bf16.mxu0 %vm170_vm0, %v21906_v47 }
 0xba4   : > { %17784 = vmatmul.mubr.msk.bf16.gmra.mrb[92].mxu0 %vm170_vm0, %v22014_v25 }
 0xba5   : > { %17791 = vmatprep.mubr.msk.bf16.mxu0 %vm170_vm0, %v21722_v8  ;;  %v12785_v8 = vld [vmem:[#allocation2 + $0x189] sm:$0xff] }
 0xbac   : > { %17792 = vmatmul.mubr.msk.bf16.vlgmr.msra.gmra.mrb[64].mxu0 %vm170_vm0, %v21728_v50  ;;  %v12784_v50 = vld [vmem:[#allocation2 + $0x181] sm:$0xff] }
 0xbad   : > { %17824 = vmatpush3.bf16.msra.mxu0 %v19375_v2  ;;  %17795 = vmatprep.mubr.msk.bf16.mxu0 %vm170_vm0, %v21746_v1  ;;  %v22054_v1 = vpack.c.bf16 %v12785_v8, %v12784_v50  ;;  %v13712_v2 = vpack.c.bf16 %v13689_v18, %v13688_v9 }
 0xbae   : > { %17825 = vmatprep.subr.bf16.mxu0 %v19376_v36 }
 0xbb1   : > { %17826 = vmatpush3.bf16.msra.mxu0 %v19376_v36  ;;  %v13702_v36 = vld [vmem:[#allocation2 + $0x199] sm:$0xff] }
 0xbb2   : > { %17859 = vmatprep.subr.bf16.mxu0 %v19377_v14 }
 0xbb4   : > { %17796 = vmatmul.mubr.msk.bf16.gmra.mrb[68].mxu0 %vm170_vm0, %v21750_v63  ;;  %v19378_v63 = vld [vmem:[%s22349_s1 + $0x2a8] sm:$0xff]  }
 0xbb5   : > { %17799 = vmatprep.mubr.msk.bf16.mxu0 %vm170_vm0, %v21763_v26  ;;  %v19379_v26 = vld [vmem:[%s22349_s1 + $0x2b0] sm:$0xff]  }
 0xbbc   : > { %17800 = vmatmul.mubr.msk.bf16.gmra.mrb[72].mxu0 %vm170_vm0, %v21766_v13  ;;  %v13090_v13 = vld [vmem:[#allocation2 + $0x182] sm:$0xff] }
 0xbbd   : > { %17803 = vmatprep.mubr.msk.bf16.mxu0 %vm170_vm0, %v21779_v33  ;;  %v13091_v33 = vld [vmem:[#allocation2 + $0x18a] sm:$0xff] }
 0xbc4   : > { %17804 = vmatmul.mubr.msk.bf16.gmra.mrb[76].mxu0 %vm170_vm0, %v21782_v35  ;;  %v22094_v35 = vpack.c.bf16 %v13091_v33, %v13090_v13 }
 0xbc5   : > { %17807 = vmatprep.mubr.msk.bf16.mxu0 %vm170_vm0, %v21795_v28  ;;  %v19380_v28 = vld [vmem:[%s22349_s1 + $0x2b8] sm:$0xff]  }
 0xbcc   : > { %17808 = vmatmul.mubr.msk.bf16.gmra.mrb[80].mxu0 %vm170_vm0, %v21798_v53  ;;  %v19381_v53 = vld [vmem:[%s22349_s1 + $0x2c0] sm:$0xff]  }
 0xbcd   : > { %17811 = vmatprep.mubr.msk.bf16.mxu0 %vm170_vm0, %v21811_v54  ;;  %v13396_v54 = vld [vmem:[#allocation2 + $0x198] sm:$0xff] }
 0xbd4   : > { %17812 = vmatmul.mubr.msk.bf16.gmra.mrb[84].mxu0 %vm170_vm0, %v21814_v55 }
 0xbd5   : > { %17815 = vmatprep.mubr.msk.bf16.mxu0 %vm170_vm0, %v21827_v42 }
 0xbdc   : > { %17816 = vmatmul.mubr.msk.bf16.gmra.mrb[88].mxu0 %vm170_vm0, %v21829_v24 }
 0xbdd   : > { %17819 = vmatprep.mubr.msk.bf16.mxu0 %vm170_vm0, %v21835_v7 }
 0xbe4   : > { %17820 = vmatmul.mubr.msk.bf16.gmra.mrb[92].mxu0 %vm170_vm0, %v22054_v1 }
 0xbe5   : > { %17827 = vmatprep.mubr.msk.bf16.mxu0 %vm170_vm0, %v21911_v30  ;;  %v13678_v30 = vld [vmem:[#allocation2 + $0x79] sm:$0xff] }
 0xbec   : > { %17828 = vmatmul.mubr.msk.bf16.vlgmr.msra.gmra.mrb[64].mxu0 %vm170_vm0, %v21916_v45 }
 0xbed   : > { %17860 = vmatpush3.bf16.msra.mxu0 %v19377_v14  ;;  %17831 = vmatprep.mubr.msk.bf16.mxu0 %vm170_vm0, %v21926_v5  ;;  %v13703_v14 = vld [vmem:[#allocation2 + $0x1a1] sm:$0xff] }
 0xbee   : > { %17861 = vmatprep.subr.bf16.mxu0 %v19378_v63  ;;  %v13719_v8 = vpack.c.bf16 %v13703_v14, %v13702_v36 }
 0xbf1   : > { %17862 = vmatpush3.bf16.msra.mxu0 %v19378_v63 }
 0xbf2   : > { %17895 = vmatprep.subr.bf16.mxu0 %v19379_v26 }
 0xbf4   : > { %17832 = vmatmul.mubr.msk.bf16.gmra.mrb[68].mxu0 %vm170_vm0, %v21928_v32 }
 0xbf5   : > { %17835 = vmatprep.mubr.msk.bf16.mxu0 %vm170_vm0, %v21934_v3 }
 0xbfc   : > { %17836 = vmatmul.mubr.msk.bf16.gmra.mrb[72].mxu0 %vm170_vm0, %v21936_v62 }
 0xbfd   : > { %17839 = vmatprep.mubr.msk.bf16.mxu0 %vm170_vm0, %v21942_v10 }
 0xc04   : > { %17840 = vmatmul.mubr.msk.bf16.gmra.mrb[76].mxu0 %vm170_vm0, %v21944_v34 }
 0xc05   : > { %17843 = vmatprep.mubr.msk.bf16.mxu0 %vm170_vm0, %v21950_v48 }
 0xc0c   : > { %17844 = vmatmul.mubr.msk.bf16.gmra.mrb[80].mxu0 %vm170_vm0, %v21952_v40 }
 0xc0d   : > { %17847 = vmatprep.mubr.msk.bf16.mxu0 %vm170_vm0, %v21958_v39 }
 0xc14   : > { %17848 = vmatmul.mubr.msk.bf16.gmra.mrb[84].mxu0 %vm170_vm0, %v21960_v43 }
 0xc15   : > { %17851 = vmatprep.mubr.msk.bf16.mxu0 %vm170_vm0, %v21966_v49 }
 0xc1c   : > { %17852 = vmatmul.mubr.msk.bf16.gmra.mrb[88].mxu0 %vm170_vm0, %v21968_v44 }
 0xc1d   : > { %17855 = vmatprep.mubr.msk.bf16.mxu0 %vm170_vm0, %v21974_v17 }
 0xc24   : > { %17856 = vmatmul.mubr.msk.bf16.gmra.mrb[92].mxu0 %vm170_vm0, %v22094_v35 }
 0xc25   : > { %17863 = vmatprep.mubr.msk.bf16.mxu0 %vm170_vm0, %v21845_v4  ;;  %v13397_v4 = vld [vmem:[#allocation2 + $0x1a0] sm:$0xff] }
 0xc2c   : > { %17864 = vmatmul.mubr.msk.bf16.vlgmr.msra.gmra.mrb[64].mxu0 %vm170_vm0, %v21857_v31  ;;  %v13413_v31 = vpack.c.bf16 %v13397_v4, %v13396_v54  ;;  %v14330_v54 = vld [vmem:[#allocation3 + $0x30] sm:$0xff] }
 0xc2d   : > { %17896 = vmatpush3.bf16.msra.mxu0 %v19379_v26  ;;  %17867 = vmatprep.mubr.msk.bf16.mxu0 %vm170_vm0, %v21860_v6  ;;  %v13673_v6 = vld [vmem:[#allocation2 + $0x39] sm:$0xff] }
 0xc2e   : > { %17897 = vmatprep.subr.bf16.mxu0 %v19380_v28 }
 0xc31   : > { %17898 = vmatpush3.bf16.msra.mxu0 %v19380_v28 }
 0xc32   : > { %17931 = vmatprep.subr.bf16.mxu0 %v19381_v53 }
 0xc34   : > { %17868 = vmatmul.mubr.msk.bf16.gmra.mrb[68].mxu0 %vm170_vm0, %v21866_v52  ;;  %v13672_v52 = vld [vmem:[#allocation2 + $0x31] sm:$0xff] }
 0xc35   : > { %17871 = vmatprep.mubr.msk.bf16.mxu0 %vm170_vm0, %v21868_v59  ;;  %v13704_v59 = vpack.c.bf16 %v13673_v6, %v13672_v52  ;;  %v14328_v52 = vld [vmem:[#allocation3 + $0x20] sm:$0xff] }
 0xc3c   : > { %17872 = vmatmul.mubr.msk.bf16.gmra.mrb[72].mxu0 %vm170_vm0, %v21874_v21  ;;  %v13675_v21 = vld [vmem:[#allocation2 + $0x51] sm:$0xff] }
 0xc3d   : > { %17875 = vmatprep.mubr.msk.bf16.mxu0 %vm170_vm0, %v21876_v16  ;;  %v13677_v16 = vld [vmem:[#allocation2 + $0x69] sm:$0xff] }
 0xc44   : > { %17876 = vmatmul.mubr.msk.bf16.gmra.mrb[76].mxu0 %vm170_vm0, %v21882_v20  ;;  %v13674_v20 = vld [vmem:[#allocation2 + $0x49] sm:$0xff] }
 0xc45   : > { %17879 = vmatprep.mubr.msk.bf16.mxu0 %vm170_vm0, %v21884_v41  ;;  %v13705_v41 = vpack.c.bf16 %v13675_v21, %v13674_v20  ;;  %v14331_v20 = vld [vmem:[#allocation3 + $0x38] sm:$0xff] }
 0xc4c   : > { %17880 = vmatmul.mubr.msk.bf16.gmra.mrb[80].mxu0 %vm170_vm0, %v21890_v46  ;;  %v13676_v46 = vld [vmem:[#allocation2 + $0x61] sm:$0xff] }
 0xc4d   : > { %17883 = vmatprep.mubr.msk.bf16.mxu0 %vm170_vm0, %v21892_v60  ;;  %v19382_v60 = vld [vmem:[%s22349_s1 + $0x2c8] sm:$0xff]  }
 0xc54   : > { %17884 = vmatmul.mubr.msk.bf16.gmra.mrb[84].mxu0 %vm170_vm0, %v21898_v61  ;;  %v13706_v61 = vpack.c.bf16 %v13677_v16, %v13676_v46 }
 0xc55   : > { %17887 = vmatprep.mubr.msk.bf16.mxu0 %vm170_vm0, %v21900_v22  ;;  %v13679_v22 = vld [vmem:[#allocation2 + $0x81] sm:$0xff] }
 0xc56   : > { %v13707_v51 = vpack.c.bf16 %v13679_v22, %v13678_v30 }
 0xc5c   : > { %17888 = vmatmul.mubr.msk.bf16.gmra.mrb[88].mxu0 %vm170_vm0, %v21906_v47  ;;  %v13681_v47 = vld [vmem:[#allocation2 + $0x99] sm:$0xff] }
 0xc5d   : > { %17891 = vmatprep.mubr.msk.bf16.mxu0 %vm170_vm0, %v22014_v25  ;;  %v13708_v27 = vpack.c.bf16 %v13681_v47, %v13680_v29  ;;  %v13713_v25 = vpack.c.bf16 %v13691_v11, %v13690_v56  ;;  %v14333_v56 = vld [vmem:[#allocation3 + $0x48] sm:$0xff] }
 0xc64   : > { %17892 = vmatmul.mubr.msk.bf16.gmra.mrb[92].mxu0 %vm170_vm0, %v13413_v31 }
 0xc65   : > { %17899 = vmatprep.mubr.msk.bf16.mxu0 %vm170_vm0, %v13704_v59 }
 0xc6c   : > { %17900 = vmatmul.mubr.msk.bf16.vlgmr.msra.gmra.mrb[64].mxu0 %vm170_vm0, %v13705_v41 }
 0xc6d   : > { %17932 = vmatpush3.bf16.msra.mxu0 %v19381_v53  ;;  %17903 = vmatprep.mubr.msk.bf16.mxu0 %vm170_vm0, %v13706_v61  ;;  %v14329_v61 = vld [vmem:[#allocation3 + $0x28] sm:$0xff] }
 0xc6e   : > { %17933 = vmatprep.subr.bf16.mxu0 %v19382_v60 }
 0xc71   : > { %17934 = vmatpush3.bf16.msra.mxu0 %v19382_v60 }
 0xc74   : > { %17904 = vmatmul.mubr.msk.bf16.gmra.mrb[68].mxu0 %vm170_vm0, %v13707_v51 }
 0xc75   : > { %17907 = vmatprep.mubr.msk.bf16.mxu0 %vm170_vm0, %v13708_v27 }
 0xc7c   : > { %17908 = vmatmul.mubr.msk.bf16.gmra.mrb[72].mxu0 %vm170_vm0, %v13709_v57 }
 0xc7d   : > { %17911 = vmatprep.mubr.msk.bf16.mxu0 %vm170_vm0, %v13710_v15  ;;  %v14332_v15 = vld [vmem:[#allocation3 + $0x40] sm:$0xff] }
 0xc84   : > { %17912 = vmatmul.mubr.msk.bf16.gmra.mrb[76].mxu0 %vm170_vm0, %v13711_v38  ;;  %v14335_v38 = vld [vmem:[#allocation3 + $0x58] sm:$0xff] }
 0xc85   : > { %17915 = vmatprep.mubr.msk.bf16.mxu0 %vm170_vm0, %v13712_v2 }
 0xc8c   : > { %17916 = vmatmul.mubr.msk.bf16.gmra.mrb[80].mxu0 %vm170_vm0, %v13713_v25 }
 0xc8d   : > { %17919 = vmatprep.mubr.msk.bf16.mxu0 %vm170_vm0, %v21814_v55  ;;  %v14008_v55 = vld [vmem:[#allocation2 + $0x19a] sm:$0xff] }
 0xc94   : > { %17920 = vmatmul.mubr.msk.bf16.gmra.mrb[84].mxu0 %vm170_vm0, %v21827_v42  ;;  %v14009_v42 = vld [vmem:[#allocation2 + $0x1a2] sm:$0xff] }
 0xc95   : > { %17923 = vmatprep.mubr.msk.bf16.mxu0 %vm170_vm0, %v21829_v24  ;;  %v14025_v24 = vpack.c.bf16 %v14009_v42, %v14008_v55 }
 0xc9c   : > { %17924 = vmatmul.mubr.msk.bf16.gmra.mrb[88].mxu0 %vm170_vm0, %v21835_v7  ;;  %v22194_v7 = vld [vmem:[%s22350_s2 + $0x4] ss:$0 sm:$0xff] }
 0xc9d   : > { %17927 = vmatprep.mubr.msk.bf16.mxu0 %vm170_vm0, %v22054_v1  ;;  %v14325_v1 = vld [vmem:[#allocation3 + $0x8] sm:$0xff] }
 0xca4   : > { %17928 = vmatmul.mubr.msk.bf16.gmra.mrb[92].mxu0 %vm170_vm0, %v13719_v8 }
 0xca5   : > { %17935 = vmatprep.mubr.msk.bf16.mxu0 %vm170_vm0, %v21916_v45 }
 0xcac   : > { %17936 = vmatmul.mubr.msk.bf16.vlgmr.msra.gmra.mrb[64].mxu0 %vm170_vm0, %v21926_v5 }
 0xcad   : > { %17939 = vmatprep.mubr.msk.bf16.mxu0 %vm170_vm0, %v21928_v32 }
 0xcb4   : > { %17940 = vmatmul.mubr.msk.bf16.gmra.mrb[68].mxu0 %vm170_vm0, %v21934_v3  ;;  %v14326_v3 = vld [vmem:[#allocation3 + $0x10] sm:$0xff] }
 0xcb5   : > { %17943 = vmatprep.mubr.msk.bf16.mxu0 %vm170_vm0, %v21936_v62 }
 0xcbc   : > { %17944 = vmatmul.mubr.msk.bf16.gmra.mrb[72].mxu0 %vm170_vm0, %v21942_v10 }
 0xcbd   : > { %17947 = vmatprep.mubr.msk.bf16.mxu0 %vm170_vm0, %v21944_v34 }
 0xcc4   : > { %17948 = vmatmul.mubr.msk.bf16.gmra.mrb[76].mxu0 %vm170_vm0, %v21950_v48  ;;  %v14324_v48 = vld [vmem:[#allocation3] sm:$0xff] }
 0xcc5   : > { %17951 = vmatprep.mubr.msk.bf16.mxu0 %vm170_vm0, %v21952_v40 }
 0xccc   : > { %17952 = vmatmul.mubr.msk.bf16.gmra.mrb[80].mxu0 %vm170_vm0, %v21958_v39 }
 0xccd   : > { %17955 = vmatprep.mubr.msk.bf16.mxu0 %vm170_vm0, %v21960_v43 }
 0xcd4   : > { %17956 = vmatmul.mubr.msk.bf16.gmra.mrb[84].mxu0 %vm170_vm0, %v21966_v49  ;;  %v14327_v49 = vld [vmem:[#allocation3 + $0x18] sm:$0xff] }
 0xcd5   : > { %17959 = vmatprep.mubr.msk.bf16.mxu0 %vm170_vm0, %v21968_v44 }
 0xcdc   : > { %17960 = vmatmul.mubr.msk.bf16.gmra.mrb[88].mxu0 %vm170_vm0, %v21974_v17 }
 0xcdd   : > { %17963 = vmatprep.mubr.msk.bf16.mxu0 %vm170_vm0, %v22094_v35 }
 0xce4   : > { %17964 = vmatmul.mubr.msk.bf16.gmra.mrb[92].mxu0 %vm170_vm0, %v14025_v24 }
 0xd7f   : > { %v17937_v45 = vpop.f32.mrb[64].mxu0 }
 0xd80   : > { %v14294_v5 = vadd.f32 %v17937_v45, %v22194_v7  ;;  %v14125_v32 = vpop.f32.mrb[65].mxu0  ;;  %v14338_v45 = vld [vmem:[#allocation3 + $0x70] sm:$0xff] }
 0xd81   : > { %v14292_v62 = vadd.f32 %v22194_v7, %v14125_v32  ;;  %v17938_v10 = vpop.f32.mrb[66].mxu0 }
 0xd82   : > { %v14358_v34 = vadd.f32 %v14326_v3, %v14294_v5  ;;  %v14295_v40 = vadd.f32 %v17938_v10, %v22194_v7  ;;  %v14128_v39 = vpop.f32.mrb[67].mxu0 }
 0xd83   : > { %v14356_v43 = vadd.f32 %v14324_v48, %v14292_v62  ;;  %v14293_v44 = vadd.f32 %v22194_v7, %v14128_v39  ;;  %v14336_v62 = vld [vmem:[#allocation3 + $0x60] sm:$0xff] }
 0xd84   : > { %v14390_v17 = vmax.f32 %v14358_v34, 0.0  ;;  %v14359_v50 = vadd.f32 %v14327_v49, %v14295_v40  ;;  %v14339_v40 = vld [vmem:[#allocation3 + $0x78] sm:$0xff] }
 0xd85   : > { %v14388_v63 = vmax.f32 %v14356_v43, 0.0  ;;  %v14357_v26 = vadd.f32 %v14325_v1, %v14293_v44  ;;  %v14337_v44 = vld [vmem:[#allocation3 + $0x68] sm:$0xff] }
 0xd86   : > { %14422 = vst.msk [vmem:[%s22202_s27 + $0x10] sm:$0xff] %vm170_vm0, %v14390_v17  ;;  %v14391_v13 = vmax.f32 %v14359_v50, 0.0 }
 0xd87   : > { %14420 = vst.msk [vmem:[%s22202_s27] sm:$0xff] %vm170_vm0, %v14388_v63  ;;  %v14389_v33 = vmax.f32 %v14357_v26, 0.0  ;;  %v17941_v35 = vpop.f32.mrb[68].mxu0 }
 0xd88   : > { %14423 = vst.msk [vmem:[%s22202_s27 + $0x18] sm:$0xff] %vm170_vm0, %v14391_v13  ;;  %v14298_v28 = vadd.f32 %v17941_v35, %v22194_v7  ;;  %v14141_v53 = vpop.f32.mrb[69].mxu0  ;;  %v14342_v35 = vld [vmem:[#allocation3 + $0x90] sm:$0xff] }
 0xd89   : > { %14421 = vst.msk [vmem:[%s22202_s27 + $0x8] sm:$0xff] %vm170_vm0, %v14389_v33  ;;  %v14296_v4 = vadd.f32 %v22194_v7, %v14141_v53  ;;  %v17942_v31 = vpop.f32.mrb[70].mxu0 }
 0xd8a   : > { %v14362_v6 = vadd.f32 %v14330_v54, %v14298_v28  ;;  %v14299_v59 = vadd.f32 %v17942_v31, %v22194_v7  ;;  %v14144_v21 = vpop.f32.mrb[71].mxu0 }
 0xd8b   : > { %v14360_v16 = vadd.f32 %v14328_v52, %v14296_v4  ;;  %v14297_v41 = vadd.f32 %v22194_v7, %v14144_v21  ;;  %v14340_v4 = vld [vmem:[#allocation3 + $0x80] sm:$0xff] }
 0xd8c   : > { %v14394_v46 = vmax.f32 %v14362_v6, 0.0  ;;  %v14363_v60 = vadd.f32 %v14331_v20, %v14299_v59  ;;  %v14343_v59 = vld [vmem:[#allocation3 + $0x98] sm:$0xff] }
 0xd8d   : > { %v14392_v22 = vmax.f32 %v14360_v16, 0.0  ;;  %v14361_v47 = vadd.f32 %v14329_v61, %v14297_v41  ;;  %v14341_v41 = vld [vmem:[#allocation3 + $0x88] sm:$0xff] }
 0xd8e   : > { %14426 = vst.msk [vmem:[%s22202_s27 + $0x30] sm:$0xff] %vm170_vm0, %v14394_v46  ;;  %v14395_v30 = vmax.f32 %v14363_v60, 0.0 }
 0xd8f   : > { %14424 = vst.msk [vmem:[%s22202_s27 + $0x20] sm:$0xff] %vm170_vm0, %v14392_v22  ;;  %v14393_v51 = vmax.f32 %v14361_v47, 0.0  ;;  %v17945_v29 = vpop.f32.mrb[72].mxu0 }
 0xd90   : > { %14427 = vst.msk [vmem:[%s22202_s27 + $0x38] sm:$0xff] %vm170_vm0, %v14395_v30  ;;  %v14302_v27 = vadd.f32 %v17945_v29, %v22194_v7  ;;  %v14157_v37 = vpop.f32.mrb[73].mxu0  ;;  %v14346_v29 = vld [vmem:[#allocation3 + $0xb0] sm:$0xff] }
 0xd91   : > { %14425 = vst.msk [vmem:[%s22202_s27 + $0x28] sm:$0xff] %vm170_vm0, %v14393_v51  ;;  %v14300_v0 = vadd.f32 %v22194_v7, %v14157_v37  ;;  %v17946_v57 = vpop.f32.mrb[74].mxu0 }
 0xd92   : > { %v14366_v23 = vadd.f32 %v14334_v19, %v14302_v27  ;;  %v14303_v12 = vadd.f32 %v17946_v57, %v22194_v7  ;;  %v14160_v18 = vpop.f32.mrb[75].mxu0 }
 0xd93   : > { %v14364_v58 = vadd.f32 %v14332_v15, %v14300_v0  ;;  %v14301_v9 = vadd.f32 %v22194_v7, %v14160_v18  ;;  %v14344_v0 = vld [vmem:[#allocation3 + $0xa0] sm:$0xff] }
 0xd94   : > { %v14398_v2 = vmax.f32 %v14366_v23, 0.0  ;;  %v14367_v11 = vadd.f32 %v14335_v38, %v14303_v12  ;;  %v14347_v12 = vld [vmem:[#allocation3 + $0xb8] sm:$0xff] }
 0xd95   : > { %v14396_v25 = vmax.f32 %v14364_v58, 0.0  ;;  %v14365_v36 = vadd.f32 %v14333_v56, %v14301_v9  ;;  %v14345_v9 = vld [vmem:[#allocation3 + $0xa8] sm:$0xff] }
 0xd96   : > { %14430 = vst.msk [vmem:[%s22202_s27 + $0x50] sm:$0xff] %vm170_vm0, %v14398_v2  ;;  %v14399_v14 = vmax.f32 %v14367_v11, 0.0 }
 0xd97   : > { %14428 = vst.msk [vmem:[%s22202_s27 + $0x40] sm:$0xff] %vm170_vm0, %v14396_v25  ;;  %v14397_v8 = vmax.f32 %v14365_v36, 0.0  ;;  %v17949_v55 = vpop.f32.mrb[76].mxu0 }
 0xd98   : > { %14431 = vst.msk [vmem:[%s22202_s27 + $0x58] sm:$0xff] %vm170_vm0, %v14399_v14  ;;  %v14306_v42 = vadd.f32 %v17949_v55, %v22194_v7  ;;  %v14173_v24 = vpop.f32.mrb[77].mxu0  ;;  %v14350_v55 = vld [vmem:[#allocation3 + $0xd0] sm:$0xff] }
 0xd99   : > { %14429 = vst.msk [vmem:[%s22202_s27 + $0x48] sm:$0xff] %vm170_vm0, %v14397_v8  ;;  %v14304_v5 = vadd.f32 %v22194_v7, %v14173_v24  ;;  %v17950_v32 = vpop.f32.mrb[78].mxu0 }
 0xd9a   : > { %v14370_v3 = vadd.f32 %v14338_v45, %v14306_v42  ;;  %v14307_v10 = vadd.f32 %v17950_v32, %v22194_v7  ;;  %v14176_v34 = vpop.f32.mrb[79].mxu0 }
 0xd9b   : > { %v14368_v48 = vadd.f32 %v14336_v62, %v14304_v5  ;;  %v14305_v39 = vadd.f32 %v22194_v7, %v14176_v34  ;;  %v14348_v5 = vld [vmem:[#allocation3 + $0xc0] sm:$0xff] }
 0xd9c   : > { %v14402_v43 = vmax.f32 %v14370_v3, 0.0  ;;  %v14371_v49 = vadd.f32 %v14339_v40, %v14307_v10  ;;  %v14351_v10 = vld [vmem:[#allocation3 + $0xd8] sm:$0xff] }
 0xd9d   : > { %v14400_v17 = vmax.f32 %v14368_v48, 0.0  ;;  %v14369_v50 = vadd.f32 %v14337_v44, %v14305_v39  ;;  %v14349_v39 = vld [vmem:[#allocation3 + $0xc8] sm:$0xff] }
 0xd9e   : > { %14434 = vst.msk [vmem:[%s22202_s27 + $0x70] sm:$0xff] %vm170_vm0, %v14402_v43  ;;  %v14403_v1 = vmax.f32 %v14371_v49, 0.0 }
 0xd9f   : > { %14432 = vst.msk [vmem:[%s22202_s27 + $0x60] sm:$0xff] %vm170_vm0, %v14400_v17  ;;  %v14401_v63 = vmax.f32 %v14369_v50, 0.0  ;;  %v17953_v26 = vpop.f32.mrb[80].mxu0 }
 0xda0   : > { %14435 = vst.msk [vmem:[%s22202_s27 + $0x78] sm:$0xff] %vm170_vm0, %v14403_v1  ;;  %v14310_v13 = vadd.f32 %v17953_v26, %v22194_v7  ;;  %v14189_v33 = vpop.f32.mrb[81].mxu0  ;;  %v14354_v26 = vld [vmem:[#allocation3 + $0xf0] sm:$0xff] }
 0xda1   : > { %14433 = vst.msk [vmem:[%s22202_s27 + $0x68] sm:$0xff] %vm170_vm0, %v14401_v63  ;;  %v14308_v28 = vadd.f32 %v22194_v7, %v14189_v33  ;;  %v17954_v53 = vpop.f32.mrb[82].mxu0 }
 0xda2   : > { %v14374_v54 = vadd.f32 %v14342_v35, %v14310_v13  ;;  %v14311_v31 = vadd.f32 %v17954_v53, %v22194_v7  ;;  %v14192_v6 = vpop.f32.mrb[83].mxu0 }
 0xda3   : > { %v14372_v52 = vadd.f32 %v14340_v4, %v14308_v28  ;;  %v14309_v21 = vadd.f32 %v22194_v7, %v14192_v6  ;;  %v14352_v28 = vld [vmem:[#allocation3 + $0xe0] sm:$0xff] }
 0xda4   : > { %v14406_v16 = vmax.f32 %v14374_v54, 0.0  ;;  %v14375_v20 = vadd.f32 %v14343_v59, %v14311_v31  ;;  %v14355_v31 = vld [vmem:[#allocation3 + $0xf8] sm:$0xff] }
 0xda5   : > { %v14404_v46 = vmax.f32 %v14372_v52, 0.0  ;;  %v14373_v60 = vadd.f32 %v14341_v41, %v14309_v21  ;;  %v14353_v21 = vld [vmem:[#allocation3 + $0xe8] sm:$0xff] }
 0xda6   : > { %14438 = vst.msk [vmem:[%s22202_s27 + $0x90] sm:$0xff] %vm170_vm0, %v14406_v16  ;;  %v14407_v61 = vmax.f32 %v14375_v20, 0.0 }
 0xda7   : > { %14436 = vst.msk [vmem:[%s22202_s27 + $0x80] sm:$0xff] %vm170_vm0, %v14404_v46  ;;  %v14405_v22 = vmax.f32 %v14373_v60, 0.0  ;;  %v17957_v47 = vpop.f32.mrb[84].mxu0 }
 0xda8   : > { %14439 = vst.msk [vmem:[%s22202_s27 + $0x98] sm:$0xff] %vm170_vm0, %v14407_v61  ;;  %v14314_v30 = vadd.f32 %v17957_v47, %v22194_v7  ;;  %v14205_v51 = vpop.f32.mrb[85].mxu0 }
 0xda9   : > { %14437 = vst.msk [vmem:[%s22202_s27 + $0x88] sm:$0xff] %vm170_vm0, %v14405_v22  ;;  %v14312_v27 = vadd.f32 %v22194_v7, %v14205_v51  ;;  %v17958_v37 = vpop.f32.mrb[86].mxu0 }
 0xdaa   : > { %v14378_v19 = vadd.f32 %v14346_v29, %v14314_v30  ;;  %v14315_v57 = vadd.f32 %v17958_v37, %v22194_v7  ;;  %v14208_v23 = vpop.f32.mrb[87].mxu0 }
 0xdab   : > { %v14376_v15 = vadd.f32 %v14344_v0, %v14312_v27  ;;  %v14313_v18 = vadd.f32 %v22194_v7, %v14208_v23 }
 0xdac   : > { %v14410_v58 = vmax.f32 %v14378_v19, 0.0  ;;  %v14379_v38 = vadd.f32 %v14347_v12, %v14315_v57 }
 0xdad   : > { %v14408_v2 = vmax.f32 %v14376_v15, 0.0  ;;  %v14377_v11 = vadd.f32 %v14345_v9, %v14313_v18 }
 0xdae   : > { %14442 = vst.msk [vmem:[%s22202_s27 + $0xb0] sm:$0xff] %vm170_vm0, %v14410_v58  ;;  %v14411_v56 = vmax.f32 %v14379_v38, 0.0 }
 0xdaf   : > { %14440 = vst.msk [vmem:[%s22202_s27 + $0xa0] sm:$0xff] %vm170_vm0, %v14408_v2  ;;  %v14409_v25 = vmax.f32 %v14377_v11, 0.0  ;;  %v17961_v36 = vpop.f32.mrb[88].mxu0 }
 0xdb0   : > { %14443 = vst.msk [vmem:[%s22202_s27 + $0xb8] sm:$0xff] %vm170_vm0, %v14411_v56  ;;  %v14318_v14 = vadd.f32 %v17961_v36, %v22194_v7  ;;  %v14221_v8 = vpop.f32.mrb[89].mxu0 }
 0xdb1   : > { %14441 = vst.msk [vmem:[%s22202_s27 + $0xa8] sm:$0xff] %vm170_vm0, %v14409_v25  ;;  %v14316_v42 = vadd.f32 %v22194_v7, %v14221_v8  ;;  %v17962_v24 = vpop.f32.mrb[90].mxu0 }
 0xdb2   : > { %v14382_v45 = vadd.f32 %v14350_v55, %v14318_v14  ;;  %v14319_v32 = vadd.f32 %v17962_v24, %v22194_v7  ;;  %v14224_v3 = vpop.f32.mrb[91].mxu0 }
 0xdb3   : > { %v14380_v62 = vadd.f32 %v14348_v5, %v14316_v42  ;;  %v14317_v34 = vadd.f32 %v22194_v7, %v14224_v3 }
 0xdb4   : > { %v14414_v48 = vmax.f32 %v14382_v45, 0.0  ;;  %v14383_v40 = vadd.f32 %v14351_v10, %v14319_v32 }
 0xdb5   : > { %v14412_v43 = vmax.f32 %v14380_v62, 0.0  ;;  %v14381_v49 = vadd.f32 %v14349_v39, %v14317_v34 }
 0xdb6   : > { %14446 = vst.msk [vmem:[%s22202_s27 + $0xd0] sm:$0xff] %vm170_vm0, %v14414_v48  ;;  %v14415_v44 = vmax.f32 %v14383_v40, 0.0 }
 0xdb7   : > { %14444 = vst.msk [vmem:[%s22202_s27 + $0xc0] sm:$0xff] %vm170_vm0, %v14412_v43  ;;  %v14413_v17 = vmax.f32 %v14381_v49, 0.0  ;;  %v17965_v50 = vpop.f32.mrb[92].mxu0 }
 0xdb8   : > { %14447 = vst.msk [vmem:[%s22202_s27 + $0xd8] sm:$0xff] %vm170_vm0, %v14415_v44  ;;  %v14322_v1 = vadd.f32 %v17965_v50, %v22194_v7  ;;  %v14237_v63 = vpop.f32.mrb[93].mxu0 }
 0xdb9   : > { %14445 = vst.msk [vmem:[%s22202_s27 + $0xc8] sm:$0xff] %vm170_vm0, %v14413_v17  ;;  %v14320_v13 = vadd.f32 %v22194_v7, %v14237_v63  ;;  %v17966_v33 = vpop.f32.mrb[94].mxu0 }
 0xdba   : > { %v14386_v35 = vadd.f32 %v14354_v26, %v14322_v1  ;;  %v14323_v53 = vadd.f32 %v17966_v33, %v22194_v7  ;;  %v14240_v54 = vpop.f32.mrb[95].mxu0 }
 0xdbb   : > { %v14384_v4 = vadd.f32 %v14352_v28, %v14320_v13  ;;  %v14321_v6 = vadd.f32 %v22194_v7, %v14240_v54 }
 0xdbc   : > { %v14418_v52 = vmax.f32 %v14386_v35, 0.0  ;;  %v14387_v59 = vadd.f32 %v14355_v31, %v14323_v53 }
 0xdbd   : > { %v14416_v16 = vmax.f32 %v14384_v4, 0.0  ;;  %v14385_v20 = vadd.f32 %v14353_v21, %v14321_v6 }
 0xdbe   : > { %14450 = vst.msk [vmem:[%s22202_s27 + $0xf0] sm:$0xff] %vm170_vm0, %v14418_v52  ;;  %v14419_v41 = vmax.f32 %v14387_v59, 0.0 }
 0xdbf   : > { %14448 = vst.msk [vmem:[%s22202_s27 + $0xe0] sm:$0xff] %vm170_vm0, %v14416_v16  ;;  %v14417_v7 = vmax.f32 %v14385_v20, 0.0 }
 0xdc0   : > { %14451 = vst.msk [vmem:[%s22202_s27 + $0xf8] sm:$0xff] %vm170_vm0, %v14419_v41 }
 0xdc1   : > { %14449 = vst.msk [vmem:[%s22202_s27 + $0xe8] sm:$0xff] %vm170_vm0, %v14417_v7 }
 0xdc2   : > { %19398 = shalt.err (!%p19395_p3)
}
 0xdc3   : > { %s19399_s10 = scalar_lea.hbm %s22295_s5, 4096  ;;  %s19403_s19 = scalar_lea.hbm %s22351_s3, 8192 }
 0xdc4   : > { %p19400_p4 = scmp.ne.s32.totalorder %s22295_s5, %s19399_s10  ;;  %p19404_p9 = scmp.lt.u32.totalorder %s22295_s5, %s22351_s3 }
 0xdc5   : > { %p19405_p10 = scmp.lt.u32.totalorder %s19403_s19, %s19399_s10  ;;  %p19407_p12 = scmp.lt.u32.totalorder %s19399_s10, %s22295_s5 }
 0xdc6   : > { %p19401_p7 = pnand %p19400_p4, %p19511_p5 }
 0xdc7   : > { %p19406_p11 = por %p19405_p10, %p19404_p9 }
 0xdc8   : > { %p19402_p8 = pneg %p19401_p7 }
 0xdc9   : > { %p19408_p13 = por %p19407_p12, %p19406_p11 }
 0xdcb   : > { %p19409_p0 = pnand %p19408_p13, %p19402_p8 }
 0xdcd   : > { %19412 = shalt.err (!%p19409_p0)
}
 0xdce   : > { %s19451_s25 = smov 128   ;;  %s19452_s26 = smov 8  }
 0xdcf   : > { %19251 = dma.vmem_to_hbm [thread:$0]  (%p19511_p5), %s22297_s29, 4096, %s22295_s5, %s22307_s16, %s19451_s25, %s19451_s25, %s19452_s26  }
 0xdd0 PF: > { %p19257_p1 = scmp.ge.s32.totalorder %s19447_s15, 2  ;;  %s14481_s27 = sand.u32 1, %s19435_s12  }
 0xdd1   : > { %s14482_s28 = scalar_lea.sflag [#allocation5], %s14481_s27 }
 0xdd2   : > { %p19254_p2 = pnand %p19257_p1, %p19515_p6 }
 0xdd4   : > { %19430 = dma.done.wait (!%p19254_p2), %s14482_s28, 4096  }
 0xdd5   : > { %19432 = vsyncadd (!%p19254_p2), %s14482_s28, 4294963200  ;;  %p13_p3 = scmp.ge.s32.totalorder %s19498_s18, 4   ;;  %s22354_s12 = smov %s19439_s13 }
 0xdd6   : > { %s22355_s13 = smov %s19443_s14  ;;  %s22356_s14 = smov %s19509_s21 }
 0xdd7   : > { %s22357_s15 = smov %s19498_s18  ;;  %15 = sbr.rel (!%p13_p3) target bundleno = 3 (0x3), region = 117 }
 0xdde   :  { %14487 = vsyncpa [#allocation5], 1 }
 0xddf   :  { %14489 = vsyncpa [#allocation5 + $0x1], 1 }

</bundles_post_ra>
